<compile_context>
chip_gen: v7x
topology: tpu7x:2x2x1
jax: 0.10.0
libtpu: 0.0.40
codegen_flags: <defaults>
</compile_context>

<pallas_src>
import functools

import jax
import jax.numpy as jnp
import numpy as np
from jax.experimental import pallas as pl
from jax.experimental.pallas import tpu as pltpu


# ---------------------------------------------------------------------------
# Constant permutation matrix, cached per geometry (review: no per-call rebuild
# or re-upload).  Under jit it becomes a compile-time constant.
# ---------------------------------------------------------------------------
@functools.lru_cache(maxsize=None)
def _patchify_perm_np(C, H, W, n_patches):
    """(D, D) 0/1 matrix P such that out_flat = in_flat @ P == torch patchify."""
    ps = H // n_patches
    F = C * ps * ps
    D = C * H * W
    src = np.arange(D)
    c = src // (H * W)
    rem = src % (H * W)
    h = rem // W
    w = rem % W
    i, r = h // ps, h % ps
    j, col = w // ps, w % ps
    dst = (i * n_patches + j) * F + c * (ps * ps) + r * ps + col
    perm = np.zeros((D, D), dtype=np.float32)
    perm[src, dst] = 1.0
    return perm


# ---------------------------------------------------------------------------
# Kernels
# ---------------------------------------------------------------------------
def _patchify_kernel_f32(x_ref, perm_ref, o_ref):
    # x_ref: (block_n, D) f32   perm_ref: (D, D) bf16 0/1   o_ref: (block_n, D) f32
    x = x_ref[...]
    p = perm_ref[...]
    # Exact Dekker-style split: x == hi + mid + lo (3 x 8 mantissa bits).
    x_hi = x.astype(jnp.bfloat16)
    r1 = x - x_hi.astype(jnp.float32)
    x_mid = r1.astype(jnp.bfloat16)
    x_lo = (r1 - x_mid.astype(jnp.float32)).astype(jnp.bfloat16)
    # Three DEFAULT-precision bf16 MXU passes, f32 accumulation: bit-exact here
    # because each output lane is a single x_chunk[src] * 1.0 term.
    acc = jnp.dot(x_hi, p, preferred_element_type=jnp.float32)
    acc = acc + jnp.dot(x_mid, p, preferred_element_type=jnp.float32)
    acc = acc + jnp.dot(x_lo, p, preferred_element_type=jnp.float32)
    o_ref[...] = acc.astype(o_ref.dtype)


def _patchify_kernel_bf16(x_ref, perm_ref, o_ref):
    out = jnp.dot(x_ref[...], perm_ref[...], preferred_element_type=jnp.float32)
    o_ref[...] = out.astype(o_ref.dtype)


# ---------------------------------------------------------------------------
# Batch blocking
# ---------------------------------------------------------------------------
def _round_up(x, m):
    return ((x + m - 1) // m) * m


def _pick_batch_blocking(n, max_block_rows):
    """Rows per grid step and padded batch size.

    Review applied:
      * tiny batches (< 16): one full-extent block, NO padding (block dims equal
        to the full array dims are always legal);
      * otherwise: largest block <= cap (multiple of 8), padding n up to a block
        multiple instead of degrading to 8-row blocks for awkward n;
      * batches >= 16 always get >= 2 grid steps so the "parallel" batch axis can
        shard across v7x's two TensorCores.
    """
    cap = max(8, (max_block_rows // 8) * 8)
    if n < 16:
        return n, n
    n8 = _round_up(n, 8)
    block = min(cap, n8)
    if block == n8:                       # would collapse to a single grid step
        block = _round_up(n8 // 2, 8)
    n_pad = _round_up(n, block)
    return block, n_pad


# ---------------------------------------------------------------------------
# Wrapper
# ---------------------------------------------------------------------------
@functools.partial(jax.jit, static_argnames=("n_patches", "max_block_rows"))
def patchify_pallas(images, n_patches, max_block_rows=512):
    """Pallas equivalent of MyViT.forward (== patchify).

    Default block cap (512 rows) and VMEM budget are sized for v7x's 64 MiB VMEM;
    on v5e/v6e (128 MiB VMEM) passing max_block_rows=1024 amortizes per-step
    overhead further.
    """
    N, C, H, W = images.shape
    assert H == W, "Patchify method is implemented for square images only"
    assert H % n_patches == 0 and W % n_patches == 0
    ps = H // n_patches
    P = n_patches * n_patches
    F = C * ps * ps
    D = C * H * W                          # == P * F, multiple of 128 lanes

    if images.dtype == jnp.bfloat16:
        compute_dtype, kernel, passes = jnp.bfloat16, _patchify_kernel_bf16, 1
    else:
        # torch's patchify always produces float32; non-f32 inputs go through
        # the exact f32 path.
        images = images.astype(jnp.float32)
        compute_dtype, kernel, passes = jnp.float32, _patchify_kernel_f32, 3
    itemsize = jnp.dtype(compute_dtype).itemsize

    # Lane-dense, free (row-major metadata) flatten of the NCHW input.
    x_flat = images.reshape(N, D)

    block_n, n_pad = _pick_batch_blocking(N, max_block_rows)
    if n_pad != N:
        # Only emitted when N isn't already a block multiple; the whole wrapper
        # is jitted so pad / slice / reshape stay inside one XLA program.
        x_flat = jnp.pad(x_flat, ((0, n_pad - N), (0, 0)))
    grid_n = n_pad // block_n

    perm = jnp.asarray(_patchify_perm_np(C, H, W, n_patches), dtype=jnp.bfloat16)

    # VMEM budget: double-buffered in/out blocks + double-buffered bf16 perm +
    # kernel temporaries, with ~1.5x slack.  (The perm's constant index_map means
    # it is DMAed only once; single-buffering it via pl.Buffered(1) was skipped
    # since the budget below already has ample headroom on all generations.)
    vmem_need = 2 * 2 * block_n * D * itemsize        # in + out, double-buffered
    vmem_need += 2 * D * D * 2                        # bf16 perm, double-buffered
    vmem_need += 6 * block_n * D * 4                  # split chunks + f32 accum
    vmem_limit = int(min(100 * 2**20, max(32 * 2**20, vmem_need * 3 // 2)))

    cost = pl.CostEstimate(
        flops=2 * passes * n_pad * D * D,
        transcendentals=0,
        bytes_accessed=2 * n_pad * D * itemsize + D * D * 2,
    )

    out_flat = pl.pallas_call(
        kernel,
        out_shape=jax.ShapeDtypeStruct((n_pad, D), compute_dtype),
        grid=(grid_n,),
        in_specs=[
            pl.BlockSpec((block_n, D), lambda n: (n, 0)),
            pl.BlockSpec((D, D), lambda n: (0, 0)),   # constant block: fetched once
        ],
        out_specs=pl.BlockSpec((block_n, D), lambda n: (n, 0)),
        compiler_params=pltpu.CompilerParams(
            dimension_semantics=("parallel",),
            vmem_limit_bytes=vmem_limit,
        ),
        cost_estimate=cost,
    )(x_flat, perm)

    out_flat = out_flat[:N] if n_pad != N else out_flat
    return out_flat.reshape(N, P, F)


class MyViTPallas:
    """Mirror of the PyTorch MyViT module (no learnable parameters)."""

    def __init__(self, chw=(4, 16, 16), n_patches=4):
        self.chw = chw
        self.n_patches = n_patches
        assert chw[1] % n_patches == 0, "Input shape not entirely divisible by number of patches"
        assert chw[2] % n_patches == 0, "Input shape not entirely divisible by number of patches"

    def __call__(self, images):
        return patchify_pallas(images, n_patches=self.n_patches)


def patchify_reference(images, n_patches):
    """Pure numpy reference replicating the PyTorch loop semantics."""
    n, c, h, w = images.shape
    ps = h // n_patches
    out = np.zeros((n, n_patches ** 2, h * w * c // n_patches ** 2), dtype=np.float32)
    for idx in range(n):
        for i in range(n_patches):
            for j in range(n_patches):
                patch = images[idx, :, i * ps:(i + 1) * ps, j * ps:(j + 1) * ps]
                out[idx, i * n_patches + j] = patch.reshape(-1)
    return out


if __name__ == "__main__":
    # Small shapes consistent with the module: batch=2, C=4, H=W=16, n_patches=4
    key = jax.random.PRNGKey(0)
    N, C, H, W = 2, 4, 16, 16
    n_patches = 4
    x = jax.random.normal(key, (N, C, H, W), dtype=jnp.float32)

    model = MyViTPallas(chw=(C, H, W), n_patches=n_patches)
    out = jax.block_until_ready(model(x))

    ref = patchify_reference(np.asarray(x), n_patches)
    assert out.shape == ref.shape, (out.shape, ref.shape)
    # The 3x-bf16 split reconstructs normal f32 values exactly; tight tolerance
    # (far below bf16's ~1e-2) validates the multi-pass decomposition.
    np.testing.assert_allclose(np.asarray(out), ref, rtol=1e-6, atol=1e-6)

    print("KERNEL_OK")
</pallas_src>

<mosaic_0001>
module attributes {stable_mosaic.version = 11 : i64} {
  func.func @_patchify_kernel_f32(%arg0: i32, %arg1: memref<2x1024xf32, #tpu.memory_space<vmem>>, %arg2: memref<1024x1024xbf16, #tpu.memory_space<vmem>>, %arg3: memref<2x1024xf32, #tpu.memory_space<vmem>>) attributes {dimension_semantics = [#tpu.dimension_semantics<parallel>], iteration_bounds = array<i64: 1>, scalar_prefetch = 0 : i64, scratch_operands = 0 : i64, tpu.core_type = #tpu.core_type<tc>, window_params = [{transform_indices = @transform_0, window_bounds = array<i64: 2, 1024>}, {pipeline_mode = #tpu.pipeline_mode<synchronous>, transform_indices = @transform_1, window_bounds = array<i64: 1024, 1024>}, {transform_indices = @transform_2, window_bounds = array<i64: 2, 1024>}]} {
    %c0 = arith.constant 0 : index
    %c0_0 = arith.constant 0 : index
    %0 = vector.load %arg1[%c0, %c0_0] : memref<2x1024xf32, #tpu.memory_space<vmem>>, vector<2x1024xf32>
    %c0_1 = arith.constant 0 : index
    %c0_2 = arith.constant 0 : index
    %1 = vector.load %arg2[%c0_1, %c0_2] : memref<1024x1024xbf16, #tpu.memory_space<vmem>>, vector<1024x1024xbf16>
    %2 = arith.truncf %0 : vector<2x1024xf32> to vector<2x1024xbf16>
    %3 = arith.extf %2 : vector<2x1024xbf16> to vector<2x1024xf32>
    %4 = arith.subf %0, %3 : vector<2x1024xf32>
    %5 = arith.truncf %4 : vector<2x1024xf32> to vector<2x1024xbf16>
    %6 = arith.extf %5 : vector<2x1024xbf16> to vector<2x1024xf32>
    %7 = arith.subf %4, %6 : vector<2x1024xf32>
    %8 = arith.truncf %7 : vector<2x1024xf32> to vector<2x1024xbf16>
    %cst = arith.constant dense<0.000000e+00> : vector<2x1024xf32>
    %9 = tpu.matmul %2, %1, %cst {dimension_numbers = #tpu.dot_dimension_numbers<[1], [0], [0], [1], [0, 0, 1, 1], [], []>} : vector<2x1024xbf16>, vector<1024x1024xbf16>, vector<2x1024xf32> -> vector<2x1024xf32>
    %cst_3 = arith.constant dense<0.000000e+00> : vector<2x1024xf32>
    %10 = tpu.matmul %5, %1, %cst_3 {dimension_numbers = #tpu.dot_dimension_numbers<[1], [0], [0], [1], [0, 0, 1, 1], [], []>} : vector<2x1024xbf16>, vector<1024x1024xbf16>, vector<2x1024xf32> -> vector<2x1024xf32>
    %11 = arith.addf %9, %10 : vector<2x1024xf32>
    %cst_4 = arith.constant dense<0.000000e+00> : vector<2x1024xf32>
    %12 = tpu.matmul %8, %1, %cst_4 {dimension_numbers = #tpu.dot_dimension_numbers<[1], [0], [0], [1], [0, 0, 1, 1], [], []>} : vector<2x1024xbf16>, vector<1024x1024xbf16>, vector<2x1024xf32> -> vector<2x1024xf32>
    %13 = arith.addf %11, %12 : vector<2x1024xf32>
    %c0_5 = arith.constant 0 : index
    %c0_6 = arith.constant 0 : index
    %14 = vector.load %arg3[%c0_5, %c0_6] : memref<2x1024xf32, #tpu.memory_space<vmem>>, vector<2x1024xf32>
    tpu.vector_store %arg3[%c0_5, %c0_6], %13 {strides = array<i32>} : memref<2x1024xf32, #tpu.memory_space<vmem>>, vector<2x1024xf32>,
    return
  }
  func.func @transform_0(%arg0: i32) -> (i32, i32) {
    %c0_i32 = arith.constant 0 : i32
    %c0_i32_0 = arith.constant 0 : i32
    return %arg0, %c0_i32 : i32, i32
  }
  func.func @transform_1(%arg0: i32) -> (i32, i32) {
    %c0_i32 = arith.constant 0 : i32
    %c0_i32_0 = arith.constant 0 : i32
    %c0_i32_1 = arith.constant 0 : i32
    return %c0_i32, %c0_i32_0 : i32, i32
  }
  func.func @transform_2(%arg0: i32) -> (i32, i32) {
    %c0_i32 = arith.constant 0 : i32
    %c0_i32_0 = arith.constant 0 : i32
    return %arg0, %c0_i32 : i32, i32
  }
}

</mosaic_0001>

<bundles_post_ra>
// kernel: patchify_pallas.1
= control target key start
LH: loop header
LB: loop body
LE: loop exit
PB: predicated region body
PF: predicated region fallthrough
CT: control target
= control target key end

     0   :  { %v6066_v32 = vmov 1983009808   ;;  %v531_v34 = vlaneseq  ;;  %s10458_s1 = inlined_call_operand.vmem [shape: bf16[1024,1024], index: 1, kind: input, shape index: {}]   ;;  %s10459_s0 = inlined_call_operand.vmem [shape: f32[2,1024], index: 0, kind: input, shape index: {}]   ;;  %s10460_s2 = inlined_call_operand.vmem [shape: f32[2,1024], index: 2, kind: output, shape index: {}]  }
   0x1   :  { %v13_v0 = vld [vmem:[%s10458_s1] sm:$0xff]  ;;  %v14_v2 = vld [vmem:[%s10458_s1 + $0x8] sm:$0xff]  ;;  %v529_v33 = vunpack.c.l.s4 %v6066_v32 }
   0x2   :  { %v17_v1 = vld [vmem:[%s10458_s1 + $0x20] sm:$0xff]  ;;  %v18_v4 = vld [vmem:[%s10458_s1 + $0x28] sm:$0xff]  ;;  %v532_v44 = vshrl.u32 %v531_v34, 7 }
   0x3   :  { %v6091_v3 = vcombine.high %v13_v0, %v17_v1  ;;  %v6096_v5 = vcombine.low %v13_v0, %v17_v1  ;;  %v21_v6 = vld [vmem:[%s10458_s1 + $0x40] sm:$0xff]  ;;  %v6104_v8 = vcombine.high %v14_v2, %v18_v4  ;;  %v6106_v9 = vcombine.low %v14_v2, %v18_v4  ;;  %v22_v11 = vld [vmem:[%s10458_s1 + $0x48] sm:$0xff] }
   0x4   :  { %v25_v7 = vld [vmem:[%s10458_s1 + $0x60] sm:$0xff]  ;;  %v26_v12 = vld [vmem:[%s10458_s1 + $0x68] sm:$0xff]  ;;  %v530_v43 = vunpack.c.0.s8 %v529_v33 }
   0x5   :  { %v6108_v10 = vcombine.high %v21_v6, %v25_v7  ;;  %v29_v13 = vld [vmem:[%s10458_s1 + $0x80] sm:$0xff]  ;;  %3349 = vmatprep.subr.bf16.mxu0 %v6091_v3  ;;  %v6120_v14 = vcombine.high %v22_v11, %v26_v12  ;;  %v30_v16 = vld [vmem:[%s10458_s1 + $0x88] sm:$0xff]  ;;  %3513 = vmatprep.subr.bf16.mxu1 %v6104_v8  ;;  %v6133_v18 = vcombine.low %v21_v6, %v25_v7 }
   0x6   :  { %v33_v15 = vld [vmem:[%s10458_s1 + $0xa0] sm:$0xff]  ;;  %v34_v17 = vld [vmem:[%s10458_s1 + $0xa8] sm:$0xff]  ;;  %3350 = vmatpush1.bf16.msra.mxu0 %v6096_v5  ;;  %3514 = vmatpush1.bf16.msra.mxu1 %v6106_v9  ;;  %v6137_v19 = vcombine.low %v22_v11, %v26_v12  ;;  %v6222_v53 = vsub.s32 %v530_v43, %v532_v44 }
   0x7   :  { %3351 = vmatprep.subr.bf16.mxu0 %v6108_v10  ;;  %v6139_v20 = vcombine.high %v29_v13, %v33_v15  ;;  %3515 = vmatprep.subr.bf16.mxu1 %v6120_v14  ;;  %v6142_v21 = vcombine.high %v30_v16, %v34_v17  ;;  %v37_v22 = vld [vmem:[%s10458_s1 + $0xc0] sm:$0xff]  ;;  %v38_v24 = vld [vmem:[%s10458_s1 + $0xc8] sm:$0xff]  ;;  %v6157_v26 = vcombine.low %v29_v13, %v33_v15 }
   0x8   :  { %v41_v23 = vld [vmem:[%s10458_s1 + $0xe0] sm:$0xff]  ;;  %v42_v25 = vld [vmem:[%s10458_s1 + $0xe8] sm:$0xff]  ;;  %v6161_v27 = vcombine.low %v30_v16, %v34_v17  ;;  %11417 = vst [vmem:[#allocation2_spill] sm:$0xff] %v6222_v53 }
   0x9   :  { %v6163_v28 = vcombine.high %v37_v22, %v41_v23  ;;  %v6166_v29 = vcombine.high %v38_v24, %v42_v25  ;;  %v45_v30 = vld [vmem:[%s10458_s1 + $0x100] sm:$0xff]  ;;  %v46_v35 = vld [vmem:[%s10458_s1 + $0x108] sm:$0xff]  ;;  %v6181_v37 = vcombine.low %v37_v22, %v41_v23  ;;  %v6185_v38 = vcombine.low %v38_v24, %v42_v25 }
   0xa   :  { %3352 = vmatpush1.bf16.msra.mxu0 %v6133_v18  ;;  %3516 = vmatpush1.bf16.msra.mxu1 %v6137_v19  ;;  %v49_v31 = vld [vmem:[%s10458_s1 + $0x120] sm:$0xff]  ;;  %v50_v36 = vld [vmem:[%s10458_s1 + $0x128] sm:$0xff] }
   0xb   :  { %3353 = vmatprep.subr.bf16.mxu0 %v6139_v20  ;;  %3517 = vmatprep.subr.bf16.mxu1 %v6142_v21  ;;  %v6187_v39 = vcombine.high %v45_v30, %v49_v31  ;;  %v6190_v40 = vcombine.high %v46_v35, %v50_v36  ;;  %v53_v41 = vld [vmem:[%s10458_s1 + $0x140] sm:$0xff]  ;;  %v54_v45 = vld [vmem:[%s10458_s1 + $0x148] sm:$0xff]  ;;  %v6205_v47 = vcombine.low %v45_v30, %v49_v31 }
   0xc   :  { %v57_v42 = vld [vmem:[%s10458_s1 + $0x160] sm:$0xff]  ;;  %v58_v46 = vld [vmem:[%s10458_s1 + $0x168] sm:$0xff]  ;;  %v6209_v48 = vcombine.low %v46_v35, %v50_v36 }
   0xd   :  { %v6211_v49 = vcombine.high %v53_v41, %v57_v42  ;;  %v6214_v50 = vcombine.high %v54_v45, %v58_v46  ;;  %v61_v51 = vld [vmem:[%s10458_s1 + $0x180] sm:$0xff]  ;;  %v62_v54 = vld [vmem:[%s10458_s1 + $0x188] sm:$0xff]  ;;  %v6231_v56 = vcombine.low %v53_v41, %v57_v42  ;;  %v6235_v57 = vcombine.low %v54_v45, %v58_v46 }
   0xe   :  { %3354 = vmatpush1.bf16.msra.mxu0 %v6157_v26  ;;  %3518 = vmatpush1.bf16.msra.mxu1 %v6161_v27  ;;  %v65_v52 = vld [vmem:[%s10458_s1 + $0x1a0] sm:$0xff]  ;;  %v66_v55 = vld [vmem:[%s10458_s1 + $0x1a8] sm:$0xff] }
   0xf   :  { %3355 = vmatprep.subr.bf16.mxu0 %v6163_v28  ;;  %3519 = vmatprep.subr.bf16.mxu1 %v6166_v29  ;;  %v6237_v58 = vcombine.high %v61_v51, %v65_v52  ;;  %v69_v59 = vld [vmem:[%s10458_s1 + $0x1c0] sm:$0xff]  ;;  %v6248_v61 = vcombine.high %v62_v54, %v66_v55  ;;  %v70_v63 = vld [vmem:[%s10458_s1 + $0x1c8] sm:$0xff]  ;;  %v6264_v4 = vcombine.low %v61_v51, %v65_v52 }
  0x10   :  { %v6245_v60 = vld [vmem:[%s10459_s0] sm:$0xff]  ;;  %v74_v0 = vld [vmem:[%s10458_s1 + $0x1e8] sm:$0xff]  ;;  %v6271_v12 = vcombine.low %v62_v54, %v66_v55 }
  0x11   :  { %v73_v62 = vld [vmem:[%s10458_s1 + $0x1e0] sm:$0xff]  ;;  %v527_v1 = vcombine.high %v6245_v60, %v6245_v60  ;;  %v534_v2 = vrot.slane %v6245_v60, %v6222_v53  ;;  %v6275_v15 = vcombine.high %v70_v63, %v74_v0  ;;  %v78_v30 = vld [vmem:[%s10458_s1 + $0x208] sm:$0xff]  ;;  %v6304_v36 = vcombine.low %v70_v63, %v74_v0 }
  0x12   :  { %3356 = vmatpush1.bf16.msra.mxu0 %v6181_v37  ;;  %3520 = vmatpush1.bf16.msra.mxu1 %v6185_v38  ;;  %v6273_v13 = vcombine.high %v69_v59, %v73_v62  ;;  %v77_v16 = vld [vmem:[%s10458_s1 + $0x200] sm:$0xff]  ;;  %v82_v31 = vld [vmem:[%s10458_s1 + $0x228] sm:$0xff]  ;;  %v6296_v32 = vcombine.low %v69_v59, %v73_v62 }
  0x13   :  { %3357 = vmatprep.subr.bf16.mxu0 %v6187_v39  ;;  %3521 = vmatprep.subr.bf16.mxu1 %v6190_v40  ;;  %v541_v6 = vrot.slane %v527_v1, %v6222_v53  ;;  %v542_v7 = vcombine.high %v534_v2, %v534_v2  ;;  %v6267_v11 = vpack.c.bf16 %v534_v2, %v534_v2  ;;  %v81_v17 = vld [vmem:[%s10458_s1 + $0x220] sm:$0xff]  ;;  %v86_v51 = vld [vmem:[%s10458_s1 + $0x248] sm:$0xff] }
  0x14   :  { %11419 = vst [vmem:[#allocation4_spill] sm:$0xff] %v6275_v15  ;;  %11421 = vst [vmem:[#allocation6_spill] sm:$0xff] %v6296_v32  ;;  %v6306_v41 = vcombine.high %v77_v16, %v81_v17  ;;  %v6309_v42 = vcombine.high %v78_v30, %v82_v31  ;;  %v85_v43 = vld [vmem:[%s10458_s1 + $0x240] sm:$0xff]  ;;  %v90_v52 = vld [vmem:[%s10458_s1 + $0x268] sm:$0xff]  ;;  %v6325_v54 = vcombine.low %v77_v16, %v81_v17 }
  0x15   :  { %11418 = vst [vmem:[#allocation3_spill] sm:$0xff] %v6267_v11  ;;  %v543_v22 = vcombine.high %v541_v6, %v541_v6  ;;  %v6284_v23 = vpack.c.bf16 %v542_v7, %v542_v7  ;;  %v6286_v24 = vpack.c.bf16 %v541_v6, %v541_v6  ;;  %v577_v25 = vunpack.c.l.bf16 %v6267_v11  ;;  %11423 = vst [vmem:[#allocation8_spill] sm:$0xff] %v6304_v36  ;;  %v89_v44 = vld [vmem:[%s10458_s1 + $0x260] sm:$0xff]  ;;  %v94_v7 = vld [vmem:[%s10458_s1 + $0x288] sm:$0xff] }
  0x16   :  { %3358 = vmatpush1.bf16.msra.mxu0 %v6205_v47  ;;  %3522 = vmatpush1.bf16.msra.mxu1 %v6209_v48  ;;  %11424 = vst [vmem:[#allocation9_spill] sm:$0xff] %v6306_v41  ;;  %11425 = vst [vmem:[#allocation10_spill] sm:$0xff] %v6309_v42  ;;  %v6330_v62 = vcombine.low %v78_v30, %v82_v31  ;;  %v6332_v63 = vcombine.high %v85_v43, %v89_v44  ;;  %v93_v1 = vld [vmem:[%s10458_s1 + $0x280] sm:$0xff]  ;;  %v98_v16 = vld [vmem:[%s10458_s1 + $0x2a8] sm:$0xff] }
  0x17   :  { %3359 = vmatprep.subr.bf16.mxu0 %v6211_v49  ;;  %3523 = vmatprep.subr.bf16.mxu1 %v6214_v50  ;;  %11420 = vst [vmem:[#allocation5_spill] sm:$0xff] %v6286_v24  ;;  %v6298_v33 = vpack.c.bf16 %v543_v22, %v543_v22  ;;  %v578_v34 = vunpack.c.l.bf16 %v6284_v23  ;;  %v579_v35 = vunpack.c.l.bf16 %v6286_v24  ;;  %11426 = vst [vmem:[#allocation11_spill] sm:$0xff] %v6325_v54  ;;  %v97_v2 = vld [vmem:[%s10458_s1 + $0x2a0] sm:$0xff] }
  0x18   :  { %11427 = vst [vmem:[#allocation12_spill] sm:$0xff] %v6330_v62  ;;  %11428 = vst [vmem:[#allocation13_spill] sm:$0xff] %v6332_v63  ;;  %v6335_v0 = vcombine.high %v86_v51, %v90_v52  ;;  %v6351_v17 = vcombine.low %v85_v43, %v89_v44  ;;  %v6357_v30 = vcombine.high %v93_v1, %v97_v2  ;;  %v102_v44 = vld [vmem:[%s10458_s1 + $0x2c8] sm:$0xff] }
  0x19   :  { %11422 = vst [vmem:[#allocation7_spill] sm:$0xff] %v6298_v33  ;;  %v580_v45 = vunpack.c.l.bf16 %v6298_v33  ;;  %v593_v46 = vcombine.low %v577_v25, %v578_v34  ;;  %v6355_v25 = vcombine.low %v86_v51, %v90_v52  ;;  %v6360_v31 = vcombine.high %v94_v7, %v98_v16  ;;  %v101_v34 = vld [vmem:[%s10458_s1 + $0x2c0] sm:$0xff] }
  0x1a   :  { %3360 = vmatpush1.bf16.msra.mxu0 %v6231_v56  ;;  %3524 = vmatpush1.bf16.msra.mxu1 %v6235_v57  ;;  %11429 = vst [vmem:[#allocation14_spill] sm:$0xff] %v6335_v0  ;;  %11430 = vst [vmem:[#allocation15_spill] sm:$0xff] %v6351_v17 }
  0x1b   :  { %3361 = vmatprep.subr.bf16.mxu0 %v6237_v58  ;;  %3525 = vmatprep.subr.bf16.mxu1 %v6248_v61  ;;  %v594_v55 = vcombine.low %v579_v35, %v580_v45  ;;  %v601_v59 = vrot.slane %v593_v46, %v6222_v53  ;;  %11431 = vst [vmem:[#allocation16_spill] sm:$0xff] %v6355_v25  ;;  %11432 = vst [vmem:[#allocation17_spill] sm:$0xff] %v6357_v30  ;;  %v105_v35 = vld [vmem:[%s10458_s1 + $0x2e0] sm:$0xff]  ;;  %v106_v45 = vld [vmem:[%s10458_s1 + $0x2e8] sm:$0xff] }
  0x1c   :  { %11433 = vst [vmem:[#allocation18_spill] sm:$0xff] %v6360_v31  ;;  %v6378_v46 = vcombine.low %v93_v1, %v97_v2  ;;  %v6388_v52 = vcombine.high %v101_v34, %v105_v35  ;;  %v113_v1 = vld [vmem:[%s10458_s1 + $0x320] sm:$0xff]  ;;  %v6414_v24 = vcombine.low %v102_v44, %v106_v45 }
  0x1d   :  { %v608_v6 = vrot.slane %v594_v55, %v6222_v53  ;;  %v6391_v55 = vcombine.high %v102_v44, %v106_v45  ;;  %v122_v44 = vld [vmem:[%s10458_s1 + $0x368] sm:$0xff] }
  0x1e   :  { %3362 = vmatpush1.bf16.msra.mxu0 %v6264_v4  ;;  %3526 = vmatpush1.bf16.msra.mxu1 %v6271_v12  ;;  %11435 = vst [vmem:[#allocation20_spill] sm:$0xff] %v6378_v46  ;;  %11437 = vst [vmem:[#allocation22_spill] sm:$0xff] %v6388_v52 }
  0x1f   :  { %3363 = vmatprep.subr.bf16.mxu0 %v6273_v13  ;;  %3527 = vmatprep.subr.bf16.mxu1 %v6275_v15  ;;  %v609_v22 = vcombine.low %v601_v59, %v608_v6  ;;  %11438 = vst [vmem:[#allocation23_spill] sm:$0xff] %v6391_v55  ;;  %v109_v59 = vld [vmem:[%s10458_s1 + $0x300] sm:$0xff]  ;;  %v110_v6 = vld [vmem:[%s10458_s1 + $0x308] sm:$0xff]  ;;  %11441 = vst [vmem:[#allocation26_spill] sm:$0xff] %v6414_v24 }
  0x20   :  { %v6416_v33 = vcombine.high %v109_v59, %v113_v1  ;;  %v6436_v45 = vcombine.low %v109_v59, %v113_v1  ;;  %v129_v59 = vld [vmem:[%s10458_s1 + $0x3a0] sm:$0xff]  ;;  %v126_v1 = vld [vmem:[%s10458_s1 + $0x388] sm:$0xff] }
  0x21   :  { %v6369_v43 = vsub.f32 %v6245_v60, %v609_v22  ;;  %v6386_v60 = vcombine.low %v94_v7, %v98_v16  ;;  %v114_v7 = vld [vmem:[%s10458_s1 + $0x328] sm:$0xff]  ;;  %v6408_v16 = vcombine.low %v101_v34, %v105_v35  ;;  %v121_v34 = vld [vmem:[%s10458_s1 + $0x360] sm:$0xff] }
  0x22   :  { %3364 = vmatpush1.bf16.msra.mxu0 %v6296_v32  ;;  %3528 = vmatpush1.bf16.msra.mxu1 %v6304_v36  ;;  %11442 = vst [vmem:[#allocation27_spill] sm:$0xff] %v6416_v33  ;;  %v6419_v11 = vcombine.high %v110_v6, %v114_v7  ;;  %v118_v35 = vld [vmem:[%s10458_s1 + $0x348] sm:$0xff]  ;;  %11444 = vst [vmem:[#allocation29_spill] sm:$0xff] %v6436_v45 }
  0x23   :  { %3365 = vmatprep.subr.bf16.mxu0 %v6306_v41  ;;  %3529 = vmatprep.subr.bf16.mxu1 %v6309_v42  ;;  %11434 = vst [vmem:[#allocation19_spill] sm:$0xff] %v6369_v43  ;;  %v6382_v51 = vrot.slane %v6369_v43, %v6222_v53  ;;  %11436 = vst [vmem:[#allocation21_spill] sm:$0xff] %v6386_v60 }
  0x24   :  { %11439 = vst [vmem:[#allocation24_spill] sm:$0xff] %v6408_v16  ;;  %11443 = vst [vmem:[#allocation28_spill] sm:$0xff] %v6419_v11 }
  0x25   :  { %v648_v2 = vcombine.high %v6382_v51, %v6382_v51 }
  0x26   :  { %3366 = vmatpush1.bf16.msra.mxu0 %v6325_v54  ;;  %3530 = vmatpush1.bf16.msra.mxu1 %v6330_v62 }
  0x27   :  { %3367 = vmatprep.subr.bf16.mxu0 %v6332_v63  ;;  %3531 = vmatprep.subr.bf16.mxu1 %v6335_v0  ;;  %v6410_v22 = vpack.c.bf16 %v648_v2, %v648_v2  ;;  %v6440_v2 = vcombine.low %v110_v6, %v114_v7  ;;  %v130_v6 = vld [vmem:[%s10458_s1 + $0x3a8] sm:$0xff]  ;;  %v221_v63 = vld [vmem:[%s10458_s1 + $0x680] sm:$0xff] }
  0x29   :  { %11440 = vst [vmem:[#allocation25_spill] sm:$0xff] %v6410_v22  ;;  %3381 = vmatprep.mubr.bf16.mxu0 %v6410_v22  ;;  %3545 = vmatprep.mubr.bf16.mxu1 %v6410_v22  ;;  %11445 = vst [vmem:[#allocation30_spill] sm:$0xff] %v6440_v2 }
  0x2a   :  { %3368 = vmatpush1.bf16.msra.mxu0 %v6351_v17  ;;  %3532 = vmatpush1.bf16.msra.mxu1 %v6355_v25  ;;  %v205_v25 = vld [vmem:[%s10458_s1 + $0x600] sm:$0xff] }
  0x2b   :  { %3369 = vmatprep.subr.bf16.mxu0 %v6357_v30  ;;  %3533 = vmatprep.subr.bf16.mxu1 %v6360_v31  ;;  %v157_v31 = vld [vmem:[%s10458_s1 + $0x480] sm:$0xff] }
  0x2c   :  { %v197_v30 = vld [vmem:[%s10458_s1 + $0x5c0] sm:$0xff] }
  0x2e   :  { %3370 = vmatpush1.bf16.msra.mxu0 %v6378_v46  ;;  %3534 = vmatpush1.bf16.msra.mxu1 %v6386_v60  ;;  %v117_v46 = vld [vmem:[%s10458_s1 + $0x340] sm:$0xff] }
  0x2f   :  { %3371 = vmatprep.subr.bf16.mxu0 %v6388_v52  ;;  %3535 = vmatprep.subr.bf16.mxu1 %v6391_v55  ;;  %v6442_v55 = vcombine.high %v117_v46, %v121_v34  ;;  %v6445_v52 = vcombine.high %v118_v35, %v122_v44  ;;  %v125_v60 = vld [vmem:[%s10458_s1 + $0x380] sm:$0xff]  ;;  %v6460_v7 = vcombine.low %v117_v46, %v121_v34 }
  0x30   :  { %v137_v46 = vld [vmem:[%s10458_s1 + $0x3e0] sm:$0xff]  ;;  %v633_v34 = vcombine.high %v6369_v43, %v6369_v43 }
  0x31   :  { %11446 = vst [vmem:[#allocation31_spill] sm:$0xff] %v6442_v55  ;;  %11447 = vst [vmem:[#allocation32_spill] sm:$0xff] %v6445_v52 }
  0x32   :  { %3372 = vmatpush1.bf16.msra.mxu0 %v6408_v16  ;;  %3536 = vmatpush1.bf16.msra.mxu1 %v6414_v24  ;;  %11448 = vst [vmem:[#allocation33_spill] sm:$0xff] %v6460_v7  ;;  %v6469_v24 = vcombine.high %v126_v1, %v130_v6  ;;  %v133_v16 = vld [vmem:[%s10458_s1 + $0x3c0] sm:$0xff] }
  0x33   :  { %3373 = vmatprep.subr.bf16.mxu0 %v6416_v33  ;;  %3537 = vmatprep.subr.bf16.mxu1 %v6419_v11  ;;  %v6464_v11 = vcombine.low %v118_v35, %v122_v44  ;;  %v6466_v33 = vcombine.high %v125_v60, %v129_v59  ;;  %v134_v35 = vld [vmem:[%s10458_s1 + $0x3c8] sm:$0xff] }
  0x34   :  { %11451 = vst [vmem:[#allocation36_spill] sm:$0xff] %v6469_v24  ;;  %v138_v44 = vld [vmem:[%s10458_s1 + $0x3e8] sm:$0xff] }
  0x35   :  { %11449 = vst [vmem:[#allocation34_spill] sm:$0xff] %v6464_v11  ;;  %11450 = vst [vmem:[#allocation35_spill] sm:$0xff] %v6466_v33  ;;  %v6495_v43 = vcombine.high %v134_v35, %v138_v44 }
  0x36   :  { %3374 = vmatpush1.bf16.msra.mxu0 %v6436_v45  ;;  %3538 = vmatpush1.bf16.msra.mxu1 %v6440_v2  ;;  %v6492_v2 = vcombine.high %v133_v16, %v137_v46  ;;  %v141_v45 = vld [vmem:[%s10458_s1 + $0x400] sm:$0xff] }
  0x37   :  { %3375 = vmatprep.subr.bf16.mxu0 %v6442_v55  ;;  %3539 = vmatprep.subr.bf16.mxu1 %v6445_v52  ;;  %v6486_v52 = vcombine.low %v125_v60, %v129_v59  ;;  %v6490_v55 = vcombine.low %v126_v1, %v130_v6  ;;  %11455 = vst [vmem:[#allocation40_spill] sm:$0xff] %v6495_v43  ;;  %v145_v60 = vld [vmem:[%s10458_s1 + $0x420] sm:$0xff]  ;;  %v142_v1 = vld [vmem:[%s10458_s1 + $0x408] sm:$0xff] }
  0x38   :  { %11454 = vst [vmem:[#allocation39_spill] sm:$0xff] %v6492_v2  ;;  %v6504_v59 = vrot.slane %v633_v34, %v6222_v53  ;;  %v146_v6 = vld [vmem:[%s10458_s1 + $0x428] sm:$0xff]  ;;  %v6519_v34 = vcombine.high %v141_v45, %v145_v60 }
  0x39   :  { %11452 = vst [vmem:[#allocation37_spill] sm:$0xff] %v6486_v52  ;;  %11453 = vst [vmem:[#allocation38_spill] sm:$0xff] %v6490_v55 }
  0x3a   :  { %3376 = vmatpush1.bf16.msra.mxu0 %v6460_v7  ;;  %3540 = vmatpush1.bf16.msra.mxu1 %v6464_v11  ;;  %11458 = vst [vmem:[#allocation43_spill] sm:$0xff] %v6519_v34  ;;  %v6522_v11 = vcombine.high %v142_v1, %v146_v6  ;;  %v149_v7 = vld [vmem:[%s10458_s1 + $0x440] sm:$0xff] }
  0x3b   :  { %3377 = vmatprep.subr.bf16.mxu0 %v6466_v33  ;;  %3541 = vmatprep.subr.bf16.mxu1 %v6469_v24  ;;  %v6513_v24 = vcombine.low %v133_v16, %v137_v46  ;;  %v6517_v33 = vcombine.low %v134_v35, %v138_v44  ;;  %v153_v16 = vld [vmem:[%s10458_s1 + $0x460] sm:$0xff]  ;;  %v649_v46 = vcombine.high %v6504_v59, %v6504_v59  ;;  %v150_v44 = vld [vmem:[%s10458_s1 + $0x448] sm:$0xff] }
  0x3c   :  { %11459 = vst [vmem:[#allocation44_spill] sm:$0xff] %v6522_v11  ;;  %v6534_v35 = vpack.c.bf16 %v6382_v51, %v6382_v51  ;;  %v6549_v51 = vcombine.high %v149_v7, %v153_v16 }
  0x3d   :  { %11456 = vst [vmem:[#allocation41_spill] sm:$0xff] %v6513_v24  ;;  %11457 = vst [vmem:[#allocation42_spill] sm:$0xff] %v6517_v33 }
  0x3e   :  { %3378 = vmatpush1.bf16.msra.mxu0 %v6486_v52  ;;  %3542 = vmatpush1.bf16.msra.mxu1 %v6490_v55  ;;  %11460 = vst [vmem:[#allocation45_spill] sm:$0xff] %v6534_v35  ;;  %v6547_v55 = vcombine.low %v142_v1, %v146_v6  ;;  %11463 = vst [vmem:[#allocation48_spill] sm:$0xff] %v6549_v51  ;;  %v158_v1 = vld [vmem:[%s10458_s1 + $0x488] sm:$0xff] }
  0x3f   :  { %3379 = vmatprep.subr.bf16.mxu0 %v6492_v2  ;;  %3543 = vmatprep.subr.bf16.mxu1 %v6495_v43  ;;  %v154_v43 = vld [vmem:[%s10458_s1 + $0x468] sm:$0xff]  ;;  %v6543_v2 = vcombine.low %v141_v45, %v145_v60  ;;  %v161_v45 = vld [vmem:[%s10458_s1 + $0x4a0] sm:$0xff]  ;;  %v6560_v60 = vpack.c.bf16 %v649_v46, %v649_v46 }
  0x40   :  { %11462 = vst [vmem:[#allocation47_spill] sm:$0xff] %v6547_v55  ;;  %v6552_v52 = vcombine.high %v150_v44, %v154_v43  ;;  %v162_v6 = vld [vmem:[%s10458_s1 + $0x4a8] sm:$0xff]  ;;  %v6575_v46 = vcombine.low %v150_v44, %v154_v43  ;;  %v6597_v44 = vcombine.low %v157_v31, %v161_v45 }
  0x41   :  { %11461 = vst [vmem:[#allocation46_spill] sm:$0xff] %v6543_v2  ;;  %11465 = vst [vmem:[#allocation50_spill] sm:$0xff] %v6560_v60  ;;  %v166_v43 = vld [vmem:[%s10458_s1 + $0x4c8] sm:$0xff] }
  0x42   :  { %3380 = vmatpush1.bf16.msra.mxu0 %v6513_v24  ;;  %3544 = vmatpush1.bf16.msra.mxu1 %v6517_v33  ;;  %11464 = vst [vmem:[#allocation49_spill] sm:$0xff] %v6552_v52  ;;  %11467 = vst [vmem:[#allocation52_spill] sm:$0xff] %v6575_v46  ;;  %v6580_v33 = vcombine.high %v158_v1, %v162_v6  ;;  %v173_v24 = vld [vmem:[%s10458_s1 + $0x500] sm:$0xff] }
  0x43   :  { %3390 = vmatprep.subr.bf16.mxu0 %v6519_v34  ;;  %3554 = vmatprep.subr.bf16.mxu1 %v6522_v11  ;;  %v6571_v11 = vcombine.low %v149_v7, %v153_v16  ;;  %v6577_v34 = vcombine.high %v157_v31, %v161_v45  ;;  %v169_v7 = vld [vmem:[%s10458_s1 + $0x4e0] sm:$0xff]  ;;  %v170_v16 = vld [vmem:[%s10458_s1 + $0x4e8] sm:$0xff]  ;;  %11470 = vst [vmem:[#allocation55_spill] sm:$0xff] %v6597_v44 }
  0x44   :  { %11469 = vst [vmem:[#allocation54_spill] sm:$0xff] %v6580_v33  ;;  %v177_v31 = vld [vmem:[%s10458_s1 + $0x520] sm:$0xff]  ;;  %v174_v45 = vld [vmem:[%s10458_s1 + $0x508] sm:$0xff] }
  0x45   :  { %3382 = vmatmul.mubr.bf16.vlgmr.msra.gmra.mrb[0].mxu0 %v6534_v35  ;;  %3546 = vmatmul.mubr.bf16.vlgmr.msra.gmra.mrb[0].mxu1 %v6534_v35  ;;  %11466 = vst [vmem:[#allocation51_spill] sm:$0xff] %v6571_v11  ;;  %11468 = vst [vmem:[#allocation53_spill] sm:$0xff] %v6577_v34 }
  0x46   :  { %3391 = vmatpush1.bf16.msra.mxu0 %v6543_v2  ;;  %3555 = vmatpush1.bf16.msra.mxu1 %v6547_v55  ;;  %v165_v2 = vld [vmem:[%s10458_s1 + $0x4c0] sm:$0xff]  ;;  %v6606_v55 = vcombine.high %v166_v43, %v170_v16 }
  0x47   :  { %3392 = vmatprep.subr.bf16.mxu0 %v6549_v51  ;;  %3556 = vmatprep.subr.bf16.mxu1 %v6552_v52  ;;  %v6601_v52 = vcombine.low %v158_v1, %v162_v6  ;;  %v6603_v51 = vcombine.high %v165_v2, %v169_v7  ;;  %v178_v1 = vld [vmem:[%s10458_s1 + $0x528] sm:$0xff]  ;;  %v6621_v6 = vcombine.low %v165_v2, %v169_v7  ;;  %v185_v2 = vld [vmem:[%s10458_s1 + $0x560] sm:$0xff] }
  0x48   :  { %3422 = vmatprep.mubr.bf16.mxu0 %v6560_v60  ;;  %3586 = vmatprep.mubr.bf16.mxu1 %v6560_v60  ;;  %11473 = vst [vmem:[#allocation58_spill] sm:$0xff] %v6606_v55  ;;  %v182_v7 = vld [vmem:[%s10458_s1 + $0x548] sm:$0xff] }
  0x49   :  { %11471 = vst [vmem:[#allocation56_spill] sm:$0xff] %v6601_v52  ;;  %11472 = vst [vmem:[#allocation57_spill] sm:$0xff] %v6603_v51 }
  0x4a   :  { %3393 = vmatpush1.bf16.msra.mxu0 %v6571_v11  ;;  %3557 = vmatpush1.bf16.msra.mxu1 %v6575_v46  ;;  %11474 = vst [vmem:[#allocation59_spill] sm:$0xff] %v6621_v6  ;;  %v6630_v46 = vcombine.high %v174_v45, %v178_v1  ;;  %v181_v11 = vld [vmem:[%s10458_s1 + $0x540] sm:$0xff] }
  0x4b   :  { %3394 = vmatprep.subr.bf16.mxu0 %v6577_v34  ;;  %3558 = vmatprep.subr.bf16.mxu1 %v6580_v33  ;;  %v6625_v33 = vcombine.low %v166_v43, %v170_v16  ;;  %v6627_v34 = vcombine.high %v173_v24, %v177_v31  ;;  %v186_v43 = vld [vmem:[%s10458_s1 + $0x568] sm:$0xff]  ;;  %v6645_v16 = vcombine.low %v173_v24, %v177_v31  ;;  %v193_v24 = vld [vmem:[%s10458_s1 + $0x5a0] sm:$0xff] }
  0x4c   :  { %11477 = vst [vmem:[#allocation62_spill] sm:$0xff] %v6630_v46  ;;  %v190_v31 = vld [vmem:[%s10458_s1 + $0x588] sm:$0xff] }
  0x4d   :  { %11475 = vst [vmem:[#allocation60_spill] sm:$0xff] %v6625_v33  ;;  %11476 = vst [vmem:[#allocation61_spill] sm:$0xff] %v6627_v34 }
  0x4e   :  { %3395 = vmatpush1.bf16.msra.mxu0 %v6597_v44  ;;  %3559 = vmatpush1.bf16.msra.mxu1 %v6601_v52  ;;  %11478 = vst [vmem:[#allocation63_spill] sm:$0xff] %v6645_v16  ;;  %v6654_v52 = vcombine.high %v182_v7, %v186_v43  ;;  %v189_v44 = vld [vmem:[%s10458_s1 + $0x580] sm:$0xff] }
  0x4f   :  { %3396 = vmatprep.subr.bf16.mxu0 %v6603_v51  ;;  %3560 = vmatprep.subr.bf16.mxu1 %v6606_v55  ;;  %v6649_v55 = vcombine.low %v174_v45, %v178_v1  ;;  %v6651_v51 = vcombine.high %v181_v11, %v185_v2  ;;  %v194_v45 = vld [vmem:[%s10458_s1 + $0x5a8] sm:$0xff] }
  0x50   :  { %11481 = vst [vmem:[#allocation66_spill] sm:$0xff] %v6654_v52  ;;  %v6671_v1 = vld [vmem:[%s10459_s0 + $0x8] sm:$0xff] }
  0x51   :  { %11479 = vst [vmem:[#allocation64_spill] sm:$0xff] %v6649_v55  ;;  %11480 = vst [vmem:[#allocation65_spill] sm:$0xff] %v6651_v51 }
  0x52   :  { %3397 = vmatpush1.bf16.msra.mxu0 %v6621_v6  ;;  %3561 = vmatpush1.bf16.msra.mxu1 %v6625_v33  ;;  %v6680_v33 = vcombine.high %v189_v44, %v193_v24  ;;  %v6683_v6 = vcombine.high %v190_v31, %v194_v45 }
  0x53   :  { %3398 = vmatprep.subr.bf16.mxu0 %v6627_v34  ;;  %3562 = vmatprep.subr.bf16.mxu1 %v6630_v46  ;;  %v6674_v46 = vcombine.low %v181_v11, %v185_v2  ;;  %v6678_v34 = vcombine.low %v182_v7, %v186_v43  ;;  %v201_v11 = vld [vmem:[%s10458_s1 + $0x5e0] sm:$0xff]  ;;  %v544_v2 = vcombine.high %v6671_v1, %v6671_v1  ;;  %v198_v7 = vld [vmem:[%s10458_s1 + $0x5c8] sm:$0xff] }
  0x54   :  { %11484 = vst [vmem:[#allocation69_spill] sm:$0xff] %v6680_v33  ;;  %11485 = vst [vmem:[#allocation70_spill] sm:$0xff] %v6683_v6  ;;  %v202_v43 = vld [vmem:[%s10458_s1 + $0x5e8] sm:$0xff] }
  0x55   :  { %11482 = vst [vmem:[#allocation67_spill] sm:$0xff] %v6674_v46  ;;  %11483 = vst [vmem:[#allocation68_spill] sm:$0xff] %v6678_v34 }
  0x56   :  { %3399 = vmatpush1.bf16.msra.mxu0 %v6645_v16  ;;  %3563 = vmatpush1.bf16.msra.mxu1 %v6649_v55  ;;  %v6706_v55 = vcombine.high %v197_v30, %v201_v11  ;;  %v6709_v16 = vcombine.high %v198_v7, %v202_v43 }
  0x57   :  { %3400 = vmatprep.subr.bf16.mxu0 %v6651_v51  ;;  %3564 = vmatprep.subr.bf16.mxu1 %v6654_v52  ;;  %v6700_v52 = vcombine.low %v189_v44, %v193_v24  ;;  %v6704_v51 = vcombine.low %v190_v31, %v194_v45  ;;  %v209_v44 = vld [vmem:[%s10458_s1 + $0x620] sm:$0xff]  ;;  %v551_v24 = vrot.slane %v6671_v1, %v6222_v53  ;;  %v206_v45 = vld [vmem:[%s10458_s1 + $0x608] sm:$0xff] }
  0x58   :  { %11488 = vst [vmem:[#allocation73_spill] sm:$0xff] %v6706_v55  ;;  %11489 = vst [vmem:[#allocation74_spill] sm:$0xff] %v6709_v16  ;;  %v558_v31 = vrot.slane %v544_v2, %v6222_v53  ;;  %v213_v2 = vld [vmem:[%s10458_s1 + $0x640] sm:$0xff] }
  0x59   :  { %11486 = vst [vmem:[#allocation71_spill] sm:$0xff] %v6700_v52  ;;  %11487 = vst [vmem:[#allocation72_spill] sm:$0xff] %v6704_v51 }
  0x5a   :  { %3401 = vmatpush1.bf16.msra.mxu0 %v6674_v46  ;;  %3565 = vmatpush1.bf16.msra.mxu1 %v6678_v34  ;;  %v6731_v34 = vcombine.low %v198_v7, %v202_v43  ;;  %v6733_v46 = vcombine.high %v205_v25, %v209_v44  ;;  %v218_v7 = vld [vmem:[%s10458_s1 + $0x668] sm:$0xff]  ;;  %v559_v43 = vcombine.high %v551_v24, %v551_v24 }
  0x5b   :  { %3402 = vmatprep.subr.bf16.mxu0 %v6680_v33  ;;  %3566 = vmatprep.subr.bf16.mxu1 %v6683_v6  ;;  %v210_v6 = vld [vmem:[%s10458_s1 + $0x628] sm:$0xff]  ;;  %v6727_v33 = vcombine.low %v197_v30, %v201_v11  ;;  %v217_v30 = vld [vmem:[%s10458_s1 + $0x660] sm:$0xff] }
  0x5c   :  { %11491 = vst [vmem:[#allocation76_spill] sm:$0xff] %v6731_v34  ;;  %11492 = vst [vmem:[#allocation77_spill] sm:$0xff] %v6733_v46  ;;  %v6739_v17 = vcombine.high %v206_v45, %v210_v6  ;;  %v214_v11 = vld [vmem:[%s10458_s1 + $0x648] sm:$0xff] }
  0x5d   :  { %11490 = vst [vmem:[#allocation75_spill] sm:$0xff] %v6727_v33  ;;  %v6759_v0 = vcombine.high %v214_v11, %v218_v7  ;;  %v6787_v62 = vcombine.low %v214_v11, %v218_v7 }
  0x5e   :  { %3403 = vmatpush1.bf16.msra.mxu0 %v6700_v52  ;;  %3567 = vmatpush1.bf16.msra.mxu1 %v6704_v51  ;;  %11493 = vst [vmem:[#allocation78_spill] sm:$0xff] %v6739_v17  ;;  %v6751_v51 = vcombine.low %v205_v25, %v209_v44  ;;  %v6757_v52 = vcombine.high %v213_v2, %v217_v30  ;;  %v225_v25 = vld [vmem:[%s10458_s1 + $0x6a0] sm:$0xff]  ;;  %v222_v44 = vld [vmem:[%s10458_s1 + $0x688] sm:$0xff] }
  0x5f   :  { %3404 = vmatprep.subr.bf16.mxu0 %v6706_v55  ;;  %3568 = vmatprep.subr.bf16.mxu1 %v6709_v16  ;;  %v560_v55 = vcombine.high %v558_v31, %v558_v31  ;;  %v6755_v16 = vcombine.low %v206_v45, %v210_v6  ;;  %11497 = vst [vmem:[#allocation82_spill] sm:$0xff] %v6759_v0  ;;  %v226_v6 = vld [vmem:[%s10458_s1 + $0x6a8] sm:$0xff]  ;;  %11503 = vst [vmem:[#allocation88_spill] sm:$0xff] %v6787_v62 }
  0x60   :  { %11494 = vst [vmem:[#allocation79_spill] sm:$0xff] %v6751_v51  ;;  %11496 = vst [vmem:[#allocation81_spill] sm:$0xff] %v6757_v52  ;;  %v6774_v45 = vpack.c.bf16 %v551_v24, %v551_v24  ;;  %v6789_v54 = vcombine.high %v221_v63, %v225_v25  ;;  %v6791_v24 = vcombine.high %v222_v44, %v226_v6 }
  0x61   :  { %11495 = vst [vmem:[#allocation80_spill] sm:$0xff] %v6755_v16 }
  0x62   :  { %3405 = vmatpush1.bf16.msra.mxu0 %v6727_v33  ;;  %3569 = vmatpush1.bf16.msra.mxu1 %v6731_v34  ;;  %11498 = vst [vmem:[#allocation83_spill] sm:$0xff] %v6774_v45  ;;  %v6778_v34 = vpack.c.bf16 %v558_v31, %v558_v31  ;;  %v6780_v33 = vpack.c.bf16 %v560_v55, %v560_v55  ;;  %11504 = vst [vmem:[#allocation89_spill] sm:$0xff] %v6789_v54  ;;  %v229_v55 = vld [vmem:[%s10458_s1 + $0x6c0] sm:$0xff] }
  0x63   :  { %3406 = vmatprep.subr.bf16.mxu0 %v6733_v46  ;;  %3570 = vmatprep.subr.bf16.mxu1 %v6739_v17  ;;  %v6776_v46 = vpack.c.bf16 %v559_v43, %v559_v43  ;;  %v6783_v17 = vcombine.low %v213_v2, %v217_v30  ;;  %11505 = vst [vmem:[#allocation90_spill] sm:$0xff] %v6791_v24  ;;  %v233_v31 = vld [vmem:[%s10458_s1 + $0x6e0] sm:$0xff]  ;;  %v581_v2 = vunpack.c.l.bf16 %v6774_v45  ;;  %v230_v43 = vld [vmem:[%s10458_s1 + $0x6c8] sm:$0xff] }
  0x64   :  { %11500 = vst [vmem:[#allocation85_spill] sm:$0xff] %v6778_v34  ;;  %11501 = vst [vmem:[#allocation86_spill] sm:$0xff] %v6780_v33  ;;  %v583_v11 = vunpack.c.l.bf16 %v6778_v34  ;;  %v584_v7 = vunpack.c.l.bf16 %v6780_v33  ;;  %v6815_v45 = vcombine.low %v222_v44, %v226_v6  ;;  %v6817_v34 = vcombine.high %v229_v55, %v233_v31  ;;  %v238_v44 = vld [vmem:[%s10458_s1 + $0x708] sm:$0xff] }
  0x65   :  { %11499 = vst [vmem:[#allocation84_spill] sm:$0xff] %v6776_v46  ;;  %11502 = vst [vmem:[#allocation87_spill] sm:$0xff] %v6783_v17  ;;  %v582_v30 = vunpack.c.l.bf16 %v6776_v46  ;;  %v237_v46 = vld [vmem:[%s10458_s1 + $0x700] sm:$0xff]  ;;  %v242_v6 = vld [vmem:[%s10458_s1 + $0x728] sm:$0xff] }
  0x66   :  { %3407 = vmatpush1.bf16.msra.mxu0 %v6751_v51  ;;  %3571 = vmatpush1.bf16.msra.mxu1 %v6755_v16  ;;  %11507 = vst [vmem:[#allocation92_spill] sm:$0xff] %v6815_v45  ;;  %11508 = vst [vmem:[#allocation93_spill] sm:$0xff] %v6817_v34 }
  0x67   :  { %3408 = vmatprep.subr.bf16.mxu0 %v6757_v52  ;;  %3572 = vmatprep.subr.bf16.mxu1 %v6759_v0  ;;  %v234_v0 = vld [vmem:[%s10458_s1 + $0x6e8] sm:$0xff]  ;;  %v6811_v52 = vcombine.low %v221_v63, %v225_v25  ;;  %v241_v63 = vld [vmem:[%s10458_s1 + $0x720] sm:$0xff]  ;;  %v610_v25 = vcombine.low %v581_v2, %v582_v30  ;;  %v6844_v30 = vcombine.high %v238_v44, %v242_v6 }
  0x68   :  { %v6820_v33 = vcombine.high %v230_v43, %v234_v0  ;;  %v6841_v2 = vcombine.high %v237_v46, %v241_v63 }
  0x69   :  { %11506 = vst [vmem:[#allocation91_spill] sm:$0xff] %v6811_v52  ;;  %11513 = vst [vmem:[#allocation98_spill] sm:$0xff] %v6844_v30 }
  0x6a   :  { %3409 = vmatpush1.bf16.msra.mxu0 %v6783_v17  ;;  %3573 = vmatpush1.bf16.msra.mxu1 %v6787_v62  ;;  %11509 = vst [vmem:[#allocation94_spill] sm:$0xff] %v6820_v33  ;;  %v611_v62 = vcombine.low %v583_v11, %v584_v7  ;;  %11512 = vst [vmem:[#allocation97_spill] sm:$0xff] %v6841_v2  ;;  %v245_v11 = vld [vmem:[%s10458_s1 + $0x740] sm:$0xff] }
  0x6b   :  { %3410 = vmatprep.subr.bf16.mxu0 %v6789_v54  ;;  %3574 = vmatprep.subr.bf16.mxu1 %v6791_v24  ;;  %v6835_v24 = vcombine.low %v229_v55, %v233_v31  ;;  %v6839_v54 = vcombine.low %v230_v43, %v234_v0  ;;  %v249_v55 = vld [vmem:[%s10458_s1 + $0x760] sm:$0xff]  ;;  %v618_v31 = vrot.slane %v610_v25, %v6222_v53  ;;  %v246_v0 = vld [vmem:[%s10458_s1 + $0x748] sm:$0xff] }
  0x6c   :  { %v625_v7 = vrot.slane %v611_v62, %v6222_v53  ;;  %v250_v43 = vld [vmem:[%s10458_s1 + $0x768] sm:$0xff]  ;;  %v6867_v25 = vcombine.high %v245_v11, %v249_v55 }
  0x6d   :  { %11510 = vst [vmem:[#allocation95_spill] sm:$0xff] %v6835_v24  ;;  %11511 = vst [vmem:[#allocation96_spill] sm:$0xff] %v6839_v54  ;;  %v6870_v62 = vcombine.high %v246_v0, %v250_v43 }
  0x6e   :  { %3411 = vmatpush1.bf16.msra.mxu0 %v6811_v52  ;;  %3575 = vmatpush1.bf16.msra.mxu1 %v6815_v45  ;;  %11516 = vst [vmem:[#allocation101_spill] sm:$0xff] %v6867_v25  ;;  %v253_v45 = vld [vmem:[%s10458_s1 + $0x780] sm:$0xff] }
  0x6f   :  { %3412 = vmatprep.subr.bf16.mxu0 %v6817_v34  ;;  %3576 = vmatprep.subr.bf16.mxu1 %v6820_v33  ;;  %v6861_v33 = vcombine.low %v237_v46, %v241_v63  ;;  %v6865_v34 = vcombine.low %v238_v44, %v242_v6  ;;  %11517 = vst [vmem:[#allocation102_spill] sm:$0xff] %v6870_v62  ;;  %v257_v46 = vld [vmem:[%s10458_s1 + $0x7a0] sm:$0xff]  ;;  %v254_v44 = vld [vmem:[%s10458_s1 + $0x788] sm:$0xff] }
  0x70   :  { %v626_v63 = vcombine.low %v618_v31, %v625_v7  ;;  %v258_v6 = vld [vmem:[%s10458_s1 + $0x7a8] sm:$0xff]  ;;  %v261_v7 = vld [vmem:[%s10458_s1 + $0x7c0] sm:$0xff] }
  0x71   :  { %11514 = vst [vmem:[#allocation99_spill] sm:$0xff] %v6861_v33  ;;  %11515 = vst [vmem:[#allocation100_spill] sm:$0xff] %v6865_v34  ;;  %v6894_v31 = vcombine.high %v254_v44, %v258_v6 }
  0x72   :  { %3413 = vmatpush1.bf16.msra.mxu0 %v6835_v24  ;;  %3577 = vmatpush1.bf16.msra.mxu1 %v6839_v54  ;;  %v6891_v54 = vcombine.high %v253_v45, %v257_v46  ;;  %v285_v24 = vld [vmem:[%s10458_s1 + $0x880] sm:$0xff] }
  0x73   :  { %3414 = vmatprep.subr.bf16.mxu0 %v6841_v2  ;;  %3578 = vmatprep.subr.bf16.mxu1 %v6844_v30  ;;  %v6885_v30 = vcombine.low %v245_v11, %v249_v55  ;;  %v6889_v2 = vcombine.low %v246_v0, %v250_v43  ;;  %11521 = vst [vmem:[#allocation106_spill] sm:$0xff] %v6894_v31  ;;  %v265_v11 = vld [vmem:[%s10458_s1 + $0x7e0] sm:$0xff]  ;;  %v262_v0 = vld [vmem:[%s10458_s1 + $0x7c8] sm:$0xff] }
  0x74   :  { %11520 = vst [vmem:[#allocation105_spill] sm:$0xff] %v6891_v54  ;;  %v6903_v55 = vsub.f32 %v6671_v1, %v626_v63  ;;  %v266_v43 = vld [vmem:[%s10458_s1 + $0x7e8] sm:$0xff]  ;;  %v6918_v1 = vcombine.high %v261_v7, %v265_v11 }
  0x75   :  { %11518 = vst [vmem:[#allocation103_spill] sm:$0xff] %v6885_v30  ;;  %11519 = vst [vmem:[#allocation104_spill] sm:$0xff] %v6889_v2  ;;  %v6921_v63 = vcombine.high %v262_v0, %v266_v43 }
  0x76   :  { %3415 = vmatpush1.bf16.msra.mxu0 %v6861_v33  ;;  %3579 = vmatpush1.bf16.msra.mxu1 %v6865_v34  ;;  %11522 = vst [vmem:[#allocation107_spill] sm:$0xff] %v6903_v55  ;;  %11525 = vst [vmem:[#allocation110_spill] sm:$0xff] %v6918_v1  ;;  %v269_v34 = vld [vmem:[%s10458_s1 + $0x800] sm:$0xff] }
  0x77   :  { %3416 = vmatprep.subr.bf16.mxu0 %v6867_v25  ;;  %3580 = vmatprep.subr.bf16.mxu1 %v6870_v62  ;;  %v6912_v62 = vcombine.low %v253_v45, %v257_v46  ;;  %v6916_v25 = vcombine.low %v254_v44, %v258_v6  ;;  %11526 = vst [vmem:[#allocation111_spill] sm:$0xff] %v6921_v63  ;;  %v273_v45 = vld [vmem:[%s10458_s1 + $0x820] sm:$0xff]  ;;  %v270_v44 = vld [vmem:[%s10458_s1 + $0x808] sm:$0xff] }
  0x78   :  { %v6931_v46 = vrot.slane %v6903_v55, %v6222_v53  ;;  %v274_v6 = vld [vmem:[%s10458_s1 + $0x828] sm:$0xff]  ;;  %v277_v33 = vld [vmem:[%s10458_s1 + $0x840] sm:$0xff] }
  0x79   :  { %11523 = vst [vmem:[#allocation108_spill] sm:$0xff] %v6912_v62  ;;  %11524 = vst [vmem:[#allocation109_spill] sm:$0xff] %v6916_v25 }
  0x7a   :  { %3417 = vmatpush1.bf16.msra.mxu0 %v6885_v30  ;;  %3581 = vmatpush1.bf16.msra.mxu1 %v6889_v2  ;;  %v6946_v2 = vcombine.high %v269_v34, %v273_v45  ;;  %v6949_v30 = vcombine.high %v270_v44, %v274_v6 }
  0x7b   :  { %3418 = vmatprep.subr.bf16.mxu0 %v6891_v54  ;;  %3582 = vmatprep.subr.bf16.mxu1 %v6894_v31  ;;  %v6940_v31 = vcombine.low %v261_v7, %v265_v11  ;;  %v6944_v54 = vcombine.low %v262_v0, %v266_v43  ;;  %v281_v7 = vld [vmem:[%s10458_s1 + $0x860] sm:$0xff]  ;;  %v665_v11 = vcombine.high %v6931_v46, %v6931_v46  ;;  %v278_v43 = vld [vmem:[%s10458_s1 + $0x848] sm:$0xff] }
  0x7c   :  { %11529 = vst [vmem:[#allocation114_spill] sm:$0xff] %v6946_v2  ;;  %11530 = vst [vmem:[#allocation115_spill] sm:$0xff] %v6949_v30  ;;  %v6961_v0 = vpack.c.bf16 %v6504_v59, %v6504_v59  ;;  %v6976_v59 = vcombine.high %v277_v33, %v281_v7 }
  0x7d   :  { %11527 = vst [vmem:[#allocation112_spill] sm:$0xff] %v6940_v31  ;;  %11528 = vst [vmem:[#allocation113_spill] sm:$0xff] %v6944_v54 }
  0x7e   :  { %3419 = vmatpush1.bf16.msra.mxu0 %v6912_v62  ;;  %3583 = vmatpush1.bf16.msra.mxu1 %v6916_v25  ;;  %11531 = vst [vmem:[#allocation116_spill] sm:$0xff] %v6961_v0  ;;  %v6974_v25 = vcombine.low %v270_v44, %v274_v6  ;;  %11534 = vst [vmem:[#allocation119_spill] sm:$0xff] %v6976_v59  ;;  %v286_v44 = vld [vmem:[%s10458_s1 + $0x888] sm:$0xff] }
  0x7f   :  { %3420 = vmatprep.subr.bf16.mxu0 %v6918_v1  ;;  %3584 = vmatprep.subr.bf16.mxu1 %v6921_v63  ;;  %v282_v63 = vld [vmem:[%s10458_s1 + $0x868] sm:$0xff]  ;;  %v6970_v1 = vcombine.low %v269_v34, %v273_v45  ;;  %v289_v34 = vld [vmem:[%s10458_s1 + $0x8a0] sm:$0xff]  ;;  %v6987_v45 = vpack.c.bf16 %v665_v11, %v665_v11 }
  0x80   :  { %11533 = vst [vmem:[#allocation118_spill] sm:$0xff] %v6974_v25  ;;  %v6979_v62 = vcombine.high %v278_v43, %v282_v63  ;;  %v290_v6 = vld [vmem:[%s10458_s1 + $0x8a8] sm:$0xff]  ;;  %v7002_v11 = vcombine.low %v278_v43, %v282_v63  ;;  %v7024_v43 = vcombine.low %v285_v24, %v289_v34 }
  0x81   :  { %11532 = vst [vmem:[#allocation117_spill] sm:$0xff] %v6970_v1  ;;  %11536 = vst [vmem:[#allocation121_spill] sm:$0xff] %v6987_v45  ;;  %v294_v63 = vld [vmem:[%s10458_s1 + $0x8c8] sm:$0xff] }
  0x82   :  { %3421 = vmatpush1.bf16.msra.mxu0 %v6940_v31  ;;  %3585 = vmatpush1.bf16.msra.mxu1 %v6944_v54  ;;  %11535 = vst [vmem:[#allocation120_spill] sm:$0xff] %v6979_v62  ;;  %11538 = vst [vmem:[#allocation123_spill] sm:$0xff] %v7002_v11  ;;  %v7007_v54 = vcombine.high %v286_v44, %v290_v6  ;;  %v301_v31 = vld [vmem:[%s10458_s1 + $0x900] sm:$0xff] }
  0x83   :  { %3431 = vmatprep.subr.bf16.mxu0 %v6946_v2  ;;  %3595 = vmatprep.subr.bf16.mxu1 %v6949_v30  ;;  %v6998_v30 = vcombine.low %v277_v33, %v281_v7  ;;  %v7004_v2 = vcombine.high %v285_v24, %v289_v34  ;;  %v297_v33 = vld [vmem:[%s10458_s1 + $0x8e0] sm:$0xff]  ;;  %v298_v7 = vld [vmem:[%s10458_s1 + $0x8e8] sm:$0xff]  ;;  %11541 = vst [vmem:[#allocation126_spill] sm:$0xff] %v7024_v43 }
  0x84   :  { %11540 = vst [vmem:[#allocation125_spill] sm:$0xff] %v7007_v54  ;;  %v305_v24 = vld [vmem:[%s10458_s1 + $0x920] sm:$0xff]  ;;  %v302_v34 = vld [vmem:[%s10458_s1 + $0x908] sm:$0xff] }
  0x85   :  { %3423 = vmatmul.mubr.bf16.vlgmr.msra.gmra.mrb[0].mxu0 %v6961_v0  ;;  %3587 = vmatmul.mubr.bf16.vlgmr.msra.gmra.mrb[0].mxu1 %v6961_v0  ;;  %11537 = vst [vmem:[#allocation122_spill] sm:$0xff] %v6998_v30  ;;  %11539 = vst [vmem:[#allocation124_spill] sm:$0xff] %v7004_v2 }
  0x86   :  { %3432 = vmatpush1.bf16.msra.mxu0 %v6970_v1  ;;  %3596 = vmatpush1.bf16.msra.mxu1 %v6974_v25  ;;  %v293_v1 = vld [vmem:[%s10458_s1 + $0x8c0] sm:$0xff]  ;;  %v7033_v25 = vcombine.high %v294_v63, %v298_v7 }
  0x87   :  { %3433 = vmatprep.subr.bf16.mxu0 %v6976_v59  ;;  %3597 = vmatprep.subr.bf16.mxu1 %v6979_v62  ;;  %v7028_v62 = vcombine.low %v286_v44, %v290_v6  ;;  %v7030_v59 = vcombine.high %v293_v1, %v297_v33  ;;  %v306_v44 = vld [vmem:[%s10458_s1 + $0x928] sm:$0xff]  ;;  %v7048_v6 = vcombine.low %v293_v1, %v297_v33  ;;  %v313_v1 = vld [vmem:[%s10458_s1 + $0x960] sm:$0xff] }
  0x88   :  { %3463 = vmatprep.mubr.bf16.mxu0 %v6987_v45  ;;  %3627 = vmatprep.mubr.bf16.mxu1 %v6987_v45  ;;  %11544 = vst [vmem:[#allocation129_spill] sm:$0xff] %v7033_v25  ;;  %v310_v33 = vld [vmem:[%s10458_s1 + $0x948] sm:$0xff] }
  0x89   :  { %11542 = vst [vmem:[#allocation127_spill] sm:$0xff] %v7028_v62  ;;  %11543 = vst [vmem:[#allocation128_spill] sm:$0xff] %v7030_v59 }
  0x8a   :  { %3434 = vmatpush1.bf16.msra.mxu0 %v6998_v30  ;;  %3598 = vmatpush1.bf16.msra.mxu1 %v7002_v11  ;;  %11545 = vst [vmem:[#allocation130_spill] sm:$0xff] %v7048_v6  ;;  %v7057_v11 = vcombine.high %v302_v34, %v306_v44  ;;  %v309_v30 = vld [vmem:[%s10458_s1 + $0x940] sm:$0xff] }
  0x8b   :  { %3435 = vmatprep.subr.bf16.mxu0 %v7004_v2  ;;  %3599 = vmatprep.subr.bf16.mxu1 %v7007_v54  ;;  %v7052_v54 = vcombine.low %v294_v63, %v298_v7  ;;  %v7054_v2 = vcombine.high %v301_v31, %v305_v24  ;;  %v314_v63 = vld [vmem:[%s10458_s1 + $0x968] sm:$0xff]  ;;  %v7072_v7 = vcombine.low %v301_v31, %v305_v24  ;;  %v321_v31 = vld [vmem:[%s10458_s1 + $0x9a0] sm:$0xff] }
  0x8c   :  { %11548 = vst [vmem:[#allocation133_spill] sm:$0xff] %v7057_v11  ;;  %v318_v24 = vld [vmem:[%s10458_s1 + $0x988] sm:$0xff] }
  0x8d   :  { %11546 = vst [vmem:[#allocation131_spill] sm:$0xff] %v7052_v54  ;;  %11547 = vst [vmem:[#allocation132_spill] sm:$0xff] %v7054_v2 }
  0x8e   :  { %3436 = vmatpush1.bf16.msra.mxu0 %v7024_v43  ;;  %3600 = vmatpush1.bf16.msra.mxu1 %v7028_v62  ;;  %11549 = vst [vmem:[#allocation134_spill] sm:$0xff] %v7072_v7  ;;  %v7081_v62 = vcombine.high %v310_v33, %v314_v63  ;;  %v317_v43 = vld [vmem:[%s10458_s1 + $0x980] sm:$0xff] }
  0x8f   :  { %3437 = vmatprep.subr.bf16.mxu0 %v7030_v59  ;;  %3601 = vmatprep.subr.bf16.mxu1 %v7033_v25  ;;  %v7076_v25 = vcombine.low %v302_v34, %v306_v44  ;;  %v7078_v59 = vcombine.high %v309_v30, %v313_v1  ;;  %v322_v34 = vld [vmem:[%s10458_s1 + $0x9a8] sm:$0xff]  ;;  %v7096_v44 = vcombine.low %v309_v30, %v313_v1  ;;  %v329_v30 = vld [vmem:[%s10458_s1 + $0x9e0] sm:$0xff] }
  0x90   :  { %11552 = vst [vmem:[#allocation137_spill] sm:$0xff] %v7081_v62  ;;  %v326_v1 = vld [vmem:[%s10458_s1 + $0x9c8] sm:$0xff] }
  0x91   :  { %11550 = vst [vmem:[#allocation135_spill] sm:$0xff] %v7076_v25  ;;  %11551 = vst [vmem:[#allocation136_spill] sm:$0xff] %v7078_v59 }
  0x92   :  { %3438 = vmatpush1.bf16.msra.mxu0 %v7048_v6  ;;  %3602 = vmatpush1.bf16.msra.mxu1 %v7052_v54  ;;  %11553 = vst [vmem:[#allocation138_spill] sm:$0xff] %v7096_v44  ;;  %v7105_v54 = vcombine.high %v318_v24, %v322_v34  ;;  %v325_v6 = vld [vmem:[%s10458_s1 + $0x9c0] sm:$0xff] }
  0x93   :  { %3439 = vmatprep.subr.bf16.mxu0 %v7054_v2  ;;  %3603 = vmatprep.subr.bf16.mxu1 %v7057_v11  ;;  %v7100_v11 = vcombine.low %v310_v33, %v314_v63  ;;  %v7102_v2 = vcombine.high %v317_v43, %v321_v31  ;;  %v330_v33 = vld [vmem:[%s10458_s1 + $0x9e8] sm:$0xff]  ;;  %v7120_v63 = vcombine.low %v317_v43, %v321_v31  ;;  %v337_v43 = vld [vmem:[%s10458_s1 + $0xa20] sm:$0xff] }
  0x94   :  { %11556 = vst [vmem:[#allocation141_spill] sm:$0xff] %v7105_v54  ;;  %v334_v31 = vld [vmem:[%s10458_s1 + $0xa08] sm:$0xff] }
  0x95   :  { %11554 = vst [vmem:[#allocation139_spill] sm:$0xff] %v7100_v11  ;;  %11555 = vst [vmem:[#allocation140_spill] sm:$0xff] %v7102_v2 }
  0x96   :  { %3440 = vmatpush1.bf16.msra.mxu0 %v7072_v7  ;;  %3604 = vmatpush1.bf16.msra.mxu1 %v7076_v25  ;;  %11557 = vst [vmem:[#allocation142_spill] sm:$0xff] %v7120_v63  ;;  %v7129_v25 = vcombine.high %v326_v1, %v330_v33  ;;  %v333_v7 = vld [vmem:[%s10458_s1 + $0xa00] sm:$0xff] }
  0x97   :  { %3441 = vmatprep.subr.bf16.mxu0 %v7078_v59  ;;  %3605 = vmatprep.subr.bf16.mxu1 %v7081_v62  ;;  %v7124_v62 = vcombine.low %v318_v24, %v322_v34  ;;  %v7126_v59 = vcombine.high %v325_v6, %v329_v30  ;;  %v338_v24 = vld [vmem:[%s10458_s1 + $0xa28] sm:$0xff]  ;;  %v7144_v34 = vcombine.low %v325_v6, %v329_v30  ;;  %v345_v6 = vld [vmem:[%s10458_s1 + $0xa60] sm:$0xff] }
  0x98   :  { %11560 = vst [vmem:[#allocation145_spill] sm:$0xff] %v7129_v25  ;;  %v342_v30 = vld [vmem:[%s10458_s1 + $0xa48] sm:$0xff] }
  0x99   :  { %11558 = vst [vmem:[#allocation143_spill] sm:$0xff] %v7124_v62  ;;  %11559 = vst [vmem:[#allocation144_spill] sm:$0xff] %v7126_v59 }
  0x9a   :  { %3442 = vmatpush1.bf16.msra.mxu0 %v7096_v44  ;;  %3606 = vmatpush1.bf16.msra.mxu1 %v7100_v11  ;;  %11561 = vst [vmem:[#allocation146_spill] sm:$0xff] %v7144_v34  ;;  %v7153_v11 = vcombine.high %v334_v31, %v338_v24  ;;  %v341_v44 = vld [vmem:[%s10458_s1 + $0xa40] sm:$0xff] }
  0x9b   :  { %3443 = vmatprep.subr.bf16.mxu0 %v7102_v2  ;;  %3607 = vmatprep.subr.bf16.mxu1 %v7105_v54  ;;  %v7148_v54 = vcombine.low %v326_v1, %v330_v33  ;;  %v7150_v2 = vcombine.high %v333_v7, %v337_v43  ;;  %v346_v1 = vld [vmem:[%s10458_s1 + $0xa68] sm:$0xff]  ;;  %v7168_v33 = vcombine.low %v333_v7, %v337_v43  ;;  %v353_v7 = vld [vmem:[%s10458_s1 + $0xaa0] sm:$0xff] }
  0x9c   :  { %11564 = vst [vmem:[#allocation149_spill] sm:$0xff] %v7153_v11  ;;  %v350_v43 = vld [vmem:[%s10458_s1 + $0xa88] sm:$0xff] }
  0x9d   :  { %11562 = vst [vmem:[#allocation147_spill] sm:$0xff] %v7148_v54  ;;  %11563 = vst [vmem:[#allocation148_spill] sm:$0xff] %v7150_v2 }
  0x9e   :  { %3444 = vmatpush1.bf16.msra.mxu0 %v7120_v63  ;;  %3608 = vmatpush1.bf16.msra.mxu1 %v7124_v62  ;;  %11565 = vst [vmem:[#allocation150_spill] sm:$0xff] %v7168_v33  ;;  %v7177_v62 = vcombine.high %v342_v30, %v346_v1  ;;  %v349_v63 = vld [vmem:[%s10458_s1 + $0xa80] sm:$0xff] }
  0x9f   :  { %3445 = vmatprep.subr.bf16.mxu0 %v7126_v59  ;;  %3609 = vmatprep.subr.bf16.mxu1 %v7129_v25  ;;  %v7172_v25 = vcombine.low %v334_v31, %v338_v24  ;;  %v7174_v59 = vcombine.high %v341_v44, %v345_v6  ;;  %v354_v31 = vld [vmem:[%s10458_s1 + $0xaa8] sm:$0xff]  ;;  %v7192_v24 = vcombine.low %v341_v44, %v345_v6  ;;  %v361_v44 = vld [vmem:[%s10458_s1 + $0xae0] sm:$0xff] }
  0xa0   :  { %11568 = vst [vmem:[#allocation153_spill] sm:$0xff] %v7177_v62  ;;  %v358_v6 = vld [vmem:[%s10458_s1 + $0xac8] sm:$0xff] }
  0xa1   :  { %11566 = vst [vmem:[#allocation151_spill] sm:$0xff] %v7172_v25  ;;  %11567 = vst [vmem:[#allocation152_spill] sm:$0xff] %v7174_v59 }
  0xa2   :  { %3446 = vmatpush1.bf16.msra.mxu0 %v7144_v34  ;;  %3610 = vmatpush1.bf16.msra.mxu1 %v7148_v54  ;;  %11569 = vst [vmem:[#allocation154_spill] sm:$0xff] %v7192_v24  ;;  %v7201_v54 = vcombine.high %v350_v43, %v354_v31  ;;  %v357_v34 = vld [vmem:[%s10458_s1 + $0xac0] sm:$0xff] }
  0xa3   :  { %3447 = vmatprep.subr.bf16.mxu0 %v7150_v2  ;;  %3611 = vmatprep.subr.bf16.mxu1 %v7153_v11  ;;  %v7196_v11 = vcombine.low %v342_v30, %v346_v1  ;;  %v7198_v2 = vcombine.high %v349_v63, %v353_v7  ;;  %v362_v30 = vld [vmem:[%s10458_s1 + $0xae8] sm:$0xff]  ;;  %v7216_v1 = vcombine.low %v349_v63, %v353_v7  ;;  %v369_v63 = vld [vmem:[%s10458_s1 + $0xb20] sm:$0xff] }
  0xa4   :  { %11572 = vst [vmem:[#allocation157_spill] sm:$0xff] %v7201_v54  ;;  %v366_v7 = vld [vmem:[%s10458_s1 + $0xb08] sm:$0xff] }
  0xa5   :  { %11570 = vst [vmem:[#allocation155_spill] sm:$0xff] %v7196_v11  ;;  %11571 = vst [vmem:[#allocation156_spill] sm:$0xff] %v7198_v2 }
  0xa6   :  { %3448 = vmatpush1.bf16.msra.mxu0 %v7168_v33  ;;  %3612 = vmatpush1.bf16.msra.mxu1 %v7172_v25  ;;  %11573 = vst [vmem:[#allocation158_spill] sm:$0xff] %v7216_v1  ;;  %v7225_v25 = vcombine.high %v358_v6, %v362_v30  ;;  %v365_v33 = vld [vmem:[%s10458_s1 + $0xb00] sm:$0xff] }
  0xa7   :  { %3449 = vmatprep.subr.bf16.mxu0 %v7174_v59  ;;  %3613 = vmatprep.subr.bf16.mxu1 %v7177_v62  ;;  %v7220_v62 = vcombine.low %v350_v43, %v354_v31  ;;  %v7222_v59 = vcombine.high %v357_v34, %v361_v44  ;;  %v370_v43 = vld [vmem:[%s10458_s1 + $0xb28] sm:$0xff]  ;;  %v7240_v31 = vcombine.low %v357_v34, %v361_v44  ;;  %v377_v34 = vld [vmem:[%s10458_s1 + $0xb60] sm:$0xff] }
  0xa8   :  { %11576 = vst [vmem:[#allocation161_spill] sm:$0xff] %v7225_v25  ;;  %v374_v44 = vld [vmem:[%s10458_s1 + $0xb48] sm:$0xff] }
  0xa9   :  { %11574 = vst [vmem:[#allocation159_spill] sm:$0xff] %v7220_v62  ;;  %11575 = vst [vmem:[#allocation160_spill] sm:$0xff] %v7222_v59 }
  0xaa   :  { %3450 = vmatpush1.bf16.msra.mxu0 %v7192_v24  ;;  %3614 = vmatpush1.bf16.msra.mxu1 %v7196_v11  ;;  %11577 = vst [vmem:[#allocation162_spill] sm:$0xff] %v7240_v31  ;;  %v7249_v11 = vcombine.high %v366_v7, %v370_v43  ;;  %v373_v24 = vld [vmem:[%s10458_s1 + $0xb40] sm:$0xff] }
  0xab   :  { %3451 = vmatprep.subr.bf16.mxu0 %v7198_v2  ;;  %3615 = vmatprep.subr.bf16.mxu1 %v7201_v54  ;;  %v7244_v54 = vcombine.low %v358_v6, %v362_v30  ;;  %v7246_v2 = vcombine.high %v365_v33, %v369_v63  ;;  %v378_v6 = vld [vmem:[%s10458_s1 + $0xb68] sm:$0xff]  ;;  %v7264_v30 = vcombine.low %v365_v33, %v369_v63  ;;  %v385_v33 = vld [vmem:[%s10458_s1 + $0xba0] sm:$0xff] }
  0xac   :  { %11580 = vst [vmem:[#allocation165_spill] sm:$0xff] %v7249_v11  ;;  %v382_v63 = vld [vmem:[%s10458_s1 + $0xb88] sm:$0xff] }
  0xad   :  { %11578 = vst [vmem:[#allocation163_spill] sm:$0xff] %v7244_v54  ;;  %11579 = vst [vmem:[#allocation164_spill] sm:$0xff] %v7246_v2 }
  0xae   :  { %3452 = vmatpush1.bf16.msra.mxu0 %v7216_v1  ;;  %3616 = vmatpush1.bf16.msra.mxu1 %v7220_v62  ;;  %11581 = vst [vmem:[#allocation166_spill] sm:$0xff] %v7264_v30  ;;  %v7273_v62 = vcombine.high %v374_v44, %v378_v6  ;;  %v381_v1 = vld [vmem:[%s10458_s1 + $0xb80] sm:$0xff] }
  0xaf   :  { %3453 = vmatprep.subr.bf16.mxu0 %v7222_v59  ;;  %3617 = vmatprep.subr.bf16.mxu1 %v7225_v25  ;;  %v7268_v25 = vcombine.low %v366_v7, %v370_v43  ;;  %v7270_v59 = vcombine.high %v373_v24, %v377_v34  ;;  %v386_v7 = vld [vmem:[%s10458_s1 + $0xba8] sm:$0xff]  ;;  %v7288_v43 = vcombine.low %v373_v24, %v377_v34  ;;  %v393_v24 = vld [vmem:[%s10458_s1 + $0xbe0] sm:$0xff] }
  0xb0   :  { %11584 = vst [vmem:[#allocation169_spill] sm:$0xff] %v7273_v62  ;;  %v650_v34 = vcombine.high %v6903_v55, %v6903_v55 }
  0xb1   :  { %11582 = vst [vmem:[#allocation167_spill] sm:$0xff] %v7268_v25  ;;  %11583 = vst [vmem:[#allocation168_spill] sm:$0xff] %v7270_v59 }
  0xb2   :  { %3454 = vmatpush1.bf16.msra.mxu0 %v7240_v31  ;;  %3618 = vmatpush1.bf16.msra.mxu1 %v7244_v54  ;;  %11585 = vst [vmem:[#allocation170_spill] sm:$0xff] %v7288_v43  ;;  %v7297_v54 = vcombine.high %v382_v63, %v386_v7  ;;  %v389_v31 = vld [vmem:[%s10458_s1 + $0xbc0] sm:$0xff] }
  0xb3   :  { %3455 = vmatprep.subr.bf16.mxu0 %v7246_v2  ;;  %3619 = vmatprep.subr.bf16.mxu1 %v7249_v11  ;;  %v7292_v11 = vcombine.low %v374_v44, %v378_v6  ;;  %v7294_v2 = vcombine.high %v381_v1, %v385_v33  ;;  %v390_v44 = vld [vmem:[%s10458_s1 + $0xbc8] sm:$0xff] }
  0xb4   :  { %11588 = vst [vmem:[#allocation173_spill] sm:$0xff] %v7297_v54  ;;  %v394_v6 = vld [vmem:[%s10458_s1 + $0xbe8] sm:$0xff] }
  0xb5   :  { %11586 = vst [vmem:[#allocation171_spill] sm:$0xff] %v7292_v11  ;;  %11587 = vst [vmem:[#allocation172_spill] sm:$0xff] %v7294_v2  ;;  %v7323_v55 = vcombine.high %v390_v44, %v394_v6 }
  0xb6   :  { %3456 = vmatpush1.bf16.msra.mxu0 %v7264_v30  ;;  %3620 = vmatpush1.bf16.msra.mxu1 %v7268_v25  ;;  %v7320_v25 = vcombine.high %v389_v31, %v393_v24  ;;  %v397_v30 = vld [vmem:[%s10458_s1 + $0xc00] sm:$0xff] }
  0xb7   :  { %3457 = vmatprep.subr.bf16.mxu0 %v7270_v59  ;;  %3621 = vmatprep.subr.bf16.mxu1 %v7273_v62  ;;  %v7314_v62 = vcombine.low %v381_v1, %v385_v33  ;;  %v7318_v59 = vcombine.low %v382_v63, %v386_v7  ;;  %11592 = vst [vmem:[#allocation177_spill] sm:$0xff] %v7323_v55  ;;  %v401_v1 = vld [vmem:[%s10458_s1 + $0xc20] sm:$0xff]  ;;  %v398_v63 = vld [vmem:[%s10458_s1 + $0xc08] sm:$0xff] }
  0xb8   :  { %11591 = vst [vmem:[#allocation176_spill] sm:$0xff] %v7320_v25  ;;  %v7332_v33 = vrot.slane %v650_v34, %v6222_v53  ;;  %v402_v7 = vld [vmem:[%s10458_s1 + $0xc28] sm:$0xff]  ;;  %v7347_v34 = vcombine.high %v397_v30, %v401_v1 }
  0xb9   :  { %11589 = vst [vmem:[#allocation174_spill] sm:$0xff] %v7314_v62  ;;  %11590 = vst [vmem:[#allocation175_spill] sm:$0xff] %v7318_v59  ;;  %v7350_v53 = vcombine.high %v398_v63, %v402_v7 }
  0xba   :  { %3458 = vmatpush1.bf16.msra.mxu0 %v7288_v43  ;;  %3622 = vmatpush1.bf16.msra.mxu1 %v7292_v11  ;;  %11595 = vst [vmem:[#allocation180_spill] sm:$0xff] %v7347_v34  ;;  %v405_v11 = vld [vmem:[%s10458_s1 + $0xc40] sm:$0xff] }
  0xbb   :  { %3459 = vmatprep.subr.bf16.mxu0 %v7294_v2  ;;  %3623 = vmatprep.subr.bf16.mxu1 %v7297_v54  ;;  %v7341_v54 = vcombine.low %v389_v31, %v393_v24  ;;  %v7345_v2 = vcombine.low %v390_v44, %v394_v6  ;;  %11596 = vst [vmem:[#allocation181_spill] sm:$0xff] %v7350_v53  ;;  %v409_v31 = vld [vmem:[%s10458_s1 + $0xc60] sm:$0xff]  ;;  %v406_v6 = vld [vmem:[%s10458_s1 + $0xc48] sm:$0xff] }
  0xbc   :  { %v666_v24 = vcombine.high %v7332_v33, %v7332_v33  ;;  %v7362_v44 = vpack.c.bf16 %v6931_v46, %v6931_v46  ;;  %v7377_v46 = vcombine.high %v405_v11, %v409_v31  ;;  %v413_v43 = vld [vmem:[%s10458_s1 + $0xc80] sm:$0xff] }
  0xbd   :  { %11593 = vst [vmem:[#allocation178_spill] sm:$0xff] %v7341_v54  ;;  %11594 = vst [vmem:[#allocation179_spill] sm:$0xff] %v7345_v2 }
  0xbe   :  { %3460 = vmatpush1.bf16.msra.mxu0 %v7314_v62  ;;  %3624 = vmatpush1.bf16.msra.mxu1 %v7318_v59  ;;  %11597 = vst [vmem:[#allocation182_spill] sm:$0xff] %v7362_v44  ;;  %v7375_v59 = vcombine.low %v398_v63, %v402_v7  ;;  %11600 = vst [vmem:[#allocation185_spill] sm:$0xff] %v7377_v46  ;;  %v414_v63 = vld [vmem:[%s10458_s1 + $0xc88] sm:$0xff] }
  0xbf   :  { %3461 = vmatprep.subr.bf16.mxu0 %v7320_v25  ;;  %3625 = vmatprep.subr.bf16.mxu1 %v7323_v55  ;;  %v410_v55 = vld [vmem:[%s10458_s1 + $0xc68] sm:$0xff]  ;;  %v7371_v25 = vcombine.low %v397_v30, %v401_v1  ;;  %v417_v30 = vld [vmem:[%s10458_s1 + $0xca0] sm:$0xff]  ;;  %v7388_v1 = vpack.c.bf16 %v666_v24, %v666_v24 }
  0xc0   :  { %11599 = vst [vmem:[#allocation184_spill] sm:$0xff] %v7375_v59  ;;  %v7380_v62 = vcombine.high %v406_v6, %v410_v55  ;;  %v418_v7 = vld [vmem:[%s10458_s1 + $0xca8] sm:$0xff]  ;;  %v7403_v24 = vcombine.low %v406_v6, %v410_v55  ;;  %v7425_v6 = vcombine.low %v413_v43, %v417_v30 }
  0xc1   :  { %11598 = vst [vmem:[#allocation183_spill] sm:$0xff] %v7371_v25  ;;  %11602 = vst [vmem:[#allocation187_spill] sm:$0xff] %v7388_v1  ;;  %v422_v55 = vld [vmem:[%s10458_s1 + $0xcc8] sm:$0xff] }
  0xc2   :  { %3462 = vmatpush1.bf16.msra.mxu0 %v7341_v54  ;;  %3626 = vmatpush1.bf16.msra.mxu1 %v7345_v2  ;;  %11601 = vst [vmem:[#allocation186_spill] sm:$0xff] %v7380_v62  ;;  %11604 = vst [vmem:[#allocation189_spill] sm:$0xff] %v7403_v24  ;;  %v7408_v2 = vcombine.high %v414_v63, %v418_v7  ;;  %v429_v54 = vld [vmem:[%s10458_s1 + $0xd00] sm:$0xff] }
  0xc3   :  { %3472 = vmatprep.subr.bf16.mxu0 %v7347_v34  ;;  %3636 = vmatprep.subr.bf16.mxu1 %v7350_v53  ;;  %v7399_v53 = vcombine.low %v405_v11, %v409_v31  ;;  %v7405_v34 = vcombine.high %v413_v43, %v417_v30  ;;  %v425_v11 = vld [vmem:[%s10458_s1 + $0xce0] sm:$0xff]  ;;  %v426_v31 = vld [vmem:[%s10458_s1 + $0xce8] sm:$0xff]  ;;  %11607 = vst [vmem:[#allocation192_spill] sm:$0xff] %v7425_v6 }
  0xc4   :  { %11606 = vst [vmem:[#allocation191_spill] sm:$0xff] %v7408_v2  ;;  %v433_v43 = vld [vmem:[%s10458_s1 + $0xd20] sm:$0xff]  ;;  %v430_v30 = vld [vmem:[%s10458_s1 + $0xd08] sm:$0xff] }
  0xc5   :  { %3464 = vmatmul.mubr.bf16.vlgmr.msra.gmra.mrb[0].mxu0 %v7362_v44  ;;  %3628 = vmatmul.mubr.bf16.vlgmr.msra.gmra.mrb[0].mxu1 %v7362_v44  ;;  %11603 = vst [vmem:[#allocation188_spill] sm:$0xff] %v7399_v53  ;;  %11605 = vst [vmem:[#allocation190_spill] sm:$0xff] %v7405_v34 }
  0xc6   :  { %3473 = vmatpush1.bf16.msra.mxu0 %v7371_v25  ;;  %3637 = vmatpush1.bf16.msra.mxu1 %v7375_v59  ;;  %v421_v25 = vld [vmem:[%s10458_s1 + $0xcc0] sm:$0xff]  ;;  %v7434_v59 = vcombine.high %v422_v55, %v426_v31 }
  0xc7   :  { %3474 = vmatprep.subr.bf16.mxu0 %v7377_v46  ;;  %3638 = vmatprep.subr.bf16.mxu1 %v7380_v62  ;;  %v7429_v62 = vcombine.low %v414_v63, %v418_v7  ;;  %v7431_v46 = vcombine.high %v421_v25, %v425_v11  ;;  %v434_v63 = vld [vmem:[%s10458_s1 + $0xd28] sm:$0xff]  ;;  %v7449_v7 = vcombine.low %v421_v25, %v425_v11  ;;  %v441_v25 = vld [vmem:[%s10458_s1 + $0xd60] sm:$0xff] }
  0xc8   :  { %3504 = vmatprep.mubr.bf16.mxu0 %v7388_v1  ;;  %3668 = vmatprep.mubr.bf16.mxu1 %v7388_v1  ;;  %11610 = vst [vmem:[#allocation195_spill] sm:$0xff] %v7434_v59  ;;  %v438_v11 = vld [vmem:[%s10458_s1 + $0xd48] sm:$0xff] }
  0xc9   :  { %11608 = vst [vmem:[#allocation193_spill] sm:$0xff] %v7429_v62  ;;  %11609 = vst [vmem:[#allocation194_spill] sm:$0xff] %v7431_v46 }
  0xca   :  { %3475 = vmatpush1.bf16.msra.mxu0 %v7399_v53  ;;  %3639 = vmatpush1.bf16.msra.mxu1 %v7403_v24  ;;  %11611 = vst [vmem:[#allocation196_spill] sm:$0xff] %v7449_v7  ;;  %v7458_v24 = vcombine.high %v430_v30, %v434_v63  ;;  %v437_v53 = vld [vmem:[%s10458_s1 + $0xd40] sm:$0xff] }
  0xcb   :  { %3476 = vmatprep.subr.bf16.mxu0 %v7405_v34  ;;  %3640 = vmatprep.subr.bf16.mxu1 %v7408_v2  ;;  %v7453_v2 = vcombine.low %v422_v55, %v426_v31  ;;  %v7455_v34 = vcombine.high %v429_v54, %v433_v43  ;;  %v442_v55 = vld [vmem:[%s10458_s1 + $0xd68] sm:$0xff]  ;;  %v7473_v31 = vcombine.low %v429_v54, %v433_v43  ;;  %v449_v54 = vld [vmem:[%s10458_s1 + $0xda0] sm:$0xff] }
  0xcc   :  { %11614 = vst [vmem:[#allocation199_spill] sm:$0xff] %v7458_v24  ;;  %v446_v43 = vld [vmem:[%s10458_s1 + $0xd88] sm:$0xff] }
  0xcd   :  { %11612 = vst [vmem:[#allocation197_spill] sm:$0xff] %v7453_v2  ;;  %11613 = vst [vmem:[#allocation198_spill] sm:$0xff] %v7455_v34 }
  0xce   :  { %3477 = vmatpush1.bf16.msra.mxu0 %v7425_v6  ;;  %3641 = vmatpush1.bf16.msra.mxu1 %v7429_v62  ;;  %11615 = vst [vmem:[#allocation200_spill] sm:$0xff] %v7473_v31  ;;  %v7482_v62 = vcombine.high %v438_v11, %v442_v55  ;;  %v445_v6 = vld [vmem:[%s10458_s1 + $0xd80] sm:$0xff] }
  0xcf   :  { %3478 = vmatprep.subr.bf16.mxu0 %v7431_v46  ;;  %3642 = vmatprep.subr.bf16.mxu1 %v7434_v59  ;;  %v7477_v59 = vcombine.low %v430_v30, %v434_v63  ;;  %v7479_v46 = vcombine.high %v437_v53, %v441_v25  ;;  %v450_v30 = vld [vmem:[%s10458_s1 + $0xda8] sm:$0xff]  ;;  %v7497_v63 = vcombine.low %v437_v53, %v441_v25  ;;  %v457_v53 = vld [vmem:[%s10458_s1 + $0xde0] sm:$0xff] }
  0xd0   :  { %11618 = vst [vmem:[#allocation203_spill] sm:$0xff] %v7482_v62  ;;  %v454_v25 = vld [vmem:[%s10458_s1 + $0xdc8] sm:$0xff] }
  0xd1   :  { %11616 = vst [vmem:[#allocation201_spill] sm:$0xff] %v7477_v59  ;;  %11617 = vst [vmem:[#allocation202_spill] sm:$0xff] %v7479_v46 }
  0xd2   :  { %3479 = vmatpush1.bf16.msra.mxu0 %v7449_v7  ;;  %3643 = vmatpush1.bf16.msra.mxu1 %v7453_v2  ;;  %11619 = vst [vmem:[#allocation204_spill] sm:$0xff] %v7497_v63  ;;  %v7506_v2 = vcombine.high %v446_v43, %v450_v30  ;;  %v453_v7 = vld [vmem:[%s10458_s1 + $0xdc0] sm:$0xff] }
  0xd3   :  { %3480 = vmatprep.subr.bf16.mxu0 %v7455_v34  ;;  %3644 = vmatprep.subr.bf16.mxu1 %v7458_v24  ;;  %v7501_v24 = vcombine.low %v438_v11, %v442_v55  ;;  %v7503_v34 = vcombine.high %v445_v6, %v449_v54  ;;  %v458_v11 = vld [vmem:[%s10458_s1 + $0xde8] sm:$0xff]  ;;  %v7521_v55 = vcombine.low %v445_v6, %v449_v54  ;;  %v465_v6 = vld [vmem:[%s10458_s1 + $0xe20] sm:$0xff] }
  0xd4   :  { %11622 = vst [vmem:[#allocation207_spill] sm:$0xff] %v7506_v2  ;;  %v462_v54 = vld [vmem:[%s10458_s1 + $0xe08] sm:$0xff] }
  0xd5   :  { %11620 = vst [vmem:[#allocation205_spill] sm:$0xff] %v7501_v24  ;;  %11621 = vst [vmem:[#allocation206_spill] sm:$0xff] %v7503_v34 }
  0xd6   :  { %3481 = vmatpush1.bf16.msra.mxu0 %v7473_v31  ;;  %3645 = vmatpush1.bf16.msra.mxu1 %v7477_v59  ;;  %11623 = vst [vmem:[#allocation208_spill] sm:$0xff] %v7521_v55  ;;  %v7530_v59 = vcombine.high %v454_v25, %v458_v11  ;;  %v461_v31 = vld [vmem:[%s10458_s1 + $0xe00] sm:$0xff] }
  0xd7   :  { %3482 = vmatprep.subr.bf16.mxu0 %v7479_v46  ;;  %3646 = vmatprep.subr.bf16.mxu1 %v7482_v62  ;;  %v7525_v62 = vcombine.low %v446_v43, %v450_v30  ;;  %v7527_v46 = vcombine.high %v453_v7, %v457_v53  ;;  %v466_v43 = vld [vmem:[%s10458_s1 + $0xe28] sm:$0xff]  ;;  %v7545_v30 = vcombine.low %v453_v7, %v457_v53  ;;  %v473_v7 = vld [vmem:[%s10458_s1 + $0xe60] sm:$0xff] }
  0xd8   :  { %11626 = vst [vmem:[#allocation211_spill] sm:$0xff] %v7530_v59  ;;  %v470_v53 = vld [vmem:[%s10458_s1 + $0xe48] sm:$0xff] }
  0xd9   :  { %11624 = vst [vmem:[#allocation209_spill] sm:$0xff] %v7525_v62  ;;  %11625 = vst [vmem:[#allocation210_spill] sm:$0xff] %v7527_v46 }
  0xda   :  { %3483 = vmatpush1.bf16.msra.mxu0 %v7497_v63  ;;  %3647 = vmatpush1.bf16.msra.mxu1 %v7501_v24  ;;  %11627 = vst [vmem:[#allocation212_spill] sm:$0xff] %v7545_v30  ;;  %v7554_v24 = vcombine.high %v462_v54, %v466_v43  ;;  %v469_v63 = vld [vmem:[%s10458_s1 + $0xe40] sm:$0xff] }
  0xdb   :  { %3484 = vmatprep.subr.bf16.mxu0 %v7503_v34  ;;  %3648 = vmatprep.subr.bf16.mxu1 %v7506_v2  ;;  %v7549_v2 = vcombine.low %v454_v25, %v458_v11  ;;  %v7551_v34 = vcombine.high %v461_v31, %v465_v6  ;;  %v474_v25 = vld [vmem:[%s10458_s1 + $0xe68] sm:$0xff]  ;;  %v7569_v11 = vcombine.low %v461_v31, %v465_v6  ;;  %v481_v31 = vld [vmem:[%s10458_s1 + $0xea0] sm:$0xff] }
  0xdc   :  { %11630 = vst [vmem:[#allocation215_spill] sm:$0xff] %v7554_v24  ;;  %v478_v6 = vld [vmem:[%s10458_s1 + $0xe88] sm:$0xff] }
  0xdd   :  { %11628 = vst [vmem:[#allocation213_spill] sm:$0xff] %v7549_v2  ;;  %11629 = vst [vmem:[#allocation214_spill] sm:$0xff] %v7551_v34 }
  0xde   :  { %3485 = vmatpush1.bf16.msra.mxu0 %v7521_v55  ;;  %3649 = vmatpush1.bf16.msra.mxu1 %v7525_v62  ;;  %11631 = vst [vmem:[#allocation216_spill] sm:$0xff] %v7569_v11  ;;  %v7578_v62 = vcombine.high %v470_v53, %v474_v25  ;;  %v477_v55 = vld [vmem:[%s10458_s1 + $0xe80] sm:$0xff] }
  0xdf   :  { %3486 = vmatprep.subr.bf16.mxu0 %v7527_v46  ;;  %3650 = vmatprep.subr.bf16.mxu1 %v7530_v59  ;;  %v7573_v59 = vcombine.low %v462_v54, %v466_v43  ;;  %v7575_v46 = vcombine.high %v469_v63, %v473_v7  ;;  %v482_v54 = vld [vmem:[%s10458_s1 + $0xea8] sm:$0xff]  ;;  %v7593_v43 = vcombine.low %v469_v63, %v473_v7  ;;  %v489_v63 = vld [vmem:[%s10458_s1 + $0xee0] sm:$0xff] }
  0xe0   :  { %11634 = vst [vmem:[#allocation219_spill] sm:$0xff] %v7578_v62  ;;  %v486_v7 = vld [vmem:[%s10458_s1 + $0xec8] sm:$0xff] }
  0xe1   :  { %11632 = vst [vmem:[#allocation217_spill] sm:$0xff] %v7573_v59  ;;  %11633 = vst [vmem:[#allocation218_spill] sm:$0xff] %v7575_v46 }
  0xe2   :  { %3487 = vmatpush1.bf16.msra.mxu0 %v7545_v30  ;;  %3651 = vmatpush1.bf16.msra.mxu1 %v7549_v2  ;;  %11635 = vst [vmem:[#allocation220_spill] sm:$0xff] %v7593_v43  ;;  %v7602_v2 = vcombine.high %v478_v6, %v482_v54  ;;  %v485_v30 = vld [vmem:[%s10458_s1 + $0xec0] sm:$0xff] }
  0xe3   :  { %3488 = vmatprep.subr.bf16.mxu0 %v7551_v34  ;;  %3652 = vmatprep.subr.bf16.mxu1 %v7554_v24  ;;  %v7597_v24 = vcombine.low %v470_v53, %v474_v25  ;;  %v7599_v34 = vcombine.high %v477_v55, %v481_v31  ;;  %v490_v53 = vld [vmem:[%s10458_s1 + $0xee8] sm:$0xff]  ;;  %v7617_v25 = vcombine.low %v477_v55, %v481_v31  ;;  %v497_v55 = vld [vmem:[%s10458_s1 + $0xf20] sm:$0xff] }
  0xe4   :  { %11638 = vst [vmem:[#allocation223_spill] sm:$0xff] %v7602_v2  ;;  %v494_v31 = vld [vmem:[%s10458_s1 + $0xf08] sm:$0xff] }
  0xe5   :  { %11636 = vst [vmem:[#allocation221_spill] sm:$0xff] %v7597_v24  ;;  %11637 = vst [vmem:[#allocation222_spill] sm:$0xff] %v7599_v34 }
  0xe6   :  { %3489 = vmatpush1.bf16.msra.mxu0 %v7569_v11  ;;  %3653 = vmatpush1.bf16.msra.mxu1 %v7573_v59  ;;  %11639 = vst [vmem:[#allocation224_spill] sm:$0xff] %v7617_v25  ;;  %v7626_v59 = vcombine.high %v486_v7, %v490_v53  ;;  %v493_v11 = vld [vmem:[%s10458_s1 + $0xf00] sm:$0xff] }
  0xe7   :  { %3490 = vmatprep.subr.bf16.mxu0 %v7575_v46  ;;  %3654 = vmatprep.subr.bf16.mxu1 %v7578_v62  ;;  %v7621_v62 = vcombine.low %v478_v6, %v482_v54  ;;  %v7623_v46 = vcombine.high %v485_v30, %v489_v63  ;;  %v498_v6 = vld [vmem:[%s10458_s1 + $0xf28] sm:$0xff]  ;;  %v7641_v54 = vcombine.low %v485_v30, %v489_v63  ;;  %v505_v30 = vld [vmem:[%s10458_s1 + $0xf60] sm:$0xff] }
  0xe8   :  { %11642 = vst [vmem:[#allocation227_spill] sm:$0xff] %v7626_v59  ;;  %v502_v63 = vld [vmem:[%s10458_s1 + $0xf48] sm:$0xff] }
  0xe9   :  { %11640 = vst [vmem:[#allocation225_spill] sm:$0xff] %v7621_v62  ;;  %11641 = vst [vmem:[#allocation226_spill] sm:$0xff] %v7623_v46 }
  0xea   :  { %3491 = vmatpush1.bf16.msra.mxu0 %v7593_v43  ;;  %3655 = vmatpush1.bf16.msra.mxu1 %v7597_v24  ;;  %11643 = vst [vmem:[#allocation228_spill] sm:$0xff] %v7641_v54  ;;  %v7650_v24 = vcombine.high %v494_v31, %v498_v6  ;;  %v501_v43 = vld [vmem:[%s10458_s1 + $0xf40] sm:$0xff] }
  0xeb   :  { %3492 = vmatprep.subr.bf16.mxu0 %v7599_v34  ;;  %3656 = vmatprep.subr.bf16.mxu1 %v7602_v2  ;;  %v7645_v2 = vcombine.low %v486_v7, %v490_v53  ;;  %v7647_v34 = vcombine.high %v493_v11, %v497_v55  ;;  %v506_v7 = vld [vmem:[%s10458_s1 + $0xf68] sm:$0xff]  ;;  %v7665_v53 = vcombine.low %v493_v11, %v497_v55  ;;  %v513_v11 = vld [vmem:[%s10458_s1 + $0xfa0] sm:$0xff] }
  0xec   :  { %11646 = vst [vmem:[#allocation231_spill] sm:$0xff] %v7650_v24  ;;  %v510_v55 = vld [vmem:[%s10458_s1 + $0xf88] sm:$0xff] }
  0xed   :  { %11644 = vst [vmem:[#allocation229_spill] sm:$0xff] %v7645_v2  ;;  %11645 = vst [vmem:[#allocation230_spill] sm:$0xff] %v7647_v34 }
  0xee   :  { %3493 = vmatpush1.bf16.msra.mxu0 %v7617_v25  ;;  %3657 = vmatpush1.bf16.msra.mxu1 %v7621_v62  ;;  %11647 = vst [vmem:[#allocation232_spill] sm:$0xff] %v7665_v53  ;;  %v7674_v62 = vcombine.high %v502_v63, %v506_v7  ;;  %v509_v25 = vld [vmem:[%s10458_s1 + $0xf80] sm:$0xff] }
  0xef   :  { %3494 = vmatprep.subr.bf16.mxu0 %v7623_v46  ;;  %3658 = vmatprep.subr.bf16.mxu1 %v7626_v59  ;;  %v7669_v59 = vcombine.low %v494_v31, %v498_v6  ;;  %v7671_v46 = vcombine.high %v501_v43, %v505_v30  ;;  %v514_v31 = vld [vmem:[%s10458_s1 + $0xfa8] sm:$0xff]  ;;  %v7689_v6 = vcombine.low %v501_v43, %v505_v30  ;;  %v521_v43 = vld [vmem:[%s10458_s1 + $0xfe0] sm:$0xff] }
  0xf0   :  { %11650 = vst [vmem:[#allocation235_spill] sm:$0xff] %v7674_v62  ;;  %v518_v30 = vld [vmem:[%s10458_s1 + $0xfc8] sm:$0xff] }
  0xf1   :  { %11648 = vst [vmem:[#allocation233_spill] sm:$0xff] %v7669_v59  ;;  %11649 = vst [vmem:[#allocation234_spill] sm:$0xff] %v7671_v46 }
  0xf2   :  { %3495 = vmatpush1.bf16.msra.mxu0 %v7641_v54  ;;  %3659 = vmatpush1.bf16.msra.mxu1 %v7645_v2  ;;  %11651 = vst [vmem:[#allocation236_spill] sm:$0xff] %v7689_v6  ;;  %v7698_v2 = vcombine.high %v510_v55, %v514_v31  ;;  %v517_v54 = vld [vmem:[%s10458_s1 + $0xfc0] sm:$0xff] }
  0xf3   :  { %3496 = vmatprep.subr.bf16.mxu0 %v7647_v34  ;;  %3660 = vmatprep.subr.bf16.mxu1 %v7650_v24  ;;  %v7693_v24 = vcombine.low %v502_v63, %v506_v7  ;;  %v7695_v34 = vcombine.high %v509_v25, %v513_v11  ;;  %v522_v63 = vld [vmem:[%s10458_s1 + $0xfe8] sm:$0xff]  ;;  %v7713_v7 = vcombine.low %v509_v25, %v513_v11  ;;  %v19_v25 = vld [vmem:[%s10458_s1 + $0x30] sm:$0xff]  ;;  %v16_v11 = vld [vmem:[%s10458_s1 + $0x18] sm:$0xff] }
  0xf4   :  { %11654 = vst [vmem:[#allocation239_spill] sm:$0xff] %v7698_v2 }
  0xf5   :  { %11652 = vst [vmem:[#allocation237_spill] sm:$0xff] %v7693_v24  ;;  %11653 = vst [vmem:[#allocation238_spill] sm:$0xff] %v7695_v34 }
  0xf6   :  { %3497 = vmatpush1.bf16.msra.mxu0 %v7665_v53  ;;  %3661 = vmatpush1.bf16.msra.mxu1 %v7669_v59  ;;  %11655 = vst [vmem:[#allocation240_spill] sm:$0xff] %v7713_v7  ;;  %v7722_v59 = vcombine.high %v518_v30, %v522_v63  ;;  %v15_v53 = vld [vmem:[%s10458_s1 + $0x10] sm:$0xff] }
  0xf7   :  { %3498 = vmatprep.subr.bf16.mxu0 %v7671_v46  ;;  %3662 = vmatprep.subr.bf16.mxu1 %v7674_v62  ;;  %v7717_v62 = vcombine.low %v510_v55, %v514_v31  ;;  %v7719_v46 = vcombine.high %v517_v54, %v521_v43  ;;  %v20_v55 = vld [vmem:[%s10458_s1 + $0x38] sm:$0xff]  ;;  %v7737_v31 = vcombine.low %v517_v54, %v521_v43  ;;  %v27_v54 = vld [vmem:[%s10458_s1 + $0x70] sm:$0xff] }
  0xf8   :  { %11658 = vst [vmem:[#allocation243_spill] sm:$0xff] %v7722_v59  ;;  %v7756_v43 = vpack.c.bf16 %v7332_v33, %v7332_v33 }
  0xf9   :  { %11656 = vst [vmem:[#allocation241_spill] sm:$0xff] %v7717_v62  ;;  %11657 = vst [vmem:[#allocation242_spill] sm:$0xff] %v7719_v46 }
  0xfa   :  { %3499 = vmatpush1.bf16.msra.mxu0 %v7689_v6  ;;  %3663 = vmatpush1.bf16.msra.mxu1 %v7693_v24  ;;  %11659 = vst [vmem:[#allocation244_spill] sm:$0xff] %v7737_v31  ;;  %v7746_v24 = vcombine.high %v16_v11, %v20_v55  ;;  %v23_v6 = vld [vmem:[%s10458_s1 + $0x50] sm:$0xff]  ;;  %11663 = vst [vmem:[#allocation248_spill] sm:$0xff] %v7756_v43 }
  0xfb   :  { %3500 = vmatprep.subr.bf16.mxu0 %v7695_v34  ;;  %3664 = vmatprep.subr.bf16.mxu1 %v7698_v2  ;;  %v7741_v2 = vcombine.low %v518_v30, %v522_v63  ;;  %v7743_v34 = vcombine.high %v15_v53, %v19_v25  ;;  %v24_v30 = vld [vmem:[%s10458_s1 + $0x58] sm:$0xff]  ;;  %v7771_v33 = vcombine.high %v23_v6, %v27_v54 }
  0xfc   :  { %11662 = vst [vmem:[#allocation247_spill] sm:$0xff] %v7746_v24  ;;  %v28_v63 = vld [vmem:[%s10458_s1 + $0x78] sm:$0xff] }
  0xfd   :  { %11660 = vst [vmem:[#allocation245_spill] sm:$0xff] %v7741_v2  ;;  %11661 = vst [vmem:[#allocation246_spill] sm:$0xff] %v7743_v34 }
  0xfe   :  { %3501 = vmatpush1.bf16.msra.mxu0 %v7713_v7  ;;  %3665 = vmatpush1.bf16.msra.mxu1 %v7717_v62  ;;  %11666 = vst [vmem:[#allocation251_spill] sm:$0xff] %v7771_v33  ;;  %v7774_v62 = vcombine.high %v24_v30, %v28_v63  ;;  %v31_v7 = vld [vmem:[%s10458_s1 + $0x90] sm:$0xff] }
  0xff   :  { %3502 = vmatprep.subr.bf16.mxu0 %v7719_v46  ;;  %3666 = vmatprep.subr.bf16.mxu1 %v7722_v59  ;;  %v7765_v59 = vcombine.low %v15_v53, %v19_v25  ;;  %v7769_v46 = vcombine.low %v16_v11, %v20_v55  ;;  %v35_v53 = vld [vmem:[%s10458_s1 + $0xb0] sm:$0xff]  ;;  %v32_v25 = vld [vmem:[%s10458_s1 + $0x98] sm:$0xff]  ;;  %v7791_v55 = vcombine.low %v23_v6, %v27_v54 }
 0x100   :  { %11667 = vst [vmem:[#allocation252_spill] sm:$0xff] %v7774_v62  ;;  %v36_v11 = vld [vmem:[%s10458_s1 + $0xb8] sm:$0xff]  ;;  %v43_v6 = vld [vmem:[%s10458_s1 + $0xf0] sm:$0xff] }
 0x101   :  { %11664 = vst [vmem:[#allocation249_spill] sm:$0xff] %v7765_v59  ;;  %11665 = vst [vmem:[#allocation250_spill] sm:$0xff] %v7769_v46  ;;  %v40_v54 = vld [vmem:[%s10458_s1 + $0xd8] sm:$0xff] }
 0x102   :  { %3503 = vmatpush1.bf16.msra.mxu0 %v7737_v31  ;;  %3667 = vmatpush1.bf16.msra.mxu1 %v7741_v2  ;;  %11668 = vst [vmem:[#allocation253_spill] sm:$0xff] %v7791_v55  ;;  %v7800_v2 = vcombine.high %v32_v25, %v36_v11  ;;  %v39_v31 = vld [vmem:[%s10458_s1 + $0xd0] sm:$0xff] }
 0x103   :  { %3677 = vmatprep.subr.bf16.mxu0 %v7743_v34  ;;  %3841 = vmatprep.subr.bf16.mxu1 %v7746_v24  ;;  %v7795_v24 = vcombine.low %v24_v30, %v28_v63  ;;  %v7797_v34 = vcombine.high %v31_v7, %v35_v53  ;;  %v44_v30 = vld [vmem:[%s10458_s1 + $0xf8] sm:$0xff]  ;;  %v7817_v63 = vcombine.low %v31_v7, %v35_v53  ;;  %v51_v7 = vld [vmem:[%s10458_s1 + $0x130] sm:$0xff] }
 0x104   :  { %11671 = vst [vmem:[#allocation256_spill] sm:$0xff] %v7800_v2  ;;  %v48_v53 = vld [vmem:[%s10458_s1 + $0x118] sm:$0xff] }
 0x105   :  { %3505 = vmatmul.mubr.bf16.vlgmr.msra.gmra.mrb[0].mxu0 %v7756_v43  ;;  %3669 = vmatmul.mubr.bf16.vlgmr.msra.gmra.mrb[0].mxu1 %v7756_v43  ;;  %11669 = vst [vmem:[#allocation254_spill] sm:$0xff] %v7795_v24  ;;  %11670 = vst [vmem:[#allocation255_spill] sm:$0xff] %v7797_v34 }
 0x106   :  { %3678 = vmatpush1.bf16.msra.mxu0 %v7765_v59  ;;  %3842 = vmatpush1.bf16.msra.mxu1 %v7769_v46  ;;  %11672 = vst [vmem:[#allocation257_spill] sm:$0xff] %v7817_v63  ;;  %v7826_v46 = vcombine.high %v40_v54, %v44_v30 }
 0x107   :  { %3679 = vmatprep.subr.bf16.mxu0 %v7771_v33  ;;  %3843 = vmatprep.subr.bf16.mxu1 %v7774_v62  ;;  %v7821_v62 = vcombine.low %v32_v25, %v36_v11  ;;  %v7823_v33 = vcombine.high %v39_v31, %v43_v6  ;;  %v52_v25 = vld [vmem:[%s10458_s1 + $0x138] sm:$0xff]  ;;  %v7841_v11 = vcombine.low %v39_v31, %v43_v6  ;;  %v59_v31 = vld [vmem:[%s10458_s1 + $0x170] sm:$0xff] }
 0x108   :  { %3709 = vmatprep.mubr.bf16.mxu0 %v6410_v22  ;;  %3873 = vmatprep.mubr.bf16.mxu1 %v6410_v22  ;;  %11675 = vst [vmem:[#allocation260_spill] sm:$0xff] %v7826_v46  ;;  %v47_v22 = vld [vmem:[%s10458_s1 + $0x110] sm:$0xff]  ;;  %v56_v6 = vld [vmem:[%s10458_s1 + $0x158] sm:$0xff] }
 0x109   :  { %11673 = vst [vmem:[#allocation258_spill] sm:$0xff] %v7821_v62  ;;  %11674 = vst [vmem:[#allocation259_spill] sm:$0xff] %v7823_v33 }
 0x10a   :  { %3680 = vmatpush1.bf16.msra.mxu0 %v7791_v55  ;;  %3844 = vmatpush1.bf16.msra.mxu1 %v7795_v24  ;;  %11676 = vst [vmem:[#allocation261_spill] sm:$0xff] %v7841_v11  ;;  %v7850_v24 = vcombine.high %v48_v53, %v52_v25  ;;  %v55_v55 = vld [vmem:[%s10458_s1 + $0x150] sm:$0xff] }
 0x10b   :  { %3681 = vmatprep.subr.bf16.mxu0 %v7797_v34  ;;  %3845 = vmatprep.subr.bf16.mxu1 %v7800_v2  ;;  %v7845_v2 = vcombine.low %v40_v54, %v44_v30  ;;  %v7847_v34 = vcombine.high %v47_v22, %v51_v7  ;;  %v60_v54 = vld [vmem:[%s10458_s1 + $0x178] sm:$0xff]  ;;  %v7865_v30 = vcombine.low %v47_v22, %v51_v7  ;;  %v67_v22 = vld [vmem:[%s10458_s1 + $0x1b0] sm:$0xff] }
 0x10c   :  { %11679 = vst [vmem:[#allocation264_spill] sm:$0xff] %v7850_v24  ;;  %v64_v7 = vld [vmem:[%s10458_s1 + $0x198] sm:$0xff] }
 0x10d   :  { %11677 = vst [vmem:[#allocation262_spill] sm:$0xff] %v7845_v2  ;;  %11678 = vst [vmem:[#allocation263_spill] sm:$0xff] %v7847_v34 }
 0x10e   :  { %3682 = vmatpush1.bf16.msra.mxu0 %v7817_v63  ;;  %3846 = vmatpush1.bf16.msra.mxu1 %v7821_v62  ;;  %11680 = vst [vmem:[#allocation265_spill] sm:$0xff] %v7865_v30  ;;  %v7874_v62 = vcombine.high %v56_v6, %v60_v54  ;;  %v63_v63 = vld [vmem:[%s10458_s1 + $0x190] sm:$0xff] }
 0x10f   :  { %3683 = vmatprep.subr.bf16.mxu0 %v7823_v33  ;;  %3847 = vmatprep.subr.bf16.mxu1 %v7826_v46  ;;  %v7869_v46 = vcombine.low %v48_v53, %v52_v25  ;;  %v7871_v33 = vcombine.high %v55_v55, %v59_v31  ;;  %v68_v53 = vld [vmem:[%s10458_s1 + $0x1b8] sm:$0xff]  ;;  %v7889_v25 = vcombine.low %v55_v55, %v59_v31  ;;  %v75_v55 = vld [vmem:[%s10458_s1 + $0x1f0] sm:$0xff] }
 0x110   :  { %11683 = vst [vmem:[#allocation268_spill] sm:$0xff] %v7874_v62  ;;  %v72_v31 = vld [vmem:[%s10458_s1 + $0x1d8] sm:$0xff] }
 0x111   :  { %11681 = vst [vmem:[#allocation266_spill] sm:$0xff] %v7869_v46  ;;  %11682 = vst [vmem:[#allocation267_spill] sm:$0xff] %v7871_v33 }
 0x112   :  { %3684 = vmatpush1.bf16.msra.mxu0 %v7841_v11  ;;  %3848 = vmatpush1.bf16.msra.mxu1 %v7845_v2  ;;  %11684 = vst [vmem:[#allocation269_spill] sm:$0xff] %v7889_v25  ;;  %v7898_v2 = vcombine.high %v64_v7, %v68_v53  ;;  %v71_v11 = vld [vmem:[%s10458_s1 + $0x1d0] sm:$0xff] }
 0x113   :  { %3685 = vmatprep.subr.bf16.mxu0 %v7847_v34  ;;  %3849 = vmatprep.subr.bf16.mxu1 %v7850_v24  ;;  %v7893_v24 = vcombine.low %v56_v6, %v60_v54  ;;  %v7895_v34 = vcombine.high %v63_v63, %v67_v22  ;;  %v76_v6 = vld [vmem:[%s10458_s1 + $0x1f8] sm:$0xff]  ;;  %v7913_v54 = vcombine.low %v63_v63, %v67_v22  ;;  %v83_v63 = vld [vmem:[%s10458_s1 + $0x230] sm:$0xff] }
 0x114   :  { %11687 = vst [vmem:[#allocation272_spill] sm:$0xff] %v7898_v2  ;;  %v80_v22 = vld [vmem:[%s10458_s1 + $0x218] sm:$0xff] }
 0x115   :  { %11685 = vst [vmem:[#allocation270_spill] sm:$0xff] %v7893_v24  ;;  %11686 = vst [vmem:[#allocation271_spill] sm:$0xff] %v7895_v34 }
 0x116   :  { %3686 = vmatpush1.bf16.msra.mxu0 %v7865_v30  ;;  %3850 = vmatpush1.bf16.msra.mxu1 %v7869_v46  ;;  %11688 = vst [vmem:[#allocation273_spill] sm:$0xff] %v7913_v54  ;;  %v7922_v46 = vcombine.high %v72_v31, %v76_v6  ;;  %v79_v30 = vld [vmem:[%s10458_s1 + $0x210] sm:$0xff] }
 0x117   :  { %3687 = vmatprep.subr.bf16.mxu0 %v7871_v33  ;;  %3851 = vmatprep.subr.bf16.mxu1 %v7874_v62  ;;  %v7917_v62 = vcombine.low %v64_v7, %v68_v53  ;;  %v7919_v33 = vcombine.high %v71_v11, %v75_v55  ;;  %v84_v7 = vld [vmem:[%s10458_s1 + $0x238] sm:$0xff]  ;;  %v7937_v53 = vcombine.low %v71_v11, %v75_v55  ;;  %v91_v11 = vld [vmem:[%s10458_s1 + $0x270] sm:$0xff] }
 0x118   :  { %11691 = vst [vmem:[#allocation276_spill] sm:$0xff] %v7922_v46  ;;  %v88_v55 = vld [vmem:[%s10458_s1 + $0x258] sm:$0xff] }
 0x119   :  { %11689 = vst [vmem:[#allocation274_spill] sm:$0xff] %v7917_v62  ;;  %11690 = vst [vmem:[#allocation275_spill] sm:$0xff] %v7919_v33 }
 0x11a   :  { %3688 = vmatpush1.bf16.msra.mxu0 %v7889_v25  ;;  %3852 = vmatpush1.bf16.msra.mxu1 %v7893_v24  ;;  %11692 = vst [vmem:[#allocation277_spill] sm:$0xff] %v7937_v53  ;;  %v7946_v24 = vcombine.high %v80_v22, %v84_v7  ;;  %v87_v25 = vld [vmem:[%s10458_s1 + $0x250] sm:$0xff] }
 0x11b   :  { %3689 = vmatprep.subr.bf16.mxu0 %v7895_v34  ;;  %3853 = vmatprep.subr.bf16.mxu1 %v7898_v2  ;;  %v7941_v2 = vcombine.low %v72_v31, %v76_v6  ;;  %v7943_v34 = vcombine.high %v79_v30, %v83_v63  ;;  %v92_v31 = vld [vmem:[%s10458_s1 + $0x278] sm:$0xff]  ;;  %v7961_v6 = vcombine.low %v79_v30, %v83_v63  ;;  %v99_v30 = vld [vmem:[%s10458_s1 + $0x2b0] sm:$0xff] }
 0x11c   :  { %11695 = vst [vmem:[#allocation280_spill] sm:$0xff] %v7946_v24  ;;  %v96_v63 = vld [vmem:[%s10458_s1 + $0x298] sm:$0xff] }
 0x11d   :  { %11693 = vst [vmem:[#allocation278_spill] sm:$0xff] %v7941_v2  ;;  %11694 = vst [vmem:[#allocation279_spill] sm:$0xff] %v7943_v34 }
 0x11e   :  { %3690 = vmatpush1.bf16.msra.mxu0 %v7913_v54  ;;  %3854 = vmatpush1.bf16.msra.mxu1 %v7917_v62  ;;  %11696 = vst [vmem:[#allocation281_spill] sm:$0xff] %v7961_v6  ;;  %v7970_v62 = vcombine.high %v88_v55, %v92_v31  ;;  %v95_v54 = vld [vmem:[%s10458_s1 + $0x290] sm:$0xff] }
 0x11f   :  { %3691 = vmatprep.subr.bf16.mxu0 %v7919_v33  ;;  %3855 = vmatprep.subr.bf16.mxu1 %v7922_v46  ;;  %v7965_v46 = vcombine.low %v80_v22, %v84_v7  ;;  %v7967_v33 = vcombine.high %v87_v25, %v91_v11  ;;  %v100_v22 = vld [vmem:[%s10458_s1 + $0x2b8] sm:$0xff]  ;;  %v7985_v7 = vcombine.low %v87_v25, %v91_v11  ;;  %v107_v25 = vld [vmem:[%s10458_s1 + $0x2f0] sm:$0xff] }
 0x120   :  { %11699 = vst [vmem:[#allocation284_spill] sm:$0xff] %v7970_v62  ;;  %v104_v11 = vld [vmem:[%s10458_s1 + $0x2d8] sm:$0xff] }
 0x121   :  { %11697 = vst [vmem:[#allocation282_spill] sm:$0xff] %v7965_v46  ;;  %11698 = vst [vmem:[#allocation283_spill] sm:$0xff] %v7967_v33 }
 0x122   :  { %3692 = vmatpush1.bf16.msra.mxu0 %v7937_v53  ;;  %3856 = vmatpush1.bf16.msra.mxu1 %v7941_v2  ;;  %11700 = vst [vmem:[#allocation285_spill] sm:$0xff] %v7985_v7  ;;  %v7994_v2 = vcombine.high %v96_v63, %v100_v22  ;;  %v103_v53 = vld [vmem:[%s10458_s1 + $0x2d0] sm:$0xff] }
 0x123   :  { %3693 = vmatprep.subr.bf16.mxu0 %v7943_v34  ;;  %3857 = vmatprep.subr.bf16.mxu1 %v7946_v24  ;;  %v7989_v24 = vcombine.low %v88_v55, %v92_v31  ;;  %v7991_v34 = vcombine.high %v95_v54, %v99_v30  ;;  %v108_v55 = vld [vmem:[%s10458_s1 + $0x2f8] sm:$0xff]  ;;  %v8009_v31 = vcombine.low %v95_v54, %v99_v30  ;;  %v115_v54 = vld [vmem:[%s10458_s1 + $0x330] sm:$0xff] }
 0x124   :  { %11703 = vst [vmem:[#allocation288_spill] sm:$0xff] %v7994_v2  ;;  %v112_v30 = vld [vmem:[%s10458_s1 + $0x318] sm:$0xff] }
 0x125   :  { %11701 = vst [vmem:[#allocation286_spill] sm:$0xff] %v7989_v24  ;;  %11702 = vst [vmem:[#allocation287_spill] sm:$0xff] %v7991_v34 }
 0x126   :  { %3694 = vmatpush1.bf16.msra.mxu0 %v7961_v6  ;;  %3858 = vmatpush1.bf16.msra.mxu1 %v7965_v46  ;;  %11704 = vst [vmem:[#allocation289_spill] sm:$0xff] %v8009_v31  ;;  %v8018_v46 = vcombine.high %v104_v11, %v108_v55  ;;  %v111_v6 = vld [vmem:[%s10458_s1 + $0x310] sm:$0xff] }
 0x127   :  { %3695 = vmatprep.subr.bf16.mxu0 %v7967_v33  ;;  %3859 = vmatprep.subr.bf16.mxu1 %v7970_v62  ;;  %v8013_v62 = vcombine.low %v96_v63, %v100_v22  ;;  %v8015_v33 = vcombine.high %v103_v53, %v107_v25  ;;  %v116_v63 = vld [vmem:[%s10458_s1 + $0x338] sm:$0xff]  ;;  %v8033_v22 = vcombine.low %v103_v53, %v107_v25  ;;  %v123_v53 = vld [vmem:[%s10458_s1 + $0x370] sm:$0xff] }
 0x128   :  { %11707 = vst [vmem:[#allocation292_spill] sm:$0xff] %v8018_v46  ;;  %v120_v25 = vld [vmem:[%s10458_s1 + $0x358] sm:$0xff] }
 0x129   :  { %11705 = vst [vmem:[#allocation290_spill] sm:$0xff] %v8013_v62  ;;  %11706 = vst [vmem:[#allocation291_spill] sm:$0xff] %v8015_v33 }
 0x12a   :  { %3696 = vmatpush1.bf16.msra.mxu0 %v7985_v7  ;;  %3860 = vmatpush1.bf16.msra.mxu1 %v7989_v24  ;;  %11708 = vst [vmem:[#allocation293_spill] sm:$0xff] %v8033_v22  ;;  %v8042_v24 = vcombine.high %v112_v30, %v116_v63  ;;  %v119_v7 = vld [vmem:[%s10458_s1 + $0x350] sm:$0xff] }
 0x12b   :  { %3697 = vmatprep.subr.bf16.mxu0 %v7991_v34  ;;  %3861 = vmatprep.subr.bf16.mxu1 %v7994_v2  ;;  %v8037_v2 = vcombine.low %v104_v11, %v108_v55  ;;  %v8039_v34 = vcombine.high %v111_v6, %v115_v54  ;;  %v124_v11 = vld [vmem:[%s10458_s1 + $0x378] sm:$0xff]  ;;  %v8057_v55 = vcombine.low %v111_v6, %v115_v54  ;;  %v131_v6 = vld [vmem:[%s10458_s1 + $0x3b0] sm:$0xff] }
 0x12c   :  { %11711 = vst [vmem:[#allocation296_spill] sm:$0xff] %v8042_v24  ;;  %v128_v54 = vld [vmem:[%s10458_s1 + $0x398] sm:$0xff] }
 0x12d   :  { %11709 = vst [vmem:[#allocation294_spill] sm:$0xff] %v8037_v2  ;;  %11710 = vst [vmem:[#allocation295_spill] sm:$0xff] %v8039_v34 }
 0x12e   :  { %3698 = vmatpush1.bf16.msra.mxu0 %v8009_v31  ;;  %3862 = vmatpush1.bf16.msra.mxu1 %v8013_v62  ;;  %11712 = vst [vmem:[#allocation297_spill] sm:$0xff] %v8057_v55  ;;  %v8066_v62 = vcombine.high %v120_v25, %v124_v11  ;;  %v127_v31 = vld [vmem:[%s10458_s1 + $0x390] sm:$0xff] }
 0x12f   :  { %3699 = vmatprep.subr.bf16.mxu0 %v8015_v33  ;;  %3863 = vmatprep.subr.bf16.mxu1 %v8018_v46  ;;  %v8061_v46 = vcombine.low %v112_v30, %v116_v63  ;;  %v8063_v33 = vcombine.high %v119_v7, %v123_v53  ;;  %v132_v30 = vld [vmem:[%s10458_s1 + $0x3b8] sm:$0xff]  ;;  %v8081_v63 = vcombine.low %v119_v7, %v123_v53  ;;  %v139_v7 = vld [vmem:[%s10458_s1 + $0x3f0] sm:$0xff] }
 0x130   :  { %11715 = vst [vmem:[#allocation300_spill] sm:$0xff] %v8066_v62  ;;  %v136_v53 = vld [vmem:[%s10458_s1 + $0x3d8] sm:$0xff] }
 0x131   :  { %11713 = vst [vmem:[#allocation298_spill] sm:$0xff] %v8061_v46  ;;  %11714 = vst [vmem:[#allocation299_spill] sm:$0xff] %v8063_v33 }
 0x132   :  { %3700 = vmatpush1.bf16.msra.mxu0 %v8033_v22  ;;  %3864 = vmatpush1.bf16.msra.mxu1 %v8037_v2  ;;  %11716 = vst [vmem:[#allocation301_spill] sm:$0xff] %v8081_v63  ;;  %v8090_v2 = vcombine.high %v128_v54, %v132_v30  ;;  %v135_v22 = vld [vmem:[%s10458_s1 + $0x3d0] sm:$0xff] }
 0x133   :  { %3701 = vmatprep.subr.bf16.mxu0 %v8039_v34  ;;  %3865 = vmatprep.subr.bf16.mxu1 %v8042_v24  ;;  %v8085_v24 = vcombine.low %v120_v25, %v124_v11  ;;  %v8087_v34 = vcombine.high %v127_v31, %v131_v6  ;;  %v140_v25 = vld [vmem:[%s10458_s1 + $0x3f8] sm:$0xff]  ;;  %v8105_v11 = vcombine.low %v127_v31, %v131_v6  ;;  %v147_v31 = vld [vmem:[%s10458_s1 + $0x430] sm:$0xff] }
 0x134   :  { %11719 = vst [vmem:[#allocation304_spill] sm:$0xff] %v8090_v2  ;;  %v144_v6 = vld [vmem:[%s10458_s1 + $0x418] sm:$0xff] }
 0x135   :  { %11717 = vst [vmem:[#allocation302_spill] sm:$0xff] %v8085_v24  ;;  %11718 = vst [vmem:[#allocation303_spill] sm:$0xff] %v8087_v34 }
 0x136   :  { %3702 = vmatpush1.bf16.msra.mxu0 %v8057_v55  ;;  %3866 = vmatpush1.bf16.msra.mxu1 %v8061_v46  ;;  %11720 = vst [vmem:[#allocation305_spill] sm:$0xff] %v8105_v11  ;;  %v8114_v46 = vcombine.high %v136_v53, %v140_v25  ;;  %v143_v55 = vld [vmem:[%s10458_s1 + $0x410] sm:$0xff] }
 0x137   :  { %3703 = vmatprep.subr.bf16.mxu0 %v8063_v33  ;;  %3867 = vmatprep.subr.bf16.mxu1 %v8066_v62  ;;  %v8109_v62 = vcombine.low %v128_v54, %v132_v30  ;;  %v8111_v33 = vcombine.high %v135_v22, %v139_v7  ;;  %v148_v54 = vld [vmem:[%s10458_s1 + $0x438] sm:$0xff]  ;;  %v8129_v30 = vcombine.low %v135_v22, %v139_v7  ;;  %v155_v22 = vld [vmem:[%s10458_s1 + $0x470] sm:$0xff] }
 0x138   :  { %11723 = vst [vmem:[#allocation308_spill] sm:$0xff] %v8114_v46  ;;  %v152_v7 = vld [vmem:[%s10458_s1 + $0x458] sm:$0xff] }
 0x139   :  { %11721 = vst [vmem:[#allocation306_spill] sm:$0xff] %v8109_v62  ;;  %11722 = vst [vmem:[#allocation307_spill] sm:$0xff] %v8111_v33 }
 0x13a   :  { %3704 = vmatpush1.bf16.msra.mxu0 %v8081_v63  ;;  %3868 = vmatpush1.bf16.msra.mxu1 %v8085_v24  ;;  %11724 = vst [vmem:[#allocation309_spill] sm:$0xff] %v8129_v30  ;;  %v8138_v24 = vcombine.high %v144_v6, %v148_v54  ;;  %v151_v63 = vld [vmem:[%s10458_s1 + $0x450] sm:$0xff] }
 0x13b   :  { %3705 = vmatprep.subr.bf16.mxu0 %v8087_v34  ;;  %3869 = vmatprep.subr.bf16.mxu1 %v8090_v2  ;;  %v8133_v2 = vcombine.low %v136_v53, %v140_v25  ;;  %v8135_v34 = vcombine.high %v143_v55, %v147_v31  ;;  %v156_v53 = vld [vmem:[%s10458_s1 + $0x478] sm:$0xff]  ;;  %v8153_v25 = vcombine.low %v143_v55, %v147_v31  ;;  %v163_v55 = vld [vmem:[%s10458_s1 + $0x4b0] sm:$0xff] }
 0x13c   :  { %11727 = vst [vmem:[#allocation312_spill] sm:$0xff] %v8138_v24  ;;  %v160_v31 = vld [vmem:[%s10458_s1 + $0x498] sm:$0xff] }
 0x13d   :  { %11725 = vst [vmem:[#allocation310_spill] sm:$0xff] %v8133_v2  ;;  %11726 = vst [vmem:[#allocation311_spill] sm:$0xff] %v8135_v34 }
 0x13e   :  { %3706 = vmatpush1.bf16.msra.mxu0 %v8105_v11  ;;  %3870 = vmatpush1.bf16.msra.mxu1 %v8109_v62  ;;  %11728 = vst [vmem:[#allocation313_spill] sm:$0xff] %v8153_v25  ;;  %v8162_v62 = vcombine.high %v152_v7, %v156_v53  ;;  %v159_v11 = vld [vmem:[%s10458_s1 + $0x490] sm:$0xff] }
 0x13f   :  { %3707 = vmatprep.subr.bf16.mxu0 %v8111_v33  ;;  %3871 = vmatprep.subr.bf16.mxu1 %v8114_v46  ;;  %v8157_v46 = vcombine.low %v144_v6, %v148_v54  ;;  %v8159_v33 = vcombine.high %v151_v63, %v155_v22  ;;  %v164_v6 = vld [vmem:[%s10458_s1 + $0x4b8] sm:$0xff]  ;;  %v8179_v54 = vcombine.low %v151_v63, %v155_v22  ;;  %v171_v63 = vld [vmem:[%s10458_s1 + $0x4f0] sm:$0xff] }
 0x140   :  { %11731 = vst [vmem:[#allocation316_spill] sm:$0xff] %v8162_v62  ;;  %v168_v22 = vld [vmem:[%s10458_s1 + $0x4d8] sm:$0xff] }
 0x141   :  { %11729 = vst [vmem:[#allocation314_spill] sm:$0xff] %v8157_v46  ;;  %11730 = vst [vmem:[#allocation315_spill] sm:$0xff] %v8159_v33 }
 0x142   :  { %3708 = vmatpush1.bf16.msra.mxu0 %v8129_v30  ;;  %3872 = vmatpush1.bf16.msra.mxu1 %v8133_v2  ;;  %11732 = vst [vmem:[#allocation317_spill] sm:$0xff] %v8179_v54  ;;  %v8188_v2 = vcombine.high %v160_v31, %v164_v6 }
 0x143   :  { %3718 = vmatprep.subr.bf16.mxu0 %v8135_v34  ;;  %3882 = vmatprep.subr.bf16.mxu1 %v8138_v24  ;;  %v8183_v24 = vcombine.low %v152_v7, %v156_v53  ;;  %v8185_v34 = vcombine.high %v159_v11, %v163_v55  ;;  %v172_v7 = vld [vmem:[%s10458_s1 + $0x4f8] sm:$0xff]  ;;  %v8205_v53 = vcombine.low %v159_v11, %v163_v55  ;;  %v179_v11 = vld [vmem:[%s10458_s1 + $0x530] sm:$0xff] }
 0x144   :  { %11735 = vst [vmem:[#allocation320_spill] sm:$0xff] %v8188_v2  ;;  %v176_v55 = vld [vmem:[%s10458_s1 + $0x518] sm:$0xff] }
 0x145   :  { %3710 = vmatmul.mubr.bf16.vlgmr.msra.gmra.mrb[4].mxu0 %v6534_v35  ;;  %3874 = vmatmul.mubr.bf16.vlgmr.msra.gmra.mrb[4].mxu1 %v6534_v35  ;;  %11733 = vst [vmem:[#allocation318_spill] sm:$0xff] %v8183_v24  ;;  %11734 = vst [vmem:[#allocation319_spill] sm:$0xff] %v8185_v34  ;;  %v8209_v35 = vcombine.low %v160_v31, %v164_v6  ;;  %v180_v31 = vld [vmem:[%s10458_s1 + $0x538] sm:$0xff] }
 0x146   :  { %3719 = vmatpush1.bf16.msra.mxu0 %v8153_v25  ;;  %3883 = vmatpush1.bf16.msra.mxu1 %v8157_v46  ;;  %v167_v25 = vld [vmem:[%s10458_s1 + $0x4d0] sm:$0xff]  ;;  %11736 = vst [vmem:[#allocation321_spill] sm:$0xff] %v8205_v53 }
 0x147   :  { %3720 = vmatprep.subr.bf16.mxu0 %v8159_v33  ;;  %3884 = vmatprep.subr.bf16.mxu1 %v8162_v62  ;;  %11737 = vst [vmem:[#allocation322_spill] sm:$0xff] %v8209_v35  ;;  %v8211_v62 = vcombine.high %v167_v25, %v171_v63  ;;  %v8214_v33 = vcombine.high %v168_v22, %v172_v7 }
 0x148   :  { %3750 = vmatprep.mubr.bf16.mxu0 %v6560_v60  ;;  %3914 = vmatprep.mubr.bf16.mxu1 %v6560_v60  ;;  %v175_v60 = vld [vmem:[%s10458_s1 + $0x510] sm:$0xff]  ;;  %v8229_v6 = vcombine.low %v167_v25, %v171_v63  ;;  %v184_v63 = vld [vmem:[%s10458_s1 + $0x558] sm:$0xff] }
 0x149   :  { %11738 = vst [vmem:[#allocation323_spill] sm:$0xff] %v8211_v62  ;;  %11739 = vst [vmem:[#allocation324_spill] sm:$0xff] %v8214_v33  ;;  %v187_v25 = vld [vmem:[%s10458_s1 + $0x570] sm:$0xff] }
 0x14a   :  { %3721 = vmatpush1.bf16.msra.mxu0 %v8179_v54  ;;  %3885 = vmatpush1.bf16.msra.mxu1 %v8183_v24  ;;  %11740 = vst [vmem:[#allocation325_spill] sm:$0xff] %v8229_v6  ;;  %v8238_v24 = vcombine.high %v176_v55, %v180_v31  ;;  %v183_v54 = vld [vmem:[%s10458_s1 + $0x550] sm:$0xff] }
 0x14b   :  { %3722 = vmatprep.subr.bf16.mxu0 %v8185_v34  ;;  %3886 = vmatprep.subr.bf16.mxu1 %v8188_v2  ;;  %v8233_v2 = vcombine.low %v168_v22, %v172_v7  ;;  %v8235_v34 = vcombine.high %v175_v60, %v179_v11  ;;  %v188_v22 = vld [vmem:[%s10458_s1 + $0x578] sm:$0xff]  ;;  %v8253_v7 = vcombine.low %v175_v60, %v179_v11  ;;  %v195_v60 = vld [vmem:[%s10458_s1 + $0x5b0] sm:$0xff] }
 0x14c   :  { %11743 = vst [vmem:[#allocation328_spill] sm:$0xff] %v8238_v24  ;;  %v192_v11 = vld [vmem:[%s10458_s1 + $0x598] sm:$0xff] }
 0x14d   :  { %11741 = vst [vmem:[#allocation326_spill] sm:$0xff] %v8233_v2  ;;  %11742 = vst [vmem:[#allocation327_spill] sm:$0xff] %v8235_v34 }
 0x14e   :  { %3723 = vmatpush1.bf16.msra.mxu0 %v8205_v53  ;;  %3887 = vmatpush1.bf16.msra.mxu1 %v8209_v35  ;;  %11744 = vst [vmem:[#allocation329_spill] sm:$0xff] %v8253_v7  ;;  %v8262_v35 = vcombine.high %v184_v63, %v188_v22  ;;  %v191_v53 = vld [vmem:[%s10458_s1 + $0x590] sm:$0xff] }
 0x14f   :  { %3724 = vmatprep.subr.bf16.mxu0 %v8211_v62  ;;  %3888 = vmatprep.subr.bf16.mxu1 %v8214_v33  ;;  %v8257_v33 = vcombine.low %v176_v55, %v180_v31  ;;  %v8259_v62 = vcombine.high %v183_v54, %v187_v25  ;;  %v196_v55 = vld [vmem:[%s10458_s1 + $0x5b8] sm:$0xff]  ;;  %v8277_v31 = vcombine.low %v183_v54, %v187_v25  ;;  %v203_v54 = vld [vmem:[%s10458_s1 + $0x5f0] sm:$0xff] }
 0x150   :  { %11747 = vst [vmem:[#allocation332_spill] sm:$0xff] %v8262_v35  ;;  %v200_v25 = vld [vmem:[%s10458_s1 + $0x5d8] sm:$0xff] }
 0x151   :  { %11745 = vst [vmem:[#allocation330_spill] sm:$0xff] %v8257_v33  ;;  %11746 = vst [vmem:[#allocation331_spill] sm:$0xff] %v8259_v62 }
 0x152   :  { %3725 = vmatpush1.bf16.msra.mxu0 %v8229_v6  ;;  %3889 = vmatpush1.bf16.msra.mxu1 %v8233_v2  ;;  %11748 = vst [vmem:[#allocation333_spill] sm:$0xff] %v8277_v31  ;;  %v8286_v2 = vcombine.high %v192_v11, %v196_v55  ;;  %v199_v6 = vld [vmem:[%s10458_s1 + $0x5d0] sm:$0xff] }
 0x153   :  { %3726 = vmatprep.subr.bf16.mxu0 %v8235_v34  ;;  %3890 = vmatprep.subr.bf16.mxu1 %v8238_v24  ;;  %v8281_v24 = vcombine.low %v184_v63, %v188_v22  ;;  %v8283_v34 = vcombine.high %v191_v53, %v195_v60  ;;  %v204_v63 = vld [vmem:[%s10458_s1 + $0x5f8] sm:$0xff]  ;;  %v8301_v22 = vcombine.low %v191_v53, %v195_v60  ;;  %v211_v53 = vld [vmem:[%s10458_s1 + $0x630] sm:$0xff] }
 0x154   :  { %11751 = vst [vmem:[#allocation336_spill] sm:$0xff] %v8286_v2  ;;  %v208_v60 = vld [vmem:[%s10458_s1 + $0x618] sm:$0xff] }
 0x155   :  { %11749 = vst [vmem:[#allocation334_spill] sm:$0xff] %v8281_v24  ;;  %11750 = vst [vmem:[#allocation335_spill] sm:$0xff] %v8283_v34 }
 0x156   :  { %3727 = vmatpush1.bf16.msra.mxu0 %v8253_v7  ;;  %3891 = vmatpush1.bf16.msra.mxu1 %v8257_v33  ;;  %11752 = vst [vmem:[#allocation337_spill] sm:$0xff] %v8301_v22  ;;  %v8310_v33 = vcombine.high %v200_v25, %v204_v63  ;;  %v207_v7 = vld [vmem:[%s10458_s1 + $0x610] sm:$0xff] }
 0x157   :  { %3728 = vmatprep.subr.bf16.mxu0 %v8259_v62  ;;  %3892 = vmatprep.subr.bf16.mxu1 %v8262_v35  ;;  %v8305_v35 = vcombine.low %v192_v11, %v196_v55  ;;  %v8307_v62 = vcombine.high %v199_v6, %v203_v54  ;;  %v212_v11 = vld [vmem:[%s10458_s1 + $0x638] sm:$0xff]  ;;  %v8325_v55 = vcombine.low %v199_v6, %v203_v54  ;;  %v219_v6 = vld [vmem:[%s10458_s1 + $0x670] sm:$0xff] }
 0x158   :  { %11755 = vst [vmem:[#allocation340_spill] sm:$0xff] %v8310_v33  ;;  %v216_v54 = vld [vmem:[%s10458_s1 + $0x658] sm:$0xff] }
 0x159   :  { %11753 = vst [vmem:[#allocation338_spill] sm:$0xff] %v8305_v35  ;;  %11754 = vst [vmem:[#allocation339_spill] sm:$0xff] %v8307_v62 }
 0x15a   :  { %3729 = vmatpush1.bf16.msra.mxu0 %v8277_v31  ;;  %3893 = vmatpush1.bf16.msra.mxu1 %v8281_v24  ;;  %11756 = vst [vmem:[#allocation341_spill] sm:$0xff] %v8325_v55  ;;  %v8334_v24 = vcombine.high %v208_v60, %v212_v11  ;;  %v215_v31 = vld [vmem:[%s10458_s1 + $0x650] sm:$0xff] }
 0x15b   :  { %3730 = vmatprep.subr.bf16.mxu0 %v8283_v34  ;;  %3894 = vmatprep.subr.bf16.mxu1 %v8286_v2  ;;  %v8329_v2 = vcombine.low %v200_v25, %v204_v63  ;;  %v8331_v34 = vcombine.high %v207_v7, %v211_v53  ;;  %v220_v25 = vld [vmem:[%s10458_s1 + $0x678] sm:$0xff]  ;;  %v8349_v63 = vcombine.low %v207_v7, %v211_v53  ;;  %v227_v7 = vld [vmem:[%s10458_s1 + $0x6b0] sm:$0xff] }
 0x15c   :  { %11759 = vst [vmem:[#allocation344_spill] sm:$0xff] %v8334_v24  ;;  %v224_v53 = vld [vmem:[%s10458_s1 + $0x698] sm:$0xff] }
 0x15d   :  { %11757 = vst [vmem:[#allocation342_spill] sm:$0xff] %v8329_v2  ;;  %11758 = vst [vmem:[#allocation343_spill] sm:$0xff] %v8331_v34 }
 0x15e   :  { %3731 = vmatpush1.bf16.msra.mxu0 %v8301_v22  ;;  %3895 = vmatpush1.bf16.msra.mxu1 %v8305_v35  ;;  %11760 = vst [vmem:[#allocation345_spill] sm:$0xff] %v8349_v63  ;;  %v8358_v35 = vcombine.high %v216_v54, %v220_v25  ;;  %v223_v22 = vld [vmem:[%s10458_s1 + $0x690] sm:$0xff] }
 0x15f   :  { %3732 = vmatprep.subr.bf16.mxu0 %v8307_v62  ;;  %3896 = vmatprep.subr.bf16.mxu1 %v8310_v33  ;;  %v8353_v33 = vcombine.low %v208_v60, %v212_v11  ;;  %v8355_v62 = vcombine.high %v215_v31, %v219_v6  ;;  %v228_v60 = vld [vmem:[%s10458_s1 + $0x6b8] sm:$0xff]  ;;  %v8373_v11 = vcombine.low %v215_v31, %v219_v6  ;;  %v235_v31 = vld [vmem:[%s10458_s1 + $0x6f0] sm:$0xff] }
 0x160   :  { %11763 = vst [vmem:[#allocation348_spill] sm:$0xff] %v8358_v35  ;;  %v232_v6 = vld [vmem:[%s10458_s1 + $0x6d8] sm:$0xff] }
 0x161   :  { %11761 = vst [vmem:[#allocation346_spill] sm:$0xff] %v8353_v33  ;;  %11762 = vst [vmem:[#allocation347_spill] sm:$0xff] %v8355_v62 }
 0x162   :  { %3733 = vmatpush1.bf16.msra.mxu0 %v8325_v55  ;;  %3897 = vmatpush1.bf16.msra.mxu1 %v8329_v2  ;;  %11764 = vst [vmem:[#allocation349_spill] sm:$0xff] %v8373_v11  ;;  %v8382_v2 = vcombine.high %v224_v53, %v228_v60  ;;  %v231_v55 = vld [vmem:[%s10458_s1 + $0x6d0] sm:$0xff] }
 0x163   :  { %3734 = vmatprep.subr.bf16.mxu0 %v8331_v34  ;;  %3898 = vmatprep.subr.bf16.mxu1 %v8334_v24  ;;  %v8377_v24 = vcombine.low %v216_v54, %v220_v25  ;;  %v8379_v34 = vcombine.high %v223_v22, %v227_v7  ;;  %v236_v54 = vld [vmem:[%s10458_s1 + $0x6f8] sm:$0xff]  ;;  %v8397_v25 = vcombine.low %v223_v22, %v227_v7  ;;  %v243_v22 = vld [vmem:[%s10458_s1 + $0x730] sm:$0xff] }
 0x164   :  { %11767 = vst [vmem:[#allocation352_spill] sm:$0xff] %v8382_v2  ;;  %v240_v7 = vld [vmem:[%s10458_s1 + $0x718] sm:$0xff] }
 0x165   :  { %11765 = vst [vmem:[#allocation350_spill] sm:$0xff] %v8377_v24  ;;  %11766 = vst [vmem:[#allocation351_spill] sm:$0xff] %v8379_v34 }
 0x166   :  { %3735 = vmatpush1.bf16.msra.mxu0 %v8349_v63  ;;  %3899 = vmatpush1.bf16.msra.mxu1 %v8353_v33  ;;  %11768 = vst [vmem:[#allocation353_spill] sm:$0xff] %v8397_v25  ;;  %v8406_v33 = vcombine.high %v232_v6, %v236_v54  ;;  %v239_v63 = vld [vmem:[%s10458_s1 + $0x710] sm:$0xff] }
 0x167   :  { %3736 = vmatprep.subr.bf16.mxu0 %v8355_v62  ;;  %3900 = vmatprep.subr.bf16.mxu1 %v8358_v35  ;;  %v8401_v35 = vcombine.low %v224_v53, %v228_v60  ;;  %v8403_v62 = vcombine.high %v231_v55, %v235_v31  ;;  %v244_v53 = vld [vmem:[%s10458_s1 + $0x738] sm:$0xff]  ;;  %v8421_v60 = vcombine.low %v231_v55, %v235_v31  ;;  %v251_v55 = vld [vmem:[%s10458_s1 + $0x770] sm:$0xff] }
 0x168   :  { %11771 = vst [vmem:[#allocation356_spill] sm:$0xff] %v8406_v33  ;;  %v248_v31 = vld [vmem:[%s10458_s1 + $0x758] sm:$0xff] }
 0x169   :  { %11769 = vst [vmem:[#allocation354_spill] sm:$0xff] %v8401_v35  ;;  %11770 = vst [vmem:[#allocation355_spill] sm:$0xff] %v8403_v62 }
 0x16a   :  { %3737 = vmatpush1.bf16.msra.mxu0 %v8373_v11  ;;  %3901 = vmatpush1.bf16.msra.mxu1 %v8377_v24  ;;  %11772 = vst [vmem:[#allocation357_spill] sm:$0xff] %v8421_v60  ;;  %v8430_v24 = vcombine.high %v240_v7, %v244_v53  ;;  %v247_v11 = vld [vmem:[%s10458_s1 + $0x750] sm:$0xff] }
 0x16b   :  { %3738 = vmatprep.subr.bf16.mxu0 %v8379_v34  ;;  %3902 = vmatprep.subr.bf16.mxu1 %v8382_v2  ;;  %v8425_v2 = vcombine.low %v232_v6, %v236_v54  ;;  %v8427_v34 = vcombine.high %v239_v63, %v243_v22  ;;  %v252_v6 = vld [vmem:[%s10458_s1 + $0x778] sm:$0xff]  ;;  %v8445_v54 = vcombine.low %v239_v63, %v243_v22  ;;  %v259_v63 = vld [vmem:[%s10458_s1 + $0x7b0] sm:$0xff] }
 0x16c   :  { %11775 = vst [vmem:[#allocation360_spill] sm:$0xff] %v8430_v24  ;;  %v256_v22 = vld [vmem:[%s10458_s1 + $0x798] sm:$0xff] }
 0x16d   :  { %11773 = vst [vmem:[#allocation358_spill] sm:$0xff] %v8425_v2  ;;  %11774 = vst [vmem:[#allocation359_spill] sm:$0xff] %v8427_v34 }
 0x16e   :  { %3739 = vmatpush1.bf16.msra.mxu0 %v8397_v25  ;;  %3903 = vmatpush1.bf16.msra.mxu1 %v8401_v35  ;;  %11776 = vst [vmem:[#allocation361_spill] sm:$0xff] %v8445_v54  ;;  %v8454_v35 = vcombine.high %v248_v31, %v252_v6  ;;  %v255_v25 = vld [vmem:[%s10458_s1 + $0x790] sm:$0xff] }
 0x16f   :  { %3740 = vmatprep.subr.bf16.mxu0 %v8403_v62  ;;  %3904 = vmatprep.subr.bf16.mxu1 %v8406_v33  ;;  %v8449_v33 = vcombine.low %v240_v7, %v244_v53  ;;  %v8451_v62 = vcombine.high %v247_v11, %v251_v55  ;;  %v260_v7 = vld [vmem:[%s10458_s1 + $0x7b8] sm:$0xff]  ;;  %v8469_v53 = vcombine.low %v247_v11, %v251_v55  ;;  %v267_v11 = vld [vmem:[%s10458_s1 + $0x7f0] sm:$0xff] }
 0x170   :  { %11779 = vst [vmem:[#allocation364_spill] sm:$0xff] %v8454_v35  ;;  %v264_v55 = vld [vmem:[%s10458_s1 + $0x7d8] sm:$0xff] }
 0x171   :  { %11777 = vst [vmem:[#allocation362_spill] sm:$0xff] %v8449_v33  ;;  %11778 = vst [vmem:[#allocation363_spill] sm:$0xff] %v8451_v62 }
 0x172   :  { %3741 = vmatpush1.bf16.msra.mxu0 %v8421_v60  ;;  %3905 = vmatpush1.bf16.msra.mxu1 %v8425_v2  ;;  %11780 = vst [vmem:[#allocation365_spill] sm:$0xff] %v8469_v53  ;;  %v8478_v2 = vcombine.high %v256_v22, %v260_v7  ;;  %v263_v60 = vld [vmem:[%s10458_s1 + $0x7d0] sm:$0xff] }
 0x173   :  { %3742 = vmatprep.subr.bf16.mxu0 %v8427_v34  ;;  %3906 = vmatprep.subr.bf16.mxu1 %v8430_v24  ;;  %v8473_v24 = vcombine.low %v248_v31, %v252_v6  ;;  %v8475_v34 = vcombine.high %v255_v25, %v259_v63  ;;  %v268_v31 = vld [vmem:[%s10458_s1 + $0x7f8] sm:$0xff]  ;;  %v8493_v6 = vcombine.low %v255_v25, %v259_v63  ;;  %v275_v25 = vld [vmem:[%s10458_s1 + $0x830] sm:$0xff] }
 0x174   :  { %11783 = vst [vmem:[#allocation368_spill] sm:$0xff] %v8478_v2  ;;  %v272_v63 = vld [vmem:[%s10458_s1 + $0x818] sm:$0xff] }
 0x175   :  { %11781 = vst [vmem:[#allocation366_spill] sm:$0xff] %v8473_v24  ;;  %11782 = vst [vmem:[#allocation367_spill] sm:$0xff] %v8475_v34 }
 0x176   :  { %3743 = vmatpush1.bf16.msra.mxu0 %v8445_v54  ;;  %3907 = vmatpush1.bf16.msra.mxu1 %v8449_v33  ;;  %11784 = vst [vmem:[#allocation369_spill] sm:$0xff] %v8493_v6  ;;  %v8502_v33 = vcombine.high %v264_v55, %v268_v31  ;;  %v271_v54 = vld [vmem:[%s10458_s1 + $0x810] sm:$0xff] }
 0x177   :  { %3744 = vmatprep.subr.bf16.mxu0 %v8451_v62  ;;  %3908 = vmatprep.subr.bf16.mxu1 %v8454_v35  ;;  %v8497_v35 = vcombine.low %v256_v22, %v260_v7  ;;  %v8499_v62 = vcombine.high %v263_v60, %v267_v11  ;;  %v276_v22 = vld [vmem:[%s10458_s1 + $0x838] sm:$0xff]  ;;  %v8517_v7 = vcombine.low %v263_v60, %v267_v11  ;;  %v283_v60 = vld [vmem:[%s10458_s1 + $0x870] sm:$0xff] }
 0x178   :  { %11787 = vst [vmem:[#allocation372_spill] sm:$0xff] %v8502_v33  ;;  %v280_v11 = vld [vmem:[%s10458_s1 + $0x858] sm:$0xff] }
 0x179   :  { %11785 = vst [vmem:[#allocation370_spill] sm:$0xff] %v8497_v35  ;;  %11786 = vst [vmem:[#allocation371_spill] sm:$0xff] %v8499_v62 }
 0x17a   :  { %3745 = vmatpush1.bf16.msra.mxu0 %v8469_v53  ;;  %3909 = vmatpush1.bf16.msra.mxu1 %v8473_v24  ;;  %11788 = vst [vmem:[#allocation373_spill] sm:$0xff] %v8517_v7  ;;  %v8526_v24 = vcombine.high %v272_v63, %v276_v22  ;;  %v279_v53 = vld [vmem:[%s10458_s1 + $0x850] sm:$0xff] }
 0x17b   :  { %3746 = vmatprep.subr.bf16.mxu0 %v8475_v34  ;;  %3910 = vmatprep.subr.bf16.mxu1 %v8478_v2  ;;  %v8521_v2 = vcombine.low %v264_v55, %v268_v31  ;;  %v8523_v34 = vcombine.high %v271_v54, %v275_v25  ;;  %v284_v55 = vld [vmem:[%s10458_s1 + $0x878] sm:$0xff]  ;;  %v8541_v31 = vcombine.low %v271_v54, %v275_v25  ;;  %v291_v54 = vld [vmem:[%s10458_s1 + $0x8b0] sm:$0xff] }
 0x17c   :  { %11791 = vst [vmem:[#allocation376_spill] sm:$0xff] %v8526_v24  ;;  %v288_v25 = vld [vmem:[%s10458_s1 + $0x898] sm:$0xff] }
 0x17d   :  { %11789 = vst [vmem:[#allocation374_spill] sm:$0xff] %v8521_v2  ;;  %11790 = vst [vmem:[#allocation375_spill] sm:$0xff] %v8523_v34 }
 0x17e   :  { %3747 = vmatpush1.bf16.msra.mxu0 %v8493_v6  ;;  %3911 = vmatpush1.bf16.msra.mxu1 %v8497_v35  ;;  %11792 = vst [vmem:[#allocation377_spill] sm:$0xff] %v8541_v31  ;;  %v8550_v35 = vcombine.high %v280_v11, %v284_v55  ;;  %v287_v6 = vld [vmem:[%s10458_s1 + $0x890] sm:$0xff] }
 0x17f   :  { %3748 = vmatprep.subr.bf16.mxu0 %v8499_v62  ;;  %3912 = vmatprep.subr.bf16.mxu1 %v8502_v33  ;;  %v8545_v33 = vcombine.low %v272_v63, %v276_v22  ;;  %v8547_v62 = vcombine.high %v279_v53, %v283_v60  ;;  %v292_v63 = vld [vmem:[%s10458_s1 + $0x8b8] sm:$0xff]  ;;  %v8567_v22 = vcombine.low %v279_v53, %v283_v60  ;;  %v299_v53 = vld [vmem:[%s10458_s1 + $0x8f0] sm:$0xff] }
 0x180   :  { %11795 = vst [vmem:[#allocation380_spill] sm:$0xff] %v8550_v35  ;;  %v296_v60 = vld [vmem:[%s10458_s1 + $0x8d8] sm:$0xff] }
 0x181   :  { %11793 = vst [vmem:[#allocation378_spill] sm:$0xff] %v8545_v33  ;;  %11794 = vst [vmem:[#allocation379_spill] sm:$0xff] %v8547_v62 }
 0x182   :  { %3749 = vmatpush1.bf16.msra.mxu0 %v8517_v7  ;;  %3913 = vmatpush1.bf16.msra.mxu1 %v8521_v2  ;;  %11796 = vst [vmem:[#allocation381_spill] sm:$0xff] %v8567_v22  ;;  %v8576_v2 = vcombine.high %v288_v25, %v292_v63 }
 0x183   :  { %3759 = vmatprep.subr.bf16.mxu0 %v8523_v34  ;;  %3923 = vmatprep.subr.bf16.mxu1 %v8526_v24  ;;  %v8571_v24 = vcombine.low %v280_v11, %v284_v55  ;;  %v8573_v34 = vcombine.high %v287_v6, %v291_v54  ;;  %v300_v11 = vld [vmem:[%s10458_s1 + $0x8f8] sm:$0xff]  ;;  %v8593_v55 = vcombine.low %v287_v6, %v291_v54  ;;  %v307_v6 = vld [vmem:[%s10458_s1 + $0x930] sm:$0xff] }
 0x184   :  { %11799 = vst [vmem:[#allocation384_spill] sm:$0xff] %v8576_v2  ;;  %v304_v54 = vld [vmem:[%s10458_s1 + $0x918] sm:$0xff] }
 0x185   :  { %3751 = vmatmul.mubr.bf16.vlgmr.msra.gmra.mrb[4].mxu0 %v6961_v0  ;;  %3915 = vmatmul.mubr.bf16.vlgmr.msra.gmra.mrb[4].mxu1 %v6961_v0  ;;  %11797 = vst [vmem:[#allocation382_spill] sm:$0xff] %v8571_v24  ;;  %11798 = vst [vmem:[#allocation383_spill] sm:$0xff] %v8573_v34  ;;  %v8597_v0 = vcombine.low %v288_v25, %v292_v63  ;;  %v308_v25 = vld [vmem:[%s10458_s1 + $0x938] sm:$0xff] }
 0x186   :  { %3760 = vmatpush1.bf16.msra.mxu0 %v8541_v31  ;;  %3924 = vmatpush1.bf16.msra.mxu1 %v8545_v33  ;;  %v295_v31 = vld [vmem:[%s10458_s1 + $0x8d0] sm:$0xff]  ;;  %11800 = vst [vmem:[#allocation385_spill] sm:$0xff] %v8593_v55 }
 0x187   :  { %3761 = vmatprep.subr.bf16.mxu0 %v8547_v62  ;;  %3925 = vmatprep.subr.bf16.mxu1 %v8550_v35  ;;  %11801 = vst [vmem:[#allocation386_spill] sm:$0xff] %v8597_v0  ;;  %v8599_v35 = vcombine.high %v295_v31, %v299_v53  ;;  %v8602_v62 = vcombine.high %v296_v60, %v300_v11 }
 0x188   :  { %3791 = vmatprep.mubr.bf16.mxu0 %v6987_v45  ;;  %3955 = vmatprep.mubr.bf16.mxu1 %v6987_v45  ;;  %v303_v45 = vld [vmem:[%s10458_s1 + $0x910] sm:$0xff]  ;;  %v8617_v63 = vcombine.low %v295_v31, %v299_v53  ;;  %v312_v53 = vld [vmem:[%s10458_s1 + $0x958] sm:$0xff] }
 0x189   :  { %11802 = vst [vmem:[#allocation387_spill] sm:$0xff] %v8599_v35  ;;  %11803 = vst [vmem:[#allocation388_spill] sm:$0xff] %v8602_v62  ;;  %v315_v31 = vld [vmem:[%s10458_s1 + $0x970] sm:$0xff] }
 0x18a   :  { %3762 = vmatpush1.bf16.msra.mxu0 %v8567_v22  ;;  %3926 = vmatpush1.bf16.msra.mxu1 %v8571_v24  ;;  %11804 = vst [vmem:[#allocation389_spill] sm:$0xff] %v8617_v63  ;;  %v8626_v24 = vcombine.high %v304_v54, %v308_v25  ;;  %v311_v22 = vld [vmem:[%s10458_s1 + $0x950] sm:$0xff] }
 0x18b   :  { %3763 = vmatprep.subr.bf16.mxu0 %v8573_v34  ;;  %3927 = vmatprep.subr.bf16.mxu1 %v8576_v2  ;;  %v8621_v2 = vcombine.low %v296_v60, %v300_v11  ;;  %v8623_v34 = vcombine.high %v303_v45, %v307_v6  ;;  %v316_v60 = vld [vmem:[%s10458_s1 + $0x978] sm:$0xff]  ;;  %v8641_v11 = vcombine.low %v303_v45, %v307_v6  ;;  %v323_v45 = vld [vmem:[%s10458_s1 + $0x9b0] sm:$0xff] }
 0x18c   :  { %11807 = vst [vmem:[#allocation392_spill] sm:$0xff] %v8626_v24  ;;  %v320_v6 = vld [vmem:[%s10458_s1 + $0x998] sm:$0xff] }
 0x18d   :  { %11805 = vst [vmem:[#allocation390_spill] sm:$0xff] %v8621_v2  ;;  %11806 = vst [vmem:[#allocation391_spill] sm:$0xff] %v8623_v34 }
 0x18e   :  { %3764 = vmatpush1.bf16.msra.mxu0 %v8593_v55  ;;  %3928 = vmatpush1.bf16.msra.mxu1 %v8597_v0  ;;  %11808 = vst [vmem:[#allocation393_spill] sm:$0xff] %v8641_v11  ;;  %v8650_v0 = vcombine.high %v312_v53, %v316_v60  ;;  %v319_v55 = vld [vmem:[%s10458_s1 + $0x990] sm:$0xff] }
 0x18f   :  { %3765 = vmatprep.subr.bf16.mxu0 %v8599_v35  ;;  %3929 = vmatprep.subr.bf16.mxu1 %v8602_v62  ;;  %v8645_v62 = vcombine.low %v304_v54, %v308_v25  ;;  %v8647_v35 = vcombine.high %v311_v22, %v315_v31  ;;  %v324_v54 = vld [vmem:[%s10458_s1 + $0x9b8] sm:$0xff]  ;;  %v8665_v25 = vcombine.low %v311_v22, %v315_v31  ;;  %v331_v22 = vld [vmem:[%s10458_s1 + $0x9f0] sm:$0xff] }
 0x190   :  { %11811 = vst [vmem:[#allocation396_spill] sm:$0xff] %v8650_v0  ;;  %v328_v31 = vld [vmem:[%s10458_s1 + $0x9d8] sm:$0xff] }
 0x191   :  { %11809 = vst [vmem:[#allocation394_spill] sm:$0xff] %v8645_v62  ;;  %11810 = vst [vmem:[#allocation395_spill] sm:$0xff] %v8647_v35 }
 0x192   :  { %3766 = vmatpush1.bf16.msra.mxu0 %v8617_v63  ;;  %3930 = vmatpush1.bf16.msra.mxu1 %v8621_v2  ;;  %11812 = vst [vmem:[#allocation397_spill] sm:$0xff] %v8665_v25  ;;  %v8674_v2 = vcombine.high %v320_v6, %v324_v54  ;;  %v327_v63 = vld [vmem:[%s10458_s1 + $0x9d0] sm:$0xff] }
 0x193   :  { %3767 = vmatprep.subr.bf16.mxu0 %v8623_v34  ;;  %3931 = vmatprep.subr.bf16.mxu1 %v8626_v24  ;;  %v8669_v24 = vcombine.low %v312_v53, %v316_v60  ;;  %v8671_v34 = vcombine.high %v319_v55, %v323_v45  ;;  %v332_v53 = vld [vmem:[%s10458_s1 + $0x9f8] sm:$0xff]  ;;  %v8689_v60 = vcombine.low %v319_v55, %v323_v45  ;;  %v339_v55 = vld [vmem:[%s10458_s1 + $0xa30] sm:$0xff] }
 0x194   :  { %11815 = vst [vmem:[#allocation400_spill] sm:$0xff] %v8674_v2  ;;  %v336_v45 = vld [vmem:[%s10458_s1 + $0xa18] sm:$0xff] }
 0x195   :  { %11813 = vst [vmem:[#allocation398_spill] sm:$0xff] %v8669_v24  ;;  %11814 = vst [vmem:[#allocation399_spill] sm:$0xff] %v8671_v34 }
 0x196   :  { %3768 = vmatpush1.bf16.msra.mxu0 %v8641_v11  ;;  %3932 = vmatpush1.bf16.msra.mxu1 %v8645_v62  ;;  %11816 = vst [vmem:[#allocation401_spill] sm:$0xff] %v8689_v60  ;;  %v8698_v62 = vcombine.high %v328_v31, %v332_v53  ;;  %v335_v11 = vld [vmem:[%s10458_s1 + $0xa10] sm:$0xff] }
 0x197   :  { %3769 = vmatprep.subr.bf16.mxu0 %v8647_v35  ;;  %3933 = vmatprep.subr.bf16.mxu1 %v8650_v0  ;;  %v8693_v0 = vcombine.low %v320_v6, %v324_v54  ;;  %v8695_v35 = vcombine.high %v327_v63, %v331_v22  ;;  %v340_v6 = vld [vmem:[%s10458_s1 + $0xa38] sm:$0xff]  ;;  %v8713_v54 = vcombine.low %v327_v63, %v331_v22  ;;  %v347_v63 = vld [vmem:[%s10458_s1 + $0xa70] sm:$0xff] }
 0x198   :  { %11819 = vst [vmem:[#allocation404_spill] sm:$0xff] %v8698_v62  ;;  %v344_v22 = vld [vmem:[%s10458_s1 + $0xa58] sm:$0xff] }
 0x199   :  { %11817 = vst [vmem:[#allocation402_spill] sm:$0xff] %v8693_v0  ;;  %11818 = vst [vmem:[#allocation403_spill] sm:$0xff] %v8695_v35 }
 0x19a   :  { %3770 = vmatpush1.bf16.msra.mxu0 %v8665_v25  ;;  %3934 = vmatpush1.bf16.msra.mxu1 %v8669_v24  ;;  %11820 = vst [vmem:[#allocation405_spill] sm:$0xff] %v8713_v54  ;;  %v8722_v24 = vcombine.high %v336_v45, %v340_v6  ;;  %v343_v25 = vld [vmem:[%s10458_s1 + $0xa50] sm:$0xff] }
 0x19b   :  { %3771 = vmatprep.subr.bf16.mxu0 %v8671_v34  ;;  %3935 = vmatprep.subr.bf16.mxu1 %v8674_v2  ;;  %v8717_v2 = vcombine.low %v328_v31, %v332_v53  ;;  %v8719_v34 = vcombine.high %v335_v11, %v339_v55  ;;  %v348_v31 = vld [vmem:[%s10458_s1 + $0xa78] sm:$0xff]  ;;  %v8737_v53 = vcombine.low %v335_v11, %v339_v55  ;;  %v355_v11 = vld [vmem:[%s10458_s1 + $0xab0] sm:$0xff] }
 0x19c   :  { %11823 = vst [vmem:[#allocation408_spill] sm:$0xff] %v8722_v24  ;;  %v352_v55 = vld [vmem:[%s10458_s1 + $0xa98] sm:$0xff] }
 0x19d   :  { %11821 = vst [vmem:[#allocation406_spill] sm:$0xff] %v8717_v2  ;;  %11822 = vst [vmem:[#allocation407_spill] sm:$0xff] %v8719_v34 }
 0x19e   :  { %3772 = vmatpush1.bf16.msra.mxu0 %v8689_v60  ;;  %3936 = vmatpush1.bf16.msra.mxu1 %v8693_v0  ;;  %11824 = vst [vmem:[#allocation409_spill] sm:$0xff] %v8737_v53  ;;  %v8746_v0 = vcombine.high %v344_v22, %v348_v31  ;;  %v351_v60 = vld [vmem:[%s10458_s1 + $0xa90] sm:$0xff] }
 0x19f   :  { %3773 = vmatprep.subr.bf16.mxu0 %v8695_v35  ;;  %3937 = vmatprep.subr.bf16.mxu1 %v8698_v62  ;;  %v8741_v62 = vcombine.low %v336_v45, %v340_v6  ;;  %v8743_v35 = vcombine.high %v343_v25, %v347_v63  ;;  %v356_v45 = vld [vmem:[%s10458_s1 + $0xab8] sm:$0xff]  ;;  %v8761_v6 = vcombine.low %v343_v25, %v347_v63  ;;  %v363_v25 = vld [vmem:[%s10458_s1 + $0xaf0] sm:$0xff] }
 0x1a0   :  { %11827 = vst [vmem:[#allocation412_spill] sm:$0xff] %v8746_v0  ;;  %v360_v63 = vld [vmem:[%s10458_s1 + $0xad8] sm:$0xff] }
 0x1a1   :  { %11825 = vst [vmem:[#allocation410_spill] sm:$0xff] %v8741_v62  ;;  %11826 = vst [vmem:[#allocation411_spill] sm:$0xff] %v8743_v35 }
 0x1a2   :  { %3774 = vmatpush1.bf16.msra.mxu0 %v8713_v54  ;;  %3938 = vmatpush1.bf16.msra.mxu1 %v8717_v2  ;;  %11828 = vst [vmem:[#allocation413_spill] sm:$0xff] %v8761_v6  ;;  %v8770_v2 = vcombine.high %v352_v55, %v356_v45  ;;  %v359_v54 = vld [vmem:[%s10458_s1 + $0xad0] sm:$0xff] }
 0x1a3   :  { %3775 = vmatprep.subr.bf16.mxu0 %v8719_v34  ;;  %3939 = vmatprep.subr.bf16.mxu1 %v8722_v24  ;;  %v8765_v24 = vcombine.low %v344_v22, %v348_v31  ;;  %v8767_v34 = vcombine.high %v351_v60, %v355_v11  ;;  %v364_v22 = vld [vmem:[%s10458_s1 + $0xaf8] sm:$0xff]  ;;  %v8785_v31 = vcombine.low %v351_v60, %v355_v11  ;;  %v371_v60 = vld [vmem:[%s10458_s1 + $0xb30] sm:$0xff] }
 0x1a4   :  { %11831 = vst [vmem:[#allocation416_spill] sm:$0xff] %v8770_v2  ;;  %v368_v11 = vld [vmem:[%s10458_s1 + $0xb18] sm:$0xff] }
 0x1a5   :  { %11829 = vst [vmem:[#allocation414_spill] sm:$0xff] %v8765_v24  ;;  %11830 = vst [vmem:[#allocation415_spill] sm:$0xff] %v8767_v34 }
 0x1a6   :  { %3776 = vmatpush1.bf16.msra.mxu0 %v8737_v53  ;;  %3940 = vmatpush1.bf16.msra.mxu1 %v8741_v62  ;;  %11832 = vst [vmem:[#allocation417_spill] sm:$0xff] %v8785_v31  ;;  %v8794_v62 = vcombine.high %v360_v63, %v364_v22  ;;  %v367_v53 = vld [vmem:[%s10458_s1 + $0xb10] sm:$0xff] }
 0x1a7   :  { %3777 = vmatprep.subr.bf16.mxu0 %v8743_v35  ;;  %3941 = vmatprep.subr.bf16.mxu1 %v8746_v0  ;;  %v8789_v0 = vcombine.low %v352_v55, %v356_v45  ;;  %v8791_v35 = vcombine.high %v359_v54, %v363_v25  ;;  %v372_v55 = vld [vmem:[%s10458_s1 + $0xb38] sm:$0xff]  ;;  %v8809_v45 = vcombine.low %v359_v54, %v363_v25  ;;  %v379_v54 = vld [vmem:[%s10458_s1 + $0xb70] sm:$0xff] }
 0x1a8   :  { %11835 = vst [vmem:[#allocation420_spill] sm:$0xff] %v8794_v62  ;;  %v376_v25 = vld [vmem:[%s10458_s1 + $0xb58] sm:$0xff] }
 0x1a9   :  { %11833 = vst [vmem:[#allocation418_spill] sm:$0xff] %v8789_v0  ;;  %11834 = vst [vmem:[#allocation419_spill] sm:$0xff] %v8791_v35 }
 0x1aa   :  { %3778 = vmatpush1.bf16.msra.mxu0 %v8761_v6  ;;  %3942 = vmatpush1.bf16.msra.mxu1 %v8765_v24  ;;  %11836 = vst [vmem:[#allocation421_spill] sm:$0xff] %v8809_v45  ;;  %v8818_v24 = vcombine.high %v368_v11, %v372_v55  ;;  %v375_v6 = vld [vmem:[%s10458_s1 + $0xb50] sm:$0xff] }
 0x1ab   :  { %3779 = vmatprep.subr.bf16.mxu0 %v8767_v34  ;;  %3943 = vmatprep.subr.bf16.mxu1 %v8770_v2  ;;  %v8813_v2 = vcombine.low %v360_v63, %v364_v22  ;;  %v8815_v34 = vcombine.high %v367_v53, %v371_v60  ;;  %v380_v63 = vld [vmem:[%s10458_s1 + $0xb78] sm:$0xff]  ;;  %v8833_v22 = vcombine.low %v367_v53, %v371_v60  ;;  %v387_v53 = vld [vmem:[%s10458_s1 + $0xbb0] sm:$0xff] }
 0x1ac   :  { %11839 = vst [vmem:[#allocation424_spill] sm:$0xff] %v8818_v24  ;;  %v384_v60 = vld [vmem:[%s10458_s1 + $0xb98] sm:$0xff] }
 0x1ad   :  { %11837 = vst [vmem:[#allocation422_spill] sm:$0xff] %v8813_v2  ;;  %11838 = vst [vmem:[#allocation423_spill] sm:$0xff] %v8815_v34 }
 0x1ae   :  { %3780 = vmatpush1.bf16.msra.mxu0 %v8785_v31  ;;  %3944 = vmatpush1.bf16.msra.mxu1 %v8789_v0  ;;  %11840 = vst [vmem:[#allocation425_spill] sm:$0xff] %v8833_v22  ;;  %v8842_v0 = vcombine.high %v376_v25, %v380_v63  ;;  %v383_v31 = vld [vmem:[%s10458_s1 + $0xb90] sm:$0xff] }
 0x1af   :  { %3781 = vmatprep.subr.bf16.mxu0 %v8791_v35  ;;  %3945 = vmatprep.subr.bf16.mxu1 %v8794_v62  ;;  %v8837_v62 = vcombine.low %v368_v11, %v372_v55  ;;  %v8839_v35 = vcombine.high %v375_v6, %v379_v54  ;;  %v388_v11 = vld [vmem:[%s10458_s1 + $0xbb8] sm:$0xff]  ;;  %v8857_v55 = vcombine.low %v375_v6, %v379_v54  ;;  %v395_v6 = vld [vmem:[%s10458_s1 + $0xbf0] sm:$0xff] }
 0x1b0   :  { %11843 = vst [vmem:[#allocation428_spill] sm:$0xff] %v8842_v0  ;;  %v392_v54 = vld [vmem:[%s10458_s1 + $0xbd8] sm:$0xff] }
 0x1b1   :  { %11841 = vst [vmem:[#allocation426_spill] sm:$0xff] %v8837_v62  ;;  %11842 = vst [vmem:[#allocation427_spill] sm:$0xff] %v8839_v35 }
 0x1b2   :  { %3782 = vmatpush1.bf16.msra.mxu0 %v8809_v45  ;;  %3946 = vmatpush1.bf16.msra.mxu1 %v8813_v2  ;;  %11844 = vst [vmem:[#allocation429_spill] sm:$0xff] %v8857_v55  ;;  %v8866_v2 = vcombine.high %v384_v60, %v388_v11  ;;  %v391_v45 = vld [vmem:[%s10458_s1 + $0xbd0] sm:$0xff] }
 0x1b3   :  { %3783 = vmatprep.subr.bf16.mxu0 %v8815_v34  ;;  %3947 = vmatprep.subr.bf16.mxu1 %v8818_v24  ;;  %v8861_v24 = vcombine.low %v376_v25, %v380_v63  ;;  %v8863_v34 = vcombine.high %v383_v31, %v387_v53  ;;  %v396_v25 = vld [vmem:[%s10458_s1 + $0xbf8] sm:$0xff]  ;;  %v8881_v63 = vcombine.low %v383_v31, %v387_v53  ;;  %v403_v31 = vld [vmem:[%s10458_s1 + $0xc30] sm:$0xff] }
 0x1b4   :  { %11847 = vst [vmem:[#allocation432_spill] sm:$0xff] %v8866_v2  ;;  %v400_v53 = vld [vmem:[%s10458_s1 + $0xc18] sm:$0xff] }
 0x1b5   :  { %11845 = vst [vmem:[#allocation430_spill] sm:$0xff] %v8861_v24  ;;  %11846 = vst [vmem:[#allocation431_spill] sm:$0xff] %v8863_v34 }
 0x1b6   :  { %3784 = vmatpush1.bf16.msra.mxu0 %v8833_v22  ;;  %3948 = vmatpush1.bf16.msra.mxu1 %v8837_v62  ;;  %11848 = vst [vmem:[#allocation433_spill] sm:$0xff] %v8881_v63  ;;  %v8890_v62 = vcombine.high %v392_v54, %v396_v25  ;;  %v399_v22 = vld [vmem:[%s10458_s1 + $0xc10] sm:$0xff] }
 0x1b7   :  { %3785 = vmatprep.subr.bf16.mxu0 %v8839_v35  ;;  %3949 = vmatprep.subr.bf16.mxu1 %v8842_v0  ;;  %v8885_v0 = vcombine.low %v384_v60, %v388_v11  ;;  %v8887_v35 = vcombine.high %v391_v45, %v395_v6  ;;  %v404_v60 = vld [vmem:[%s10458_s1 + $0xc38] sm:$0xff]  ;;  %v8905_v11 = vcombine.low %v391_v45, %v395_v6  ;;  %v411_v45 = vld [vmem:[%s10458_s1 + $0xc70] sm:$0xff] }
 0x1b8   :  { %11851 = vst [vmem:[#allocation436_spill] sm:$0xff] %v8890_v62  ;;  %v408_v6 = vld [vmem:[%s10458_s1 + $0xc58] sm:$0xff] }
 0x1b9   :  { %11849 = vst [vmem:[#allocation434_spill] sm:$0xff] %v8885_v0  ;;  %11850 = vst [vmem:[#allocation435_spill] sm:$0xff] %v8887_v35 }
 0x1ba   :  { %3786 = vmatpush1.bf16.msra.mxu0 %v8857_v55  ;;  %3950 = vmatpush1.bf16.msra.mxu1 %v8861_v24  ;;  %11852 = vst [vmem:[#allocation437_spill] sm:$0xff] %v8905_v11  ;;  %v8914_v24 = vcombine.high %v400_v53, %v404_v60  ;;  %v407_v55 = vld [vmem:[%s10458_s1 + $0xc50] sm:$0xff] }
 0x1bb   :  { %3787 = vmatprep.subr.bf16.mxu0 %v8863_v34  ;;  %3951 = vmatprep.subr.bf16.mxu1 %v8866_v2  ;;  %v8909_v2 = vcombine.low %v392_v54, %v396_v25  ;;  %v8911_v34 = vcombine.high %v399_v22, %v403_v31  ;;  %v412_v54 = vld [vmem:[%s10458_s1 + $0xc78] sm:$0xff]  ;;  %v8929_v25 = vcombine.low %v399_v22, %v403_v31  ;;  %v419_v22 = vld [vmem:[%s10458_s1 + $0xcb0] sm:$0xff] }
 0x1bc   :  { %11855 = vst [vmem:[#allocation440_spill] sm:$0xff] %v8914_v24  ;;  %v416_v31 = vld [vmem:[%s10458_s1 + $0xc98] sm:$0xff] }
 0x1bd   :  { %11853 = vst [vmem:[#allocation438_spill] sm:$0xff] %v8909_v2  ;;  %11854 = vst [vmem:[#allocation439_spill] sm:$0xff] %v8911_v34 }
 0x1be   :  { %3788 = vmatpush1.bf16.msra.mxu0 %v8881_v63  ;;  %3952 = vmatpush1.bf16.msra.mxu1 %v8885_v0  ;;  %11856 = vst [vmem:[#allocation441_spill] sm:$0xff] %v8929_v25  ;;  %v8938_v0 = vcombine.high %v408_v6, %v412_v54  ;;  %v415_v63 = vld [vmem:[%s10458_s1 + $0xc90] sm:$0xff] }
 0x1bf   :  { %3789 = vmatprep.subr.bf16.mxu0 %v8887_v35  ;;  %3953 = vmatprep.subr.bf16.mxu1 %v8890_v62  ;;  %v8933_v62 = vcombine.low %v400_v53, %v404_v60  ;;  %v8935_v35 = vcombine.high %v407_v55, %v411_v45  ;;  %v420_v53 = vld [vmem:[%s10458_s1 + $0xcb8] sm:$0xff]  ;;  %v8955_v60 = vcombine.low %v407_v55, %v411_v45  ;;  %v427_v55 = vld [vmem:[%s10458_s1 + $0xcf0] sm:$0xff] }
 0x1c0   :  { %11859 = vst [vmem:[#allocation444_spill] sm:$0xff] %v8938_v0  ;;  %v424_v45 = vld [vmem:[%s10458_s1 + $0xcd8] sm:$0xff] }
 0x1c1   :  { %11857 = vst [vmem:[#allocation442_spill] sm:$0xff] %v8933_v62  ;;  %11858 = vst [vmem:[#allocation443_spill] sm:$0xff] %v8935_v35 }
 0x1c2   :  { %3790 = vmatpush1.bf16.msra.mxu0 %v8905_v11  ;;  %3954 = vmatpush1.bf16.msra.mxu1 %v8909_v2  ;;  %11860 = vst [vmem:[#allocation445_spill] sm:$0xff] %v8955_v60  ;;  %v8964_v2 = vcombine.high %v416_v31, %v420_v53 }
 0x1c3   :  { %3800 = vmatprep.subr.bf16.mxu0 %v8911_v34  ;;  %3964 = vmatprep.subr.bf16.mxu1 %v8914_v24  ;;  %v8959_v24 = vcombine.low %v408_v6, %v412_v54  ;;  %v8961_v34 = vcombine.high %v415_v63, %v419_v22  ;;  %v428_v6 = vld [vmem:[%s10458_s1 + $0xcf8] sm:$0xff]  ;;  %v8981_v54 = vcombine.low %v415_v63, %v419_v22  ;;  %v435_v63 = vld [vmem:[%s10458_s1 + $0xd30] sm:$0xff] }
 0x1c4   :  { %11863 = vst [vmem:[#allocation448_spill] sm:$0xff] %v8964_v2  ;;  %v432_v22 = vld [vmem:[%s10458_s1 + $0xd18] sm:$0xff] }
 0x1c5   :  { %3792 = vmatmul.mubr.bf16.vlgmr.msra.gmra.mrb[4].mxu0 %v7362_v44  ;;  %3956 = vmatmul.mubr.bf16.vlgmr.msra.gmra.mrb[4].mxu1 %v7362_v44  ;;  %11861 = vst [vmem:[#allocation446_spill] sm:$0xff] %v8959_v24  ;;  %11862 = vst [vmem:[#allocation447_spill] sm:$0xff] %v8961_v34  ;;  %v8985_v44 = vcombine.low %v416_v31, %v420_v53  ;;  %v436_v31 = vld [vmem:[%s10458_s1 + $0xd38] sm:$0xff] }
 0x1c6   :  { %3801 = vmatpush1.bf16.msra.mxu0 %v8929_v25  ;;  %3965 = vmatpush1.bf16.msra.mxu1 %v8933_v62  ;;  %v423_v25 = vld [vmem:[%s10458_s1 + $0xcd0] sm:$0xff]  ;;  %11864 = vst [vmem:[#allocation449_spill] sm:$0xff] %v8981_v54 }
 0x1c7   :  { %3802 = vmatprep.subr.bf16.mxu0 %v8935_v35  ;;  %3966 = vmatprep.subr.bf16.mxu1 %v8938_v0  ;;  %11865 = vst [vmem:[#allocation450_spill] sm:$0xff] %v8985_v44  ;;  %v8987_v0 = vcombine.high %v423_v25, %v427_v55  ;;  %v8990_v35 = vcombine.high %v424_v45, %v428_v6 }
 0x1c8   :  { %3832 = vmatprep.mubr.bf16.mxu0 %v7388_v1  ;;  %3996 = vmatprep.mubr.bf16.mxu1 %v7388_v1  ;;  %v431_v1 = vld [vmem:[%s10458_s1 + $0xd10] sm:$0xff]  ;;  %v9005_v53 = vcombine.low %v423_v25, %v427_v55  ;;  %v440_v55 = vld [vmem:[%s10458_s1 + $0xd58] sm:$0xff] }
 0x1c9   :  { %11866 = vst [vmem:[#allocation451_spill] sm:$0xff] %v8987_v0  ;;  %11867 = vst [vmem:[#allocation452_spill] sm:$0xff] %v8990_v35  ;;  %v443_v25 = vld [vmem:[%s10458_s1 + $0xd70] sm:$0xff] }
 0x1ca   :  { %3803 = vmatpush1.bf16.msra.mxu0 %v8955_v60  ;;  %3967 = vmatpush1.bf16.msra.mxu1 %v8959_v24  ;;  %11868 = vst [vmem:[#allocation453_spill] sm:$0xff] %v9005_v53  ;;  %v9014_v24 = vcombine.high %v432_v22, %v436_v31  ;;  %v439_v60 = vld [vmem:[%s10458_s1 + $0xd50] sm:$0xff] }
 0x1cb   :  { %3804 = vmatprep.subr.bf16.mxu0 %v8961_v34  ;;  %3968 = vmatprep.subr.bf16.mxu1 %v8964_v2  ;;  %v9009_v2 = vcombine.low %v424_v45, %v428_v6  ;;  %v9011_v34 = vcombine.high %v431_v1, %v435_v63  ;;  %v444_v45 = vld [vmem:[%s10458_s1 + $0xd78] sm:$0xff]  ;;  %v9029_v6 = vcombine.low %v431_v1, %v435_v63  ;;  %v451_v1 = vld [vmem:[%s10458_s1 + $0xdb0] sm:$0xff] }
 0x1cc   :  { %11871 = vst [vmem:[#allocation456_spill] sm:$0xff] %v9014_v24  ;;  %v448_v63 = vld [vmem:[%s10458_s1 + $0xd98] sm:$0xff] }
 0x1cd   :  { %11869 = vst [vmem:[#allocation454_spill] sm:$0xff] %v9009_v2  ;;  %11870 = vst [vmem:[#allocation455_spill] sm:$0xff] %v9011_v34 }
 0x1ce   :  { %3805 = vmatpush1.bf16.msra.mxu0 %v8981_v54  ;;  %3969 = vmatpush1.bf16.msra.mxu1 %v8985_v44  ;;  %11872 = vst [vmem:[#allocation457_spill] sm:$0xff] %v9029_v6  ;;  %v9038_v44 = vcombine.high %v440_v55, %v444_v45  ;;  %v447_v54 = vld [vmem:[%s10458_s1 + $0xd90] sm:$0xff] }
 0x1cf   :  { %3806 = vmatprep.subr.bf16.mxu0 %v8987_v0  ;;  %3970 = vmatprep.subr.bf16.mxu1 %v8990_v35  ;;  %v9033_v35 = vcombine.low %v432_v22, %v436_v31  ;;  %v9035_v0 = vcombine.high %v439_v60, %v443_v25  ;;  %v452_v22 = vld [vmem:[%s10458_s1 + $0xdb8] sm:$0xff]  ;;  %v9053_v31 = vcombine.low %v439_v60, %v443_v25  ;;  %v459_v60 = vld [vmem:[%s10458_s1 + $0xdf0] sm:$0xff] }
 0x1d0   :  { %11875 = vst [vmem:[#allocation460_spill] sm:$0xff] %v9038_v44  ;;  %v456_v25 = vld [vmem:[%s10458_s1 + $0xdd8] sm:$0xff] }
 0x1d1   :  { %11873 = vst [vmem:[#allocation458_spill] sm:$0xff] %v9033_v35  ;;  %11874 = vst [vmem:[#allocation459_spill] sm:$0xff] %v9035_v0 }
 0x1d2   :  { %3807 = vmatpush1.bf16.msra.mxu0 %v9005_v53  ;;  %3971 = vmatpush1.bf16.msra.mxu1 %v9009_v2  ;;  %11876 = vst [vmem:[#allocation461_spill] sm:$0xff] %v9053_v31  ;;  %v9062_v2 = vcombine.high %v448_v63, %v452_v22  ;;  %v455_v53 = vld [vmem:[%s10458_s1 + $0xdd0] sm:$0xff] }
 0x1d3   :  { %3808 = vmatprep.subr.bf16.mxu0 %v9011_v34  ;;  %3972 = vmatprep.subr.bf16.mxu1 %v9014_v24  ;;  %v9057_v24 = vcombine.low %v440_v55, %v444_v45  ;;  %v9059_v34 = vcombine.high %v447_v54, %v451_v1  ;;  %v460_v55 = vld [vmem:[%s10458_s1 + $0xdf8] sm:$0xff]  ;;  %v9077_v45 = vcombine.low %v447_v54, %v451_v1  ;;  %v467_v54 = vld [vmem:[%s10458_s1 + $0xe30] sm:$0xff] }
 0x1d4   :  { %11879 = vst [vmem:[#allocation464_spill] sm:$0xff] %v9062_v2  ;;  %v464_v1 = vld [vmem:[%s10458_s1 + $0xe18] sm:$0xff] }
 0x1d5   :  { %11877 = vst [vmem:[#allocation462_spill] sm:$0xff] %v9057_v24  ;;  %11878 = vst [vmem:[#allocation463_spill] sm:$0xff] %v9059_v34 }
 0x1d6   :  { %3809 = vmatpush1.bf16.msra.mxu0 %v9029_v6  ;;  %3973 = vmatpush1.bf16.msra.mxu1 %v9033_v35  ;;  %11880 = vst [vmem:[#allocation465_spill] sm:$0xff] %v9077_v45  ;;  %v9086_v35 = vcombine.high %v456_v25, %v460_v55  ;;  %v463_v6 = vld [vmem:[%s10458_s1 + $0xe10] sm:$0xff] }
 0x1d7   :  { %3810 = vmatprep.subr.bf16.mxu0 %v9035_v0  ;;  %3974 = vmatprep.subr.bf16.mxu1 %v9038_v44  ;;  %v9081_v44 = vcombine.low %v448_v63, %v452_v22  ;;  %v9083_v0 = vcombine.high %v455_v53, %v459_v60  ;;  %v468_v63 = vld [vmem:[%s10458_s1 + $0xe38] sm:$0xff]  ;;  %v9101_v22 = vcombine.low %v455_v53, %v459_v60  ;;  %v475_v53 = vld [vmem:[%s10458_s1 + $0xe70] sm:$0xff] }
 0x1d8   :  { %11883 = vst [vmem:[#allocation468_spill] sm:$0xff] %v9086_v35  ;;  %v472_v60 = vld [vmem:[%s10458_s1 + $0xe58] sm:$0xff] }
 0x1d9   :  { %11881 = vst [vmem:[#allocation466_spill] sm:$0xff] %v9081_v44  ;;  %11882 = vst [vmem:[#allocation467_spill] sm:$0xff] %v9083_v0 }
 0x1da   :  { %3811 = vmatpush1.bf16.msra.mxu0 %v9053_v31  ;;  %3975 = vmatpush1.bf16.msra.mxu1 %v9057_v24  ;;  %11884 = vst [vmem:[#allocation469_spill] sm:$0xff] %v9101_v22  ;;  %v9110_v24 = vcombine.high %v464_v1, %v468_v63  ;;  %v471_v31 = vld [vmem:[%s10458_s1 + $0xe50] sm:$0xff] }
 0x1db   :  { %3812 = vmatprep.subr.bf16.mxu0 %v9059_v34  ;;  %3976 = vmatprep.subr.bf16.mxu1 %v9062_v2  ;;  %v9105_v2 = vcombine.low %v456_v25, %v460_v55  ;;  %v9107_v34 = vcombine.high %v463_v6, %v467_v54  ;;  %v476_v25 = vld [vmem:[%s10458_s1 + $0xe78] sm:$0xff]  ;;  %v9125_v55 = vcombine.low %v463_v6, %v467_v54  ;;  %v483_v6 = vld [vmem:[%s10458_s1 + $0xeb0] sm:$0xff] }
 0x1dc   :  { %11887 = vst [vmem:[#allocation472_spill] sm:$0xff] %v9110_v24  ;;  %v480_v54 = vld [vmem:[%s10458_s1 + $0xe98] sm:$0xff] }
 0x1dd   :  { %11885 = vst [vmem:[#allocation470_spill] sm:$0xff] %v9105_v2  ;;  %11886 = vst [vmem:[#allocation471_spill] sm:$0xff] %v9107_v34 }
 0x1de   :  { %3813 = vmatpush1.bf16.msra.mxu0 %v9077_v45  ;;  %3977 = vmatpush1.bf16.msra.mxu1 %v9081_v44  ;;  %11888 = vst [vmem:[#allocation473_spill] sm:$0xff] %v9125_v55  ;;  %v9134_v44 = vcombine.high %v472_v60, %v476_v25  ;;  %v479_v45 = vld [vmem:[%s10458_s1 + $0xe90] sm:$0xff] }
 0x1df   :  { %3814 = vmatprep.subr.bf16.mxu0 %v9083_v0  ;;  %3978 = vmatprep.subr.bf16.mxu1 %v9086_v35  ;;  %v9129_v35 = vcombine.low %v464_v1, %v468_v63  ;;  %v9131_v0 = vcombine.high %v471_v31, %v475_v53  ;;  %v484_v1 = vld [vmem:[%s10458_s1 + $0xeb8] sm:$0xff]  ;;  %v9149_v63 = vcombine.low %v471_v31, %v475_v53  ;;  %v491_v31 = vld [vmem:[%s10458_s1 + $0xef0] sm:$0xff] }
 0x1e0   :  { %11891 = vst [vmem:[#allocation476_spill] sm:$0xff] %v9134_v44  ;;  %v488_v53 = vld [vmem:[%s10458_s1 + $0xed8] sm:$0xff] }
 0x1e1   :  { %11889 = vst [vmem:[#allocation474_spill] sm:$0xff] %v9129_v35  ;;  %11890 = vst [vmem:[#allocation475_spill] sm:$0xff] %v9131_v0 }
 0x1e2   :  { %3815 = vmatpush1.bf16.msra.mxu0 %v9101_v22  ;;  %3979 = vmatpush1.bf16.msra.mxu1 %v9105_v2  ;;  %11892 = vst [vmem:[#allocation477_spill] sm:$0xff] %v9149_v63  ;;  %v9158_v2 = vcombine.high %v480_v54, %v484_v1  ;;  %v487_v22 = vld [vmem:[%s10458_s1 + $0xed0] sm:$0xff] }
 0x1e3   :  { %3816 = vmatprep.subr.bf16.mxu0 %v9107_v34  ;;  %3980 = vmatprep.subr.bf16.mxu1 %v9110_v24  ;;  %v9153_v24 = vcombine.low %v472_v60, %v476_v25  ;;  %v9155_v34 = vcombine.high %v479_v45, %v483_v6  ;;  %v492_v60 = vld [vmem:[%s10458_s1 + $0xef8] sm:$0xff]  ;;  %v9173_v25 = vcombine.low %v479_v45, %v483_v6  ;;  %v499_v45 = vld [vmem:[%s10458_s1 + $0xf30] sm:$0xff] }
 0x1e4   :  { %11895 = vst [vmem:[#allocation480_spill] sm:$0xff] %v9158_v2  ;;  %v496_v6 = vld [vmem:[%s10458_s1 + $0xf18] sm:$0xff] }
 0x1e5   :  { %11893 = vst [vmem:[#allocation478_spill] sm:$0xff] %v9153_v24  ;;  %11894 = vst [vmem:[#allocation479_spill] sm:$0xff] %v9155_v34 }
 0x1e6   :  { %3817 = vmatpush1.bf16.msra.mxu0 %v9125_v55  ;;  %3981 = vmatpush1.bf16.msra.mxu1 %v9129_v35  ;;  %11896 = vst [vmem:[#allocation481_spill] sm:$0xff] %v9173_v25  ;;  %v9182_v35 = vcombine.high %v488_v53, %v492_v60  ;;  %v495_v55 = vld [vmem:[%s10458_s1 + $0xf10] sm:$0xff] }
 0x1e7   :  { %3818 = vmatprep.subr.bf16.mxu0 %v9131_v0  ;;  %3982 = vmatprep.subr.bf16.mxu1 %v9134_v44  ;;  %v9177_v44 = vcombine.low %v480_v54, %v484_v1  ;;  %v9179_v0 = vcombine.high %v487_v22, %v491_v31  ;;  %v500_v54 = vld [vmem:[%s10458_s1 + $0xf38] sm:$0xff]  ;;  %v9197_v1 = vcombine.low %v487_v22, %v491_v31  ;;  %v507_v22 = vld [vmem:[%s10458_s1 + $0xf70] sm:$0xff] }
 0x1e8   :  { %11899 = vst [vmem:[#allocation484_spill] sm:$0xff] %v9182_v35  ;;  %v504_v31 = vld [vmem:[%s10458_s1 + $0xf58] sm:$0xff] }
 0x1e9   :  { %11897 = vst [vmem:[#allocation482_spill] sm:$0xff] %v9177_v44  ;;  %11898 = vst [vmem:[#allocation483_spill] sm:$0xff] %v9179_v0 }
 0x1ea   :  { %3819 = vmatpush1.bf16.msra.mxu0 %v9149_v63  ;;  %3983 = vmatpush1.bf16.msra.mxu1 %v9153_v24  ;;  %11900 = vst [vmem:[#allocation485_spill] sm:$0xff] %v9197_v1  ;;  %v9206_v24 = vcombine.high %v496_v6, %v500_v54  ;;  %v503_v63 = vld [vmem:[%s10458_s1 + $0xf50] sm:$0xff] }
 0x1eb   :  { %3820 = vmatprep.subr.bf16.mxu0 %v9155_v34  ;;  %3984 = vmatprep.subr.bf16.mxu1 %v9158_v2  ;;  %v9201_v2 = vcombine.low %v488_v53, %v492_v60  ;;  %v9203_v34 = vcombine.high %v495_v55, %v499_v45  ;;  %v508_v53 = vld [vmem:[%s10458_s1 + $0xf78] sm:$0xff]  ;;  %v9221_v60 = vcombine.low %v495_v55, %v499_v45  ;;  %v515_v55 = vld [vmem:[%s10458_s1 + $0xfb0] sm:$0xff] }
 0x1ec   :  { %11903 = vst [vmem:[#allocation488_spill] sm:$0xff] %v9206_v24  ;;  %v512_v45 = vld [vmem:[%s10458_s1 + $0xf98] sm:$0xff] }
 0x1ed   :  { %11901 = vst [vmem:[#allocation486_spill] sm:$0xff] %v9201_v2  ;;  %11902 = vst [vmem:[#allocation487_spill] sm:$0xff] %v9203_v34 }
 0x1ee   :  { %3821 = vmatpush1.bf16.msra.mxu0 %v9173_v25  ;;  %3985 = vmatpush1.bf16.msra.mxu1 %v9177_v44  ;;  %11904 = vst [vmem:[#allocation489_spill] sm:$0xff] %v9221_v60  ;;  %v9230_v44 = vcombine.high %v504_v31, %v508_v53  ;;  %v511_v25 = vld [vmem:[%s10458_s1 + $0xf90] sm:$0xff] }
 0x1ef   :  { %3822 = vmatprep.subr.bf16.mxu0 %v9179_v0  ;;  %3986 = vmatprep.subr.bf16.mxu1 %v9182_v35  ;;  %v9225_v35 = vcombine.low %v496_v6, %v500_v54  ;;  %v9227_v0 = vcombine.high %v503_v63, %v507_v22  ;;  %v516_v6 = vld [vmem:[%s10458_s1 + $0xfb8] sm:$0xff]  ;;  %v9245_v54 = vcombine.low %v503_v63, %v507_v22  ;;  %v523_v63 = vld [vmem:[%s10458_s1 + $0xff0] sm:$0xff] }
 0x1f0   :  { %11907 = vst [vmem:[#allocation492_spill] sm:$0xff] %v9230_v44  ;;  %v520_v22 = vld [vmem:[%s10458_s1 + $0xfd8] sm:$0xff] }
 0x1f1   :  { %11905 = vst [vmem:[#allocation490_spill] sm:$0xff] %v9225_v35  ;;  %11906 = vst [vmem:[#allocation491_spill] sm:$0xff] %v9227_v0 }
 0x1f2   :  { %3823 = vmatpush1.bf16.msra.mxu0 %v9197_v1  ;;  %3987 = vmatpush1.bf16.msra.mxu1 %v9201_v2  ;;  %v9254_v2 = vcombine.high %v512_v45, %v516_v6  ;;  %v519_v1 = vld [vmem:[%s10458_s1 + $0xfd0] sm:$0xff] }
 0x1f3   :  { %3824 = vmatprep.subr.bf16.mxu0 %v9203_v34  ;;  %3988 = vmatprep.subr.bf16.mxu1 %v9206_v24  ;;  %v9249_v24 = vcombine.low %v504_v31, %v508_v53  ;;  %v9251_v34 = vcombine.high %v511_v25, %v515_v55  ;;  %v524_v31 = vld [vmem:[%s10458_s1 + $0xff8] sm:$0xff]  ;;  %v9269_v53 = vcombine.low %v511_v25, %v515_v55  ;;  %v11909_v55 = vld [vmem:[#allocation12_spill] sm:$0xff] }
 0x1f4   :  { %v9285_v25 = vcombine.low %v520_v22, %v524_v31 }
 0x1f6   :  { %3825 = vmatpush1.bf16.msra.mxu0 %v9221_v60  ;;  %3989 = vmatpush1.bf16.msra.mxu1 %v9225_v35  ;;  %v9278_v35 = vcombine.high %v520_v22, %v524_v31  ;;  %v9281_v60 = vcombine.low %v519_v1, %v523_v63  ;;  %v11913_v22 = vld [vmem:[#allocation16_spill] sm:$0xff]  ;;  %v11914_v31 = vld [vmem:[#allocation17_spill] sm:$0xff] }
 0x1f7   :  { %3826 = vmatprep.subr.bf16.mxu0 %v9227_v0  ;;  %3990 = vmatprep.subr.bf16.mxu1 %v9230_v44  ;;  %v9273_v44 = vcombine.low %v512_v45, %v516_v6  ;;  %v9275_v0 = vcombine.high %v519_v1, %v523_v63  ;;  %v11908_v1 = vld [vmem:[#allocation11_spill] sm:$0xff]  ;;  %v11910_v45 = vld [vmem:[#allocation13_spill] sm:$0xff]  ;;  %v11911_v6 = vld [vmem:[#allocation14_spill] sm:$0xff] }
 0x1f8   :  { %v11912_v63 = vld [vmem:[#allocation15_spill] sm:$0xff] }
 0x1fa   :  { %3827 = vmatpush1.bf16.msra.mxu0 %v9245_v54  ;;  %3991 = vmatpush1.bf16.msra.mxu1 %v9249_v24 }
 0x1fb   :  { %3828 = vmatprep.subr.bf16.mxu0 %v9251_v34  ;;  %3992 = vmatprep.subr.bf16.mxu1 %v9254_v2 }
 0x1fe   :  { %3829 = vmatpush1.bf16.msra.mxu0 %v9269_v53  ;;  %3993 = vmatpush1.bf16.msra.mxu1 %v9273_v44 }
 0x1ff   :  { %3830 = vmatprep.subr.bf16.mxu0 %v9275_v0  ;;  %3994 = vmatprep.subr.bf16.mxu1 %v9278_v35 }
 0x202   :  { %3831 = vmatpush1.bf16.msra.mxu0 %v9281_v60  ;;  %3995 = vmatpush1.bf16.msra.mxu1 %v9285_v25 }
 0x203   :  { %4005 = vmatprep.subr.bf16.mxu0 %v6091_v3  ;;  %4169 = vmatprep.subr.bf16.mxu1 %v6104_v8 }
 0x205   :  { %3833 = vmatmul.mubr.bf16.vlgmr.msra.gmra.mrb[4].mxu0 %v7756_v43  ;;  %3997 = vmatmul.mubr.bf16.vlgmr.msra.gmra.mrb[4].mxu1 %v7756_v43  ;;  %v11915_v43 = vld [vmem:[#allocation18_spill] sm:$0xff] }
 0x206   :  { %4006 = vmatpush1.bf16.msra.mxu0 %v6096_v5  ;;  %4170 = vmatpush1.bf16.msra.mxu1 %v6106_v9 }
 0x207   :  { %4007 = vmatprep.subr.bf16.mxu0 %v6108_v10  ;;  %4171 = vmatprep.subr.bf16.mxu1 %v6120_v14 }
 0x208   :  { %4037 = vmatprep.mubr.bf16.mxu0 %v6284_v23  ;;  %4201 = vmatprep.mubr.bf16.mxu1 %v6284_v23 }
 0x20a   :  { %4008 = vmatpush1.bf16.msra.mxu0 %v6133_v18  ;;  %4172 = vmatpush1.bf16.msra.mxu1 %v6137_v19 }
 0x20b   :  { %4009 = vmatprep.subr.bf16.mxu0 %v6139_v20  ;;  %4173 = vmatprep.subr.bf16.mxu1 %v6142_v21 }
 0x20e   :  { %4010 = vmatpush1.bf16.msra.mxu0 %v6157_v26  ;;  %4174 = vmatpush1.bf16.msra.mxu1 %v6161_v27 }
 0x20f   :  { %4011 = vmatprep.subr.bf16.mxu0 %v6163_v28  ;;  %4175 = vmatprep.subr.bf16.mxu1 %v6166_v29 }
 0x212   :  { %4012 = vmatpush1.bf16.msra.mxu0 %v6181_v37  ;;  %4176 = vmatpush1.bf16.msra.mxu1 %v6185_v38 }
 0x213   :  { %4013 = vmatprep.subr.bf16.mxu0 %v6187_v39  ;;  %4177 = vmatprep.subr.bf16.mxu1 %v6190_v40 }
 0x216   :  { %4014 = vmatpush1.bf16.msra.mxu0 %v6205_v47  ;;  %4178 = vmatpush1.bf16.msra.mxu1 %v6209_v48 }
 0x217   :  { %4015 = vmatprep.subr.bf16.mxu0 %v6211_v49  ;;  %4179 = vmatprep.subr.bf16.mxu1 %v6214_v50 }
 0x21a   :  { %4016 = vmatpush1.bf16.msra.mxu0 %v6231_v56  ;;  %4180 = vmatpush1.bf16.msra.mxu1 %v6235_v57 }
 0x21b   :  { %4017 = vmatprep.subr.bf16.mxu0 %v6237_v58  ;;  %4181 = vmatprep.subr.bf16.mxu1 %v6248_v61 }
 0x21e   :  { %4018 = vmatpush1.bf16.msra.mxu0 %v6264_v4  ;;  %4182 = vmatpush1.bf16.msra.mxu1 %v6271_v12 }
 0x21f   :  { %4019 = vmatprep.subr.bf16.mxu0 %v6273_v13  ;;  %4183 = vmatprep.subr.bf16.mxu1 %v6275_v15  ;;  %v11956_v15 = vld [vmem:[#allocation61_spill] sm:$0xff] }
 0x222   :  { %4020 = vmatpush1.bf16.msra.mxu0 %v6296_v32  ;;  %4184 = vmatpush1.bf16.msra.mxu1 %v6304_v36  ;;  %v11916_v36 = vld [vmem:[#allocation20_spill] sm:$0xff] }
 0x223   :  { %4021 = vmatprep.subr.bf16.mxu0 %v6306_v41  ;;  %4185 = vmatprep.subr.bf16.mxu1 %v6309_v42  ;;  %v11917_v41 = vld [vmem:[#allocation21_spill] sm:$0xff]  ;;  %v11918_v42 = vld [vmem:[#allocation22_spill] sm:$0xff]  ;;  %v11955_v32 = vld [vmem:[#allocation60_spill] sm:$0xff] }
 0x226   :  { %4022 = vmatpush1.bf16.msra.mxu0 %v11908_v1  ;;  %4186 = vmatpush1.bf16.msra.mxu1 %v11909_v55  ;;  %v11919_v1 = vld [vmem:[#allocation23_spill] sm:$0xff]  ;;  %v11920_v55 = vld [vmem:[#allocation24_spill] sm:$0xff] }
 0x227   :  { %4023 = vmatprep.subr.bf16.mxu0 %v11910_v45  ;;  %4187 = vmatprep.subr.bf16.mxu1 %v11911_v6  ;;  %v11921_v45 = vld [vmem:[#allocation26_spill] sm:$0xff]  ;;  %v11922_v6 = vld [vmem:[#allocation27_spill] sm:$0xff] }
 0x22a   :  { %4024 = vmatpush1.bf16.msra.mxu0 %v11912_v63  ;;  %4188 = vmatpush1.bf16.msra.mxu1 %v11913_v22  ;;  %v11923_v63 = vld [vmem:[#allocation28_spill] sm:$0xff]  ;;  %v11924_v22 = vld [vmem:[#allocation29_spill] sm:$0xff] }
 0x22b   :  { %4025 = vmatprep.subr.bf16.mxu0 %v11914_v31  ;;  %4189 = vmatprep.subr.bf16.mxu1 %v11915_v43  ;;  %v11925_v31 = vld [vmem:[#allocation30_spill] sm:$0xff]  ;;  %v11926_v43 = vld [vmem:[#allocation31_spill] sm:$0xff] }
 0x22e   :  { %4026 = vmatpush1.bf16.msra.mxu0 %v11916_v36  ;;  %4190 = vmatpush1.bf16.msra.mxu1 %v11917_v41  ;;  %v11927_v36 = vld [vmem:[#allocation32_spill] sm:$0xff]  ;;  %v11928_v41 = vld [vmem:[#allocation33_spill] sm:$0xff] }
 0x22f   :  { %4027 = vmatprep.subr.bf16.mxu0 %v11918_v42  ;;  %4191 = vmatprep.subr.bf16.mxu1 %v11919_v1  ;;  %v11929_v42 = vld [vmem:[#allocation34_spill] sm:$0xff]  ;;  %v11930_v1 = vld [vmem:[#allocation35_spill] sm:$0xff] }
 0x232   :  { %4028 = vmatpush1.bf16.msra.mxu0 %v11920_v55  ;;  %4192 = vmatpush1.bf16.msra.mxu1 %v11921_v45  ;;  %v11931_v55 = vld [vmem:[#allocation36_spill] sm:$0xff]  ;;  %v11932_v45 = vld [vmem:[#allocation37_spill] sm:$0xff] }
 0x233   :  { %4029 = vmatprep.subr.bf16.mxu0 %v11922_v6  ;;  %4193 = vmatprep.subr.bf16.mxu1 %v11923_v63  ;;  %v11933_v6 = vld [vmem:[#allocation38_spill] sm:$0xff]  ;;  %v11934_v63 = vld [vmem:[#allocation39_spill] sm:$0xff] }
 0x236   :  { %4030 = vmatpush1.bf16.msra.mxu0 %v11924_v22  ;;  %4194 = vmatpush1.bf16.msra.mxu1 %v11925_v31  ;;  %v11935_v22 = vld [vmem:[#allocation40_spill] sm:$0xff]  ;;  %v11936_v31 = vld [vmem:[#allocation41_spill] sm:$0xff] }
 0x237   :  { %4031 = vmatprep.subr.bf16.mxu0 %v11926_v43  ;;  %4195 = vmatprep.subr.bf16.mxu1 %v11927_v36  ;;  %v11937_v43 = vld [vmem:[#allocation42_spill] sm:$0xff]  ;;  %v11938_v36 = vld [vmem:[#allocation43_spill] sm:$0xff] }
 0x23a   :  { %4032 = vmatpush1.bf16.msra.mxu0 %v11928_v41  ;;  %4196 = vmatpush1.bf16.msra.mxu1 %v11929_v42  ;;  %v11939_v41 = vld [vmem:[#allocation44_spill] sm:$0xff]  ;;  %v11940_v42 = vld [vmem:[#allocation3_spill] sm:$0xff] }
 0x23b   :  { %4033 = vmatprep.subr.bf16.mxu0 %v11930_v1  ;;  %4197 = vmatprep.subr.bf16.mxu1 %v11931_v55  ;;  %v11941_v1 = vld [vmem:[#allocation46_spill] sm:$0xff]  ;;  %v11951_v55 = vld [vmem:[#allocation56_spill] sm:$0xff] }
 0x23e   :  { %4034 = vmatpush1.bf16.msra.mxu0 %v11932_v45  ;;  %4198 = vmatpush1.bf16.msra.mxu1 %v11933_v6  ;;  %v11942_v45 = vld [vmem:[#allocation47_spill] sm:$0xff]  ;;  %v11943_v6 = vld [vmem:[#allocation48_spill] sm:$0xff] }
 0x23f   :  { %4035 = vmatprep.subr.bf16.mxu0 %v11934_v63  ;;  %4199 = vmatprep.subr.bf16.mxu1 %v11935_v22  ;;  %v11944_v63 = vld [vmem:[#allocation49_spill] sm:$0xff]  ;;  %v11945_v22 = vld [vmem:[#allocation7_spill] sm:$0xff] }
 0x242   :  { %4036 = vmatpush1.bf16.msra.mxu0 %v11936_v31  ;;  %4200 = vmatpush1.bf16.msra.mxu1 %v11937_v43  ;;  %v11946_v43 = vld [vmem:[#allocation51_spill] sm:$0xff]  ;;  %v11949_v31 = vld [vmem:[#allocation54_spill] sm:$0xff] }
 0x243   :  { %4046 = vmatprep.subr.bf16.mxu0 %v11938_v36  ;;  %4210 = vmatprep.subr.bf16.mxu1 %v11939_v41  ;;  %v11947_v36 = vld [vmem:[#allocation52_spill] sm:$0xff]  ;;  %v11948_v41 = vld [vmem:[#allocation53_spill] sm:$0xff] }
 0x245   :  { %4038 = vmatmul.mubr.bf16.vlgmr.msra.gmra.mrb[0].mxu0 %v11940_v42  ;;  %4202 = vmatmul.mubr.bf16.vlgmr.msra.gmra.mrb[0].mxu1 %v11940_v42 }
 0x246   :  { %4047 = vmatpush1.bf16.msra.mxu0 %v11941_v1  ;;  %4211 = vmatpush1.bf16.msra.mxu1 %v11942_v45  ;;  %v11950_v1 = vld [vmem:[#allocation55_spill] sm:$0xff]  ;;  %v11952_v45 = vld [vmem:[#allocation57_spill] sm:$0xff] }
 0x247   :  { %4048 = vmatprep.subr.bf16.mxu0 %v11943_v6  ;;  %4212 = vmatprep.subr.bf16.mxu1 %v11944_v63  ;;  %v11953_v6 = vld [vmem:[#allocation58_spill] sm:$0xff]  ;;  %v11954_v63 = vld [vmem:[#allocation59_spill] sm:$0xff] }
 0x248   :  { %4078 = vmatprep.mubr.bf16.mxu0 %v11945_v22  ;;  %4242 = vmatprep.mubr.bf16.mxu1 %v11945_v22 }
 0x24a   :  { %4049 = vmatpush1.bf16.msra.mxu0 %v11946_v43  ;;  %4213 = vmatpush1.bf16.msra.mxu1 %v11947_v36  ;;  %v11957_v43 = vld [vmem:[#allocation62_spill] sm:$0xff]  ;;  %v11958_v36 = vld [vmem:[#allocation63_spill] sm:$0xff] }
 0x24b   :  { %4050 = vmatprep.subr.bf16.mxu0 %v11948_v41  ;;  %4214 = vmatprep.subr.bf16.mxu1 %v11949_v31  ;;  %v11959_v41 = vld [vmem:[#allocation64_spill] sm:$0xff]  ;;  %v11960_v31 = vld [vmem:[#allocation65_spill] sm:$0xff] }
 0x24e   :  { %4051 = vmatpush1.bf16.msra.mxu0 %v11950_v1  ;;  %4215 = vmatpush1.bf16.msra.mxu1 %v11951_v55  ;;  %v11961_v1 = vld [vmem:[#allocation66_spill] sm:$0xff]  ;;  %v11962_v55 = vld [vmem:[#allocation67_spill] sm:$0xff] }
 0x24f   :  { %4052 = vmatprep.subr.bf16.mxu0 %v11952_v45  ;;  %4216 = vmatprep.subr.bf16.mxu1 %v11953_v6  ;;  %v11963_v45 = vld [vmem:[#allocation68_spill] sm:$0xff]  ;;  %v11964_v6 = vld [vmem:[#allocation69_spill] sm:$0xff] }
 0x252   :  { %4053 = vmatpush1.bf16.msra.mxu0 %v11954_v63  ;;  %4217 = vmatpush1.bf16.msra.mxu1 %v11955_v32  ;;  %v11965_v63 = vld [vmem:[#allocation70_spill] sm:$0xff]  ;;  %v11966_v32 = vld [vmem:[#allocation71_spill] sm:$0xff] }
 0x253   :  { %4054 = vmatprep.subr.bf16.mxu0 %v11956_v15  ;;  %4218 = vmatprep.subr.bf16.mxu1 %v11957_v43  ;;  %v11967_v15 = vld [vmem:[#allocation72_spill] sm:$0xff]  ;;  %v11968_v43 = vld [vmem:[#allocation73_spill] sm:$0xff] }
 0x256   :  { %4055 = vmatpush1.bf16.msra.mxu0 %v11958_v36  ;;  %4219 = vmatpush1.bf16.msra.mxu1 %v11959_v41  ;;  %v11969_v36 = vld [vmem:[#allocation74_spill] sm:$0xff]  ;;  %v11970_v41 = vld [vmem:[#allocation75_spill] sm:$0xff] }
 0x257   :  { %4056 = vmatprep.subr.bf16.mxu0 %v11960_v31  ;;  %4220 = vmatprep.subr.bf16.mxu1 %v11961_v1  ;;  %v11971_v31 = vld [vmem:[#allocation76_spill] sm:$0xff]  ;;  %v11972_v1 = vld [vmem:[#allocation77_spill] sm:$0xff] }
 0x25a   :  { %4057 = vmatpush1.bf16.msra.mxu0 %v11962_v55  ;;  %4221 = vmatpush1.bf16.msra.mxu1 %v11963_v45  ;;  %v11973_v55 = vld [vmem:[#allocation78_spill] sm:$0xff] }
 0x25b   :  { %4058 = vmatprep.subr.bf16.mxu0 %v11964_v6  ;;  %4222 = vmatprep.subr.bf16.mxu1 %v11965_v63  ;;  %v11974_v63 = vld [vmem:[#allocation81_spill] sm:$0xff]  ;;  %v12084_v45 = vld [vmem:[#allocation198_spill] sm:$0xff] }
 0x25c   :  { %v12083_v6 = vld [vmem:[#allocation197_spill] sm:$0xff] }
 0x25e   :  { %4059 = vmatpush1.bf16.msra.mxu0 %v11966_v32  ;;  %4223 = vmatpush1.bf16.msra.mxu1 %v11967_v15  ;;  %v11975_v32 = vld [vmem:[#allocation82_spill] sm:$0xff]  ;;  %v12018_v15 = vld [vmem:[#allocation132_spill] sm:$0xff] }
 0x25f   :  { %4060 = vmatprep.subr.bf16.mxu0 %v11968_v43  ;;  %4224 = vmatprep.subr.bf16.mxu1 %v11969_v36  ;;  %v11976_v43 = vld [vmem:[#allocation88_spill] sm:$0xff]  ;;  %v11977_v36 = vld [vmem:[#allocation89_spill] sm:$0xff] }
 0x262   :  { %4061 = vmatpush1.bf16.msra.mxu0 %v11970_v41  ;;  %4225 = vmatpush1.bf16.msra.mxu1 %v11971_v31  ;;  %v11978_v41 = vld [vmem:[#allocation90_spill] sm:$0xff]  ;;  %v12017_v31 = vld [vmem:[#allocation131_spill] sm:$0xff] }
 0x263   :  { %4062 = vmatprep.subr.bf16.mxu0 %v11972_v1  ;;  %4226 = vmatprep.subr.bf16.mxu1 %v11973_v55  ;;  %v11979_v1 = vld [vmem:[#allocation92_spill] sm:$0xff]  ;;  %v11980_v55 = vld [vmem:[#allocation93_spill] sm:$0xff] }
 0x266   :  { %4063 = vmatpush1.bf16.msra.mxu0 %v6751_v51  ;;  %4227 = vmatpush1.bf16.msra.mxu1 %v6755_v16  ;;  %v11981_v51 = vld [vmem:[#allocation94_spill] sm:$0xff]  ;;  %v11982_v16 = vld [vmem:[#allocation95_spill] sm:$0xff] }
 0x267   :  { %4064 = vmatprep.subr.bf16.mxu0 %v11974_v63  ;;  %4228 = vmatprep.subr.bf16.mxu1 %v11975_v32  ;;  %v11983_v63 = vld [vmem:[#allocation96_spill] sm:$0xff]  ;;  %v11984_v32 = vld [vmem:[#allocation97_spill] sm:$0xff] }
 0x26a   :  { %4065 = vmatpush1.bf16.msra.mxu0 %v6783_v17  ;;  %4229 = vmatpush1.bf16.msra.mxu1 %v11976_v43  ;;  %v11985_v17 = vld [vmem:[#allocation98_spill] sm:$0xff]  ;;  %v11986_v43 = vld [vmem:[#allocation99_spill] sm:$0xff] }
 0x26b   :  { %4066 = vmatprep.subr.bf16.mxu0 %v11977_v36  ;;  %4230 = vmatprep.subr.bf16.mxu1 %v11978_v41  ;;  %v11987_v36 = vld [vmem:[#allocation100_spill] sm:$0xff]  ;;  %v11988_v41 = vld [vmem:[#allocation101_spill] sm:$0xff] }
 0x26e   :  { %4067 = vmatpush1.bf16.msra.mxu0 %v6811_v52  ;;  %4231 = vmatpush1.bf16.msra.mxu1 %v11979_v1  ;;  %v11989_v52 = vld [vmem:[#allocation102_spill] sm:$0xff]  ;;  %v11990_v1 = vld [vmem:[#allocation103_spill] sm:$0xff] }
 0x26f   :  { %4068 = vmatprep.subr.bf16.mxu0 %v11980_v55  ;;  %4232 = vmatprep.subr.bf16.mxu1 %v11981_v51  ;;  %v11991_v55 = vld [vmem:[#allocation104_spill] sm:$0xff]  ;;  %v11992_v51 = vld [vmem:[#allocation105_spill] sm:$0xff] }
 0x272   :  { %4069 = vmatpush1.bf16.msra.mxu0 %v11982_v16  ;;  %4233 = vmatpush1.bf16.msra.mxu1 %v11983_v63  ;;  %v11993_v16 = vld [vmem:[#allocation106_spill] sm:$0xff]  ;;  %v11994_v63 = vld [vmem:[#allocation108_spill] sm:$0xff] }
 0x273   :  { %4070 = vmatprep.subr.bf16.mxu0 %v11984_v32  ;;  %4234 = vmatprep.subr.bf16.mxu1 %v11985_v17  ;;  %v11995_v32 = vld [vmem:[#allocation109_spill] sm:$0xff]  ;;  %v11996_v17 = vld [vmem:[#allocation110_spill] sm:$0xff] }
 0x276   :  { %4071 = vmatpush1.bf16.msra.mxu0 %v11986_v43  ;;  %4235 = vmatpush1.bf16.msra.mxu1 %v11987_v36  ;;  %v11997_v43 = vld [vmem:[#allocation111_spill] sm:$0xff]  ;;  %v11998_v36 = vld [vmem:[#allocation112_spill] sm:$0xff] }
 0x277   :  { %4072 = vmatprep.subr.bf16.mxu0 %v11988_v41  ;;  %4236 = vmatprep.subr.bf16.mxu1 %v11989_v52  ;;  %v11999_v41 = vld [vmem:[#allocation113_spill] sm:$0xff]  ;;  %v12000_v52 = vld [vmem:[#allocation114_spill] sm:$0xff] }
 0x27a   :  { %4073 = vmatpush1.bf16.msra.mxu0 %v11990_v1  ;;  %4237 = vmatpush1.bf16.msra.mxu1 %v11991_v55  ;;  %v12001_v1 = vld [vmem:[#allocation115_spill] sm:$0xff]  ;;  %v12002_v55 = vld [vmem:[#allocation5_spill] sm:$0xff] }
 0x27b   :  { %4074 = vmatprep.subr.bf16.mxu0 %v11992_v51  ;;  %4238 = vmatprep.subr.bf16.mxu1 %v11993_v16  ;;  %v12003_v51 = vld [vmem:[#allocation117_spill] sm:$0xff]  ;;  %v12013_v16 = vld [vmem:[#allocation127_spill] sm:$0xff] }
 0x27e   :  { %4075 = vmatpush1.bf16.msra.mxu0 %v11994_v63  ;;  %4239 = vmatpush1.bf16.msra.mxu1 %v11995_v32  ;;  %v12004_v63 = vld [vmem:[#allocation118_spill] sm:$0xff]  ;;  %v12005_v32 = vld [vmem:[#allocation119_spill] sm:$0xff] }
 0x27f   :  { %4076 = vmatprep.subr.bf16.mxu0 %v11996_v17  ;;  %4240 = vmatprep.subr.bf16.mxu1 %v11997_v43  ;;  %v12006_v17 = vld [vmem:[#allocation120_spill] sm:$0xff] }
 0x280   :  { %v12007_v43 = vld [vmem:[#allocation84_spill] sm:$0xff] }
 0x282   :  { %4077 = vmatpush1.bf16.msra.mxu0 %v11998_v36  ;;  %4241 = vmatpush1.bf16.msra.mxu1 %v11999_v41  ;;  %v12008_v41 = vld [vmem:[#allocation122_spill] sm:$0xff]  ;;  %v12011_v36 = vld [vmem:[#allocation125_spill] sm:$0xff] }
 0x283   :  { %4087 = vmatprep.subr.bf16.mxu0 %v12000_v52  ;;  %4251 = vmatprep.subr.bf16.mxu1 %v12001_v1  ;;  %v12009_v52 = vld [vmem:[#allocation123_spill] sm:$0xff]  ;;  %v12010_v1 = vld [vmem:[#allocation124_spill] sm:$0xff] }
 0x285   :  { %4079 = vmatmul.mubr.bf16.vlgmr.msra.gmra.mrb[0].mxu0 %v12002_v55  ;;  %4243 = vmatmul.mubr.bf16.vlgmr.msra.gmra.mrb[0].mxu1 %v12002_v55 }
 0x286   :  { %4088 = vmatpush1.bf16.msra.mxu0 %v12003_v51  ;;  %4252 = vmatpush1.bf16.msra.mxu1 %v12004_v63  ;;  %v12012_v51 = vld [vmem:[#allocation126_spill] sm:$0xff]  ;;  %v12014_v63 = vld [vmem:[#allocation128_spill] sm:$0xff] }
 0x287   :  { %4089 = vmatprep.subr.bf16.mxu0 %v12005_v32  ;;  %4253 = vmatprep.subr.bf16.mxu1 %v12006_v17  ;;  %v12015_v32 = vld [vmem:[#allocation129_spill] sm:$0xff]  ;;  %v12016_v17 = vld [vmem:[#allocation130_spill] sm:$0xff] }
 0x288   :  { %4119 = vmatprep.mubr.bf16.mxu0 %v12007_v43  ;;  %4283 = vmatprep.mubr.bf16.mxu1 %v12007_v43 }
 0x28a   :  { %4090 = vmatpush1.bf16.msra.mxu0 %v12008_v41  ;;  %4254 = vmatpush1.bf16.msra.mxu1 %v12009_v52  ;;  %v12019_v41 = vld [vmem:[#allocation133_spill] sm:$0xff]  ;;  %v12020_v52 = vld [vmem:[#allocation134_spill] sm:$0xff] }
 0x28b   :  { %4091 = vmatprep.subr.bf16.mxu0 %v12010_v1  ;;  %4255 = vmatprep.subr.bf16.mxu1 %v12011_v36  ;;  %v12021_v1 = vld [vmem:[#allocation135_spill] sm:$0xff]  ;;  %v12022_v36 = vld [vmem:[#allocation136_spill] sm:$0xff] }
 0x28e   :  { %4092 = vmatpush1.bf16.msra.mxu0 %v12012_v51  ;;  %4256 = vmatpush1.bf16.msra.mxu1 %v12013_v16  ;;  %v12023_v51 = vld [vmem:[#allocation137_spill] sm:$0xff]  ;;  %v12024_v16 = vld [vmem:[#allocation138_spill] sm:$0xff] }
 0x28f   :  { %4093 = vmatprep.subr.bf16.mxu0 %v12014_v63  ;;  %4257 = vmatprep.subr.bf16.mxu1 %v12015_v32  ;;  %v12025_v63 = vld [vmem:[#allocation139_spill] sm:$0xff]  ;;  %v12026_v32 = vld [vmem:[#allocation140_spill] sm:$0xff] }
 0x292   :  { %4094 = vmatpush1.bf16.msra.mxu0 %v12016_v17  ;;  %4258 = vmatpush1.bf16.msra.mxu1 %v12017_v31  ;;  %v12027_v17 = vld [vmem:[#allocation141_spill] sm:$0xff]  ;;  %v12028_v31 = vld [vmem:[#allocation142_spill] sm:$0xff] }
 0x293   :  { %4095 = vmatprep.subr.bf16.mxu0 %v12018_v15  ;;  %4259 = vmatprep.subr.bf16.mxu1 %v12019_v41  ;;  %v12029_v15 = vld [vmem:[#allocation143_spill] sm:$0xff]  ;;  %v12030_v41 = vld [vmem:[#allocation144_spill] sm:$0xff] }
 0x296   :  { %4096 = vmatpush1.bf16.msra.mxu0 %v12020_v52  ;;  %4260 = vmatpush1.bf16.msra.mxu1 %v12021_v1  ;;  %v12031_v52 = vld [vmem:[#allocation145_spill] sm:$0xff]  ;;  %v12032_v1 = vld [vmem:[#allocation146_spill] sm:$0xff] }
 0x297   :  { %4097 = vmatprep.subr.bf16.mxu0 %v12022_v36  ;;  %4261 = vmatprep.subr.bf16.mxu1 %v12023_v51  ;;  %v12033_v36 = vld [vmem:[#allocation147_spill] sm:$0xff]  ;;  %v12034_v51 = vld [vmem:[#allocation148_spill] sm:$0xff] }
 0x29a   :  { %4098 = vmatpush1.bf16.msra.mxu0 %v12024_v16  ;;  %4262 = vmatpush1.bf16.msra.mxu1 %v12025_v63  ;;  %v12035_v16 = vld [vmem:[#allocation149_spill] sm:$0xff]  ;;  %v12036_v63 = vld [vmem:[#allocation150_spill] sm:$0xff] }
 0x29b   :  { %4099 = vmatprep.subr.bf16.mxu0 %v12026_v32  ;;  %4263 = vmatprep.subr.bf16.mxu1 %v12027_v17  ;;  %v12037_v32 = vld [vmem:[#allocation151_spill] sm:$0xff]  ;;  %v12038_v17 = vld [vmem:[#allocation152_spill] sm:$0xff] }
 0x29e   :  { %4100 = vmatpush1.bf16.msra.mxu0 %v12028_v31  ;;  %4264 = vmatpush1.bf16.msra.mxu1 %v12029_v15  ;;  %v12039_v31 = vld [vmem:[#allocation153_spill] sm:$0xff]  ;;  %v12040_v15 = vld [vmem:[#allocation154_spill] sm:$0xff] }
 0x29f   :  { %4101 = vmatprep.subr.bf16.mxu0 %v12030_v41  ;;  %4265 = vmatprep.subr.bf16.mxu1 %v12031_v52  ;;  %v12041_v41 = vld [vmem:[#allocation155_spill] sm:$0xff]  ;;  %v12042_v52 = vld [vmem:[#allocation156_spill] sm:$0xff] }
 0x2a2   :  { %4102 = vmatpush1.bf16.msra.mxu0 %v12032_v1  ;;  %4266 = vmatpush1.bf16.msra.mxu1 %v12033_v36  ;;  %v12043_v1 = vld [vmem:[#allocation157_spill] sm:$0xff]  ;;  %v12044_v36 = vld [vmem:[#allocation158_spill] sm:$0xff] }
 0x2a3   :  { %4103 = vmatprep.subr.bf16.mxu0 %v12034_v51  ;;  %4267 = vmatprep.subr.bf16.mxu1 %v12035_v16  ;;  %v12045_v51 = vld [vmem:[#allocation159_spill] sm:$0xff]  ;;  %v12046_v16 = vld [vmem:[#allocation160_spill] sm:$0xff] }
 0x2a6   :  { %4104 = vmatpush1.bf16.msra.mxu0 %v12036_v63  ;;  %4268 = vmatpush1.bf16.msra.mxu1 %v12037_v32  ;;  %v12047_v63 = vld [vmem:[#allocation161_spill] sm:$0xff]  ;;  %v12048_v32 = vld [vmem:[#allocation162_spill] sm:$0xff] }
 0x2a7   :  { %4105 = vmatprep.subr.bf16.mxu0 %v12038_v17  ;;  %4269 = vmatprep.subr.bf16.mxu1 %v12039_v31  ;;  %v12049_v17 = vld [vmem:[#allocation163_spill] sm:$0xff]  ;;  %v12050_v31 = vld [vmem:[#allocation164_spill] sm:$0xff] }
 0x2aa   :  { %4106 = vmatpush1.bf16.msra.mxu0 %v12040_v15  ;;  %4270 = vmatpush1.bf16.msra.mxu1 %v12041_v41  ;;  %v12051_v15 = vld [vmem:[#allocation165_spill] sm:$0xff]  ;;  %v12052_v41 = vld [vmem:[#allocation166_spill] sm:$0xff] }
 0x2ab   :  { %4107 = vmatprep.subr.bf16.mxu0 %v12042_v52  ;;  %4271 = vmatprep.subr.bf16.mxu1 %v12043_v1  ;;  %v12053_v52 = vld [vmem:[#allocation167_spill] sm:$0xff]  ;;  %v12054_v1 = vld [vmem:[#allocation168_spill] sm:$0xff] }
 0x2ae   :  { %4108 = vmatpush1.bf16.msra.mxu0 %v12044_v36  ;;  %4272 = vmatpush1.bf16.msra.mxu1 %v12045_v51  ;;  %v12055_v36 = vld [vmem:[#allocation169_spill] sm:$0xff]  ;;  %v12056_v51 = vld [vmem:[#allocation170_spill] sm:$0xff] }
 0x2af   :  { %4109 = vmatprep.subr.bf16.mxu0 %v12046_v16  ;;  %4273 = vmatprep.subr.bf16.mxu1 %v12047_v63  ;;  %v12057_v16 = vld [vmem:[#allocation171_spill] sm:$0xff]  ;;  %v12058_v63 = vld [vmem:[#allocation172_spill] sm:$0xff] }
 0x2b2   :  { %4110 = vmatpush1.bf16.msra.mxu0 %v12048_v32  ;;  %4274 = vmatpush1.bf16.msra.mxu1 %v12049_v17  ;;  %v12059_v32 = vld [vmem:[#allocation173_spill] sm:$0xff]  ;;  %v12060_v17 = vld [vmem:[#allocation174_spill] sm:$0xff] }
 0x2b3   :  { %4111 = vmatprep.subr.bf16.mxu0 %v12050_v31  ;;  %4275 = vmatprep.subr.bf16.mxu1 %v12051_v15  ;;  %v12061_v31 = vld [vmem:[#allocation175_spill] sm:$0xff]  ;;  %v12062_v15 = vld [vmem:[#allocation176_spill] sm:$0xff] }
 0x2b6   :  { %4112 = vmatpush1.bf16.msra.mxu0 %v12052_v41  ;;  %4276 = vmatpush1.bf16.msra.mxu1 %v12053_v52  ;;  %v12063_v41 = vld [vmem:[#allocation177_spill] sm:$0xff]  ;;  %v12064_v52 = vld [vmem:[#allocation178_spill] sm:$0xff] }
 0x2b7   :  { %4113 = vmatprep.subr.bf16.mxu0 %v12054_v1  ;;  %4277 = vmatprep.subr.bf16.mxu1 %v12055_v36  ;;  %v12065_v1 = vld [vmem:[#allocation179_spill] sm:$0xff]  ;;  %v12066_v36 = vld [vmem:[#allocation180_spill] sm:$0xff] }
 0x2ba   :  { %4114 = vmatpush1.bf16.msra.mxu0 %v12056_v51  ;;  %4278 = vmatpush1.bf16.msra.mxu1 %v12057_v16  ;;  %v12067_v51 = vld [vmem:[#allocation181_spill] sm:$0xff]  ;;  %v12068_v16 = vld [vmem:[#allocation83_spill] sm:$0xff] }
 0x2bb   :  { %4115 = vmatprep.subr.bf16.mxu0 %v12058_v63  ;;  %4279 = vmatprep.subr.bf16.mxu1 %v12059_v32  ;;  %v12069_v63 = vld [vmem:[#allocation183_spill] sm:$0xff]  ;;  %v12079_v32 = vld [vmem:[#allocation193_spill] sm:$0xff] }
 0x2be   :  { %4116 = vmatpush1.bf16.msra.mxu0 %v12060_v17  ;;  %4280 = vmatpush1.bf16.msra.mxu1 %v12061_v31  ;;  %v12070_v17 = vld [vmem:[#allocation184_spill] sm:$0xff]  ;;  %v12071_v31 = vld [vmem:[#allocation185_spill] sm:$0xff] }
 0x2bf   :  { %4117 = vmatprep.subr.bf16.mxu0 %v12062_v15  ;;  %4281 = vmatprep.subr.bf16.mxu1 %v12063_v41  ;;  %v12072_v15 = vld [vmem:[#allocation186_spill] sm:$0xff] }
 0x2c0   :  { %v12073_v41 = vld [vmem:[#allocation86_spill] sm:$0xff] }
 0x2c2   :  { %4118 = vmatpush1.bf16.msra.mxu0 %v12064_v52  ;;  %4282 = vmatpush1.bf16.msra.mxu1 %v12065_v1  ;;  %v12074_v1 = vld [vmem:[#allocation188_spill] sm:$0xff]  ;;  %v12077_v52 = vld [vmem:[#allocation191_spill] sm:$0xff] }
 0x2c3   :  { %4128 = vmatprep.subr.bf16.mxu0 %v12066_v36  ;;  %4292 = vmatprep.subr.bf16.mxu1 %v12067_v51  ;;  %v12075_v36 = vld [vmem:[#allocation189_spill] sm:$0xff]  ;;  %v12076_v51 = vld [vmem:[#allocation190_spill] sm:$0xff] }
 0x2c5   :  { %4120 = vmatmul.mubr.bf16.vlgmr.msra.gmra.mrb[0].mxu0 %v12068_v16  ;;  %4284 = vmatmul.mubr.bf16.vlgmr.msra.gmra.mrb[0].mxu1 %v12068_v16 }
 0x2c6   :  { %4129 = vmatpush1.bf16.msra.mxu0 %v12069_v63  ;;  %4293 = vmatpush1.bf16.msra.mxu1 %v12070_v17  ;;  %v12078_v63 = vld [vmem:[#allocation192_spill] sm:$0xff]  ;;  %v12080_v17 = vld [vmem:[#allocation194_spill] sm:$0xff] }
 0x2c7   :  { %4130 = vmatprep.subr.bf16.mxu0 %v12071_v31  ;;  %4294 = vmatprep.subr.bf16.mxu1 %v12072_v15  ;;  %v12081_v31 = vld [vmem:[#allocation195_spill] sm:$0xff]  ;;  %v12082_v15 = vld [vmem:[#allocation196_spill] sm:$0xff] }
 0x2c8   :  { %4160 = vmatprep.mubr.bf16.mxu0 %v12073_v41  ;;  %4324 = vmatprep.mubr.bf16.mxu1 %v12073_v41 }
 0x2ca   :  { %4131 = vmatpush1.bf16.msra.mxu0 %v12074_v1  ;;  %4295 = vmatpush1.bf16.msra.mxu1 %v12075_v36  ;;  %v12085_v1 = vld [vmem:[#allocation199_spill] sm:$0xff]  ;;  %v12086_v36 = vld [vmem:[#allocation200_spill] sm:$0xff] }
 0x2cb   :  { %4132 = vmatprep.subr.bf16.mxu0 %v12076_v51  ;;  %4296 = vmatprep.subr.bf16.mxu1 %v12077_v52  ;;  %v12087_v51 = vld [vmem:[#allocation201_spill] sm:$0xff]  ;;  %v12088_v52 = vld [vmem:[#allocation202_spill] sm:$0xff] }
 0x2ce   :  { %4133 = vmatpush1.bf16.msra.mxu0 %v12078_v63  ;;  %4297 = vmatpush1.bf16.msra.mxu1 %v12079_v32  ;;  %v12089_v63 = vld [vmem:[#allocation203_spill] sm:$0xff]  ;;  %v12090_v32 = vld [vmem:[#allocation204_spill] sm:$0xff] }
 0x2cf   :  { %4134 = vmatprep.subr.bf16.mxu0 %v12080_v17  ;;  %4298 = vmatprep.subr.bf16.mxu1 %v12081_v31  ;;  %v12091_v17 = vld [vmem:[#allocation205_spill] sm:$0xff]  ;;  %v12092_v31 = vld [vmem:[#allocation206_spill] sm:$0xff] }
 0x2d2   :  { %4135 = vmatpush1.bf16.msra.mxu0 %v12082_v15  ;;  %4299 = vmatpush1.bf16.msra.mxu1 %v12083_v6  ;;  %v12093_v15 = vld [vmem:[#allocation207_spill] sm:$0xff]  ;;  %v12094_v6 = vld [vmem:[#allocation208_spill] sm:$0xff] }
 0x2d3   :  { %4136 = vmatprep.subr.bf16.mxu0 %v12084_v45  ;;  %4300 = vmatprep.subr.bf16.mxu1 %v12085_v1  ;;  %v12095_v45 = vld [vmem:[#allocation209_spill] sm:$0xff]  ;;  %v12096_v1 = vld [vmem:[#allocation210_spill] sm:$0xff] }
 0x2d6   :  { %4137 = vmatpush1.bf16.msra.mxu0 %v12086_v36  ;;  %4301 = vmatpush1.bf16.msra.mxu1 %v12087_v51  ;;  %v12097_v36 = vld [vmem:[#allocation211_spill] sm:$0xff]  ;;  %v12098_v51 = vld [vmem:[#allocation212_spill] sm:$0xff] }
 0x2d7   :  { %4138 = vmatprep.subr.bf16.mxu0 %v12088_v52  ;;  %4302 = vmatprep.subr.bf16.mxu1 %v12089_v63  ;;  %v12099_v52 = vld [vmem:[#allocation213_spill] sm:$0xff]  ;;  %v12100_v63 = vld [vmem:[#allocation214_spill] sm:$0xff] }
 0x2da   :  { %4139 = vmatpush1.bf16.msra.mxu0 %v12090_v32  ;;  %4303 = vmatpush1.bf16.msra.mxu1 %v12091_v17  ;;  %v12101_v32 = vld [vmem:[#allocation215_spill] sm:$0xff]  ;;  %v12102_v17 = vld [vmem:[#allocation216_spill] sm:$0xff] }
 0x2db   :  { %4140 = vmatprep.subr.bf16.mxu0 %v12092_v31  ;;  %4304 = vmatprep.subr.bf16.mxu1 %v12093_v15  ;;  %v12103_v31 = vld [vmem:[#allocation217_spill] sm:$0xff]  ;;  %v12104_v15 = vld [vmem:[#allocation218_spill] sm:$0xff] }
 0x2de   :  { %4141 = vmatpush1.bf16.msra.mxu0 %v12094_v6  ;;  %4305 = vmatpush1.bf16.msra.mxu1 %v12095_v45  ;;  %v12105_v6 = vld [vmem:[#allocation219_spill] sm:$0xff]  ;;  %v12106_v45 = vld [vmem:[#allocation220_spill] sm:$0xff] }
 0x2df   :  { %4142 = vmatprep.subr.bf16.mxu0 %v12096_v1  ;;  %4306 = vmatprep.subr.bf16.mxu1 %v12097_v36  ;;  %v12107_v1 = vld [vmem:[#allocation221_spill] sm:$0xff]  ;;  %v12108_v36 = vld [vmem:[#allocation222_spill] sm:$0xff] }
 0x2e2   :  { %4143 = vmatpush1.bf16.msra.mxu0 %v12098_v51  ;;  %4307 = vmatpush1.bf16.msra.mxu1 %v12099_v52  ;;  %v12109_v51 = vld [vmem:[#allocation223_spill] sm:$0xff]  ;;  %v12110_v52 = vld [vmem:[#allocation224_spill] sm:$0xff] }
 0x2e3   :  { %4144 = vmatprep.subr.bf16.mxu0 %v12100_v63  ;;  %4308 = vmatprep.subr.bf16.mxu1 %v12101_v32  ;;  %v12111_v63 = vld [vmem:[#allocation225_spill] sm:$0xff]  ;;  %v12112_v32 = vld [vmem:[#allocation226_spill] sm:$0xff] }
 0x2e6   :  { %4145 = vmatpush1.bf16.msra.mxu0 %v12102_v17  ;;  %4309 = vmatpush1.bf16.msra.mxu1 %v12103_v31  ;;  %v12113_v17 = vld [vmem:[#allocation227_spill] sm:$0xff]  ;;  %v12114_v31 = vld [vmem:[#allocation228_spill] sm:$0xff] }
 0x2e7   :  { %4146 = vmatprep.subr.bf16.mxu0 %v12104_v15  ;;  %4310 = vmatprep.subr.bf16.mxu1 %v12105_v6  ;;  %v12115_v15 = vld [vmem:[#allocation229_spill] sm:$0xff]  ;;  %v12116_v6 = vld [vmem:[#allocation230_spill] sm:$0xff] }
 0x2ea   :  { %4147 = vmatpush1.bf16.msra.mxu0 %v12106_v45  ;;  %4311 = vmatpush1.bf16.msra.mxu1 %v12107_v1  ;;  %v12117_v45 = vld [vmem:[#allocation231_spill] sm:$0xff]  ;;  %v12118_v1 = vld [vmem:[#allocation232_spill] sm:$0xff] }
 0x2eb   :  { %4148 = vmatprep.subr.bf16.mxu0 %v12108_v36  ;;  %4312 = vmatprep.subr.bf16.mxu1 %v12109_v51  ;;  %v12119_v36 = vld [vmem:[#allocation233_spill] sm:$0xff]  ;;  %v12120_v51 = vld [vmem:[#allocation234_spill] sm:$0xff] }
 0x2ee   :  { %4149 = vmatpush1.bf16.msra.mxu0 %v12110_v52  ;;  %4313 = vmatpush1.bf16.msra.mxu1 %v12111_v63  ;;  %v12121_v52 = vld [vmem:[#allocation235_spill] sm:$0xff]  ;;  %v12122_v63 = vld [vmem:[#allocation236_spill] sm:$0xff] }
 0x2ef   :  { %4150 = vmatprep.subr.bf16.mxu0 %v12112_v32  ;;  %4314 = vmatprep.subr.bf16.mxu1 %v12113_v17  ;;  %v12123_v32 = vld [vmem:[#allocation237_spill] sm:$0xff]  ;;  %v12124_v17 = vld [vmem:[#allocation238_spill] sm:$0xff] }
 0x2f2   :  { %4151 = vmatpush1.bf16.msra.mxu0 %v12114_v31  ;;  %4315 = vmatpush1.bf16.msra.mxu1 %v12115_v15  ;;  %v12125_v31 = vld [vmem:[#allocation239_spill] sm:$0xff]  ;;  %v12126_v15 = vld [vmem:[#allocation240_spill] sm:$0xff] }
 0x2f3   :  { %4152 = vmatprep.subr.bf16.mxu0 %v12116_v6  ;;  %4316 = vmatprep.subr.bf16.mxu1 %v12117_v45  ;;  %v12127_v6 = vld [vmem:[#allocation241_spill] sm:$0xff]  ;;  %v12128_v45 = vld [vmem:[#allocation242_spill] sm:$0xff] }
 0x2f6   :  { %4153 = vmatpush1.bf16.msra.mxu0 %v12118_v1  ;;  %4317 = vmatpush1.bf16.msra.mxu1 %v12119_v36  ;;  %v12129_v1 = vld [vmem:[#allocation243_spill] sm:$0xff]  ;;  %v12130_v36 = vld [vmem:[#allocation244_spill] sm:$0xff] }
 0x2f7   :  { %4154 = vmatprep.subr.bf16.mxu0 %v12120_v51  ;;  %4318 = vmatprep.subr.bf16.mxu1 %v12121_v52  ;;  %v12131_v51 = vld [vmem:[#allocation245_spill] sm:$0xff]  ;;  %v12132_v52 = vld [vmem:[#allocation246_spill] sm:$0xff] }
 0x2fa   :  { %4155 = vmatpush1.bf16.msra.mxu0 %v12122_v63  ;;  %4319 = vmatpush1.bf16.msra.mxu1 %v12123_v32  ;;  %v12133_v63 = vld [vmem:[#allocation247_spill] sm:$0xff]  ;;  %v12134_v32 = vld [vmem:[#allocation85_spill] sm:$0xff] }
 0x2fb   :  { %4156 = vmatprep.subr.bf16.mxu0 %v12124_v17  ;;  %4320 = vmatprep.subr.bf16.mxu1 %v12125_v31  ;;  %v12147_v31 = vld [vmem:[#allocation262_spill] sm:$0xff] }
 0x2fe   :  { %4157 = vmatpush1.bf16.msra.mxu0 %v12126_v15  ;;  %4321 = vmatpush1.bf16.msra.mxu1 %v12127_v6  ;;  %v12135_v15 = vld [vmem:[#allocation250_spill] sm:$0xff]  ;;  %v12136_v6 = vld [vmem:[#allocation251_spill] sm:$0xff] }
 0x2ff   :  { %4158 = vmatprep.subr.bf16.mxu0 %v12128_v45  ;;  %4322 = vmatprep.subr.bf16.mxu1 %v12129_v1  ;;  %v12137_v45 = vld [vmem:[#allocation252_spill] sm:$0xff]  ;;  %v12142_v1 = vld [vmem:[#allocation257_spill] sm:$0xff] }
 0x302   :  { %4159 = vmatpush1.bf16.msra.mxu0 %v12130_v36  ;;  %4323 = vmatpush1.bf16.msra.mxu1 %v12131_v51  ;;  %v12138_v51 = vld [vmem:[#allocation253_spill] sm:$0xff]  ;;  %v12141_v36 = vld [vmem:[#allocation256_spill] sm:$0xff] }
 0x303   :  { %4333 = vmatprep.subr.bf16.mxu0 %v12132_v52  ;;  %4497 = vmatprep.subr.bf16.mxu1 %v12133_v63  ;;  %v12139_v52 = vld [vmem:[#allocation254_spill] sm:$0xff]  ;;  %v12140_v63 = vld [vmem:[#allocation255_spill] sm:$0xff] }
 0x305   :  { %4161 = vmatmul.mubr.bf16.vlgmr.msra.gmra.mrb[0].mxu0 %v12134_v32  ;;  %4325 = vmatmul.mubr.bf16.vlgmr.msra.gmra.mrb[0].mxu1 %v12134_v32 }
 0x306   :  { %4334 = vmatpush1.bf16.msra.mxu0 %v7765_v59  ;;  %4498 = vmatpush1.bf16.msra.mxu1 %v12135_v15  ;;  %v12143_v59 = vld [vmem:[#allocation258_spill] sm:$0xff]  ;;  %v12144_v15 = vld [vmem:[#allocation259_spill] sm:$0xff] }
 0x307   :  { %4335 = vmatprep.subr.bf16.mxu0 %v12136_v6  ;;  %4499 = vmatprep.subr.bf16.mxu1 %v12137_v45  ;;  %v12145_v6 = vld [vmem:[#allocation260_spill] sm:$0xff]  ;;  %v12146_v45 = vld [vmem:[#allocation261_spill] sm:$0xff] }
 0x308   :  { %4365 = vmatprep.mubr.bf16.mxu0 %v6284_v23  ;;  %4529 = vmatprep.mubr.bf16.mxu1 %v6284_v23  ;;  %v12148_v23 = vld [vmem:[#allocation263_spill] sm:$0xff] }
 0x30a   :  { %4336 = vmatpush1.bf16.msra.mxu0 %v12138_v51  ;;  %4500 = vmatpush1.bf16.msra.mxu1 %v12139_v52  ;;  %v12149_v51 = vld [vmem:[#allocation264_spill] sm:$0xff]  ;;  %v12150_v52 = vld [vmem:[#allocation265_spill] sm:$0xff] }
 0x30b   :  { %4337 = vmatprep.subr.bf16.mxu0 %v12140_v63  ;;  %4501 = vmatprep.subr.bf16.mxu1 %v12141_v36  ;;  %v12151_v63 = vld [vmem:[#allocation266_spill] sm:$0xff]  ;;  %v12152_v36 = vld [vmem:[#allocation267_spill] sm:$0xff] }
 0x30e   :  { %4338 = vmatpush1.bf16.msra.mxu0 %v12142_v1  ;;  %4502 = vmatpush1.bf16.msra.mxu1 %v12143_v59  ;;  %v12153_v1 = vld [vmem:[#allocation268_spill] sm:$0xff]  ;;  %v12154_v59 = vld [vmem:[#allocation269_spill] sm:$0xff] }
 0x30f   :  { %4339 = vmatprep.subr.bf16.mxu0 %v12144_v15  ;;  %4503 = vmatprep.subr.bf16.mxu1 %v12145_v6  ;;  %v12155_v15 = vld [vmem:[#allocation270_spill] sm:$0xff]  ;;  %v12156_v6 = vld [vmem:[#allocation271_spill] sm:$0xff] }
 0x312   :  { %4340 = vmatpush1.bf16.msra.mxu0 %v12146_v45  ;;  %4504 = vmatpush1.bf16.msra.mxu1 %v12147_v31  ;;  %v12157_v45 = vld [vmem:[#allocation272_spill] sm:$0xff]  ;;  %v12158_v31 = vld [vmem:[#allocation273_spill] sm:$0xff] }
 0x313   :  { %4341 = vmatprep.subr.bf16.mxu0 %v12148_v23  ;;  %4505 = vmatprep.subr.bf16.mxu1 %v12149_v51  ;;  %v12159_v23 = vld [vmem:[#allocation274_spill] sm:$0xff]  ;;  %v12160_v51 = vld [vmem:[#allocation275_spill] sm:$0xff] }
 0x316   :  { %4342 = vmatpush1.bf16.msra.mxu0 %v12150_v52  ;;  %4506 = vmatpush1.bf16.msra.mxu1 %v12151_v63  ;;  %v12161_v52 = vld [vmem:[#allocation276_spill] sm:$0xff]  ;;  %v12162_v63 = vld [vmem:[#allocation277_spill] sm:$0xff] }
 0x317   :  { %4343 = vmatprep.subr.bf16.mxu0 %v12152_v36  ;;  %4507 = vmatprep.subr.bf16.mxu1 %v12153_v1  ;;  %v12163_v36 = vld [vmem:[#allocation278_spill] sm:$0xff]  ;;  %v12164_v1 = vld [vmem:[#allocation279_spill] sm:$0xff] }
 0x31a   :  { %4344 = vmatpush1.bf16.msra.mxu0 %v12154_v59  ;;  %4508 = vmatpush1.bf16.msra.mxu1 %v12155_v15  ;;  %v12165_v59 = vld [vmem:[#allocation280_spill] sm:$0xff]  ;;  %v12166_v15 = vld [vmem:[#allocation281_spill] sm:$0xff] }
 0x31b   :  { %4345 = vmatprep.subr.bf16.mxu0 %v12156_v6  ;;  %4509 = vmatprep.subr.bf16.mxu1 %v12157_v45  ;;  %v12167_v6 = vld [vmem:[#allocation282_spill] sm:$0xff]  ;;  %v12168_v45 = vld [vmem:[#allocation283_spill] sm:$0xff] }
 0x31e   :  { %4346 = vmatpush1.bf16.msra.mxu0 %v12158_v31  ;;  %4510 = vmatpush1.bf16.msra.mxu1 %v12159_v23  ;;  %v12169_v31 = vld [vmem:[#allocation284_spill] sm:$0xff]  ;;  %v12170_v23 = vld [vmem:[#allocation285_spill] sm:$0xff] }
 0x31f   :  { %4347 = vmatprep.subr.bf16.mxu0 %v12160_v51  ;;  %4511 = vmatprep.subr.bf16.mxu1 %v12161_v52  ;;  %v12171_v51 = vld [vmem:[#allocation286_spill] sm:$0xff]  ;;  %v12172_v52 = vld [vmem:[#allocation287_spill] sm:$0xff] }
 0x322   :  { %4348 = vmatpush1.bf16.msra.mxu0 %v12162_v63  ;;  %4512 = vmatpush1.bf16.msra.mxu1 %v12163_v36  ;;  %v12173_v63 = vld [vmem:[#allocation288_spill] sm:$0xff]  ;;  %v12174_v36 = vld [vmem:[#allocation289_spill] sm:$0xff] }
 0x323   :  { %4349 = vmatprep.subr.bf16.mxu0 %v12164_v1  ;;  %4513 = vmatprep.subr.bf16.mxu1 %v12165_v59  ;;  %v12175_v1 = vld [vmem:[#allocation290_spill] sm:$0xff]  ;;  %v12176_v59 = vld [vmem:[#allocation291_spill] sm:$0xff] }
 0x326   :  { %4350 = vmatpush1.bf16.msra.mxu0 %v12166_v15  ;;  %4514 = vmatpush1.bf16.msra.mxu1 %v12167_v6  ;;  %v12177_v15 = vld [vmem:[#allocation292_spill] sm:$0xff]  ;;  %v12178_v6 = vld [vmem:[#allocation293_spill] sm:$0xff] }
 0x327   :  { %4351 = vmatprep.subr.bf16.mxu0 %v12168_v45  ;;  %4515 = vmatprep.subr.bf16.mxu1 %v12169_v31  ;;  %v12179_v45 = vld [vmem:[#allocation294_spill] sm:$0xff]  ;;  %v12180_v31 = vld [vmem:[#allocation295_spill] sm:$0xff] }
 0x32a   :  { %4352 = vmatpush1.bf16.msra.mxu0 %v12170_v23  ;;  %4516 = vmatpush1.bf16.msra.mxu1 %v12171_v51  ;;  %v12181_v23 = vld [vmem:[#allocation296_spill] sm:$0xff]  ;;  %v12182_v51 = vld [vmem:[#allocation297_spill] sm:$0xff] }
 0x32b   :  { %4353 = vmatprep.subr.bf16.mxu0 %v12172_v52  ;;  %4517 = vmatprep.subr.bf16.mxu1 %v12173_v63  ;;  %v12183_v52 = vld [vmem:[#allocation298_spill] sm:$0xff]  ;;  %v12184_v63 = vld [vmem:[#allocation299_spill] sm:$0xff] }
 0x32e   :  { %4354 = vmatpush1.bf16.msra.mxu0 %v12174_v36  ;;  %4518 = vmatpush1.bf16.msra.mxu1 %v12175_v1  ;;  %v12185_v36 = vld [vmem:[#allocation300_spill] sm:$0xff]  ;;  %v12186_v1 = vld [vmem:[#allocation301_spill] sm:$0xff] }
 0x32f   :  { %4355 = vmatprep.subr.bf16.mxu0 %v12176_v59  ;;  %4519 = vmatprep.subr.bf16.mxu1 %v12177_v15  ;;  %v12187_v59 = vld [vmem:[#allocation302_spill] sm:$0xff]  ;;  %v12188_v15 = vld [vmem:[#allocation303_spill] sm:$0xff] }
 0x332   :  { %4356 = vmatpush1.bf16.msra.mxu0 %v12178_v6  ;;  %4520 = vmatpush1.bf16.msra.mxu1 %v12179_v45  ;;  %v12189_v6 = vld [vmem:[#allocation304_spill] sm:$0xff]  ;;  %v12190_v45 = vld [vmem:[#allocation305_spill] sm:$0xff] }
 0x333   :  { %4357 = vmatprep.subr.bf16.mxu0 %v12180_v31  ;;  %4521 = vmatprep.subr.bf16.mxu1 %v12181_v23  ;;  %v12191_v31 = vld [vmem:[#allocation306_spill] sm:$0xff]  ;;  %v12192_v23 = vld [vmem:[#allocation307_spill] sm:$0xff] }
 0x336   :  { %4358 = vmatpush1.bf16.msra.mxu0 %v12182_v51  ;;  %4522 = vmatpush1.bf16.msra.mxu1 %v12183_v52  ;;  %v12193_v51 = vld [vmem:[#allocation308_spill] sm:$0xff] }
 0x337   :  { %4359 = vmatprep.subr.bf16.mxu0 %v12184_v63  ;;  %4523 = vmatprep.subr.bf16.mxu1 %v12185_v36  ;;  %v12194_v63 = vld [vmem:[#allocation310_spill] sm:$0xff]  ;;  %v12195_v36 = vld [vmem:[#allocation311_spill] sm:$0xff] }
 0x33a   :  { %4360 = vmatpush1.bf16.msra.mxu0 %v12186_v1  ;;  %4524 = vmatpush1.bf16.msra.mxu1 %v12187_v59  ;;  %v12196_v1 = vld [vmem:[#allocation312_spill] sm:$0xff] }
 0x33b   :  { %4361 = vmatprep.subr.bf16.mxu0 %v12188_v15  ;;  %4525 = vmatprep.subr.bf16.mxu1 %v12189_v6  ;;  %v12197_v15 = vld [vmem:[#allocation313_spill] sm:$0xff] }
 0x33e   :  { %4362 = vmatpush1.bf16.msra.mxu0 %v12190_v45  ;;  %4526 = vmatpush1.bf16.msra.mxu1 %v12191_v31  ;;  %v12198_v31 = vld [vmem:[#allocation315_spill] sm:$0xff] }
 0x33f   :  { %4363 = vmatprep.subr.bf16.mxu0 %v12192_v23  ;;  %4527 = vmatprep.subr.bf16.mxu1 %v12193_v51  ;;  %v12199_v23 = vld [vmem:[#allocation316_spill] sm:$0xff]  ;;  %v12209_v51 = vld [vmem:[#allocation326_spill] sm:$0xff] }
 0x342   :  { %4364 = vmatpush1.bf16.msra.mxu0 %v8129_v30  ;;  %4528 = vmatpush1.bf16.msra.mxu1 %v12194_v63  ;;  %v12200_v63 = vld [vmem:[#allocation317_spill] sm:$0xff]  ;;  %v12203_v30 = vld [vmem:[#allocation320_spill] sm:$0xff] }
 0x343   :  { %4374 = vmatprep.subr.bf16.mxu0 %v12195_v36  ;;  %4538 = vmatprep.subr.bf16.mxu1 %v12196_v1  ;;  %v12201_v36 = vld [vmem:[#allocation318_spill] sm:$0xff]  ;;  %v12202_v1 = vld [vmem:[#allocation319_spill] sm:$0xff] }
 0x345   :  { %4366 = vmatmul.mubr.bf16.vlgmr.msra.gmra.mrb[4].mxu0 %v11940_v42  ;;  %4530 = vmatmul.mubr.bf16.vlgmr.msra.gmra.mrb[4].mxu1 %v11940_v42  ;;  %v12205_v42 = vld [vmem:[#allocation322_spill] sm:$0xff] }
 0x346   :  { %4375 = vmatpush1.bf16.msra.mxu0 %v12197_v15  ;;  %4539 = vmatpush1.bf16.msra.mxu1 %v8157_v46  ;;  %v12204_v15 = vld [vmem:[#allocation321_spill] sm:$0xff]  ;;  %v12206_v46 = vld [vmem:[#allocation323_spill] sm:$0xff] }
 0x347   :  { %4376 = vmatprep.subr.bf16.mxu0 %v12198_v31  ;;  %4540 = vmatprep.subr.bf16.mxu1 %v12199_v23  ;;  %v12207_v31 = vld [vmem:[#allocation324_spill] sm:$0xff]  ;;  %v12208_v23 = vld [vmem:[#allocation325_spill] sm:$0xff] }
 0x348   :  { %4406 = vmatprep.mubr.bf16.mxu0 %v11945_v22  ;;  %4570 = vmatprep.mubr.bf16.mxu1 %v11945_v22  ;;  %v12210_v22 = vld [vmem:[#allocation327_spill] sm:$0xff] }
 0x34a   :  { %4377 = vmatpush1.bf16.msra.mxu0 %v12200_v63  ;;  %4541 = vmatpush1.bf16.msra.mxu1 %v12201_v36  ;;  %v12211_v63 = vld [vmem:[#allocation328_spill] sm:$0xff]  ;;  %v12212_v36 = vld [vmem:[#allocation329_spill] sm:$0xff] }
 0x34b   :  { %4378 = vmatprep.subr.bf16.mxu0 %v12202_v1  ;;  %4542 = vmatprep.subr.bf16.mxu1 %v12203_v30  ;;  %v12213_v1 = vld [vmem:[#allocation330_spill] sm:$0xff]  ;;  %v12214_v30 = vld [vmem:[#allocation331_spill] sm:$0xff] }
 0x34e   :  { %4379 = vmatpush1.bf16.msra.mxu0 %v12204_v15  ;;  %4543 = vmatpush1.bf16.msra.mxu1 %v12205_v42  ;;  %v12215_v15 = vld [vmem:[#allocation332_spill] sm:$0xff]  ;;  %v12216_v42 = vld [vmem:[#allocation333_spill] sm:$0xff] }
 0x34f   :  { %4380 = vmatprep.subr.bf16.mxu0 %v12206_v46  ;;  %4544 = vmatprep.subr.bf16.mxu1 %v12207_v31  ;;  %v12217_v46 = vld [vmem:[#allocation334_spill] sm:$0xff]  ;;  %v12218_v31 = vld [vmem:[#allocation335_spill] sm:$0xff] }
 0x352   :  { %4381 = vmatpush1.bf16.msra.mxu0 %v12208_v23  ;;  %4545 = vmatpush1.bf16.msra.mxu1 %v12209_v51  ;;  %v12219_v23 = vld [vmem:[#allocation336_spill] sm:$0xff]  ;;  %v12220_v51 = vld [vmem:[#allocation337_spill] sm:$0xff] }
 0x353   :  { %4382 = vmatprep.subr.bf16.mxu0 %v12210_v22  ;;  %4546 = vmatprep.subr.bf16.mxu1 %v12211_v63  ;;  %v12221_v22 = vld [vmem:[#allocation338_spill] sm:$0xff]  ;;  %v12222_v63 = vld [vmem:[#allocation339_spill] sm:$0xff] }
 0x356   :  { %4383 = vmatpush1.bf16.msra.mxu0 %v12212_v36  ;;  %4547 = vmatpush1.bf16.msra.mxu1 %v12213_v1  ;;  %v12223_v36 = vld [vmem:[#allocation340_spill] sm:$0xff]  ;;  %v12224_v1 = vld [vmem:[#allocation341_spill] sm:$0xff] }
 0x357   :  { %4384 = vmatprep.subr.bf16.mxu0 %v12214_v30  ;;  %4548 = vmatprep.subr.bf16.mxu1 %v12215_v15  ;;  %v12225_v30 = vld [vmem:[#allocation342_spill] sm:$0xff]  ;;  %v12226_v15 = vld [vmem:[#allocation343_spill] sm:$0xff] }
 0x35a   :  { %4385 = vmatpush1.bf16.msra.mxu0 %v12216_v42  ;;  %4549 = vmatpush1.bf16.msra.mxu1 %v12217_v46  ;;  %v12227_v42 = vld [vmem:[#allocation344_spill] sm:$0xff]  ;;  %v12228_v46 = vld [vmem:[#allocation345_spill] sm:$0xff] }
 0x35b   :  { %4386 = vmatprep.subr.bf16.mxu0 %v12218_v31  ;;  %4550 = vmatprep.subr.bf16.mxu1 %v12219_v23  ;;  %v12229_v31 = vld [vmem:[#allocation346_spill] sm:$0xff]  ;;  %v12230_v23 = vld [vmem:[#allocation347_spill] sm:$0xff] }
 0x35e   :  { %4387 = vmatpush1.bf16.msra.mxu0 %v12220_v51  ;;  %4551 = vmatpush1.bf16.msra.mxu1 %v12221_v22  ;;  %v12231_v51 = vld [vmem:[#allocation348_spill] sm:$0xff]  ;;  %v12232_v22 = vld [vmem:[#allocation349_spill] sm:$0xff] }
 0x35f   :  { %4388 = vmatprep.subr.bf16.mxu0 %v12222_v63  ;;  %4552 = vmatprep.subr.bf16.mxu1 %v12223_v36  ;;  %v12233_v63 = vld [vmem:[#allocation350_spill] sm:$0xff]  ;;  %v12234_v36 = vld [vmem:[#allocation351_spill] sm:$0xff] }
 0x362   :  { %4389 = vmatpush1.bf16.msra.mxu0 %v12224_v1  ;;  %4553 = vmatpush1.bf16.msra.mxu1 %v12225_v30  ;;  %v12235_v1 = vld [vmem:[#allocation352_spill] sm:$0xff]  ;;  %v12236_v30 = vld [vmem:[#allocation353_spill] sm:$0xff] }
 0x363   :  { %4390 = vmatprep.subr.bf16.mxu0 %v12226_v15  ;;  %4554 = vmatprep.subr.bf16.mxu1 %v12227_v42  ;;  %v12237_v15 = vld [vmem:[#allocation354_spill] sm:$0xff]  ;;  %v12238_v42 = vld [vmem:[#allocation355_spill] sm:$0xff] }
 0x366   :  { %4391 = vmatpush1.bf16.msra.mxu0 %v12228_v46  ;;  %4555 = vmatpush1.bf16.msra.mxu1 %v12229_v31  ;;  %v12239_v46 = vld [vmem:[#allocation356_spill] sm:$0xff]  ;;  %v12240_v31 = vld [vmem:[#allocation357_spill] sm:$0xff] }
 0x367   :  { %4392 = vmatprep.subr.bf16.mxu0 %v12230_v23  ;;  %4556 = vmatprep.subr.bf16.mxu1 %v12231_v51  ;;  %v12241_v23 = vld [vmem:[#allocation358_spill] sm:$0xff]  ;;  %v12242_v51 = vld [vmem:[#allocation359_spill] sm:$0xff] }
 0x36a   :  { %4393 = vmatpush1.bf16.msra.mxu0 %v12232_v22  ;;  %4557 = vmatpush1.bf16.msra.mxu1 %v12233_v63  ;;  %v12243_v22 = vld [vmem:[#allocation360_spill] sm:$0xff]  ;;  %v12244_v63 = vld [vmem:[#allocation361_spill] sm:$0xff] }
 0x36b   :  { %4394 = vmatprep.subr.bf16.mxu0 %v12234_v36  ;;  %4558 = vmatprep.subr.bf16.mxu1 %v12235_v1  ;;  %v12245_v36 = vld [vmem:[#allocation362_spill] sm:$0xff]  ;;  %v12246_v1 = vld [vmem:[#allocation363_spill] sm:$0xff] }
 0x36e   :  { %4395 = vmatpush1.bf16.msra.mxu0 %v12236_v30  ;;  %4559 = vmatpush1.bf16.msra.mxu1 %v12237_v15  ;;  %v12247_v30 = vld [vmem:[#allocation364_spill] sm:$0xff]  ;;  %v12248_v15 = vld [vmem:[#allocation365_spill] sm:$0xff] }
 0x36f   :  { %4396 = vmatprep.subr.bf16.mxu0 %v12238_v42  ;;  %4560 = vmatprep.subr.bf16.mxu1 %v12239_v46  ;;  %v12249_v42 = vld [vmem:[#allocation366_spill] sm:$0xff]  ;;  %v12250_v46 = vld [vmem:[#allocation367_spill] sm:$0xff] }
 0x372   :  { %4397 = vmatpush1.bf16.msra.mxu0 %v12240_v31  ;;  %4561 = vmatpush1.bf16.msra.mxu1 %v12241_v23  ;;  %v12251_v31 = vld [vmem:[#allocation368_spill] sm:$0xff]  ;;  %v12252_v23 = vld [vmem:[#allocation369_spill] sm:$0xff] }
 0x373   :  { %4398 = vmatprep.subr.bf16.mxu0 %v12242_v51  ;;  %4562 = vmatprep.subr.bf16.mxu1 %v12243_v22  ;;  %v12253_v51 = vld [vmem:[#allocation370_spill] sm:$0xff]  ;;  %v12254_v22 = vld [vmem:[#allocation371_spill] sm:$0xff] }
 0x376   :  { %4399 = vmatpush1.bf16.msra.mxu0 %v12244_v63  ;;  %4563 = vmatpush1.bf16.msra.mxu1 %v12245_v36  ;;  %v12255_v63 = vld [vmem:[#allocation372_spill] sm:$0xff] }
 0x377   :  { %4400 = vmatprep.subr.bf16.mxu0 %v12246_v1  ;;  %4564 = vmatprep.subr.bf16.mxu1 %v12247_v30  ;;  %v12256_v1 = vld [vmem:[#allocation374_spill] sm:$0xff]  ;;  %v12257_v30 = vld [vmem:[#allocation375_spill] sm:$0xff] }
 0x37a   :  { %4401 = vmatpush1.bf16.msra.mxu0 %v12248_v15  ;;  %4565 = vmatpush1.bf16.msra.mxu1 %v12249_v42  ;;  %v12258_v15 = vld [vmem:[#allocation376_spill] sm:$0xff] }
 0x37b   :  { %4402 = vmatprep.subr.bf16.mxu0 %v12250_v46  ;;  %4566 = vmatprep.subr.bf16.mxu1 %v12251_v31  ;;  %v12259_v46 = vld [vmem:[#allocation377_spill] sm:$0xff] }
 0x37c   :  { %v12369_v31 = vld [vmem:[#allocation485_spill] sm:$0xff] }
 0x37e   :  { %4403 = vmatpush1.bf16.msra.mxu0 %v12252_v23  ;;  %4567 = vmatpush1.bf16.msra.mxu1 %v12253_v51  ;;  %v12260_v51 = vld [vmem:[#allocation379_spill] sm:$0xff]  ;;  %v12364_v23 = vld [vmem:[#allocation481_spill] sm:$0xff] }
 0x37f   :  { %4404 = vmatprep.subr.bf16.mxu0 %v12254_v22  ;;  %4568 = vmatprep.subr.bf16.mxu1 %v12255_v63  ;;  %v12261_v22 = vld [vmem:[#allocation380_spill] sm:$0xff]  ;;  %v12271_v63 = vld [vmem:[#allocation390_spill] sm:$0xff] }
 0x382   :  { %4405 = vmatpush1.bf16.msra.mxu0 %v8517_v7  ;;  %4569 = vmatpush1.bf16.msra.mxu1 %v12256_v1  ;;  %v12262_v1 = vld [vmem:[#allocation381_spill] sm:$0xff]  ;;  %v12265_v7 = vld [vmem:[#allocation384_spill] sm:$0xff] }
 0x383   :  { %4415 = vmatprep.subr.bf16.mxu0 %v12257_v30  ;;  %4579 = vmatprep.subr.bf16.mxu1 %v12258_v15  ;;  %v12263_v30 = vld [vmem:[#allocation382_spill] sm:$0xff]  ;;  %v12264_v15 = vld [vmem:[#allocation383_spill] sm:$0xff] }
 0x385   :  { %4407 = vmatmul.mubr.bf16.vlgmr.msra.gmra.mrb[4].mxu0 %v12002_v55  ;;  %4571 = vmatmul.mubr.bf16.vlgmr.msra.gmra.mrb[4].mxu1 %v12002_v55  ;;  %v12267_v55 = vld [vmem:[#allocation386_spill] sm:$0xff] }
 0x386   :  { %4416 = vmatpush1.bf16.msra.mxu0 %v12259_v46  ;;  %4580 = vmatpush1.bf16.msra.mxu1 %v8545_v33  ;;  %v12266_v46 = vld [vmem:[#allocation385_spill] sm:$0xff]  ;;  %v12268_v33 = vld [vmem:[#allocation387_spill] sm:$0xff] }
 0x387   :  { %4417 = vmatprep.subr.bf16.mxu0 %v12260_v51  ;;  %4581 = vmatprep.subr.bf16.mxu1 %v12261_v22  ;;  %v12269_v51 = vld [vmem:[#allocation388_spill] sm:$0xff]  ;;  %v12270_v22 = vld [vmem:[#allocation389_spill] sm:$0xff] }
 0x388   :  { %4447 = vmatprep.mubr.bf16.mxu0 %v12007_v43  ;;  %4611 = vmatprep.mubr.bf16.mxu1 %v12007_v43  ;;  %v12272_v43 = vld [vmem:[#allocation391_spill] sm:$0xff] }
 0x38a   :  { %4418 = vmatpush1.bf16.msra.mxu0 %v12262_v1  ;;  %4582 = vmatpush1.bf16.msra.mxu1 %v12263_v30  ;;  %v12273_v1 = vld [vmem:[#allocation392_spill] sm:$0xff]  ;;  %v12274_v30 = vld [vmem:[#allocation393_spill] sm:$0xff] }
 0x38b   :  { %4419 = vmatprep.subr.bf16.mxu0 %v12264_v15  ;;  %4583 = vmatprep.subr.bf16.mxu1 %v12265_v7  ;;  %v12275_v15 = vld [vmem:[#allocation394_spill] sm:$0xff]  ;;  %v12276_v7 = vld [vmem:[#allocation395_spill] sm:$0xff] }
 0x38e   :  { %4420 = vmatpush1.bf16.msra.mxu0 %v12266_v46  ;;  %4584 = vmatpush1.bf16.msra.mxu1 %v12267_v55  ;;  %v12277_v46 = vld [vmem:[#allocation396_spill] sm:$0xff]  ;;  %v12278_v55 = vld [vmem:[#allocation397_spill] sm:$0xff] }
 0x38f   :  { %4421 = vmatprep.subr.bf16.mxu0 %v12268_v33  ;;  %4585 = vmatprep.subr.bf16.mxu1 %v12269_v51  ;;  %v12279_v33 = vld [vmem:[#allocation398_spill] sm:$0xff]  ;;  %v12280_v51 = vld [vmem:[#allocation399_spill] sm:$0xff] }
 0x392   :  { %4422 = vmatpush1.bf16.msra.mxu0 %v12270_v22  ;;  %4586 = vmatpush1.bf16.msra.mxu1 %v12271_v63  ;;  %v12281_v22 = vld [vmem:[#allocation400_spill] sm:$0xff]  ;;  %v12282_v63 = vld [vmem:[#allocation401_spill] sm:$0xff] }
 0x393   :  { %4423 = vmatprep.subr.bf16.mxu0 %v12272_v43  ;;  %4587 = vmatprep.subr.bf16.mxu1 %v12273_v1  ;;  %v12283_v43 = vld [vmem:[#allocation402_spill] sm:$0xff]  ;;  %v12284_v1 = vld [vmem:[#allocation403_spill] sm:$0xff] }
 0x396   :  { %4424 = vmatpush1.bf16.msra.mxu0 %v12274_v30  ;;  %4588 = vmatpush1.bf16.msra.mxu1 %v12275_v15  ;;  %v12285_v30 = vld [vmem:[#allocation404_spill] sm:$0xff]  ;;  %v12286_v15 = vld [vmem:[#allocation405_spill] sm:$0xff] }
 0x397   :  { %4425 = vmatprep.subr.bf16.mxu0 %v12276_v7  ;;  %4589 = vmatprep.subr.bf16.mxu1 %v12277_v46  ;;  %v12287_v7 = vld [vmem:[#allocation406_spill] sm:$0xff]  ;;  %v12288_v46 = vld [vmem:[#allocation407_spill] sm:$0xff] }
 0x39a   :  { %4426 = vmatpush1.bf16.msra.mxu0 %v12278_v55  ;;  %4590 = vmatpush1.bf16.msra.mxu1 %v12279_v33  ;;  %v12289_v55 = vld [vmem:[#allocation408_spill] sm:$0xff]  ;;  %v12290_v33 = vld [vmem:[#allocation409_spill] sm:$0xff] }
 0x39b   :  { %4427 = vmatprep.subr.bf16.mxu0 %v12280_v51  ;;  %4591 = vmatprep.subr.bf16.mxu1 %v12281_v22  ;;  %v12291_v51 = vld [vmem:[#allocation410_spill] sm:$0xff]  ;;  %v12292_v22 = vld [vmem:[#allocation411_spill] sm:$0xff] }
 0x39e   :  { %4428 = vmatpush1.bf16.msra.mxu0 %v12282_v63  ;;  %4592 = vmatpush1.bf16.msra.mxu1 %v12283_v43  ;;  %v12293_v63 = vld [vmem:[#allocation412_spill] sm:$0xff]  ;;  %v12294_v43 = vld [vmem:[#allocation413_spill] sm:$0xff] }
 0x39f   :  { %4429 = vmatprep.subr.bf16.mxu0 %v12284_v1  ;;  %4593 = vmatprep.subr.bf16.mxu1 %v12285_v30  ;;  %v12295_v1 = vld [vmem:[#allocation414_spill] sm:$0xff]  ;;  %v12296_v30 = vld [vmem:[#allocation415_spill] sm:$0xff] }
 0x3a2   :  { %4430 = vmatpush1.bf16.msra.mxu0 %v12286_v15  ;;  %4594 = vmatpush1.bf16.msra.mxu1 %v12287_v7  ;;  %v12297_v15 = vld [vmem:[#allocation416_spill] sm:$0xff]  ;;  %v12298_v7 = vld [vmem:[#allocation417_spill] sm:$0xff] }
 0x3a3   :  { %4431 = vmatprep.subr.bf16.mxu0 %v12288_v46  ;;  %4595 = vmatprep.subr.bf16.mxu1 %v12289_v55  ;;  %v12299_v46 = vld [vmem:[#allocation418_spill] sm:$0xff]  ;;  %v12300_v55 = vld [vmem:[#allocation419_spill] sm:$0xff] }
 0x3a6   :  { %4432 = vmatpush1.bf16.msra.mxu0 %v12290_v33  ;;  %4596 = vmatpush1.bf16.msra.mxu1 %v12291_v51  ;;  %v12301_v33 = vld [vmem:[#allocation420_spill] sm:$0xff]  ;;  %v12302_v51 = vld [vmem:[#allocation421_spill] sm:$0xff] }
 0x3a7   :  { %4433 = vmatprep.subr.bf16.mxu0 %v12292_v22  ;;  %4597 = vmatprep.subr.bf16.mxu1 %v12293_v63  ;;  %v12303_v22 = vld [vmem:[#allocation422_spill] sm:$0xff]  ;;  %v12304_v63 = vld [vmem:[#allocation423_spill] sm:$0xff] }
 0x3aa   :  { %4434 = vmatpush1.bf16.msra.mxu0 %v12294_v43  ;;  %4598 = vmatpush1.bf16.msra.mxu1 %v12295_v1  ;;  %v12305_v43 = vld [vmem:[#allocation424_spill] sm:$0xff]  ;;  %v12306_v1 = vld [vmem:[#allocation425_spill] sm:$0xff] }
 0x3ab   :  { %4435 = vmatprep.subr.bf16.mxu0 %v12296_v30  ;;  %4599 = vmatprep.subr.bf16.mxu1 %v12297_v15  ;;  %v12307_v30 = vld [vmem:[#allocation426_spill] sm:$0xff]  ;;  %v12308_v15 = vld [vmem:[#allocation427_spill] sm:$0xff] }
 0x3ae   :  { %4436 = vmatpush1.bf16.msra.mxu0 %v12298_v7  ;;  %4600 = vmatpush1.bf16.msra.mxu1 %v12299_v46  ;;  %v12309_v7 = vld [vmem:[#allocation428_spill] sm:$0xff]  ;;  %v12310_v46 = vld [vmem:[#allocation429_spill] sm:$0xff] }
 0x3af   :  { %4437 = vmatprep.subr.bf16.mxu0 %v12300_v55  ;;  %4601 = vmatprep.subr.bf16.mxu1 %v12301_v33  ;;  %v12311_v55 = vld [vmem:[#allocation430_spill] sm:$0xff]  ;;  %v12312_v33 = vld [vmem:[#allocation431_spill] sm:$0xff] }
 0x3b2   :  { %4438 = vmatpush1.bf16.msra.mxu0 %v12302_v51  ;;  %4602 = vmatpush1.bf16.msra.mxu1 %v12303_v22  ;;  %v12313_v51 = vld [vmem:[#allocation432_spill] sm:$0xff]  ;;  %v12314_v22 = vld [vmem:[#allocation433_spill] sm:$0xff] }
 0x3b3   :  { %4439 = vmatprep.subr.bf16.mxu0 %v12304_v63  ;;  %4603 = vmatprep.subr.bf16.mxu1 %v12305_v43  ;;  %v12315_v63 = vld [vmem:[#allocation434_spill] sm:$0xff]  ;;  %v12316_v43 = vld [vmem:[#allocation435_spill] sm:$0xff] }
 0x3b6   :  { %4440 = vmatpush1.bf16.msra.mxu0 %v12306_v1  ;;  %4604 = vmatpush1.bf16.msra.mxu1 %v12307_v30  ;;  %v12317_v1 = vld [vmem:[#allocation436_spill] sm:$0xff]  ;;  %v12360_v30 = vld [vmem:[#allocation477_spill] sm:$0xff] }
 0x3b7   :  { %4441 = vmatprep.subr.bf16.mxu0 %v12308_v15  ;;  %4605 = vmatprep.subr.bf16.mxu1 %v12309_v7  ;;  %v12318_v15 = vld [vmem:[#allocation438_spill] sm:$0xff]  ;;  %v12319_v7 = vld [vmem:[#allocation439_spill] sm:$0xff] }
 0x3ba   :  { %4442 = vmatpush1.bf16.msra.mxu0 %v12310_v46  ;;  %4606 = vmatpush1.bf16.msra.mxu1 %v12311_v55  ;;  %v12320_v46 = vld [vmem:[#allocation440_spill] sm:$0xff]  ;;  %v12359_v55 = vld [vmem:[#allocation50_spill] sm:$0xff] }
 0x3bb   :  { %4443 = vmatprep.subr.bf16.mxu0 %v12312_v33  ;;  %4607 = vmatprep.subr.bf16.mxu1 %v12313_v51  ;;  %v12321_v33 = vld [vmem:[#allocation441_spill] sm:$0xff]  ;;  %v12358_v51 = vld [vmem:[#allocation116_spill] sm:$0xff] }
 0x3be   :  { %4444 = vmatpush1.bf16.msra.mxu0 %v12314_v22  ;;  %4608 = vmatpush1.bf16.msra.mxu1 %v12315_v63  ;;  %v12322_v63 = vld [vmem:[#allocation443_spill] sm:$0xff]  ;;  %v12357_v22 = vld [vmem:[#allocation25_spill] sm:$0xff] }
 0x3bf   :  { %4445 = vmatprep.subr.bf16.mxu0 %v12316_v43  ;;  %4609 = vmatprep.subr.bf16.mxu1 %v12317_v1  ;;  %v12323_v43 = vld [vmem:[#allocation444_spill] sm:$0xff]  ;;  %v12333_v1 = vld [vmem:[#allocation454_spill] sm:$0xff] }
 0x3c2   :  { %4446 = vmatpush1.bf16.msra.mxu0 %v8905_v11  ;;  %4610 = vmatpush1.bf16.msra.mxu1 %v12318_v15  ;;  %v12324_v15 = vld [vmem:[#allocation445_spill] sm:$0xff]  ;;  %v12327_v11 = vld [vmem:[#allocation448_spill] sm:$0xff] }
 0x3c3   :  { %4456 = vmatprep.subr.bf16.mxu0 %v12319_v7  ;;  %4620 = vmatprep.subr.bf16.mxu1 %v12320_v46  ;;  %v12325_v7 = vld [vmem:[#allocation446_spill] sm:$0xff]  ;;  %v12326_v46 = vld [vmem:[#allocation447_spill] sm:$0xff] }
 0x3c5   :  { %4448 = vmatmul.mubr.bf16.vlgmr.msra.gmra.mrb[4].mxu0 %v12068_v16  ;;  %4612 = vmatmul.mubr.bf16.vlgmr.msra.gmra.mrb[4].mxu1 %v12068_v16  ;;  %v12329_v16 = vld [vmem:[#allocation450_spill] sm:$0xff] }
 0x3c6   :  { %4457 = vmatpush1.bf16.msra.mxu0 %v12321_v33  ;;  %4621 = vmatpush1.bf16.msra.mxu1 %v8933_v62  ;;  %v12328_v33 = vld [vmem:[#allocation449_spill] sm:$0xff]  ;;  %v12330_v62 = vld [vmem:[#allocation451_spill] sm:$0xff] }
 0x3c7   :  { %4458 = vmatprep.subr.bf16.mxu0 %v12322_v63  ;;  %4622 = vmatprep.subr.bf16.mxu1 %v12323_v43  ;;  %v12331_v63 = vld [vmem:[#allocation452_spill] sm:$0xff]  ;;  %v12332_v43 = vld [vmem:[#allocation453_spill] sm:$0xff] }
 0x3c8   :  { %4488 = vmatprep.mubr.bf16.mxu0 %v12073_v41  ;;  %4652 = vmatprep.mubr.bf16.mxu1 %v12073_v41  ;;  %v12334_v41 = vld [vmem:[#allocation455_spill] sm:$0xff] }
 0x3ca   :  { %4459 = vmatpush1.bf16.msra.mxu0 %v12324_v15  ;;  %4623 = vmatpush1.bf16.msra.mxu1 %v12325_v7  ;;  %v12335_v15 = vld [vmem:[#allocation456_spill] sm:$0xff]  ;;  %v12336_v7 = vld [vmem:[#allocation457_spill] sm:$0xff] }
 0x3cb   :  { %4460 = vmatprep.subr.bf16.mxu0 %v12326_v46  ;;  %4624 = vmatprep.subr.bf16.mxu1 %v12327_v11  ;;  %v12337_v46 = vld [vmem:[#allocation458_spill] sm:$0xff]  ;;  %v12338_v11 = vld [vmem:[#allocation459_spill] sm:$0xff] }
 0x3ce   :  { %4461 = vmatpush1.bf16.msra.mxu0 %v12328_v33  ;;  %4625 = vmatpush1.bf16.msra.mxu1 %v12329_v16  ;;  %v12339_v33 = vld [vmem:[#allocation460_spill] sm:$0xff]  ;;  %v12340_v16 = vld [vmem:[#allocation461_spill] sm:$0xff] }
 0x3cf   :  { %4462 = vmatprep.subr.bf16.mxu0 %v12330_v62  ;;  %4626 = vmatprep.subr.bf16.mxu1 %v12331_v63  ;;  %v12341_v62 = vld [vmem:[#allocation462_spill] sm:$0xff]  ;;  %v12342_v63 = vld [vmem:[#allocation463_spill] sm:$0xff] }
 0x3d2   :  { %4463 = vmatpush1.bf16.msra.mxu0 %v12332_v43  ;;  %4627 = vmatpush1.bf16.msra.mxu1 %v12333_v1  ;;  %v12343_v43 = vld [vmem:[#allocation464_spill] sm:$0xff]  ;;  %v12344_v1 = vld [vmem:[#allocation465_spill] sm:$0xff] }
 0x3d3   :  { %4464 = vmatprep.subr.bf16.mxu0 %v12334_v41  ;;  %4628 = vmatprep.subr.bf16.mxu1 %v12335_v15  ;;  %v12345_v41 = vld [vmem:[#allocation466_spill] sm:$0xff]  ;;  %v12346_v15 = vld [vmem:[#allocation467_spill] sm:$0xff] }
 0x3d6   :  { %4465 = vmatpush1.bf16.msra.mxu0 %v12336_v7  ;;  %4629 = vmatpush1.bf16.msra.mxu1 %v12337_v46  ;;  %v12347_v7 = vld [vmem:[#allocation468_spill] sm:$0xff]  ;;  %v12348_v46 = vld [vmem:[#allocation469_spill] sm:$0xff] }
 0x3d7   :  { %4466 = vmatprep.subr.bf16.mxu0 %v12338_v11  ;;  %4630 = vmatprep.subr.bf16.mxu1 %v12339_v33  ;;  %v12349_v11 = vld [vmem:[#allocation470_spill] sm:$0xff]  ;;  %v12350_v33 = vld [vmem:[#allocation471_spill] sm:$0xff] }
 0x3da   :  { %4467 = vmatpush1.bf16.msra.mxu0 %v12340_v16  ;;  %4631 = vmatpush1.bf16.msra.mxu1 %v12341_v62  ;;  %v12351_v16 = vld [vmem:[#allocation472_spill] sm:$0xff]  ;;  %v12352_v62 = vld [vmem:[#allocation473_spill] sm:$0xff] }
 0x3db   :  { %4468 = vmatprep.subr.bf16.mxu0 %v12342_v63  ;;  %4632 = vmatprep.subr.bf16.mxu1 %v12343_v43  ;;  %v12353_v63 = vld [vmem:[#allocation474_spill] sm:$0xff]  ;;  %v12354_v43 = vld [vmem:[#allocation475_spill] sm:$0xff] }
 0x3de   :  { %4469 = vmatpush1.bf16.msra.mxu0 %v12344_v1  ;;  %4633 = vmatpush1.bf16.msra.mxu1 %v12345_v41  ;;  %v12355_v1 = vld [vmem:[#allocation476_spill] sm:$0xff]  ;;  %v12356_v41 = vld [vmem:[#allocation45_spill] sm:$0xff] }
 0x3df   :  { %4470 = vmatprep.subr.bf16.mxu0 %v12346_v15  ;;  %4634 = vmatprep.subr.bf16.mxu1 %v12347_v7  ;;  %v683_v15 = vunpack.c.l.bf16 %v12356_v41  ;;  %v684_v7 = vunpack.c.l.bf16 %v12357_v22  ;;  %v12366_v41 = vld [vmem:[#allocation483_spill] sm:$0xff]  ;;  %v12367_v22 = vld [vmem:[#allocation484_spill] sm:$0xff] }
 0x3e2   :  { %4471 = vmatpush1.bf16.msra.mxu0 %v12348_v46  ;;  %4635 = vmatpush1.bf16.msra.mxu1 %v12349_v11  ;;  %v685_v46 = vunpack.c.l.bf16 %v12358_v51  ;;  %v686_v11 = vunpack.c.l.bf16 %v12359_v55  ;;  %v12368_v51 = vld [vmem:[#allocation2_spill] sm:$0xff] }
 0x3e3   :  { %4472 = vmatprep.subr.bf16.mxu0 %v12350_v33  ;;  %4636 = vmatprep.subr.bf16.mxu1 %v12351_v16  ;;  %v12361_v33 = vld [vmem:[#allocation478_spill] sm:$0xff]  ;;  %v12362_v16 = vld [vmem:[#allocation479_spill] sm:$0xff] }
 0x3e6   :  { %4473 = vmatpush1.bf16.msra.mxu0 %v12352_v62  ;;  %4637 = vmatpush1.bf16.msra.mxu1 %v12353_v63  ;;  %v12363_v62 = vld [vmem:[#allocation480_spill] sm:$0xff]  ;;  %v699_v63 = vcombine.low %v683_v15, %v684_v7  ;;  %v12373_v7 = vld [vmem:[#allocation489_spill] sm:$0xff] }
 0x3e7   :  { %4474 = vmatprep.subr.bf16.mxu0 %v12354_v43  ;;  %4638 = vmatprep.subr.bf16.mxu1 %v12355_v1  ;;  %v700_v43 = vcombine.low %v685_v46, %v686_v11  ;;  %v12365_v1 = vld [vmem:[#allocation482_spill] sm:$0xff]  ;;  %v12372_v15 = vld [vmem:[#allocation488_spill] sm:$0xff] }
 0x3e8   :  { %v707_v55 = vrot.slane %v699_v63, %v12368_v51  ;;  %v12374_v11 = vld [vmem:[#allocation490_spill] sm:$0xff]  ;;  %v12377_v63 = vld [vmem:[#allocation19_spill] sm:$0xff] }
 0x3ea   :  { %4475 = vmatpush1.bf16.msra.mxu0 %v12360_v30  ;;  %4639 = vmatpush1.bf16.msra.mxu1 %v12361_v33  ;;  %v714_v30 = vrot.slane %v700_v43, %v12368_v51  ;;  %v12370_v33 = vld [vmem:[#allocation486_spill] sm:$0xff] }
 0x3eb   :  { %4476 = vmatprep.subr.bf16.mxu0 %v12362_v16  ;;  %4640 = vmatprep.subr.bf16.mxu1 %v12363_v62  ;;  %v12371_v16 = vld [vmem:[#allocation487_spill] sm:$0xff] }
 0x3ec   :  { %v715_v46 = vcombine.low %v707_v55, %v714_v30 }
 0x3ee   :  { %4477 = vmatpush1.bf16.msra.mxu0 %v12364_v23  ;;  %4641 = vmatpush1.bf16.msra.mxu1 %v12365_v1  ;;  %v9831_v1 = vsub.f32 %v12377_v63, %v715_v46  ;;  %v12407_v63 = vld [vmem:[#allocation37_spill] sm:$0xff] }
 0x3ef   :  { %4478 = vmatprep.subr.bf16.mxu0 %v12366_v41  ;;  %4642 = vmatprep.subr.bf16.mxu1 %v12367_v22  ;;  %v12375_v41 = vld [vmem:[#allocation491_spill] sm:$0xff]  ;;  %v12376_v22 = vld [vmem:[#allocation492_spill] sm:$0xff] }
 0x3f0   :  { %v9839_v30 = vrot.slane %v9831_v1, %v12368_v51 }
 0x3f2   :  { %4479 = vmatpush1.bf16.msra.mxu0 %v12369_v31  ;;  %4643 = vmatpush1.bf16.msra.mxu1 %v12370_v33  ;;  %v754_v43 = vcombine.high %v9839_v30, %v9839_v30 }
 0x3f3   :  { %4480 = vmatprep.subr.bf16.mxu0 %v12371_v16  ;;  %4644 = vmatprep.subr.bf16.mxu1 %v12372_v15 }
 0x3f4   :  { %v9851_v55 = vpack.c.bf16 %v754_v43, %v754_v43  ;;  %v12408_v43 = vld [vmem:[#allocation38_spill] sm:$0xff] }
 0x3f6   :  { %4481 = vmatpush1.bf16.msra.mxu0 %v12373_v7  ;;  %4645 = vmatpush1.bf16.msra.mxu1 %v12374_v11 }
 0x3f7   :  { %4482 = vmatprep.subr.bf16.mxu0 %v12375_v41  ;;  %4646 = vmatprep.subr.bf16.mxu1 %v12376_v22 }
 0x3fa   :  { %4483 = vmatpush1.bf16.msra.mxu0 %v9245_v54  ;;  %4647 = vmatpush1.bf16.msra.mxu1 %v9249_v24 }
 0x3fb   :  { %4484 = vmatprep.subr.bf16.mxu0 %v9251_v34  ;;  %4648 = vmatprep.subr.bf16.mxu1 %v9254_v2 }
 0x3fe   :  { %4485 = vmatpush1.bf16.msra.mxu0 %v9269_v53  ;;  %4649 = vmatpush1.bf16.msra.mxu1 %v9273_v44 }
 0x3ff   :  { %4486 = vmatprep.subr.bf16.mxu0 %v9275_v0  ;;  %4650 = vmatprep.subr.bf16.mxu1 %v9278_v35 }
 0x402   :  { %4487 = vmatpush1.bf16.msra.mxu0 %v9281_v60  ;;  %4651 = vmatpush1.bf16.msra.mxu1 %v9285_v25 }
 0x403   :  { %4661 = vmatprep.subr.bf16.mxu0 %v6091_v3  ;;  %4825 = vmatprep.subr.bf16.mxu1 %v6104_v8  ;;  %v12378_v3 = vld [vmem:[#allocation4_spill] sm:$0xff] }
 0x404   :  { %v12380_v8 = vld [vmem:[#allocation8_spill] sm:$0xff] }
 0x405   :  { %4489 = vmatmul.mubr.bf16.vlgmr.msra.gmra.mrb[4].mxu0 %v12134_v32  ;;  %4653 = vmatmul.mubr.bf16.vlgmr.msra.gmra.mrb[4].mxu1 %v12134_v32  ;;  %v12406_v32 = vld [vmem:[#allocation36_spill] sm:$0xff] }
 0x406   :  { %4662 = vmatpush1.bf16.msra.mxu0 %v6096_v5  ;;  %4826 = vmatpush1.bf16.msra.mxu1 %v6106_v9  ;;  %v12379_v5 = vld [vmem:[#allocation6_spill] sm:$0xff]  ;;  %v12381_v9 = vld [vmem:[#allocation9_spill] sm:$0xff] }
 0x407   :  { %4663 = vmatprep.subr.bf16.mxu0 %v6108_v10  ;;  %4827 = vmatprep.subr.bf16.mxu1 %v6120_v14  ;;  %v12382_v10 = vld [vmem:[#allocation10_spill] sm:$0xff]  ;;  %v12383_v14 = vld [vmem:[#allocation11_spill] sm:$0xff] }
 0x408   :  { %4693 = vmatprep.mubr.bf16.mxu0 %v9851_v55  ;;  %4857 = vmatprep.mubr.bf16.mxu1 %v9851_v55 }
 0x40a   :  { %4664 = vmatpush1.bf16.msra.mxu0 %v6133_v18  ;;  %4828 = vmatpush1.bf16.msra.mxu1 %v6137_v19  ;;  %v12384_v18 = vld [vmem:[#allocation12_spill] sm:$0xff]  ;;  %v12385_v19 = vld [vmem:[#allocation13_spill] sm:$0xff] }
 0x40b   :  { %4665 = vmatprep.subr.bf16.mxu0 %v6139_v20  ;;  %4829 = vmatprep.subr.bf16.mxu1 %v6142_v21  ;;  %v12386_v20 = vld [vmem:[#allocation14_spill] sm:$0xff]  ;;  %v12387_v21 = vld [vmem:[#allocation15_spill] sm:$0xff] }
 0x40e   :  { %4666 = vmatpush1.bf16.msra.mxu0 %v6157_v26  ;;  %4830 = vmatpush1.bf16.msra.mxu1 %v6161_v27  ;;  %v12388_v26 = vld [vmem:[#allocation16_spill] sm:$0xff]  ;;  %v12389_v27 = vld [vmem:[#allocation17_spill] sm:$0xff] }
 0x40f   :  { %4667 = vmatprep.subr.bf16.mxu0 %v6163_v28  ;;  %4831 = vmatprep.subr.bf16.mxu1 %v6166_v29  ;;  %v12390_v28 = vld [vmem:[#allocation18_spill] sm:$0xff]  ;;  %v12391_v29 = vld [vmem:[#allocation20_spill] sm:$0xff] }
 0x412   :  { %4668 = vmatpush1.bf16.msra.mxu0 %v6181_v37  ;;  %4832 = vmatpush1.bf16.msra.mxu1 %v6185_v38  ;;  %v12392_v37 = vld [vmem:[#allocation21_spill] sm:$0xff]  ;;  %v12393_v38 = vld [vmem:[#allocation22_spill] sm:$0xff] }
 0x413   :  { %4669 = vmatprep.subr.bf16.mxu0 %v6187_v39  ;;  %4833 = vmatprep.subr.bf16.mxu1 %v6190_v40  ;;  %v12394_v39 = vld [vmem:[#allocation23_spill] sm:$0xff]  ;;  %v12395_v40 = vld [vmem:[#allocation24_spill] sm:$0xff] }
 0x416   :  { %4670 = vmatpush1.bf16.msra.mxu0 %v6205_v47  ;;  %4834 = vmatpush1.bf16.msra.mxu1 %v6209_v48  ;;  %v12396_v47 = vld [vmem:[#allocation26_spill] sm:$0xff]  ;;  %v12397_v48 = vld [vmem:[#allocation27_spill] sm:$0xff] }
 0x417   :  { %4671 = vmatprep.subr.bf16.mxu0 %v6211_v49  ;;  %4835 = vmatprep.subr.bf16.mxu1 %v6214_v50  ;;  %v12398_v49 = vld [vmem:[#allocation28_spill] sm:$0xff]  ;;  %v12399_v50 = vld [vmem:[#allocation29_spill] sm:$0xff] }
 0x41a   :  { %4672 = vmatpush1.bf16.msra.mxu0 %v6231_v56  ;;  %4836 = vmatpush1.bf16.msra.mxu1 %v6235_v57  ;;  %v12400_v56 = vld [vmem:[#allocation30_spill] sm:$0xff]  ;;  %v12401_v57 = vld [vmem:[#allocation31_spill] sm:$0xff] }
 0x41b   :  { %4673 = vmatprep.subr.bf16.mxu0 %v6237_v58  ;;  %4837 = vmatprep.subr.bf16.mxu1 %v6248_v61  ;;  %v12402_v58 = vld [vmem:[#allocation32_spill] sm:$0xff]  ;;  %v739_v61 = vcombine.high %v9831_v1, %v9831_v1 }
 0x41d   :  { %v9916_v46 = vrot.slane %v739_v61, %v12368_v51  ;;  %v12433_v61 = vld [vmem:[#allocation65_spill] sm:$0xff] }
 0x41e   :  { %4674 = vmatpush1.bf16.msra.mxu0 %v6264_v4  ;;  %4838 = vmatpush1.bf16.msra.mxu1 %v6271_v12  ;;  %v12403_v4 = vld [vmem:[#allocation33_spill] sm:$0xff]  ;;  %v12404_v12 = vld [vmem:[#allocation34_spill] sm:$0xff] }
 0x41f   :  { %4675 = vmatprep.subr.bf16.mxu0 %v6273_v13  ;;  %4839 = vmatprep.subr.bf16.mxu1 %v12378_v3  ;;  %v12405_v13 = vld [vmem:[#allocation35_spill] sm:$0xff]  ;;  %v755_v1 = vcombine.high %v9916_v46, %v9916_v46 }
 0x420   :  { %v12409_v3 = vld [vmem:[#allocation39_spill] sm:$0xff] }
 0x422   :  { %4676 = vmatpush1.bf16.msra.mxu0 %v12379_v5  ;;  %4840 = vmatpush1.bf16.msra.mxu1 %v12380_v8  ;;  %v12410_v5 = vld [vmem:[#allocation40_spill] sm:$0xff]  ;;  %v9926_v8 = vpack.c.bf16 %v9839_v30, %v9839_v30 }
 0x423   :  { %4677 = vmatprep.subr.bf16.mxu0 %v12381_v9  ;;  %4841 = vmatprep.subr.bf16.mxu1 %v12382_v10  ;;  %v12411_v9 = vld [vmem:[#allocation41_spill] sm:$0xff]  ;;  %v12412_v10 = vld [vmem:[#allocation42_spill] sm:$0xff]  ;;  %v12417_v30 = vld [vmem:[#allocation48_spill] sm:$0xff] }
 0x426   :  { %4678 = vmatpush1.bf16.msra.mxu0 %v12383_v14  ;;  %4842 = vmatpush1.bf16.msra.mxu1 %v12384_v18  ;;  %v12413_v14 = vld [vmem:[#allocation43_spill] sm:$0xff]  ;;  %v12414_v18 = vld [vmem:[#allocation44_spill] sm:$0xff] }
 0x427   :  { %4679 = vmatprep.subr.bf16.mxu0 %v12385_v19  ;;  %4843 = vmatprep.subr.bf16.mxu1 %v12386_v20  ;;  %v9932_v19 = vpack.c.bf16 %v755_v1, %v755_v1  ;;  %v12415_v20 = vld [vmem:[#allocation46_spill] sm:$0xff] }
 0x428   :  { %v12442_v1 = vld [vmem:[#allocation74_spill] sm:$0xff] }
 0x42a   :  { %4680 = vmatpush1.bf16.msra.mxu0 %v12387_v21  ;;  %4844 = vmatpush1.bf16.msra.mxu1 %v12388_v26  ;;  %v12416_v21 = vld [vmem:[#allocation47_spill] sm:$0xff]  ;;  %v12418_v26 = vld [vmem:[#allocation49_spill] sm:$0xff] }
 0x42b   :  { %4681 = vmatprep.subr.bf16.mxu0 %v12389_v27  ;;  %4845 = vmatprep.subr.bf16.mxu1 %v12390_v28  ;;  %v12419_v27 = vld [vmem:[#allocation51_spill] sm:$0xff]  ;;  %v12420_v28 = vld [vmem:[#allocation52_spill] sm:$0xff] }
 0x42e   :  { %4682 = vmatpush1.bf16.msra.mxu0 %v12391_v29  ;;  %4846 = vmatpush1.bf16.msra.mxu1 %v12392_v37  ;;  %v12421_v29 = vld [vmem:[#allocation53_spill] sm:$0xff]  ;;  %v12422_v37 = vld [vmem:[#allocation54_spill] sm:$0xff] }
 0x42f   :  { %4683 = vmatprep.subr.bf16.mxu0 %v12393_v38  ;;  %4847 = vmatprep.subr.bf16.mxu1 %v12394_v39  ;;  %v12423_v38 = vld [vmem:[#allocation55_spill] sm:$0xff]  ;;  %v12424_v39 = vld [vmem:[#allocation56_spill] sm:$0xff] }
 0x432   :  { %4684 = vmatpush1.bf16.msra.mxu0 %v12395_v40  ;;  %4848 = vmatpush1.bf16.msra.mxu1 %v12396_v47  ;;  %v12425_v40 = vld [vmem:[#allocation57_spill] sm:$0xff]  ;;  %v12426_v47 = vld [vmem:[#allocation58_spill] sm:$0xff] }
 0x433   :  { %4685 = vmatprep.subr.bf16.mxu0 %v12397_v48  ;;  %4849 = vmatprep.subr.bf16.mxu1 %v12398_v49  ;;  %v12427_v48 = vld [vmem:[#allocation59_spill] sm:$0xff]  ;;  %v12428_v49 = vld [vmem:[#allocation60_spill] sm:$0xff] }
 0x436   :  { %4686 = vmatpush1.bf16.msra.mxu0 %v12399_v50  ;;  %4850 = vmatpush1.bf16.msra.mxu1 %v12400_v56  ;;  %v12429_v50 = vld [vmem:[#allocation61_spill] sm:$0xff]  ;;  %v12430_v56 = vld [vmem:[#allocation62_spill] sm:$0xff] }
 0x437   :  { %4687 = vmatprep.subr.bf16.mxu0 %v12401_v57  ;;  %4851 = vmatprep.subr.bf16.mxu1 %v12402_v58  ;;  %v12431_v57 = vld [vmem:[#allocation63_spill] sm:$0xff]  ;;  %v12432_v58 = vld [vmem:[#allocation64_spill] sm:$0xff] }
 0x43a   :  { %4688 = vmatpush1.bf16.msra.mxu0 %v12403_v4  ;;  %4852 = vmatpush1.bf16.msra.mxu1 %v12404_v12  ;;  %v12434_v4 = vld [vmem:[#allocation66_spill] sm:$0xff]  ;;  %v12435_v12 = vld [vmem:[#allocation67_spill] sm:$0xff] }
 0x43b   :  { %4689 = vmatprep.subr.bf16.mxu0 %v12405_v13  ;;  %4853 = vmatprep.subr.bf16.mxu1 %v12406_v32  ;;  %v12436_v13 = vld [vmem:[#allocation68_spill] sm:$0xff]  ;;  %v12437_v32 = vld [vmem:[#allocation69_spill] sm:$0xff] }
 0x43e   :  { %4690 = vmatpush1.bf16.msra.mxu0 %v12407_v63  ;;  %4854 = vmatpush1.bf16.msra.mxu1 %v12408_v43  ;;  %v12438_v63 = vld [vmem:[#allocation70_spill] sm:$0xff]  ;;  %v12439_v43 = vld [vmem:[#allocation71_spill] sm:$0xff] }
 0x43f   :  { %4691 = vmatprep.subr.bf16.mxu0 %v12409_v3  ;;  %4855 = vmatprep.subr.bf16.mxu1 %v12410_v5  ;;  %v12440_v3 = vld [vmem:[#allocation72_spill] sm:$0xff]  ;;  %v12441_v5 = vld [vmem:[#allocation73_spill] sm:$0xff] }
 0x442   :  { %4692 = vmatpush1.bf16.msra.mxu0 %v12411_v9  ;;  %4856 = vmatpush1.bf16.msra.mxu1 %v12412_v10  ;;  %v12443_v9 = vld [vmem:[#allocation75_spill] sm:$0xff]  ;;  %v12444_v10 = vld [vmem:[#allocation76_spill] sm:$0xff] }
 0x443   :  { %4702 = vmatprep.subr.bf16.mxu0 %v12413_v14  ;;  %4866 = vmatprep.subr.bf16.mxu1 %v12414_v18  ;;  %v12445_v14 = vld [vmem:[#allocation77_spill] sm:$0xff]  ;;  %v12446_v18 = vld [vmem:[#allocation78_spill] sm:$0xff] }
 0x445   :  { %4694 = vmatmul.mubr.bf16.vlgmr.msra.gmra.mrb[0].mxu0 %v9926_v8  ;;  %4858 = vmatmul.mubr.bf16.vlgmr.msra.gmra.mrb[0].mxu1 %v9926_v8 }
 0x446   :  { %4703 = vmatpush1.bf16.msra.mxu0 %v12415_v20  ;;  %4867 = vmatpush1.bf16.msra.mxu1 %v12416_v21  ;;  %v12447_v20 = vld [vmem:[#allocation79_spill] sm:$0xff]  ;;  %v12448_v21 = vld [vmem:[#allocation80_spill] sm:$0xff] }
 0x447   :  { %4704 = vmatprep.subr.bf16.mxu0 %v12417_v30  ;;  %4868 = vmatprep.subr.bf16.mxu1 %v12418_v26  ;;  %v12449_v30 = vld [vmem:[#allocation81_spill] sm:$0xff]  ;;  %v12450_v26 = vld [vmem:[#allocation82_spill] sm:$0xff] }
 0x448   :  { %4734 = vmatprep.mubr.bf16.mxu0 %v9932_v19  ;;  %4898 = vmatprep.mubr.bf16.mxu1 %v9932_v19 }
 0x44a   :  { %4705 = vmatpush1.bf16.msra.mxu0 %v12419_v27  ;;  %4869 = vmatpush1.bf16.msra.mxu1 %v12420_v28  ;;  %v12451_v27 = vld [vmem:[#allocation182_spill] sm:$0xff] }
 0x44b   :  { %4706 = vmatprep.subr.bf16.mxu0 %v12421_v29  ;;  %4870 = vmatprep.subr.bf16.mxu1 %v12422_v37  ;;  %v687_v28 = vunpack.c.l.bf16 %v12451_v27  ;;  %v12452_v29 = vld [vmem:[#allocation121_spill] sm:$0xff]  ;;  %v12473_v27 = vld [vmem:[#allocation104_spill] sm:$0xff] }
 0x44c   :  { %v688_v37 = vunpack.c.l.bf16 %v12452_v29  ;;  %v12475_v29 = vld [vmem:[#allocation106_spill] sm:$0xff] }
 0x44e   :  { %4707 = vmatpush1.bf16.msra.mxu0 %v12423_v38  ;;  %4871 = vmatpush1.bf16.msra.mxu1 %v12424_v39  ;;  %v12453_v38 = vld [vmem:[#allocation248_spill] sm:$0xff] }
 0x44f   :  { %4708 = vmatprep.subr.bf16.mxu0 %v12425_v40  ;;  %4872 = vmatprep.subr.bf16.mxu1 %v12426_v47  ;;  %v689_v39 = vunpack.c.l.bf16 %v12453_v38  ;;  %v12454_v40 = vld [vmem:[#allocation187_spill] sm:$0xff]  ;;  %v12476_v38 = vld [vmem:[#allocation108_spill] sm:$0xff] }
 0x450   :  { %v690_v47 = vunpack.c.l.bf16 %v12454_v40  ;;  %v12478_v40 = vld [vmem:[#allocation110_spill] sm:$0xff] }
 0x452   :  { %4709 = vmatpush1.bf16.msra.mxu0 %v12427_v48  ;;  %4873 = vmatpush1.bf16.msra.mxu1 %v12428_v49  ;;  %v12455_v48 = vld [vmem:[#allocation87_spill] sm:$0xff]  ;;  %v12456_v49 = vld [vmem:[#allocation88_spill] sm:$0xff] }
 0x453   :  { %4710 = vmatprep.subr.bf16.mxu0 %v12429_v50  ;;  %4874 = vmatprep.subr.bf16.mxu1 %v12430_v56  ;;  %v12457_v50 = vld [vmem:[#allocation89_spill] sm:$0xff]  ;;  %v12458_v56 = vld [vmem:[#allocation90_spill] sm:$0xff] }
 0x456   :  { %4711 = vmatpush1.bf16.msra.mxu0 %v12431_v57  ;;  %4875 = vmatpush1.bf16.msra.mxu1 %v12432_v58  ;;  %v716_v57 = vcombine.low %v687_v28, %v688_v37  ;;  %v717_v58 = vcombine.low %v689_v39, %v690_v47  ;;  %v12474_v28 = vld [vmem:[#allocation105_spill] sm:$0xff]  ;;  %v12479_v47 = vld [vmem:[#allocation111_spill] sm:$0xff] }
 0x457   :  { %4712 = vmatprep.subr.bf16.mxu0 %v12433_v61  ;;  %4876 = vmatprep.subr.bf16.mxu1 %v12434_v4  ;;  %v12459_v61 = vld [vmem:[#allocation91_spill] sm:$0xff]  ;;  %v12460_v4 = vld [vmem:[#allocation92_spill] sm:$0xff]  ;;  %v12477_v39 = vld [vmem:[#allocation109_spill] sm:$0xff] }
 0x45a   :  { %4713 = vmatpush1.bf16.msra.mxu0 %v12435_v12  ;;  %4877 = vmatpush1.bf16.msra.mxu1 %v12436_v13  ;;  %v12461_v12 = vld [vmem:[#allocation93_spill] sm:$0xff]  ;;  %v12462_v13 = vld [vmem:[#allocation94_spill] sm:$0xff] }
 0x45b   :  { %4714 = vmatprep.subr.bf16.mxu0 %v12437_v32  ;;  %4878 = vmatprep.subr.bf16.mxu1 %v12438_v63  ;;  %v724_v32 = vrot.slane %v716_v57, %v12368_v51  ;;  %v731_v63 = vrot.slane %v717_v58, %v12368_v51  ;;  %v12482_v57 = vld [vmem:[#allocation114_spill] sm:$0xff]  ;;  %v12483_v58 = vld [vmem:[#allocation115_spill] sm:$0xff] }
 0x45e   :  { %4715 = vmatpush1.bf16.msra.mxu0 %v12439_v43  ;;  %4879 = vmatpush1.bf16.msra.mxu1 %v12440_v3  ;;  %v12463_v43 = vld [vmem:[#allocation95_spill] sm:$0xff]  ;;  %v12464_v3 = vld [vmem:[#allocation96_spill] sm:$0xff] }
 0x45f   :  { %4716 = vmatprep.subr.bf16.mxu0 %v12441_v5  ;;  %4880 = vmatprep.subr.bf16.mxu1 %v12442_v1  ;;  %v12465_v5 = vld [vmem:[#allocation97_spill] sm:$0xff]  ;;  %v12466_v1 = vld [vmem:[#allocation98_spill] sm:$0xff] }
 0x462   :  { %4717 = vmatpush1.bf16.msra.mxu0 %v12443_v9  ;;  %4881 = vmatpush1.bf16.msra.mxu1 %v12444_v10  ;;  %v732_v9 = vcombine.low %v724_v32, %v731_v63  ;;  %v12467_v10 = vld [vmem:[#allocation99_spill] sm:$0xff]  ;;  %v12488_v32 = vld [vmem:[#allocation122_spill] sm:$0xff] }
 0x463   :  { %4718 = vmatprep.subr.bf16.mxu0 %v12445_v14  ;;  %4882 = vmatprep.subr.bf16.mxu1 %v12446_v18  ;;  %v12468_v14 = vld [vmem:[#allocation100_spill] sm:$0xff]  ;;  %v12469_v18 = vld [vmem:[#allocation101_spill] sm:$0xff]  ;;  %v12489_v63 = vld [vmem:[#allocation123_spill] sm:$0xff] }
 0x466   :  { %4719 = vmatpush1.bf16.msra.mxu0 %v12447_v20  ;;  %4883 = vmatpush1.bf16.msra.mxu1 %v12448_v21  ;;  %v12470_v20 = vld [vmem:[#allocation102_spill] sm:$0xff]  ;;  %v12471_v21 = vld [vmem:[#allocation107_spill] sm:$0xff] }
 0x467   :  { %4720 = vmatprep.subr.bf16.mxu0 %v12449_v30  ;;  %4884 = vmatprep.subr.bf16.mxu1 %v12450_v26  ;;  %v9997_v30 = vsub.f32 %v12471_v21, %v732_v9  ;;  %v12472_v26 = vld [vmem:[#allocation103_spill] sm:$0xff]  ;;  %v12494_v9 = vld [vmem:[#allocation128_spill] sm:$0xff]  ;;  %v12499_v21 = vld [vmem:[#allocation133_spill] sm:$0xff] }
 0x469   :  { %v10005_v37 = vrot.slane %v9997_v30, %v12368_v51 }
 0x46a   :  { %4721 = vmatpush1.bf16.msra.mxu0 %v12455_v48  ;;  %4885 = vmatpush1.bf16.msra.mxu1 %v12456_v49  ;;  %v10015_v49 = vpack.c.bf16 %v9916_v46, %v9916_v46  ;;  %v12486_v46 = vld [vmem:[#allocation119_spill] sm:$0xff] }
 0x46b   :  { %4722 = vmatprep.subr.bf16.mxu0 %v12457_v50  ;;  %4886 = vmatprep.subr.bf16.mxu1 %v12458_v56  ;;  %v771_v48 = vcombine.high %v10005_v37, %v10005_v37  ;;  %v12480_v50 = vld [vmem:[#allocation112_spill] sm:$0xff]  ;;  %v12481_v56 = vld [vmem:[#allocation113_spill] sm:$0xff] }
 0x46e   :  { %4723 = vmatpush1.bf16.msra.mxu0 %v12459_v61  ;;  %4887 = vmatpush1.bf16.msra.mxu1 %v12460_v4  ;;  %v10021_v61 = vpack.c.bf16 %v771_v48, %v771_v48  ;;  %v12484_v4 = vld [vmem:[#allocation117_spill] sm:$0xff]  ;;  %v12508_v48 = vld [vmem:[#allocation142_spill] sm:$0xff] }
 0x46f   :  { %4724 = vmatprep.subr.bf16.mxu0 %v12461_v12  ;;  %4888 = vmatprep.subr.bf16.mxu1 %v12462_v13  ;;  %v12485_v12 = vld [vmem:[#allocation118_spill] sm:$0xff]  ;;  %v12487_v13 = vld [vmem:[#allocation120_spill] sm:$0xff] }
 0x472   :  { %4725 = vmatpush1.bf16.msra.mxu0 %v12463_v43  ;;  %4889 = vmatpush1.bf16.msra.mxu1 %v12464_v3  ;;  %v12490_v43 = vld [vmem:[#allocation124_spill] sm:$0xff]  ;;  %v12491_v3 = vld [vmem:[#allocation125_spill] sm:$0xff] }
 0x473   :  { %4726 = vmatprep.subr.bf16.mxu0 %v12465_v5  ;;  %4890 = vmatprep.subr.bf16.mxu1 %v12466_v1  ;;  %v12492_v5 = vld [vmem:[#allocation126_spill] sm:$0xff]  ;;  %v12493_v1 = vld [vmem:[#allocation127_spill] sm:$0xff] }
 0x476   :  { %4727 = vmatpush1.bf16.msra.mxu0 %v12467_v10  ;;  %4891 = vmatpush1.bf16.msra.mxu1 %v12468_v14  ;;  %v12495_v10 = vld [vmem:[#allocation129_spill] sm:$0xff]  ;;  %v12496_v14 = vld [vmem:[#allocation130_spill] sm:$0xff] }
 0x477   :  { %4728 = vmatprep.subr.bf16.mxu0 %v12469_v18  ;;  %4892 = vmatprep.subr.bf16.mxu1 %v12470_v20  ;;  %v12497_v18 = vld [vmem:[#allocation131_spill] sm:$0xff]  ;;  %v12498_v20 = vld [vmem:[#allocation132_spill] sm:$0xff] }
 0x47a   :  { %4729 = vmatpush1.bf16.msra.mxu0 %v12472_v26  ;;  %4893 = vmatpush1.bf16.msra.mxu1 %v12473_v27  ;;  %v12500_v26 = vld [vmem:[#allocation134_spill] sm:$0xff]  ;;  %v12501_v27 = vld [vmem:[#allocation135_spill] sm:$0xff] }
 0x47b   :  { %4730 = vmatprep.subr.bf16.mxu0 %v12474_v28  ;;  %4894 = vmatprep.subr.bf16.mxu1 %v12475_v29  ;;  %v12502_v28 = vld [vmem:[#allocation136_spill] sm:$0xff]  ;;  %v12503_v29 = vld [vmem:[#allocation137_spill] sm:$0xff] }
 0x47e   :  { %4731 = vmatpush1.bf16.msra.mxu0 %v12476_v38  ;;  %4895 = vmatpush1.bf16.msra.mxu1 %v12477_v39  ;;  %v12504_v38 = vld [vmem:[#allocation138_spill] sm:$0xff]  ;;  %v12505_v39 = vld [vmem:[#allocation139_spill] sm:$0xff] }
 0x47f   :  { %4732 = vmatprep.subr.bf16.mxu0 %v12478_v40  ;;  %4896 = vmatprep.subr.bf16.mxu1 %v12479_v47  ;;  %v12506_v40 = vld [vmem:[#allocation140_spill] sm:$0xff]  ;;  %v12507_v47 = vld [vmem:[#allocation141_spill] sm:$0xff] }
 0x482   :  { %4733 = vmatpush1.bf16.msra.mxu0 %v12480_v50  ;;  %4897 = vmatpush1.bf16.msra.mxu1 %v12481_v56  ;;  %v12509_v50 = vld [vmem:[#allocation143_spill] sm:$0xff]  ;;  %v12510_v56 = vld [vmem:[#allocation144_spill] sm:$0xff] }
 0x483   :  { %4743 = vmatprep.subr.bf16.mxu0 %v12482_v57  ;;  %4907 = vmatprep.subr.bf16.mxu1 %v12483_v58  ;;  %v12511_v57 = vld [vmem:[#allocation145_spill] sm:$0xff]  ;;  %v12512_v58 = vld [vmem:[#allocation146_spill] sm:$0xff] }
 0x485   :  { %4735 = vmatmul.mubr.bf16.vlgmr.msra.gmra.mrb[0].mxu0 %v10015_v49  ;;  %4899 = vmatmul.mubr.bf16.vlgmr.msra.gmra.mrb[0].mxu1 %v10015_v49 }
 0x486   :  { %4744 = vmatpush1.bf16.msra.mxu0 %v12484_v4  ;;  %4908 = vmatpush1.bf16.msra.mxu1 %v12485_v12  ;;  %v12513_v4 = vld [vmem:[#allocation147_spill] sm:$0xff]  ;;  %v12514_v12 = vld [vmem:[#allocation148_spill] sm:$0xff] }
 0x487   :  { %4745 = vmatprep.subr.bf16.mxu0 %v12486_v46  ;;  %4909 = vmatprep.subr.bf16.mxu1 %v12487_v13  ;;  %v12515_v46 = vld [vmem:[#allocation149_spill] sm:$0xff]  ;;  %v12516_v13 = vld [vmem:[#allocation150_spill] sm:$0xff] }
 0x488   :  { %4775 = vmatprep.mubr.bf16.mxu0 %v10021_v61  ;;  %4939 = vmatprep.mubr.bf16.mxu1 %v10021_v61 }
 0x48a   :  { %4746 = vmatpush1.bf16.msra.mxu0 %v12488_v32  ;;  %4910 = vmatpush1.bf16.msra.mxu1 %v12489_v63  ;;  %v12517_v32 = vld [vmem:[#allocation151_spill] sm:$0xff]  ;;  %v12518_v63 = vld [vmem:[#allocation152_spill] sm:$0xff] }
 0x48b   :  { %4747 = vmatprep.subr.bf16.mxu0 %v12490_v43  ;;  %4911 = vmatprep.subr.bf16.mxu1 %v12491_v3  ;;  %v12519_v43 = vld [vmem:[#allocation153_spill] sm:$0xff]  ;;  %v12520_v3 = vld [vmem:[#allocation154_spill] sm:$0xff] }
 0x48e   :  { %4748 = vmatpush1.bf16.msra.mxu0 %v12492_v5  ;;  %4912 = vmatpush1.bf16.msra.mxu1 %v12493_v1  ;;  %v12521_v5 = vld [vmem:[#allocation155_spill] sm:$0xff]  ;;  %v12522_v1 = vld [vmem:[#allocation156_spill] sm:$0xff] }
 0x48f   :  { %4749 = vmatprep.subr.bf16.mxu0 %v12494_v9  ;;  %4913 = vmatprep.subr.bf16.mxu1 %v12495_v10  ;;  %v12523_v9 = vld [vmem:[#allocation157_spill] sm:$0xff]  ;;  %v12524_v10 = vld [vmem:[#allocation158_spill] sm:$0xff] }
 0x492   :  { %4750 = vmatpush1.bf16.msra.mxu0 %v12496_v14  ;;  %4914 = vmatpush1.bf16.msra.mxu1 %v12497_v18  ;;  %v12525_v14 = vld [vmem:[#allocation159_spill] sm:$0xff]  ;;  %v12526_v18 = vld [vmem:[#allocation160_spill] sm:$0xff] }
 0x493   :  { %4751 = vmatprep.subr.bf16.mxu0 %v12498_v20  ;;  %4915 = vmatprep.subr.bf16.mxu1 %v12499_v21  ;;  %v12527_v20 = vld [vmem:[#allocation161_spill] sm:$0xff]  ;;  %v12528_v21 = vld [vmem:[#allocation162_spill] sm:$0xff] }
 0x496   :  { %4752 = vmatpush1.bf16.msra.mxu0 %v12500_v26  ;;  %4916 = vmatpush1.bf16.msra.mxu1 %v12501_v27  ;;  %v12529_v26 = vld [vmem:[#allocation163_spill] sm:$0xff]  ;;  %v12530_v27 = vld [vmem:[#allocation164_spill] sm:$0xff] }
 0x497   :  { %4753 = vmatprep.subr.bf16.mxu0 %v12502_v28  ;;  %4917 = vmatprep.subr.bf16.mxu1 %v12503_v29  ;;  %v12531_v28 = vld [vmem:[#allocation165_spill] sm:$0xff]  ;;  %v12532_v29 = vld [vmem:[#allocation166_spill] sm:$0xff] }
 0x49a   :  { %4754 = vmatpush1.bf16.msra.mxu0 %v12504_v38  ;;  %4918 = vmatpush1.bf16.msra.mxu1 %v12505_v39  ;;  %v12533_v38 = vld [vmem:[#allocation167_spill] sm:$0xff]  ;;  %v12534_v39 = vld [vmem:[#allocation168_spill] sm:$0xff] }
 0x49b   :  { %4755 = vmatprep.subr.bf16.mxu0 %v12506_v40  ;;  %4919 = vmatprep.subr.bf16.mxu1 %v12507_v47  ;;  %v12535_v40 = vld [vmem:[#allocation169_spill] sm:$0xff]  ;;  %v756_v47 = vcombine.high %v9997_v30, %v9997_v30 }
 0x49e   :  { %4756 = vmatpush1.bf16.msra.mxu0 %v12508_v48  ;;  %4920 = vmatpush1.bf16.msra.mxu1 %v12509_v50  ;;  %v12536_v48 = vld [vmem:[#allocation170_spill] sm:$0xff]  ;;  %v12537_v50 = vld [vmem:[#allocation171_spill] sm:$0xff] }
 0x49f   :  { %4757 = vmatprep.subr.bf16.mxu0 %v12510_v56  ;;  %4921 = vmatprep.subr.bf16.mxu1 %v12511_v57  ;;  %v12538_v56 = vld [vmem:[#allocation172_spill] sm:$0xff]  ;;  %v12539_v57 = vld [vmem:[#allocation173_spill] sm:$0xff] }
 0x4a2   :  { %4758 = vmatpush1.bf16.msra.mxu0 %v12512_v58  ;;  %4922 = vmatpush1.bf16.msra.mxu1 %v12513_v4  ;;  %v10086_v58 = vrot.slane %v756_v47, %v12368_v51  ;;  %v12540_v4 = vld [vmem:[#allocation174_spill] sm:$0xff] }
 0x4a3   :  { %4759 = vmatprep.subr.bf16.mxu0 %v12514_v12  ;;  %4923 = vmatprep.subr.bf16.mxu1 %v12515_v46  ;;  %v12541_v12 = vld [vmem:[#allocation175_spill] sm:$0xff]  ;;  %v12542_v46 = vld [vmem:[#allocation176_spill] sm:$0xff]  ;;  %v12562_v47 = vld [vmem:[#allocation198_spill] sm:$0xff] }
 0x4a4   :  { %v772_v30 = vcombine.high %v10086_v58, %v10086_v58 }
 0x4a6   :  { %4760 = vmatpush1.bf16.msra.mxu0 %v12516_v13  ;;  %4924 = vmatpush1.bf16.msra.mxu1 %v12517_v32  ;;  %v12543_v13 = vld [vmem:[#allocation177_spill] sm:$0xff]  ;;  %v10096_v32 = vpack.c.bf16 %v10005_v37, %v10005_v37 }
 0x4a7   :  { %4761 = vmatprep.subr.bf16.mxu0 %v12518_v63  ;;  %4925 = vmatprep.subr.bf16.mxu1 %v12519_v43  ;;  %v12544_v63 = vld [vmem:[#allocation178_spill] sm:$0xff]  ;;  %v12545_v43 = vld [vmem:[#allocation179_spill] sm:$0xff]  ;;  %v12550_v37 = vld [vmem:[#allocation185_spill] sm:$0xff] }
 0x4aa   :  { %4762 = vmatpush1.bf16.msra.mxu0 %v12520_v3  ;;  %4926 = vmatpush1.bf16.msra.mxu1 %v12521_v5  ;;  %v12546_v3 = vld [vmem:[#allocation180_spill] sm:$0xff]  ;;  %v12547_v5 = vld [vmem:[#allocation181_spill] sm:$0xff] }
 0x4ab   :  { %4763 = vmatprep.subr.bf16.mxu0 %v12522_v1  ;;  %4927 = vmatprep.subr.bf16.mxu1 %v12523_v9  ;;  %v10102_v1 = vpack.c.bf16 %v772_v30, %v772_v30  ;;  %v12548_v9 = vld [vmem:[#allocation183_spill] sm:$0xff] }
 0x4ac   :  { %v12571_v30 = vld [vmem:[#allocation207_spill] sm:$0xff] }
 0x4ae   :  { %4764 = vmatpush1.bf16.msra.mxu0 %v12524_v10  ;;  %4928 = vmatpush1.bf16.msra.mxu1 %v12525_v14  ;;  %v12549_v10 = vld [vmem:[#allocation184_spill] sm:$0xff]  ;;  %v12551_v14 = vld [vmem:[#allocation186_spill] sm:$0xff] }
 0x4af   :  { %4765 = vmatprep.subr.bf16.mxu0 %v12526_v18  ;;  %4929 = vmatprep.subr.bf16.mxu1 %v12527_v20  ;;  %v12552_v18 = vld [vmem:[#allocation188_spill] sm:$0xff]  ;;  %v12553_v20 = vld [vmem:[#allocation189_spill] sm:$0xff] }
 0x4b2   :  { %4766 = vmatpush1.bf16.msra.mxu0 %v12528_v21  ;;  %4930 = vmatpush1.bf16.msra.mxu1 %v12529_v26  ;;  %v12554_v21 = vld [vmem:[#allocation190_spill] sm:$0xff]  ;;  %v12555_v26 = vld [vmem:[#allocation191_spill] sm:$0xff] }
 0x4b3   :  { %4767 = vmatprep.subr.bf16.mxu0 %v12530_v27  ;;  %4931 = vmatprep.subr.bf16.mxu1 %v12531_v28  ;;  %v12556_v27 = vld [vmem:[#allocation192_spill] sm:$0xff]  ;;  %v12557_v28 = vld [vmem:[#allocation193_spill] sm:$0xff] }
 0x4b6   :  { %4768 = vmatpush1.bf16.msra.mxu0 %v12532_v29  ;;  %4932 = vmatpush1.bf16.msra.mxu1 %v12533_v38  ;;  %v12558_v29 = vld [vmem:[#allocation194_spill] sm:$0xff]  ;;  %v12559_v38 = vld [vmem:[#allocation195_spill] sm:$0xff] }
 0x4b7   :  { %4769 = vmatprep.subr.bf16.mxu0 %v12534_v39  ;;  %4933 = vmatprep.subr.bf16.mxu1 %v12535_v40  ;;  %v12560_v39 = vld [vmem:[#allocation196_spill] sm:$0xff]  ;;  %v12561_v40 = vld [vmem:[#allocation197_spill] sm:$0xff] }
 0x4ba   :  { %4770 = vmatpush1.bf16.msra.mxu0 %v12536_v48  ;;  %4934 = vmatpush1.bf16.msra.mxu1 %v12537_v50  ;;  %v12563_v48 = vld [vmem:[#allocation199_spill] sm:$0xff]  ;;  %v12564_v50 = vld [vmem:[#allocation200_spill] sm:$0xff] }
 0x4bb   :  { %4771 = vmatprep.subr.bf16.mxu0 %v12538_v56  ;;  %4935 = vmatprep.subr.bf16.mxu1 %v12539_v57  ;;  %v12565_v56 = vld [vmem:[#allocation201_spill] sm:$0xff]  ;;  %v12566_v57 = vld [vmem:[#allocation202_spill] sm:$0xff] }
 0x4be   :  { %4772 = vmatpush1.bf16.msra.mxu0 %v12540_v4  ;;  %4936 = vmatpush1.bf16.msra.mxu1 %v12541_v12  ;;  %v12567_v4 = vld [vmem:[#allocation203_spill] sm:$0xff]  ;;  %v12568_v12 = vld [vmem:[#allocation204_spill] sm:$0xff] }
 0x4bf   :  { %4773 = vmatprep.subr.bf16.mxu0 %v12542_v46  ;;  %4937 = vmatprep.subr.bf16.mxu1 %v12543_v13  ;;  %v12569_v46 = vld [vmem:[#allocation205_spill] sm:$0xff]  ;;  %v12570_v13 = vld [vmem:[#allocation206_spill] sm:$0xff] }
 0x4c2   :  { %4774 = vmatpush1.bf16.msra.mxu0 %v12544_v63  ;;  %4938 = vmatpush1.bf16.msra.mxu1 %v12545_v43  ;;  %v12572_v63 = vld [vmem:[#allocation208_spill] sm:$0xff]  ;;  %v12573_v43 = vld [vmem:[#allocation209_spill] sm:$0xff] }
 0x4c3   :  { %4784 = vmatprep.subr.bf16.mxu0 %v12546_v3  ;;  %4948 = vmatprep.subr.bf16.mxu1 %v12547_v5  ;;  %v12574_v3 = vld [vmem:[#allocation210_spill] sm:$0xff]  ;;  %v12575_v5 = vld [vmem:[#allocation211_spill] sm:$0xff] }
 0x4c5   :  { %4776 = vmatmul.mubr.bf16.vlgmr.msra.gmra.mrb[0].mxu0 %v10096_v32  ;;  %4940 = vmatmul.mubr.bf16.vlgmr.msra.gmra.mrb[0].mxu1 %v10096_v32 }
 0x4c6   :  { %4785 = vmatpush1.bf16.msra.mxu0 %v12548_v9  ;;  %4949 = vmatpush1.bf16.msra.mxu1 %v12549_v10  ;;  %v12576_v9 = vld [vmem:[#allocation212_spill] sm:$0xff]  ;;  %v12577_v10 = vld [vmem:[#allocation213_spill] sm:$0xff] }
 0x4c7   :  { %4786 = vmatprep.subr.bf16.mxu0 %v12550_v37  ;;  %4950 = vmatprep.subr.bf16.mxu1 %v12551_v14  ;;  %v12578_v37 = vld [vmem:[#allocation214_spill] sm:$0xff]  ;;  %v12579_v14 = vld [vmem:[#allocation215_spill] sm:$0xff] }
 0x4c8   :  { %4816 = vmatprep.mubr.bf16.mxu0 %v10102_v1  ;;  %4980 = vmatprep.mubr.bf16.mxu1 %v10102_v1 }
 0x4ca   :  { %4787 = vmatpush1.bf16.msra.mxu0 %v12552_v18  ;;  %4951 = vmatpush1.bf16.msra.mxu1 %v12553_v20  ;;  %v12580_v18 = vld [vmem:[#allocation216_spill] sm:$0xff]  ;;  %v12581_v20 = vld [vmem:[#allocation217_spill] sm:$0xff] }
 0x4cb   :  { %4788 = vmatprep.subr.bf16.mxu0 %v12554_v21  ;;  %4952 = vmatprep.subr.bf16.mxu1 %v12555_v26  ;;  %v12582_v21 = vld [vmem:[#allocation218_spill] sm:$0xff]  ;;  %v12583_v26 = vld [vmem:[#allocation219_spill] sm:$0xff] }
 0x4ce   :  { %4789 = vmatpush1.bf16.msra.mxu0 %v12556_v27  ;;  %4953 = vmatpush1.bf16.msra.mxu1 %v12557_v28  ;;  %v12584_v27 = vld [vmem:[#allocation220_spill] sm:$0xff]  ;;  %v12585_v28 = vld [vmem:[#allocation221_spill] sm:$0xff] }
 0x4cf   :  { %4790 = vmatprep.subr.bf16.mxu0 %v12558_v29  ;;  %4954 = vmatprep.subr.bf16.mxu1 %v12559_v38  ;;  %v12586_v29 = vld [vmem:[#allocation222_spill] sm:$0xff]  ;;  %v12587_v38 = vld [vmem:[#allocation223_spill] sm:$0xff] }
 0x4d2   :  { %4791 = vmatpush1.bf16.msra.mxu0 %v12560_v39  ;;  %4955 = vmatpush1.bf16.msra.mxu1 %v12561_v40  ;;  %v12588_v39 = vld [vmem:[#allocation224_spill] sm:$0xff]  ;;  %v12589_v40 = vld [vmem:[#allocation225_spill] sm:$0xff] }
 0x4d3   :  { %4792 = vmatprep.subr.bf16.mxu0 %v12562_v47  ;;  %4956 = vmatprep.subr.bf16.mxu1 %v12563_v48  ;;  %v12590_v47 = vld [vmem:[#allocation226_spill] sm:$0xff]  ;;  %v12591_v48 = vld [vmem:[#allocation227_spill] sm:$0xff] }
 0x4d6   :  { %4793 = vmatpush1.bf16.msra.mxu0 %v12564_v50  ;;  %4957 = vmatpush1.bf16.msra.mxu1 %v12565_v56  ;;  %v12592_v50 = vld [vmem:[#allocation228_spill] sm:$0xff]  ;;  %v12593_v56 = vld [vmem:[#allocation229_spill] sm:$0xff] }
 0x4d7   :  { %4794 = vmatprep.subr.bf16.mxu0 %v12566_v57  ;;  %4958 = vmatprep.subr.bf16.mxu1 %v12567_v4  ;;  %v12594_v57 = vld [vmem:[#allocation230_spill] sm:$0xff]  ;;  %v12595_v4 = vld [vmem:[#allocation231_spill] sm:$0xff] }
 0x4da   :  { %4795 = vmatpush1.bf16.msra.mxu0 %v12568_v12  ;;  %4959 = vmatpush1.bf16.msra.mxu1 %v12569_v46  ;;  %v12596_v12 = vld [vmem:[#allocation232_spill] sm:$0xff]  ;;  %v12597_v46 = vld [vmem:[#allocation233_spill] sm:$0xff] }
 0x4db   :  { %4796 = vmatprep.subr.bf16.mxu0 %v12570_v13  ;;  %4960 = vmatprep.subr.bf16.mxu1 %v12571_v30  ;;  %v12598_v13 = vld [vmem:[#allocation234_spill] sm:$0xff]  ;;  %v12599_v30 = vld [vmem:[#allocation235_spill] sm:$0xff] }
 0x4de   :  { %4797 = vmatpush1.bf16.msra.mxu0 %v12572_v63  ;;  %4961 = vmatpush1.bf16.msra.mxu1 %v12573_v43  ;;  %v12600_v63 = vld [vmem:[#allocation236_spill] sm:$0xff]  ;;  %v12601_v43 = vld [vmem:[#allocation237_spill] sm:$0xff] }
 0x4df   :  { %4798 = vmatprep.subr.bf16.mxu0 %v12574_v3  ;;  %4962 = vmatprep.subr.bf16.mxu1 %v12575_v5  ;;  %v12602_v3 = vld [vmem:[#allocation239_spill] sm:$0xff]  ;;  %v12603_v5 = vld [vmem:[#allocation240_spill] sm:$0xff] }
 0x4e2   :  { %4799 = vmatpush1.bf16.msra.mxu0 %v12576_v9  ;;  %4963 = vmatpush1.bf16.msra.mxu1 %v12577_v10  ;;  %v12604_v9 = vld [vmem:[#allocation241_spill] sm:$0xff]  ;;  %v12605_v10 = vld [vmem:[#allocation242_spill] sm:$0xff] }
 0x4e3   :  { %4800 = vmatprep.subr.bf16.mxu0 %v12578_v37  ;;  %4964 = vmatprep.subr.bf16.mxu1 %v12579_v14  ;;  %v12606_v37 = vld [vmem:[#allocation243_spill] sm:$0xff]  ;;  %v10170_v14 = vpack.c.bf16 %v10086_v58, %v10086_v58  ;;  %v12614_v58 = vld [vmem:[#allocation252_spill] sm:$0xff] }
 0x4e6   :  { %4801 = vmatpush1.bf16.msra.mxu0 %v12580_v18  ;;  %4965 = vmatpush1.bf16.msra.mxu1 %v12581_v20  ;;  %v12607_v18 = vld [vmem:[#allocation244_spill] sm:$0xff]  ;;  %v12608_v20 = vld [vmem:[#allocation245_spill] sm:$0xff] }
 0x4e7   :  { %4802 = vmatprep.subr.bf16.mxu0 %v12582_v21  ;;  %4966 = vmatprep.subr.bf16.mxu1 %v12583_v26  ;;  %v12609_v21 = vld [vmem:[#allocation246_spill] sm:$0xff]  ;;  %v12611_v26 = vld [vmem:[#allocation249_spill] sm:$0xff] }
 0x4ea   :  { %4803 = vmatpush1.bf16.msra.mxu0 %v12584_v27  ;;  %4967 = vmatpush1.bf16.msra.mxu1 %v12585_v28  ;;  %v12612_v27 = vld [vmem:[#allocation250_spill] sm:$0xff]  ;;  %v12613_v28 = vld [vmem:[#allocation251_spill] sm:$0xff] }
 0x4eb   :  { %4804 = vmatprep.subr.bf16.mxu0 %v12586_v29  ;;  %4968 = vmatprep.subr.bf16.mxu1 %v12587_v38  ;;  %v12615_v29 = vld [vmem:[#allocation253_spill] sm:$0xff]  ;;  %v12616_v38 = vld [vmem:[#allocation254_spill] sm:$0xff] }
 0x4ee   :  { %4805 = vmatpush1.bf16.msra.mxu0 %v12588_v39  ;;  %4969 = vmatpush1.bf16.msra.mxu1 %v12589_v40  ;;  %v12617_v39 = vld [vmem:[#allocation255_spill] sm:$0xff]  ;;  %v12618_v40 = vld [vmem:[#allocation256_spill] sm:$0xff] }
 0x4ef   :  { %4806 = vmatprep.subr.bf16.mxu0 %v12590_v47  ;;  %4970 = vmatprep.subr.bf16.mxu1 %v12591_v48  ;;  %v12619_v47 = vld [vmem:[#allocation257_spill] sm:$0xff]  ;;  %v12620_v48 = vld [vmem:[#allocation258_spill] sm:$0xff] }
 0x4f2   :  { %4807 = vmatpush1.bf16.msra.mxu0 %v12592_v50  ;;  %4971 = vmatpush1.bf16.msra.mxu1 %v12593_v56  ;;  %v12621_v50 = vld [vmem:[#allocation259_spill] sm:$0xff]  ;;  %v12622_v56 = vld [vmem:[#allocation260_spill] sm:$0xff] }
 0x4f3   :  { %4808 = vmatprep.subr.bf16.mxu0 %v12594_v57  ;;  %4972 = vmatprep.subr.bf16.mxu1 %v12595_v4  ;;  %v12623_v57 = vld [vmem:[#allocation261_spill] sm:$0xff]  ;;  %v12624_v4 = vld [vmem:[#allocation262_spill] sm:$0xff] }
 0x4f6   :  { %4809 = vmatpush1.bf16.msra.mxu0 %v12596_v12  ;;  %4973 = vmatpush1.bf16.msra.mxu1 %v12597_v46  ;;  %v12626_v12 = vld [vmem:[#allocation264_spill] sm:$0xff]  ;;  %v12627_v46 = vld [vmem:[#allocation265_spill] sm:$0xff] }
 0x4f7   :  { %4810 = vmatprep.subr.bf16.mxu0 %v12598_v13  ;;  %4974 = vmatprep.subr.bf16.mxu1 %v12599_v30  ;;  %v12628_v13 = vld [vmem:[#allocation266_spill] sm:$0xff]  ;;  %v12629_v30 = vld [vmem:[#allocation267_spill] sm:$0xff] }
 0x4fa   :  { %4811 = vmatpush1.bf16.msra.mxu0 %v12600_v63  ;;  %4975 = vmatpush1.bf16.msra.mxu1 %v12601_v43  ;;  %v12630_v63 = vld [vmem:[#allocation268_spill] sm:$0xff]  ;;  %v12631_v43 = vld [vmem:[#allocation269_spill] sm:$0xff] }
 0x4fb   :  { %4812 = vmatprep.subr.bf16.mxu0 %v12124_v17  ;;  %4976 = vmatprep.subr.bf16.mxu1 %v12602_v3  ;;  %v12610_v17 = vld [vmem:[#allocation247_spill] sm:$0xff]  ;;  %v12632_v3 = vld [vmem:[#allocation270_spill] sm:$0xff] }
 0x4fe   :  { %4813 = vmatpush1.bf16.msra.mxu0 %v12603_v5  ;;  %4977 = vmatpush1.bf16.msra.mxu1 %v12604_v9  ;;  %v12633_v5 = vld [vmem:[#allocation271_spill] sm:$0xff]  ;;  %v12634_v9 = vld [vmem:[#allocation272_spill] sm:$0xff] }
 0x4ff   :  { %4814 = vmatprep.subr.bf16.mxu0 %v12605_v10  ;;  %4978 = vmatprep.subr.bf16.mxu1 %v12606_v37  ;;  %v12635_v10 = vld [vmem:[#allocation273_spill] sm:$0xff]  ;;  %v12636_v37 = vld [vmem:[#allocation274_spill] sm:$0xff] }
 0x502   :  { %4815 = vmatpush1.bf16.msra.mxu0 %v12607_v18  ;;  %4979 = vmatpush1.bf16.msra.mxu1 %v12608_v20  ;;  %v12637_v18 = vld [vmem:[#allocation275_spill] sm:$0xff]  ;;  %v12638_v20 = vld [vmem:[#allocation276_spill] sm:$0xff] }
 0x503   :  { %4989 = vmatprep.subr.bf16.mxu0 %v12609_v21  ;;  %5153 = vmatprep.subr.bf16.mxu1 %v12610_v17  ;;  %v12639_v21 = vld [vmem:[#allocation277_spill] sm:$0xff]  ;;  %v12640_v17 = vld [vmem:[#allocation278_spill] sm:$0xff] }
 0x505   :  { %4817 = vmatmul.mubr.bf16.vlgmr.msra.gmra.mrb[0].mxu0 %v10170_v14  ;;  %4981 = vmatmul.mubr.bf16.vlgmr.msra.gmra.mrb[0].mxu1 %v10170_v14 }
 0x506   :  { %4990 = vmatpush1.bf16.msra.mxu0 %v12611_v26  ;;  %5154 = vmatpush1.bf16.msra.mxu1 %v12612_v27  ;;  %v12641_v26 = vld [vmem:[#allocation279_spill] sm:$0xff]  ;;  %v12642_v27 = vld [vmem:[#allocation280_spill] sm:$0xff] }
 0x507   :  { %4991 = vmatprep.subr.bf16.mxu0 %v12613_v28  ;;  %5155 = vmatprep.subr.bf16.mxu1 %v12614_v58  ;;  %v12643_v28 = vld [vmem:[#allocation281_spill] sm:$0xff]  ;;  %v12644_v58 = vld [vmem:[#allocation282_spill] sm:$0xff] }
 0x508   :  { %5021 = vmatprep.mubr.bf16.mxu0 %v9851_v55  ;;  %5185 = vmatprep.mubr.bf16.mxu1 %v9851_v55  ;;  %v12625_v55 = vld [vmem:[#allocation263_spill] sm:$0xff] }
 0x50a   :  { %4992 = vmatpush1.bf16.msra.mxu0 %v12615_v29  ;;  %5156 = vmatpush1.bf16.msra.mxu1 %v12616_v38  ;;  %v12645_v29 = vld [vmem:[#allocation283_spill] sm:$0xff]  ;;  %v12646_v38 = vld [vmem:[#allocation284_spill] sm:$0xff] }
 0x50b   :  { %4993 = vmatprep.subr.bf16.mxu0 %v12617_v39  ;;  %5157 = vmatprep.subr.bf16.mxu1 %v12618_v40  ;;  %v12647_v39 = vld [vmem:[#allocation285_spill] sm:$0xff]  ;;  %v12648_v40 = vld [vmem:[#allocation286_spill] sm:$0xff] }
 0x50e   :  { %4994 = vmatpush1.bf16.msra.mxu0 %v12619_v47  ;;  %5158 = vmatpush1.bf16.msra.mxu1 %v12620_v48  ;;  %v12649_v47 = vld [vmem:[#allocation287_spill] sm:$0xff]  ;;  %v12650_v48 = vld [vmem:[#allocation288_spill] sm:$0xff] }
 0x50f   :  { %4995 = vmatprep.subr.bf16.mxu0 %v12621_v50  ;;  %5159 = vmatprep.subr.bf16.mxu1 %v12622_v56  ;;  %v12651_v50 = vld [vmem:[#allocation289_spill] sm:$0xff]  ;;  %v12652_v56 = vld [vmem:[#allocation290_spill] sm:$0xff] }
 0x512   :  { %4996 = vmatpush1.bf16.msra.mxu0 %v12623_v57  ;;  %5160 = vmatpush1.bf16.msra.mxu1 %v12624_v4  ;;  %v12653_v57 = vld [vmem:[#allocation291_spill] sm:$0xff]  ;;  %v12654_v4 = vld [vmem:[#allocation292_spill] sm:$0xff] }
 0x513   :  { %4997 = vmatprep.subr.bf16.mxu0 %v12625_v55  ;;  %5161 = vmatprep.subr.bf16.mxu1 %v12626_v12  ;;  %v12655_v55 = vld [vmem:[#allocation293_spill] sm:$0xff]  ;;  %v12656_v12 = vld [vmem:[#allocation294_spill] sm:$0xff] }
 0x516   :  { %4998 = vmatpush1.bf16.msra.mxu0 %v12627_v46  ;;  %5162 = vmatpush1.bf16.msra.mxu1 %v12628_v13  ;;  %v12657_v46 = vld [vmem:[#allocation295_spill] sm:$0xff]  ;;  %v12658_v13 = vld [vmem:[#allocation296_spill] sm:$0xff] }
 0x517   :  { %4999 = vmatprep.subr.bf16.mxu0 %v12629_v30  ;;  %5163 = vmatprep.subr.bf16.mxu1 %v12630_v63  ;;  %v12659_v30 = vld [vmem:[#allocation297_spill] sm:$0xff]  ;;  %v12660_v63 = vld [vmem:[#allocation299_spill] sm:$0xff] }
 0x51a   :  { %5000 = vmatpush1.bf16.msra.mxu0 %v12631_v43  ;;  %5164 = vmatpush1.bf16.msra.mxu1 %v12632_v3  ;;  %v12661_v43 = vld [vmem:[#allocation300_spill] sm:$0xff]  ;;  %v12662_v3 = vld [vmem:[#allocation301_spill] sm:$0xff] }
 0x51b   :  { %5001 = vmatprep.subr.bf16.mxu0 %v12633_v5  ;;  %5165 = vmatprep.subr.bf16.mxu1 %v12634_v9  ;;  %v12663_v5 = vld [vmem:[#allocation303_spill] sm:$0xff]  ;;  %v12664_v9 = vld [vmem:[#allocation306_spill] sm:$0xff] }
 0x51e   :  { %5002 = vmatpush1.bf16.msra.mxu0 %v12635_v10  ;;  %5166 = vmatpush1.bf16.msra.mxu1 %v12636_v37  ;;  %v12665_v10 = vld [vmem:[#allocation307_spill] sm:$0xff]  ;;  %v12666_v37 = vld [vmem:[#allocation308_spill] sm:$0xff] }
 0x51f   :  { %5003 = vmatprep.subr.bf16.mxu0 %v12637_v18  ;;  %5167 = vmatprep.subr.bf16.mxu1 %v12638_v20  ;;  %v12668_v18 = vld [vmem:[#allocation310_spill] sm:$0xff]  ;;  %v12669_v20 = vld [vmem:[#allocation311_spill] sm:$0xff] }
 0x522   :  { %5004 = vmatpush1.bf16.msra.mxu0 %v12639_v21  ;;  %5168 = vmatpush1.bf16.msra.mxu1 %v12640_v17  ;;  %v12670_v21 = vld [vmem:[#allocation312_spill] sm:$0xff] }
 0x523   :  { %5005 = vmatprep.subr.bf16.mxu0 %v12641_v26  ;;  %5169 = vmatprep.subr.bf16.mxu1 %v12642_v27  ;;  %v12674_v17 = vld [vmem:[#allocation316_spill] sm:$0xff]  ;;  %v12675_v26 = vld [vmem:[#allocation317_spill] sm:$0xff]  ;;  %v12676_v27 = vld [vmem:[#allocation318_spill] sm:$0xff] }
 0x526   :  { %5006 = vmatpush1.bf16.msra.mxu0 %v12643_v28  ;;  %5170 = vmatpush1.bf16.msra.mxu1 %v12644_v58  ;;  %v12677_v28 = vld [vmem:[#allocation319_spill] sm:$0xff]  ;;  %v12678_v58 = vld [vmem:[#allocation320_spill] sm:$0xff] }
 0x527   :  { %5007 = vmatprep.subr.bf16.mxu0 %v12645_v29  ;;  %5171 = vmatprep.subr.bf16.mxu1 %v12646_v38  ;;  %v12679_v29 = vld [vmem:[#allocation321_spill] sm:$0xff]  ;;  %v12681_v38 = vld [vmem:[#allocation323_spill] sm:$0xff] }
 0x52a   :  { %5008 = vmatpush1.bf16.msra.mxu0 %v12647_v39  ;;  %5172 = vmatpush1.bf16.msra.mxu1 %v12648_v40  ;;  %v12682_v39 = vld [vmem:[#allocation324_spill] sm:$0xff]  ;;  %v12683_v40 = vld [vmem:[#allocation325_spill] sm:$0xff] }
 0x52b   :  { %5009 = vmatprep.subr.bf16.mxu0 %v12649_v47  ;;  %5173 = vmatprep.subr.bf16.mxu1 %v12650_v48  ;;  %v12684_v47 = vld [vmem:[#allocation326_spill] sm:$0xff]  ;;  %v12686_v48 = vld [vmem:[#allocation328_spill] sm:$0xff] }
 0x52e   :  { %5010 = vmatpush1.bf16.msra.mxu0 %v12651_v50  ;;  %5174 = vmatpush1.bf16.msra.mxu1 %v12652_v56  ;;  %v12687_v50 = vld [vmem:[#allocation329_spill] sm:$0xff]  ;;  %v12688_v56 = vld [vmem:[#allocation330_spill] sm:$0xff] }
 0x52f   :  { %5011 = vmatprep.subr.bf16.mxu0 %v12653_v57  ;;  %5175 = vmatprep.subr.bf16.mxu1 %v12654_v4  ;;  %v12689_v57 = vld [vmem:[#allocation331_spill] sm:$0xff]  ;;  %v12690_v4 = vld [vmem:[#allocation332_spill] sm:$0xff] }
 0x532   :  { %5012 = vmatpush1.bf16.msra.mxu0 %v12655_v55  ;;  %5176 = vmatpush1.bf16.msra.mxu1 %v12656_v12  ;;  %v12691_v55 = vld [vmem:[#allocation333_spill] sm:$0xff]  ;;  %v12692_v12 = vld [vmem:[#allocation334_spill] sm:$0xff] }
 0x533   :  { %5013 = vmatprep.subr.bf16.mxu0 %v12657_v46  ;;  %5177 = vmatprep.subr.bf16.mxu1 %v12658_v13  ;;  %v12693_v46 = vld [vmem:[#allocation335_spill] sm:$0xff]  ;;  %v12694_v13 = vld [vmem:[#allocation336_spill] sm:$0xff] }
 0x536   :  { %5014 = vmatpush1.bf16.msra.mxu0 %v12659_v30  ;;  %5178 = vmatpush1.bf16.msra.mxu1 %v12183_v52  ;;  %v12667_v52 = vld [vmem:[#allocation309_spill] sm:$0xff] }
 0x537   :  { %5015 = vmatprep.subr.bf16.mxu0 %v12660_v63  ;;  %5179 = vmatprep.subr.bf16.mxu1 %v12661_v43  ;;  %v12695_v30 = vld [vmem:[#allocation337_spill] sm:$0xff]  ;;  %v12696_v63 = vld [vmem:[#allocation338_spill] sm:$0xff]  ;;  %v12697_v43 = vld [vmem:[#allocation339_spill] sm:$0xff] }
 0x53a   :  { %5016 = vmatpush1.bf16.msra.mxu0 %v12662_v3  ;;  %5180 = vmatpush1.bf16.msra.mxu1 %v12187_v59  ;;  %v12671_v59 = vld [vmem:[#allocation313_spill] sm:$0xff]  ;;  %v12698_v3 = vld [vmem:[#allocation340_spill] sm:$0xff] }
 0x53b   :  { %5017 = vmatprep.subr.bf16.mxu0 %v12663_v5  ;;  %5181 = vmatprep.subr.bf16.mxu1 %v12189_v6  ;;  %v12673_v6 = vld [vmem:[#allocation315_spill] sm:$0xff]  ;;  %v12699_v5 = vld [vmem:[#allocation341_spill] sm:$0xff] }
 0x53e   :  { %5018 = vmatpush1.bf16.msra.mxu0 %v12190_v45  ;;  %5182 = vmatpush1.bf16.msra.mxu1 %v12664_v9  ;;  %v12672_v45 = vld [vmem:[#allocation314_spill] sm:$0xff] }
 0x53f   :  { %5019 = vmatprep.subr.bf16.mxu0 %v12665_v10  ;;  %5183 = vmatprep.subr.bf16.mxu1 %v12666_v37  ;;  %v12700_v9 = vld [vmem:[#allocation342_spill] sm:$0xff]  ;;  %v12701_v10 = vld [vmem:[#allocation343_spill] sm:$0xff]  ;;  %v12702_v37 = vld [vmem:[#allocation344_spill] sm:$0xff] }
 0x542   :  { %5020 = vmatpush1.bf16.msra.mxu0 %v12667_v52  ;;  %5184 = vmatpush1.bf16.msra.mxu1 %v12668_v18  ;;  %v12703_v52 = vld [vmem:[#allocation345_spill] sm:$0xff]  ;;  %v12704_v18 = vld [vmem:[#allocation346_spill] sm:$0xff] }
 0x543   :  { %5030 = vmatprep.subr.bf16.mxu0 %v12669_v20  ;;  %5194 = vmatprep.subr.bf16.mxu1 %v12670_v21  ;;  %v12705_v20 = vld [vmem:[#allocation347_spill] sm:$0xff]  ;;  %v12706_v21 = vld [vmem:[#allocation348_spill] sm:$0xff] }
 0x545   :  { %5022 = vmatmul.mubr.bf16.vlgmr.msra.gmra.mrb[4].mxu0 %v9926_v8  ;;  %5186 = vmatmul.mubr.bf16.vlgmr.msra.gmra.mrb[4].mxu1 %v9926_v8  ;;  %v12680_v8 = vld [vmem:[#allocation322_spill] sm:$0xff] }
 0x546   :  { %5031 = vmatpush1.bf16.msra.mxu0 %v12671_v59  ;;  %5195 = vmatpush1.bf16.msra.mxu1 %v12672_v45  ;;  %v12707_v59 = vld [vmem:[#allocation349_spill] sm:$0xff]  ;;  %v12708_v45 = vld [vmem:[#allocation350_spill] sm:$0xff] }
 0x547   :  { %5032 = vmatprep.subr.bf16.mxu0 %v12673_v6  ;;  %5196 = vmatprep.subr.bf16.mxu1 %v12674_v17  ;;  %v12709_v6 = vld [vmem:[#allocation351_spill] sm:$0xff]  ;;  %v12710_v17 = vld [vmem:[#allocation352_spill] sm:$0xff] }
 0x548   :  { %5062 = vmatprep.mubr.bf16.mxu0 %v9932_v19  ;;  %5226 = vmatprep.mubr.bf16.mxu1 %v9932_v19  ;;  %v12685_v19 = vld [vmem:[#allocation327_spill] sm:$0xff] }
 0x54a   :  { %5033 = vmatpush1.bf16.msra.mxu0 %v12675_v26  ;;  %5197 = vmatpush1.bf16.msra.mxu1 %v12676_v27  ;;  %v12711_v26 = vld [vmem:[#allocation353_spill] sm:$0xff]  ;;  %v12712_v27 = vld [vmem:[#allocation354_spill] sm:$0xff] }
 0x54b   :  { %5034 = vmatprep.subr.bf16.mxu0 %v12677_v28  ;;  %5198 = vmatprep.subr.bf16.mxu1 %v12678_v58  ;;  %v12713_v28 = vld [vmem:[#allocation355_spill] sm:$0xff]  ;;  %v12714_v58 = vld [vmem:[#allocation356_spill] sm:$0xff] }
 0x54e   :  { %5035 = vmatpush1.bf16.msra.mxu0 %v12679_v29  ;;  %5199 = vmatpush1.bf16.msra.mxu1 %v12680_v8  ;;  %v12715_v29 = vld [vmem:[#allocation357_spill] sm:$0xff]  ;;  %v12716_v8 = vld [vmem:[#allocation358_spill] sm:$0xff] }
 0x54f   :  { %5036 = vmatprep.subr.bf16.mxu0 %v12681_v38  ;;  %5200 = vmatprep.subr.bf16.mxu1 %v12682_v39  ;;  %v12717_v38 = vld [vmem:[#allocation359_spill] sm:$0xff]  ;;  %v12718_v39 = vld [vmem:[#allocation360_spill] sm:$0xff] }
 0x552   :  { %5037 = vmatpush1.bf16.msra.mxu0 %v12683_v40  ;;  %5201 = vmatpush1.bf16.msra.mxu1 %v12684_v47  ;;  %v12719_v40 = vld [vmem:[#allocation361_spill] sm:$0xff]  ;;  %v12720_v47 = vld [vmem:[#allocation363_spill] sm:$0xff] }
 0x553   :  { %5038 = vmatprep.subr.bf16.mxu0 %v12685_v19  ;;  %5202 = vmatprep.subr.bf16.mxu1 %v12686_v48  ;;  %v12721_v19 = vld [vmem:[#allocation364_spill] sm:$0xff]  ;;  %v12722_v48 = vld [vmem:[#allocation365_spill] sm:$0xff] }
 0x556   :  { %5039 = vmatpush1.bf16.msra.mxu0 %v12687_v50  ;;  %5203 = vmatpush1.bf16.msra.mxu1 %v12688_v56  ;;  %v12723_v50 = vld [vmem:[#allocation367_spill] sm:$0xff]  ;;  %v12724_v56 = vld [vmem:[#allocation368_spill] sm:$0xff] }
 0x557   :  { %5040 = vmatprep.subr.bf16.mxu0 %v12689_v57  ;;  %5204 = vmatprep.subr.bf16.mxu1 %v12690_v4  ;;  %v12725_v57 = vld [vmem:[#allocation369_spill] sm:$0xff]  ;;  %v12726_v4 = vld [vmem:[#allocation370_spill] sm:$0xff] }
 0x55a   :  { %5041 = vmatpush1.bf16.msra.mxu0 %v12691_v55  ;;  %5205 = vmatpush1.bf16.msra.mxu1 %v12692_v12  ;;  %v12727_v55 = vld [vmem:[#allocation371_spill] sm:$0xff]  ;;  %v12728_v12 = vld [vmem:[#allocation372_spill] sm:$0xff] }
 0x55b   :  { %5042 = vmatprep.subr.bf16.mxu0 %v12693_v46  ;;  %5206 = vmatprep.subr.bf16.mxu1 %v12694_v13  ;;  %v12730_v46 = vld [vmem:[#allocation374_spill] sm:$0xff]  ;;  %v12731_v13 = vld [vmem:[#allocation375_spill] sm:$0xff] }
 0x55e   :  { %5043 = vmatpush1.bf16.msra.mxu0 %v12695_v30  ;;  %5207 = vmatpush1.bf16.msra.mxu1 %v12696_v63  ;;  %v12732_v30 = vld [vmem:[#allocation376_spill] sm:$0xff]  ;;  %v12734_v63 = vld [vmem:[#allocation378_spill] sm:$0xff] }
 0x55f   :  { %5044 = vmatprep.subr.bf16.mxu0 %v12697_v43  ;;  %5208 = vmatprep.subr.bf16.mxu1 %v12698_v3  ;;  %v12735_v43 = vld [vmem:[#allocation379_spill] sm:$0xff]  ;;  %v12736_v3 = vld [vmem:[#allocation380_spill] sm:$0xff] }
 0x562   :  { %5045 = vmatpush1.bf16.msra.mxu0 %v12699_v5  ;;  %5209 = vmatpush1.bf16.msra.mxu1 %v12700_v9  ;;  %v12737_v5 = vld [vmem:[#allocation381_spill] sm:$0xff]  ;;  %v12738_v9 = vld [vmem:[#allocation382_spill] sm:$0xff] }
 0x563   :  { %5046 = vmatprep.subr.bf16.mxu0 %v12701_v10  ;;  %5210 = vmatprep.subr.bf16.mxu1 %v12702_v37  ;;  %v12739_v10 = vld [vmem:[#allocation383_spill] sm:$0xff]  ;;  %v12740_v37 = vld [vmem:[#allocation384_spill] sm:$0xff] }
 0x566   :  { %5047 = vmatpush1.bf16.msra.mxu0 %v12703_v52  ;;  %5211 = vmatpush1.bf16.msra.mxu1 %v12704_v18  ;;  %v12741_v52 = vld [vmem:[#allocation385_spill] sm:$0xff]  ;;  %v12743_v18 = vld [vmem:[#allocation387_spill] sm:$0xff] }
 0x567   :  { %5048 = vmatprep.subr.bf16.mxu0 %v12705_v20  ;;  %5212 = vmatprep.subr.bf16.mxu1 %v12706_v21  ;;  %v12744_v20 = vld [vmem:[#allocation388_spill] sm:$0xff]  ;;  %v12745_v21 = vld [vmem:[#allocation389_spill] sm:$0xff] }
 0x56a   :  { %5049 = vmatpush1.bf16.msra.mxu0 %v12707_v59  ;;  %5213 = vmatpush1.bf16.msra.mxu1 %v12708_v45  ;;  %v12746_v59 = vld [vmem:[#allocation390_spill] sm:$0xff]  ;;  %v12748_v45 = vld [vmem:[#allocation392_spill] sm:$0xff] }
 0x56b   :  { %5050 = vmatprep.subr.bf16.mxu0 %v12709_v6  ;;  %5214 = vmatprep.subr.bf16.mxu1 %v12710_v17  ;;  %v12749_v6 = vld [vmem:[#allocation393_spill] sm:$0xff]  ;;  %v12750_v17 = vld [vmem:[#allocation394_spill] sm:$0xff] }
 0x56e   :  { %5051 = vmatpush1.bf16.msra.mxu0 %v12711_v26  ;;  %5215 = vmatpush1.bf16.msra.mxu1 %v12712_v27  ;;  %v12751_v26 = vld [vmem:[#allocation395_spill] sm:$0xff]  ;;  %v12752_v27 = vld [vmem:[#allocation396_spill] sm:$0xff] }
 0x56f   :  { %5052 = vmatprep.subr.bf16.mxu0 %v12713_v28  ;;  %5216 = vmatprep.subr.bf16.mxu1 %v12714_v58  ;;  %v12753_v28 = vld [vmem:[#allocation397_spill] sm:$0xff]  ;;  %v12754_v58 = vld [vmem:[#allocation398_spill] sm:$0xff] }
 0x572   :  { %5053 = vmatpush1.bf16.msra.mxu0 %v12715_v29  ;;  %5217 = vmatpush1.bf16.msra.mxu1 %v12716_v8  ;;  %v12755_v29 = vld [vmem:[#allocation399_spill] sm:$0xff]  ;;  %v12756_v8 = vld [vmem:[#allocation400_spill] sm:$0xff] }
 0x573   :  { %5054 = vmatprep.subr.bf16.mxu0 %v12717_v38  ;;  %5218 = vmatprep.subr.bf16.mxu1 %v12718_v39  ;;  %v12757_v38 = vld [vmem:[#allocation401_spill] sm:$0xff]  ;;  %v12758_v39 = vld [vmem:[#allocation402_spill] sm:$0xff] }
 0x576   :  { %5055 = vmatpush1.bf16.msra.mxu0 %v12719_v40  ;;  %5219 = vmatpush1.bf16.msra.mxu1 %v12245_v36  ;;  %v12729_v36 = vld [vmem:[#allocation373_spill] sm:$0xff]  ;;  %v12759_v40 = vld [vmem:[#allocation403_spill] sm:$0xff] }
 0x577   :  { %5056 = vmatprep.subr.bf16.mxu0 %v12720_v47  ;;  %5220 = vmatprep.subr.bf16.mxu1 %v12721_v19  ;;  %v12760_v47 = vld [vmem:[#allocation404_spill] sm:$0xff]  ;;  %v12761_v19 = vld [vmem:[#allocation405_spill] sm:$0xff] }
 0x57a   :  { %5057 = vmatpush1.bf16.msra.mxu0 %v12722_v48  ;;  %5221 = vmatpush1.bf16.msra.mxu1 %v12249_v42  ;;  %v12733_v42 = vld [vmem:[#allocation377_spill] sm:$0xff]  ;;  %v12762_v48 = vld [vmem:[#allocation406_spill] sm:$0xff] }
 0x57b   :  { %5058 = vmatprep.subr.bf16.mxu0 %v12723_v50  ;;  %5222 = vmatprep.subr.bf16.mxu1 %v12724_v56  ;;  %v12763_v50 = vld [vmem:[#allocation407_spill] sm:$0xff]  ;;  %v12764_v56 = vld [vmem:[#allocation408_spill] sm:$0xff] }
 0x57e   :  { %5059 = vmatpush1.bf16.msra.mxu0 %v12725_v57  ;;  %5223 = vmatpush1.bf16.msra.mxu1 %v12726_v4  ;;  %v12765_v57 = vld [vmem:[#allocation409_spill] sm:$0xff]  ;;  %v12766_v4 = vld [vmem:[#allocation410_spill] sm:$0xff] }
 0x57f   :  { %5060 = vmatprep.subr.bf16.mxu0 %v12727_v55  ;;  %5224 = vmatprep.subr.bf16.mxu1 %v12728_v12  ;;  %v12767_v55 = vld [vmem:[#allocation411_spill] sm:$0xff]  ;;  %v12768_v12 = vld [vmem:[#allocation412_spill] sm:$0xff] }
 0x582   :  { %5061 = vmatpush1.bf16.msra.mxu0 %v12729_v36  ;;  %5225 = vmatpush1.bf16.msra.mxu1 %v12730_v46  ;;  %v12769_v36 = vld [vmem:[#allocation413_spill] sm:$0xff]  ;;  %v12770_v46 = vld [vmem:[#allocation414_spill] sm:$0xff] }
 0x583   :  { %5071 = vmatprep.subr.bf16.mxu0 %v12731_v13  ;;  %5235 = vmatprep.subr.bf16.mxu1 %v12732_v30  ;;  %v12771_v13 = vld [vmem:[#allocation415_spill] sm:$0xff]  ;;  %v12772_v30 = vld [vmem:[#allocation416_spill] sm:$0xff] }
 0x585   :  { %5063 = vmatmul.mubr.bf16.vlgmr.msra.gmra.mrb[4].mxu0 %v10015_v49  ;;  %5227 = vmatmul.mubr.bf16.vlgmr.msra.gmra.mrb[4].mxu1 %v10015_v49  ;;  %v12742_v49 = vld [vmem:[#allocation386_spill] sm:$0xff] }
 0x586   :  { %5072 = vmatpush1.bf16.msra.mxu0 %v12733_v42  ;;  %5236 = vmatpush1.bf16.msra.mxu1 %v12734_v63  ;;  %v12773_v42 = vld [vmem:[#allocation417_spill] sm:$0xff]  ;;  %v12774_v63 = vld [vmem:[#allocation418_spill] sm:$0xff] }
 0x587   :  { %5073 = vmatprep.subr.bf16.mxu0 %v12735_v43  ;;  %5237 = vmatprep.subr.bf16.mxu1 %v12736_v3  ;;  %v12775_v43 = vld [vmem:[#allocation419_spill] sm:$0xff]  ;;  %v12776_v3 = vld [vmem:[#allocation420_spill] sm:$0xff] }
 0x588   :  { %5103 = vmatprep.mubr.bf16.mxu0 %v10021_v61  ;;  %5267 = vmatprep.mubr.bf16.mxu1 %v10021_v61  ;;  %v12747_v61 = vld [vmem:[#allocation391_spill] sm:$0xff] }
 0x58a   :  { %5074 = vmatpush1.bf16.msra.mxu0 %v12737_v5  ;;  %5238 = vmatpush1.bf16.msra.mxu1 %v12738_v9  ;;  %v12777_v5 = vld [vmem:[#allocation421_spill] sm:$0xff]  ;;  %v12778_v9 = vld [vmem:[#allocation422_spill] sm:$0xff] }
 0x58b   :  { %5075 = vmatprep.subr.bf16.mxu0 %v12739_v10  ;;  %5239 = vmatprep.subr.bf16.mxu1 %v12740_v37  ;;  %v12779_v10 = vld [vmem:[#allocation423_spill] sm:$0xff]  ;;  %v12780_v37 = vld [vmem:[#allocation424_spill] sm:$0xff] }
 0x58e   :  { %5076 = vmatpush1.bf16.msra.mxu0 %v12741_v52  ;;  %5240 = vmatpush1.bf16.msra.mxu1 %v12742_v49  ;;  %v12781_v52 = vld [vmem:[#allocation425_spill] sm:$0xff]  ;;  %v12782_v49 = vld [vmem:[#allocation426_spill] sm:$0xff] }
 0x58f   :  { %5077 = vmatprep.subr.bf16.mxu0 %v12743_v18  ;;  %5241 = vmatprep.subr.bf16.mxu1 %v12744_v20  ;;  %v12783_v18 = vld [vmem:[#allocation427_spill] sm:$0xff]  ;;  %v12784_v20 = vld [vmem:[#allocation428_spill] sm:$0xff] }
 0x592   :  { %5078 = vmatpush1.bf16.msra.mxu0 %v12745_v21  ;;  %5242 = vmatpush1.bf16.msra.mxu1 %v12746_v59  ;;  %v12785_v21 = vld [vmem:[#allocation429_spill] sm:$0xff]  ;;  %v12786_v59 = vld [vmem:[#allocation430_spill] sm:$0xff] }
 0x593   :  { %5079 = vmatprep.subr.bf16.mxu0 %v12747_v61  ;;  %5243 = vmatprep.subr.bf16.mxu1 %v12748_v45  ;;  %v12787_v61 = vld [vmem:[#allocation431_spill] sm:$0xff]  ;;  %v12788_v45 = vld [vmem:[#allocation432_spill] sm:$0xff] }
 0x596   :  { %5080 = vmatpush1.bf16.msra.mxu0 %v12749_v6  ;;  %5244 = vmatpush1.bf16.msra.mxu1 %v12750_v17  ;;  %v12789_v6 = vld [vmem:[#allocation433_spill] sm:$0xff]  ;;  %v12790_v17 = vld [vmem:[#allocation434_spill] sm:$0xff] }
 0x597   :  { %5081 = vmatprep.subr.bf16.mxu0 %v12751_v26  ;;  %5245 = vmatprep.subr.bf16.mxu1 %v12752_v27  ;;  %v12791_v26 = vld [vmem:[#allocation435_spill] sm:$0xff]  ;;  %v12792_v27 = vld [vmem:[#allocation436_spill] sm:$0xff] }
 0x59a   :  { %5082 = vmatpush1.bf16.msra.mxu0 %v12753_v28  ;;  %5246 = vmatpush1.bf16.msra.mxu1 %v12754_v58  ;;  %v12793_v28 = vld [vmem:[#allocation437_spill] sm:$0xff]  ;;  %v12794_v58 = vld [vmem:[#allocation438_spill] sm:$0xff] }
 0x59b   :  { %5083 = vmatprep.subr.bf16.mxu0 %v12755_v29  ;;  %5247 = vmatprep.subr.bf16.mxu1 %v12756_v8  ;;  %v12795_v29 = vld [vmem:[#allocation439_spill] sm:$0xff]  ;;  %v12796_v8 = vld [vmem:[#allocation440_spill] sm:$0xff] }
 0x59e   :  { %5084 = vmatpush1.bf16.msra.mxu0 %v12757_v38  ;;  %5248 = vmatpush1.bf16.msra.mxu1 %v12758_v39  ;;  %v12797_v38 = vld [vmem:[#allocation441_spill] sm:$0xff]  ;;  %v12798_v39 = vld [vmem:[#allocation442_spill] sm:$0xff] }
 0x59f   :  { %5085 = vmatprep.subr.bf16.mxu0 %v12759_v40  ;;  %5249 = vmatprep.subr.bf16.mxu1 %v12760_v47  ;;  %v12799_v40 = vld [vmem:[#allocation443_spill] sm:$0xff]  ;;  %v12800_v47 = vld [vmem:[#allocation444_spill] sm:$0xff] }
 0x5a2   :  { %5086 = vmatpush1.bf16.msra.mxu0 %v12761_v19  ;;  %5250 = vmatpush1.bf16.msra.mxu1 %v12762_v48  ;;  %v12801_v19 = vld [vmem:[#allocation445_spill] sm:$0xff]  ;;  %v12802_v48 = vld [vmem:[#allocation446_spill] sm:$0xff] }
 0x5a3   :  { %5087 = vmatprep.subr.bf16.mxu0 %v12763_v50  ;;  %5251 = vmatprep.subr.bf16.mxu1 %v12764_v56  ;;  %v12803_v50 = vld [vmem:[#allocation447_spill] sm:$0xff]  ;;  %v12804_v56 = vld [vmem:[#allocation448_spill] sm:$0xff] }
 0x5a6   :  { %5088 = vmatpush1.bf16.msra.mxu0 %v12765_v57  ;;  %5252 = vmatpush1.bf16.msra.mxu1 %v12766_v4  ;;  %v12805_v57 = vld [vmem:[#allocation449_spill] sm:$0xff]  ;;  %v12807_v4 = vld [vmem:[#allocation451_spill] sm:$0xff] }
 0x5a7   :  { %5089 = vmatprep.subr.bf16.mxu0 %v12767_v55  ;;  %5253 = vmatprep.subr.bf16.mxu1 %v12768_v12  ;;  %v12808_v55 = vld [vmem:[#allocation452_spill] sm:$0xff]  ;;  %v12809_v12 = vld [vmem:[#allocation453_spill] sm:$0xff] }
 0x5aa   :  { %5090 = vmatpush1.bf16.msra.mxu0 %v12769_v36  ;;  %5254 = vmatpush1.bf16.msra.mxu1 %v12770_v46  ;;  %v12810_v36 = vld [vmem:[#allocation454_spill] sm:$0xff]  ;;  %v12812_v46 = vld [vmem:[#allocation456_spill] sm:$0xff] }
 0x5ab   :  { %5091 = vmatprep.subr.bf16.mxu0 %v12771_v13  ;;  %5255 = vmatprep.subr.bf16.mxu1 %v12772_v30  ;;  %v12813_v13 = vld [vmem:[#allocation457_spill] sm:$0xff]  ;;  %v12814_v30 = vld [vmem:[#allocation458_spill] sm:$0xff] }
 0x5ae   :  { %5092 = vmatpush1.bf16.msra.mxu0 %v12773_v42  ;;  %5256 = vmatpush1.bf16.msra.mxu1 %v12774_v63  ;;  %v12815_v42 = vld [vmem:[#allocation459_spill] sm:$0xff] }
 0x5af   :  { %5093 = vmatprep.subr.bf16.mxu0 %v12775_v43  ;;  %5257 = vmatprep.subr.bf16.mxu1 %v12776_v3  ;;  %v12816_v43 = vld [vmem:[#allocation460_spill] sm:$0xff] }
 0x5b2   :  { %5094 = vmatpush1.bf16.msra.mxu0 %v12777_v5  ;;  %5258 = vmatpush1.bf16.msra.mxu1 %v12778_v9 }
 0x5b3   :  { %5095 = vmatprep.subr.bf16.mxu0 %v12779_v10  ;;  %5259 = vmatprep.subr.bf16.mxu1 %v12780_v37 }
 0x5b6   :  { %5096 = vmatpush1.bf16.msra.mxu0 %v12781_v52  ;;  %5260 = vmatpush1.bf16.msra.mxu1 %v12782_v49  ;;  %v12817_v52 = vld [vmem:[#allocation461_spill] sm:$0xff] }
 0x5b7   :  { %5097 = vmatprep.subr.bf16.mxu0 %v12783_v18  ;;  %5261 = vmatprep.subr.bf16.mxu1 %v12784_v20  ;;  %v12818_v20 = vld [vmem:[#allocation462_spill] sm:$0xff] }
 0x5ba   :  { %5098 = vmatpush1.bf16.msra.mxu0 %v12785_v21  ;;  %5262 = vmatpush1.bf16.msra.mxu1 %v12786_v59  ;;  %v12819_v59 = vld [vmem:[#allocation463_spill] sm:$0xff] }
 0x5bb   :  { %5099 = vmatprep.subr.bf16.mxu0 %v12787_v61  ;;  %5263 = vmatprep.subr.bf16.mxu1 %v12788_v45 }
 0x5be   :  { %5100 = vmatpush1.bf16.msra.mxu0 %v12789_v6  ;;  %5264 = vmatpush1.bf16.msra.mxu1 %v12790_v17  ;;  %v12820_v6 = vld [vmem:[#allocation464_spill] sm:$0xff] }
 0x5bf   :  { %5101 = vmatprep.subr.bf16.mxu0 %v12791_v26  ;;  %5265 = vmatprep.subr.bf16.mxu1 %v12792_v27  ;;  %v12821_v26 = vld [vmem:[#allocation465_spill] sm:$0xff] }
 0x5c2   :  { %5102 = vmatpush1.bf16.msra.mxu0 %v12793_v28  ;;  %5266 = vmatpush1.bf16.msra.mxu1 %v12794_v58  ;;  %v12822_v28 = vld [vmem:[#allocation466_spill] sm:$0xff]  ;;  %v12823_v58 = vld [vmem:[#allocation467_spill] sm:$0xff] }
 0x5c3   :  { %5112 = vmatprep.subr.bf16.mxu0 %v12795_v29  ;;  %5276 = vmatprep.subr.bf16.mxu1 %v12796_v8  ;;  %v12824_v29 = vld [vmem:[#allocation468_spill] sm:$0xff]  ;;  %v12825_v8 = vld [vmem:[#allocation469_spill] sm:$0xff] }
 0x5c5   :  { %5104 = vmatmul.mubr.bf16.vlgmr.msra.gmra.mrb[4].mxu0 %v10096_v32  ;;  %5268 = vmatmul.mubr.bf16.vlgmr.msra.gmra.mrb[4].mxu1 %v10096_v32  ;;  %v12806_v32 = vld [vmem:[#allocation450_spill] sm:$0xff] }
 0x5c6   :  { %5113 = vmatpush1.bf16.msra.mxu0 %v12797_v38  ;;  %5277 = vmatpush1.bf16.msra.mxu1 %v12798_v39  ;;  %v12826_v38 = vld [vmem:[#allocation470_spill] sm:$0xff]  ;;  %v12827_v39 = vld [vmem:[#allocation471_spill] sm:$0xff] }
 0x5c7   :  { %5114 = vmatprep.subr.bf16.mxu0 %v12799_v40  ;;  %5278 = vmatprep.subr.bf16.mxu1 %v12800_v47  ;;  %v12828_v40 = vld [vmem:[#allocation472_spill] sm:$0xff]  ;;  %v12829_v47 = vld [vmem:[#allocation473_spill] sm:$0xff] }
 0x5c8   :  { %5144 = vmatprep.mubr.bf16.mxu0 %v10102_v1  ;;  %5308 = vmatprep.mubr.bf16.mxu1 %v10102_v1  ;;  %v12811_v1 = vld [vmem:[#allocation455_spill] sm:$0xff] }
 0x5ca   :  { %5115 = vmatpush1.bf16.msra.mxu0 %v12801_v19  ;;  %5279 = vmatpush1.bf16.msra.mxu1 %v12802_v48  ;;  %v12830_v19 = vld [vmem:[#allocation474_spill] sm:$0xff]  ;;  %v12831_v48 = vld [vmem:[#allocation475_spill] sm:$0xff] }
 0x5cb   :  { %5116 = vmatprep.subr.bf16.mxu0 %v12803_v50  ;;  %5280 = vmatprep.subr.bf16.mxu1 %v12804_v56  ;;  %v12832_v50 = vld [vmem:[#allocation476_spill] sm:$0xff]  ;;  %v12833_v56 = vld [vmem:[#allocation477_spill] sm:$0xff] }
 0x5ce   :  { %5117 = vmatpush1.bf16.msra.mxu0 %v12805_v57  ;;  %5281 = vmatpush1.bf16.msra.mxu1 %v12806_v32  ;;  %v12834_v57 = vld [vmem:[#allocation478_spill] sm:$0xff]  ;;  %v12835_v32 = vld [vmem:[#allocation479_spill] sm:$0xff] }
 0x5cf   :  { %5118 = vmatprep.subr.bf16.mxu0 %v12807_v4  ;;  %5282 = vmatprep.subr.bf16.mxu1 %v12808_v55  ;;  %v12836_v4 = vld [vmem:[#allocation482_spill] sm:$0xff]  ;;  %v12837_v55 = vld [vmem:[#allocation483_spill] sm:$0xff] }
 0x5d2   :  { %5119 = vmatpush1.bf16.msra.mxu0 %v12809_v12  ;;  %5283 = vmatpush1.bf16.msra.mxu1 %v12810_v36  ;;  %v12838_v12 = vld [vmem:[#allocation484_spill] sm:$0xff] }
 0x5d3   :  { %5120 = vmatprep.subr.bf16.mxu0 %v12811_v1  ;;  %5284 = vmatprep.subr.bf16.mxu1 %v12812_v46 }
 0x5d6   :  { %5121 = vmatpush1.bf16.msra.mxu0 %v12813_v13  ;;  %5285 = vmatpush1.bf16.msra.mxu1 %v12814_v30 }
 0x5d7   :  { %5122 = vmatprep.subr.bf16.mxu0 %v12815_v42  ;;  %5286 = vmatprep.subr.bf16.mxu1 %v12816_v43 }
 0x5d8   :  { %v4818_v63 = vpop.f32.mrb[0].mxu0  ;;  %v4982_v3 = vpop.f32.mrb[0].mxu1 }
 0x5d9   :  { %v4820_v5 = vpop.f32.mrb[1].mxu0  ;;  %v4984_v10 = vpop.f32.mrb[1].mxu1 }
 0x5da   :  { %v5333_v9 = vcombine.low %v4818_v63, %v4820_v5  ;;  %v4822_v37 = vpop.f32.mrb[2].mxu0  ;;  %5123 = vmatpush1.bf16.msra.mxu0 %v12817_v52  ;;  %v5334_v49 = vcombine.low %v4982_v3, %v4984_v10  ;;  %v4986_v18 = vpop.f32.mrb[2].mxu1  ;;  %5287 = vmatpush1.bf16.msra.mxu1 %v12818_v20 }
 0x5db   :  { %v4823_v21 = vpop.f32.mrb[3].mxu0  ;;  %5124 = vmatprep.subr.bf16.mxu0 %v12819_v59  ;;  %v4987_v45 = vpop.f32.mrb[3].mxu1  ;;  %5288 = vmatprep.subr.bf16.mxu1 %v12820_v6 }
 0x5dc   :  { %v5341_v61 = vrot.slane %v5333_v9, %v12368_v51  ;;  %v5348_v17 = vrot.slane %v5334_v49, %v12368_v51 }
 0x5de   :  { %5125 = vmatpush1.bf16.msra.mxu0 %v12821_v26  ;;  %v5349_v27 = vcombine.low %v5341_v61, %v5348_v17  ;;  %5289 = vmatpush1.bf16.msra.mxu1 %v12822_v28 }
 0x5df   :  { %5126 = vmatprep.subr.bf16.mxu0 %v12823_v58  ;;  %5290 = vmatprep.subr.bf16.mxu1 %v12824_v29 }
 0x5e0   :  { %5369 = vst [vmem:[%s10460_s2] sm:$0xff] %v5349_v27 }
 0x5e2   :  { %5127 = vmatpush1.bf16.msra.mxu0 %v12825_v8  ;;  %5291 = vmatpush1.bf16.msra.mxu1 %v12826_v38 }
 0x5e3   :  { %5128 = vmatprep.subr.bf16.mxu0 %v12827_v39  ;;  %5292 = vmatprep.subr.bf16.mxu1 %v12828_v40 }
 0x5e6   :  { %5129 = vmatpush1.bf16.msra.mxu0 %v12829_v47  ;;  %5293 = vmatpush1.bf16.msra.mxu1 %v12830_v19 }
 0x5e7   :  { %5130 = vmatprep.subr.bf16.mxu0 %v12831_v48  ;;  %5294 = vmatprep.subr.bf16.mxu1 %v12832_v50 }
 0x5ea   :  { %5131 = vmatpush1.bf16.msra.mxu0 %v12833_v56  ;;  %5295 = vmatpush1.bf16.msra.mxu1 %v12834_v57 }
 0x5eb   :  { %5132 = vmatprep.subr.bf16.mxu0 %v12835_v32  ;;  %5296 = vmatprep.subr.bf16.mxu1 %v12363_v62 }
 0x5ee   :  { %5133 = vmatpush1.bf16.msra.mxu0 %v12364_v23  ;;  %5297 = vmatpush1.bf16.msra.mxu1 %v12836_v4 }
 0x5ef   :  { %5134 = vmatprep.subr.bf16.mxu0 %v12837_v55  ;;  %5298 = vmatprep.subr.bf16.mxu1 %v12838_v12 }
 0x5f2   :  { %5135 = vmatpush1.bf16.msra.mxu0 %v12369_v31  ;;  %5299 = vmatpush1.bf16.msra.mxu1 %v12370_v33 }
 0x5f3   :  { %5136 = vmatprep.subr.bf16.mxu0 %v12371_v16  ;;  %5300 = vmatprep.subr.bf16.mxu1 %v12372_v15 }
 0x5f6   :  { %5137 = vmatpush1.bf16.msra.mxu0 %v12373_v7  ;;  %5301 = vmatpush1.bf16.msra.mxu1 %v12374_v11 }
 0x5f7   :  { %5138 = vmatprep.subr.bf16.mxu0 %v12375_v41  ;;  %5302 = vmatprep.subr.bf16.mxu1 %v12376_v22 }
 0x5fa   :  { %5139 = vmatpush1.bf16.msra.mxu0 %v9245_v54  ;;  %5303 = vmatpush1.bf16.msra.mxu1 %v9249_v24 }
 0x5fb   :  { %5140 = vmatprep.subr.bf16.mxu0 %v9251_v34  ;;  %5304 = vmatprep.subr.bf16.mxu1 %v9254_v2 }
 0x5fe   :  { %5141 = vmatpush1.bf16.msra.mxu0 %v9269_v53  ;;  %5305 = vmatpush1.bf16.msra.mxu1 %v9273_v44 }
 0x5ff   :  { %5142 = vmatprep.subr.bf16.mxu0 %v9275_v0  ;;  %5306 = vmatprep.subr.bf16.mxu1 %v9278_v35 }
 0x602   :  { %5143 = vmatpush1.bf16.msra.mxu0 %v9281_v60  ;;  %5307 = vmatpush1.bf16.msra.mxu1 %v9285_v25 }
 0x605   :  { %5145 = vmatmul.mubr.bf16.vlgmr.msra.gmra.mrb[4].mxu0 %v10170_v14  ;;  %5309 = vmatmul.mubr.bf16.vlgmr.msra.gmra.mrb[4].mxu1 %v10170_v14 }
 0x6d8   :  { %v5146_v62 = vpop.f32.mrb[4].mxu0  ;;  %v5310_v34 = vpop.f32.mrb[4].mxu1 }
 0x6d9   :  { %v5148_v24 = vpop.f32.mrb[5].mxu0  ;;  %v5312_v33 = vpop.f32.mrb[5].mxu1 }
 0x6da   :  { %v5350_v2 = vcombine.low %v5146_v62, %v5148_v24  ;;  %v5150_v54 = vpop.f32.mrb[6].mxu0  ;;  %v5351_v53 = vcombine.low %v5310_v34, %v5312_v33  ;;  %v5314_v44 = vpop.f32.mrb[6].mxu1 }
 0x6db   :  { %v5151_v31 = vpop.f32.mrb[7].mxu0  ;;  %v5315_v35 = vpop.f32.mrb[7].mxu1 }
 0x6dc   :  { %v5358_v0 = vrot.slane %v5350_v2, %v12368_v51  ;;  %v5365_v60 = vrot.slane %v5351_v53, %v12368_v51 }
 0x6de   :  { %v5366_v23 = vcombine.low %v5358_v0, %v5365_v60 }
 0x6e0   :  { %5370 = vst [vmem:[%s10460_s2 + $0x8] sm:$0xff] %v5366_v23 }

</bundles_post_ra>
